<compile_context>
chip_gen: v7x
topology: tpu7x:2x2x1
jax: 0.10.0
libtpu: 0.0.40
codegen_flags: <defaults>
</compile_context>

<pallas_src>
import functools
import math

import jax
import jax.numpy as jnp
import numpy as np
from jax.experimental import pallas as pl
from jax.experimental.pallas import tpu as pltpu

EPS = 1e-5
LEAKY_SLOPE = 0.01                       # nn.LeakyReLU() default

_VMEM_LIMIT = 48 * 1024 * 1024           # raised scoped-VMEM limit (fits all gens)
_CONV_TILE_BUDGET = 6 * 1024 * 1024      # per-step output+acc budget for conv tiles
_EW_TILE_BUDGET = 8 * 1024 * 1024        # budget for elementwise kernels' row tiles


# ------------------------------------------------------------------ kernels
def _conv_bias_act_kernel(x_ref, w_ref, b_ref, o_ref, s_ref, q_ref, acc_ref,
                          *, kh, dh, th, gh):
    """One (image, row-tile): y = LeakyReLU(sum_ki win[ki*dh:ki*dh+TH] @ band[ki] + b).

    x_ref : (1, Hp, Lin)    bf16  padded input rows, lanes = Wp*Cin
    w_ref : (KH, Lin, Lout) bf16  row-banded weights, lanes = Wo*Ccat (constant block)
    b_ref : (1, Lout)       f32   per-channel bias tiled over Wo
    o_ref : (1, TH, Lout)   f32
    s_ref : (1, 1, 1, Lout) f32   row-sum of y   (two-pass BN statistics)
    q_ref : (1, 1, 1, Lout) f32   row-sum of y*y
    acc   : (TH, Lout)      f32   VMEM scratch accumulator (review item 13)
    """
    halo = (kh - 1) * dh
    if gh == 1:
        r0 = 0                                            # static: whole padded image
    else:
        r0 = pl.multiple_of(pl.program_id(1) * th, 8)     # 8-aligned dynamic window
    # One bounded window load per step; per-tap views are static slices of it
    # (review item 2: don't keep the whole (Hp, Lin) tile live).
    win = x_ref[0, pl.ds(r0, th + halo), :]               # (TH+halo, Lin) bf16
    for ki in range(kh):                                  # static unroll over H taps
        xt = win[ki * dh: ki * dh + th, :]
        part = jnp.dot(xt, w_ref[ki], preferred_element_type=jnp.float32)
        if ki == 0:
            acc_ref[...] = part
        else:
            acc_ref[...] += part
    y = acc_ref[...] + b_ref[...]
    y = jnp.where(y > 0, y, LEAKY_SLOPE * y)              # LeakyReLU
    o_ref[...] = y[None]
    s_ref[...] = jnp.sum(y, axis=0, keepdims=True)[None, None]
    q_ref[...] = jnp.sum(y * y, axis=0, keepdims=True)[None, None]


def _sum_affine_stats_kernel(*refs, n_in):
    """y = sum_i (a_i * x_i + b_i); also emit row-sums of y and y*y.

    refs = (x_0..x_{n-1}, a, b, o, s, q);  x_i/o blocks (TR, L), a/b (n_in, L),
    s/q (1, 1, L).  Folds the six branch-final BN affines into the sum pass.
    """
    a_ref, b_ref = refs[n_in], refs[n_in + 1]
    o_ref, s_ref, q_ref = refs[n_in + 2], refs[n_in + 3], refs[n_in + 4]
    av, bv = a_ref[...], b_ref[...]
    y = refs[0][...] * av[0:1, :] + bv[0:1, :]
    for i in range(1, n_in):
        y = y + refs[i][...] * av[i:i + 1, :] + bv[i:i + 1, :]
    o_ref[...] = y
    s_ref[...] = jnp.sum(y, axis=0, keepdims=True)[None]
    q_ref[...] = jnp.sum(y * y, axis=0, keepdims=True)[None]


def _affine_kernel(x_ref, a_ref, b_ref, o_ref):
    """o = x * a + b  (a, b are (1, L) lane vectors) -- BN finalize pass."""
    o_ref[...] = x_ref[...] * a_ref[...] + b_ref[...]


# ----------------------------------------------------------------- utilities
def _pick_row_tile(rows, bytes_per_row, budget, prefer_split=True):
    """Largest multiple-of-8 divisor of `rows` whose tile fits `budget`; prefer
    producing >=2 tiles (pipelining / megacore slack).  Falls back to the full
    extent, which is always a legal block shape (budget is a soft target)."""
    fitting = [d for d in range(8, rows + 1, 8)
               if rows % d == 0 and d * bytes_per_row <= budget]
    if prefer_split:
        split = [d for d in fitting if d < rows]
        if split:
            return max(split)
    if fitting:
        return max(fitting)
    return rows


def _batch_stats(x):
    m = jnp.mean(x, axis=(0, 1, 2))
    v = jnp.mean(jnp.square(x - m), axis=(0, 1, 2))
    return m, v


def bn_affine(stats, bn):
    """Fold training-mode BatchNorm (batch stats, biased var, eps=1e-5) into (scale, shift)."""
    mean, var = stats
    scale = bn["gamma"] * jax.lax.rsqrt(var + EPS)
    return scale, bn["beta"] - mean * scale


# ---------------------------------------------------- one-time weight prepare
def make_conv_entry(w_list, b_list, H, W, *, ph, pw, dh=1, dw=1):
    """Precompute the row-banded bf16 weights + tiled bias for conv(s) sharing one
    input and geometry, applied to an (H, W) input.  Runs once, OUTSIDE the jitted
    forward (review item 12)."""
    KH, KW = int(w_list[0].shape[0]), int(w_list[0].shape[1])
    Cin = int(w_list[0].shape[2])
    Ccat = sum(int(w.shape[3]) for w in w_list)
    w = jnp.concatenate(w_list, axis=3) if len(w_list) > 1 else w_list[0]
    b = jnp.concatenate(b_list, axis=0) if len(b_list) > 1 else b_list[0]
    Wp = W + 2 * pw
    Wo = Wp - dw * (KW - 1)
    Lin, Lout = Wp * Cin, Wo * Ccat
    # Static 0/1 selector folds the W-direction taps into per-H-tap matrices.
    sel = np.zeros((KW, Wp, Wo), np.float32)
    for kj in range(KW):
        for wo in range(Wo):
            sel[kj, wo + kj * dw, wo] = 1.0
    band = jnp.einsum("jpq,kjco->kpcqo", jnp.asarray(sel), w).reshape(KH, Lin, Lout)
    return {"band": band.astype(jnp.bfloat16),
            "bias": jnp.tile(b, Wo).reshape(1, Lout).astype(jnp.float32)}


def prepare_duck_params(params, H, W, size=3):
    """Convert raw conv weights to banded form for every conv in the block."""
    def ce(conv, h, w, ph, pw, dh=1, dw=1):
        return make_conv_entry([conv["w"]], [conv["b"]], h, w, ph=ph, pw=pw, dh=dh, dw=dw)

    def resnet_entry(blk, h, w):
        # 1x1 conv (act, no BN) zero-padded to 3x3 and fused with the 3x3 conv that
        # shares its input -> one grouped lane-dense matmul.
        w1 = jnp.pad(blk["conv1"]["w"], ((1, 1), (1, 1), (0, 0), (0, 0)))
        return {"c12": make_conv_entry([w1, blk["conv2"]["w"]],
                                       [blk["conv1"]["b"], blk["conv2"]["b"]],
                                       h, w, ph=1, pw=1),
                "c3": ce(blk["conv3"], h, w, 1, 1),
                "bn1": blk["bn1"], "bn2": blk["bn2"], "bn3": blk["bn3"]}

    ws, ms, sp = params["widescope"], params["midscope"], params["separated"]
    pad = (size - 1) // 2
    return {
        "bn_in": params["bn_in"], "bn_out": params["bn_out"],
        "widescope": {"c1": ce(ws["conv1"], H, W, 2, 2),
                      "c2": ce(ws["conv2"], H + 2, W + 2, 2, 2, 2, 2),
                      "c3": ce(ws["conv3"], H + 2, W + 2, 2, 2, 3, 3),
                      "bn1": ws["bn1"], "bn2": ws["bn2"], "bn3": ws["bn3"]},
        "midscope": {"c1": ce(ms["conv1"], H, W, 1, 1),
                     "c2": ce(ms["conv2"], H, W, 1, 1),
                     "bn1": ms["bn1"], "bn2": ms["bn2"]},
        "resnet1": [resnet_entry(b, H, W) for b in params["resnet1"]],
        "resnet2": [resnet_entry(b, H, W) for b in params["resnet2"]],
        "resnet3": [resnet_entry(b, H, W) for b in params["resnet3"]],
        "separated": {"c1": ce(sp["conv1"], H, W, pad, 0),
                      "c2": ce(sp["conv2"], H, W, 0, pad),
                      "bn1": sp["bn1"], "bn2": sp["bn2"]},
    }


# ------------------------------------------------------- pallas_call wrappers
def conv_group(x, entry, *, ph, pw, dh=1, dw=1, couts, affine=None):
    """Conv2d(+bias)+LeakyReLU for conv(s) sharing one input; the producer's BN
    affine, zero-padding and bf16 cast are fused into the input prep.
    Returns ([y_i (N,Ho,Wo,Cout_i)], [(mean_i, var_i)])."""
    N, H, W, Cin = x.shape
    band, bias = entry["band"], entry["bias"]
    KH, Lin, Lout = band.shape
    Ccat = sum(couts)
    Hp, Wp = H + 2 * ph, W + 2 * pw
    Ho = Hp - dh * (KH - 1)
    Wo = Lout // Ccat
    assert Lin == Wp * Cin and Lout == Wo * Ccat, (Lin, Lout, Wp, Cin, Wo, Ccat)

    if affine is not None:                                # fold producer BN (item 12)
        scale, shift = affine
        x = x * scale + shift
    xp = jnp.pad(x, ((0, 0), (ph, ph), (pw, pw), (0, 0)))
    xp = xp.reshape(N, Hp, Lin).astype(jnp.bfloat16)      # bf16 DMA (item 1)

    # NOTE: at these shapes Lout is 256/288/512 lanes (>=2 full vregs, mostly dense);
    # padding Ccat up to a 128-multiple of Wo*Ccat would cost more than it saves here.
    TH = _pick_row_tile(Ho, bytes_per_row=Lout * 4 * 3, budget=_CONV_TILE_BUDGET)
    GH = Ho // TH

    kern = functools.partial(_conv_bias_act_kernel, kh=KH, dh=dh, th=TH, gh=GH)
    y, ysum, ysq = pl.pallas_call(
        kern,
        out_shape=(jax.ShapeDtypeStruct((N, Ho, Lout), jnp.float32),
                   jax.ShapeDtypeStruct((N, GH, 1, Lout), jnp.float32),
                   jax.ShapeDtypeStruct((N, GH, 1, Lout), jnp.float32)),
        grid=(N, GH),
        in_specs=[pl.BlockSpec((1, Hp, Lin), lambda n, h: (n, 0, 0)),
                  pl.BlockSpec((KH, Lin, Lout), lambda n, h: (0, 0, 0)),
                  pl.BlockSpec((1, Lout), lambda n, h: (0, 0))],
        out_specs=(pl.BlockSpec((1, TH, Lout), lambda n, h: (n, h, 0)),
                   pl.BlockSpec((1, 1, 1, Lout), lambda n, h: (n, h, 0, 0)),
                   pl.BlockSpec((1, 1, 1, Lout), lambda n, h: (n, h, 0, 0))),
        scratch_shapes=[pltpu.VMEM((TH, Lout), jnp.float32)],
        compiler_params=pltpu.CompilerParams(
            dimension_semantics=("parallel", "parallel"),
            vmem_limit_bytes=_VMEM_LIMIT),
    )(xp, band, bias)

    y = y.reshape(N, Ho, Wo, Ccat)
    ch_sum = ysum.reshape(N * GH, Wo, Ccat).sum(axis=(0, 1))
    ch_sq = ysq.reshape(N * GH, Wo, Ccat).sum(axis=(0, 1))
    cnt = N * Ho * Wo
    outs, stats, off = [], [], 0
    for c in couts:
        mean = ch_sum[off:off + c] / cnt
        var = jnp.maximum(ch_sq[off:off + c] / cnt - mean * mean, 0.0)
        outs.append(y[..., off:off + c])
        stats.append((mean, var))
        off += c
    return outs, stats


def sum_affine_stats(xs, affines):
    """y = sum_i (a_i * x_i + b_i) plus per-channel batch statistics of y
    (one tiled Pallas pass; folds the six branch-final BN affines)."""
    N, H, W, C = xs[0].shape
    R, L = N * H, W * C
    n_in = len(xs)
    TR = _pick_row_tile(R, bytes_per_row=L * 4 * 2 * (n_in + 1), budget=_EW_TILE_BUDGET)
    G = R // TR
    flats = [x.reshape(R, L) for x in xs]
    a = jnp.stack([jnp.tile(s, W) for s, _ in affines]).astype(jnp.float32)
    b = jnp.stack([jnp.tile(t, W) for _, t in affines]).astype(jnp.float32)
    kern = functools.partial(_sum_affine_stats_kernel, n_in=n_in)
    y, s, q = pl.pallas_call(
        kern,
        out_shape=(jax.ShapeDtypeStruct((R, L), jnp.float32),
                   jax.ShapeDtypeStruct((G, 1, L), jnp.float32),
                   jax.ShapeDtypeStruct((G, 1, L), jnp.float32)),
        grid=(G,),
        in_specs=[pl.BlockSpec((TR, L), lambda g: (g, 0)) for _ in xs]
                 + [pl.BlockSpec((n_in, L), lambda g: (0, 0)),
                    pl.BlockSpec((n_in, L), lambda g: (0, 0))],
        out_specs=(pl.BlockSpec((TR, L), lambda g: (g, 0)),
                   pl.BlockSpec((1, 1, L), lambda g: (g, 0, 0)),
                   pl.BlockSpec((1, 1, L), lambda g: (g, 0, 0))),
        compiler_params=pltpu.CompilerParams(
            dimension_semantics=("parallel",), vmem_limit_bytes=_VMEM_LIMIT),
    )(*flats, a, b)
    ch_sum = s.reshape(G, W, C).sum(axis=(0, 1))
    ch_sq = q.reshape(G, W, C).sum(axis=(0, 1))
    cnt = R * W
    mean = ch_sum / cnt
    var = jnp.maximum(ch_sq / cnt - mean * mean, 0.0)
    return y.reshape(N, H, W, C), (mean, var)


def bn_normalize(y, stats, bn):
    """Finalize pass of the two-pass BatchNorm (tiled Pallas affine)."""
    N, H, W, C = y.shape
    scale, shift = bn_affine(stats, bn)
    R, L = N * H, W * C
    TR = _pick_row_tile(R, bytes_per_row=L * 4 * 4, budget=_EW_TILE_BUDGET)
    G = R // TR
    a = jnp.tile(scale, W).reshape(1, L).astype(jnp.float32)
    b = jnp.tile(shift, W).reshape(1, L).astype(jnp.float32)
    out = pl.pallas_call(
        _affine_kernel,
        out_shape=jax.ShapeDtypeStruct((R, L), jnp.float32),
        grid=(G,),
        in_specs=[pl.BlockSpec((TR, L), lambda g: (g, 0)),
                  pl.BlockSpec((1, L), lambda g: (0, 0)),
                  pl.BlockSpec((1, L), lambda g: (0, 0))],
        out_specs=pl.BlockSpec((TR, L), lambda g: (g, 0)),
        compiler_params=pltpu.CompilerParams(
            dimension_semantics=("parallel",), vmem_limit_bytes=_VMEM_LIMIT),
    )(y.reshape(R, L), a, b)
    return out.reshape(N, H, W, C)


# -------------------------------------------------------------- param init
def init_conv(key, kh, kw, cin, cout):
    k1, k2 = jax.random.split(key)
    bound = 1.0 / math.sqrt(cin * kh * kw)
    w = jax.random.uniform(k1, (kh, kw, cin, cout), jnp.float32, -bound, bound)
    b = jax.random.uniform(k2, (cout,), jnp.float32, -bound, bound)
    return {"w": w, "b": b}


def init_bn(c):
    return {"gamma": jnp.ones((c,), jnp.float32), "beta": jnp.zeros((c,), jnp.float32)}


def init_duck_params(key, cin, cout, size=3):
    keys = iter(jax.random.split(key, 64))
    nk = lambda: next(keys)

    def init_resnet_block(ci):
        return {"conv1": init_conv(nk(), 1, 1, ci, cout),
                "conv2": init_conv(nk(), 3, 3, ci, cout),
                "conv3": init_conv(nk(), 3, 3, cout, cout),
                "bn1": init_bn(cout), "bn2": init_bn(cout), "bn3": init_bn(cout)}

    return {
        "bn_in": init_bn(cin),
        "widescope": {"conv1": init_conv(nk(), 3, 3, cin, cout), "bn1": init_bn(cout),
                      "conv2": init_conv(nk(), 3, 3, cout, cout), "bn2": init_bn(cout),
                      "conv3": init_conv(nk(), 3, 3, cout, cout), "bn3": init_bn(cout)},
        "midscope": {"conv1": init_conv(nk(), 3, 3, cin, cout), "bn1": init_bn(cout),
                     "conv2": init_conv(nk(), 3, 3, cout, cout), "bn2": init_bn(cout)},
        "resnet1": [init_resnet_block(cin)],
        "resnet2": [init_resnet_block(cin), init_resnet_block(cout)],
        "resnet3": [init_resnet_block(cin), init_resnet_block(cout),
                    init_resnet_block(cout)],
        "separated": {"conv1": init_conv(nk(), size, 1, cin, cout), "bn1": init_bn(cout),
                      "conv2": init_conv(nk(), 1, size, cout, cout), "bn2": init_bn(cout)},
        "bn_out": init_bn(cout),
    }


# ------------------------------------------------------------ block forwards
def widescope_fwd(x, p, aff):
    c = p["bn1"]["gamma"].shape[0]
    (y1,), (s1,) = conv_group(x, p["c1"], ph=2, pw=2, couts=(c,), affine=aff)
    (y2,), (s2,) = conv_group(y1, p["c2"], ph=2, pw=2, dh=2, dw=2, couts=(c,),
                              affine=bn_affine(s1, p["bn1"]))
    (y3,), (s3,) = conv_group(y2, p["c3"], ph=2, pw=2, dh=3, dw=3, couts=(c,),
                              affine=bn_affine(s2, p["bn2"]))
    return y3, bn_affine(s3, p["bn3"])


def midscope_fwd(x, p, aff):
    c = p["bn1"]["gamma"].shape[0]
    (y1,), (s1,) = conv_group(x, p["c1"], ph=1, pw=1, couts=(c,), affine=aff)
    (y2,), (s2,) = conv_group(y1, p["c2"], ph=1, pw=1, couts=(c,),
                              affine=bn_affine(s1, p["bn1"]))
    return y2, bn_affine(s2, p["bn2"])


def separated_fwd(x, p, aff):
    c = p["bn1"]["gamma"].shape[0]
    size = p["c1"]["band"].shape[0]          # KH of the (size,1) conv (static)
    pad = (size - 1) // 2
    (y1,), (s1,) = conv_group(x, p["c1"], ph=pad, pw=0, couts=(c,), affine=aff)
    (y2,), (s2,) = conv_group(y1, p["c2"], ph=0, pw=pad, couts=(c,),
                              affine=bn_affine(s1, p["bn1"]))
    return y2, bn_affine(s2, p["bn2"])


def resnet_block_fwd(x, p, aff):
    c = p["bn1"]["gamma"].shape[0]
    # act(conv1(x)) (1x1 padded to 3x3) and act(conv2(x)) fused into one grouped conv.
    (y1, y2), (_, s2) = conv_group(x, p["c12"], ph=1, pw=1, couts=(c, c), affine=aff)
    (y3,), (s3,) = conv_group(y2, p["c3"], ph=1, pw=1, couts=(c,),
                              affine=bn_affine(s2, p["bn1"]))
    a2 = bn_affine(s3, p["bn2"])
    z = y1 + (y3 * a2[0] + a2[1])            # x1 + bn2(act(conv3(...))) -- XLA glue
    return z, bn_affine(_batch_stats(z), p["bn3"])   # bn3 folded into the consumer


def resnet_chain_fwd(x, plist, aff):
    z, a = x, aff
    for p in plist:
        z, a = resnet_block_fwd(z, p, a)
    return z, a


def duck_fwd_nhwc(x, p):
    # bn1 on the block input (training-mode batch stats); affine folded into every
    # branch's first conv input prep.
    aff_in = bn_affine(_batch_stats(x), p["bn_in"])

    x1, a1 = widescope_fwd(x, p["widescope"], aff_in)
    x2, a2 = midscope_fwd(x, p["midscope"], aff_in)
    x3, a3 = resnet_chain_fwd(x, p["resnet1"], aff_in)
    x4, a4 = resnet_chain_fwd(x, p["resnet2"], aff_in)
    x5, a5 = resnet_chain_fwd(x, p["resnet3"], aff_in)
    x6, a6 = separated_fwd(x, p["separated"], aff_in)

    s, st = sum_affine_stats([x1, x2, x3, x4, x5, x6],
                             [a1, a2, a3, a4, a5, a6])   # Σ bn_i(x_i) + its stats
    return bn_normalize(s, st, p["bn_out"])              # final bn2 (two-pass finalize)


@jax.jit
def duck_conv2d_block(x_nchw, prepared):
    # NCHW in/out (PyTorch convention); NHWC / (rows, lanes) inside the kernels.
    x = jnp.transpose(x_nchw, (0, 2, 3, 1))
    y = duck_fwd_nhwc(x, prepared)
    return jnp.transpose(y, (0, 3, 1, 2))


# ---------------------------------------------------------------------- main
if __name__ == "__main__":
    key = jax.random.PRNGKey(0)
    kx, kp = jax.random.split(key)

    N, Cin, Cout, H, W = 2, 4, 16, 16, 16
    x = jax.random.normal(kx, (N, Cin, H, W), jnp.float32)
    params = init_duck_params(kp, Cin, Cout, size=3)
    prepared = prepare_duck_params(params, H, W, size=3)   # one-time, outside jit

    out = duck_conv2d_block(x, prepared)
    out = jax.block_until_ready(out)

    assert out.shape == (N, Cout, H, W), out.shape
    assert bool(jnp.all(jnp.isfinite(out)))
    print("KERNEL_OK")
</pallas_src>

<mosaic_0001>
module attributes {stable_mosaic.version = 11 : i64} {
  func.func @_conv_bias_act_kernel(%arg0: i32, %arg1: i32, %arg2: memref<1x18x64xbf16, #tpu.memory_space<vmem>>, %arg3: memref<3x64x256xbf16, #tpu.memory_space<vmem>>, %arg4: memref<1x256xf32, #tpu.memory_space<vmem>>, %arg5: memref<1x8x256xf32, #tpu.memory_space<vmem>>, %arg6: memref<1x1x1x256xf32, #tpu.memory_space<vmem>>, %arg7: memref<1x1x1x256xf32, #tpu.memory_space<vmem>>, %arg8: memref<8x256xf32, #tpu.memory_space<vmem>>) attributes {dimension_semantics = [#tpu.dimension_semantics<parallel>, #tpu.dimension_semantics<parallel>], iteration_bounds = array<i64: 2, 2>, scalar_prefetch = 0 : i64, scratch_operands = 1 : i64, tpu.core_type = #tpu.core_type<tc>, window_params = [{transform_indices = @transform_0, window_bounds = array<i64: 1, 18, 64>}, {pipeline_mode = #tpu.pipeline_mode<synchronous>, transform_indices = @transform_1, window_bounds = array<i64: 3, 64, 256>}, {pipeline_mode = #tpu.pipeline_mode<synchronous>, transform_indices = @transform_2, window_bounds = array<i64: 1, 256>}, {transform_indices = @transform_3, window_bounds = array<i64: 1, 8, 256>}, {transform_indices = @transform_4, window_bounds = array<i64: 1, 1, 1, 256>}, {transform_indices = @transform_5, window_bounds = array<i64: 1, 1, 1, 256>}]} {
    %c8_i32 = arith.constant 8 : i32
    %0 = arith.muli %arg1, %c8_i32 : i32
    %1 = tpu.assume_multiple %0, 8 : i32
    %c0 = arith.constant 0 : index
    %2 = arith.index_cast %1 : i32 to index
    %c0_0 = arith.constant 0 : index
    %3 = vector.load %arg2[%c0, %2, %c0_0] : memref<1x18x64xbf16, #tpu.memory_space<vmem>>, vector<1x10x64xbf16>
    %4 = vector.shape_cast %3 : vector<1x10x64xbf16> to vector<10x64xbf16>
    %5 = vector.extract_strided_slice %4 {offsets = [0, 0], sizes = [8, 64], strides = [1, 1]} : vector<10x64xbf16> to vector<8x64xbf16>
    %c0_1 = arith.constant 0 : index
    %c0_2 = arith.constant 0 : index
    %c0_3 = arith.constant 0 : index
    %6 = vector.load %arg3[%c0_1, %c0_2, %c0_3] : memref<3x64x256xbf16, #tpu.memory_space<vmem>>, vector<1x64x256xbf16>
    %7 = vector.shape_cast %6 : vector<1x64x256xbf16> to vector<64x256xbf16>
    %cst = arith.constant dense<0.000000e+00> : vector<8x256xf32>
    %8 = tpu.matmul %5, %7, %cst {dimension_numbers = #tpu.dot_dimension_numbers<[1], [0], [0], [1], [0, 0, 1, 1], [], []>} : vector<8x64xbf16>, vector<64x256xbf16>, vector<8x256xf32> -> vector<8x256xf32>
    %c0_4 = arith.constant 0 : index
    %c0_5 = arith.constant 0 : index
    %9 = vector.load %arg8[%c0_4, %c0_5] : memref<8x256xf32, #tpu.memory_space<vmem>>, vector<8x256xf32>
    tpu.vector_store %arg8[%c0_4, %c0_5], %8 {strides = array<i32>} : memref<8x256xf32, #tpu.memory_space<vmem>>, vector<8x256xf32>,
    %10 = vector.extract_strided_slice %4 {offsets = [1, 0], sizes = [8, 64], strides = [1, 1]} : vector<10x64xbf16> to vector<8x64xbf16>
    %c1 = arith.constant 1 : index
    %c0_6 = arith.constant 0 : index
    %c0_7 = arith.constant 0 : index
    %11 = vector.load %arg3[%c1, %c0_6, %c0_7] : memref<3x64x256xbf16, #tpu.memory_space<vmem>>, vector<1x64x256xbf16>
    %12 = vector.shape_cast %11 : vector<1x64x256xbf16> to vector<64x256xbf16>
    %cst_8 = arith.constant dense<0.000000e+00> : vector<8x256xf32>
    %13 = tpu.matmul %10, %12, %cst_8 {dimension_numbers = #tpu.dot_dimension_numbers<[1], [0], [0], [1], [0, 0, 1, 1], [], []>} : vector<8x64xbf16>, vector<64x256xbf16>, vector<8x256xf32> -> vector<8x256xf32>
    %c0_9 = arith.constant 0 : index
    %c0_10 = arith.constant 0 : index
    %14 = vector.load %arg8[%c0_9, %c0_10] : memref<8x256xf32, #tpu.memory_space<vmem>>, vector<8x256xf32>
    %15 = arith.addf %14, %13 : vector<8x256xf32>
    %c0_11 = arith.constant 0 : index
    %c0_12 = arith.constant 0 : index
    %16 = vector.load %arg8[%c0_11, %c0_12] : memref<8x256xf32, #tpu.memory_space<vmem>>, vector<8x256xf32>
    tpu.vector_store %arg8[%c0_11, %c0_12], %15 {strides = array<i32>} : memref<8x256xf32, #tpu.memory_space<vmem>>, vector<8x256xf32>,
    %17 = vector.extract_strided_slice %4 {offsets = [2, 0], sizes = [8, 64], strides = [1, 1]} : vector<10x64xbf16> to vector<8x64xbf16>
    %c2 = arith.constant 2 : index
    %c0_13 = arith.constant 0 : index
    %c0_14 = arith.constant 0 : index
    %18 = vector.load %arg3[%c2, %c0_13, %c0_14] : memref<3x64x256xbf16, #tpu.memory_space<vmem>>, vector<1x64x256xbf16>
    %19 = vector.shape_cast %18 : vector<1x64x256xbf16> to vector<64x256xbf16>
    %cst_15 = arith.constant dense<0.000000e+00> : vector<8x256xf32>
    %20 = tpu.matmul %17, %19, %cst_15 {dimension_numbers = #tpu.dot_dimension_numbers<[1], [0], [0], [1], [0, 0, 1, 1], [], []>} : vector<8x64xbf16>, vector<64x256xbf16>, vector<8x256xf32> -> vector<8x256xf32>
    %c0_16 = arith.constant 0 : index
    %c0_17 = arith.constant 0 : index
    %21 = vector.load %arg8[%c0_16, %c0_17] : memref<8x256xf32, #tpu.memory_space<vmem>>, vector<8x256xf32>
    %22 = arith.addf %21, %20 : vector<8x256xf32>
    %c0_18 = arith.constant 0 : index
    %c0_19 = arith.constant 0 : index
    %23 = vector.load %arg8[%c0_18, %c0_19] : memref<8x256xf32, #tpu.memory_space<vmem>>, vector<8x256xf32>
    tpu.vector_store %arg8[%c0_18, %c0_19], %22 {strides = array<i32>} : memref<8x256xf32, #tpu.memory_space<vmem>>, vector<8x256xf32>,
    %c0_20 = arith.constant 0 : index
    %c0_21 = arith.constant 0 : index
    %24 = vector.load %arg8[%c0_20, %c0_21] : memref<8x256xf32, #tpu.memory_space<vmem>>, vector<8x256xf32>
    %c0_22 = arith.constant 0 : index
    %c0_23 = arith.constant 0 : index
    %25 = vector.load %arg4[%c0_22, %c0_23] : memref<1x256xf32, #tpu.memory_space<vmem>>, vector<1x256xf32>
    %26 = vector.broadcast %25 : vector<1x256xf32> to vector<8x256xf32>
    %27 = arith.addf %24, %26 : vector<8x256xf32>
    %cst_24 = arith.constant 0.000000e+00 : f32
    %28 = vector.broadcast %cst_24 : f32 to vector<8x256xf32>
    %29 = arith.cmpf ogt, %27, %28 : vector<8x256xf32>
    %cst_25 = arith.constant 0.00999999977 : f32
    %30 = vector.broadcast %cst_25 : f32 to vector<8x256xf32>
    %31 = arith.mulf %30, %27 : vector<8x256xf32>
    %32 = arith.select %29, %27, %31 : vector<8x256xi1>, vector<8x256xf32>
    %33 = vector.shape_cast %32 : vector<8x256xf32> to vector<1x8x256xf32>
    %c0_26 = arith.constant 0 : index
    %c0_27 = arith.constant 0 : index
    %c0_28 = arith.constant 0 : index
    %34 = vector.load %arg5[%c0_26, %c0_27, %c0_28] : memref<1x8x256xf32, #tpu.memory_space<vmem>>, vector<1x8x256xf32>
    tpu.vector_store %arg5[%c0_26, %c0_27, %c0_28], %33 {strides = array<i32>} : memref<1x8x256xf32, #tpu.memory_space<vmem>>, vector<1x8x256xf32>,
    %cst_29 = arith.constant dense<0.000000e+00> : vector<256xf32>
    %35 = vector.multi_reduction <add>, %32, %cst_29 [0] : vector<8x256xf32> to vector<256xf32>
    %36 = vector.shape_cast %35 : vector<256xf32> to vector<1x256xf32>
    %37 = vector.shape_cast %36 : vector<1x256xf32> to vector<1x1x1x256xf32>
    %c0_30 = arith.constant 0 : index
    %c0_31 = arith.constant 0 : index
    %c0_32 = arith.constant 0 : index
    %c0_33 = arith.constant 0 : index
    %38 = vector.load %arg6[%c0_30, %c0_31, %c0_32, %c0_33] : memref<1x1x1x256xf32, #tpu.memory_space<vmem>>, vector<1x1x1x256xf32>
    tpu.vector_store %arg6[%c0_30, %c0_31, %c0_32, %c0_33], %37 {strides = array<i32>} : memref<1x1x1x256xf32, #tpu.memory_space<vmem>>, vector<1x1x1x256xf32>,
    %39 = arith.mulf %32, %32 : vector<8x256xf32>
    %cst_34 = arith.constant dense<0.000000e+00> : vector<256xf32>
    %40 = vector.multi_reduction <add>, %39, %cst_34 [0] : vector<8x256xf32> to vector<256xf32>
    %41 = vector.shape_cast %40 : vector<256xf32> to vector<1x256xf32>
    %42 = vector.shape_cast %41 : vector<1x256xf32> to vector<1x1x1x256xf32>
    %c0_35 = arith.constant 0 : index
    %c0_36 = arith.constant 0 : index
    %c0_37 = arith.constant 0 : index
    %c0_38 = arith.constant 0 : index
    %43 = vector.load %arg7[%c0_35, %c0_36, %c0_37, %c0_38] : memref<1x1x1x256xf32, #tpu.memory_space<vmem>>, vector<1x1x1x256xf32>
    tpu.vector_store %arg7[%c0_35, %c0_36, %c0_37, %c0_38], %42 {strides = array<i32>} : memref<1x1x1x256xf32, #tpu.memory_space<vmem>>, vector<1x1x1x256xf32>,
    return
  }
  func.func @transform_0(%arg0: i32, %arg1: i32) -> (i32, i32, i32) {
    %c0_i32 = arith.constant 0 : i32
    %c0_i32_0 = arith.constant 0 : i32
    %c0_i32_1 = arith.constant 0 : i32
    return %arg0, %c0_i32, %c0_i32_0 : i32, i32, i32
  }
  func.func @transform_1(%arg0: i32, %arg1: i32) -> (i32, i32, i32) {
    %c0_i32 = arith.constant 0 : i32
    %c0_i32_0 = arith.constant 0 : i32
    %c0_i32_1 = arith.constant 0 : i32
    %c0_i32_2 = arith.constant 0 : i32
    return %c0_i32, %c0_i32_0, %c0_i32_1 : i32, i32, i32
  }
  func.func @transform_2(%arg0: i32, %arg1: i32) -> (i32, i32) {
    %c0_i32 = arith.constant 0 : i32
    %c0_i32_0 = arith.constant 0 : i32
    %c0_i32_1 = arith.constant 0 : i32
    return %c0_i32, %c0_i32_0 : i32, i32
  }
  func.func @transform_3(%arg0: i32, %arg1: i32) -> (i32, i32, i32) {
    %c0_i32 = arith.constant 0 : i32
    %c0_i32_0 = arith.constant 0 : i32
    return %arg0, %arg1, %c0_i32 : i32, i32, i32
  }
  func.func @transform_4(%arg0: i32, %arg1: i32) -> (i32, i32, i32, i32) {
    %c0_i32 = arith.constant 0 : i32
    %c0_i32_0 = arith.constant 0 : i32
    %c0_i32_1 = arith.constant 0 : i32
    return %arg0, %arg1, %c0_i32, %c0_i32_0 : i32, i32, i32, i32
  }
  func.func @transform_5(%arg0: i32, %arg1: i32) -> (i32, i32, i32, i32) {
    %c0_i32 = arith.constant 0 : i32
    %c0_i32_0 = arith.constant 0 : i32
    %c0_i32_1 = arith.constant 0 : i32
    return %arg0, %arg1, %c0_i32, %c0_i32_0 : i32, i32, i32, i32
  }
}

module attributes {stable_mosaic.version = 11 : i64} {
  func.func @_conv_bias_act_kernel(%arg0: i32, %arg1: i32, %arg2: memref<1x18x72xbf16, #tpu.memory_space<vmem>>, %arg3: memref<3x72x256xbf16, #tpu.memory_space<vmem>>, %arg4: memref<1x256xf32, #tpu.memory_space<vmem>>, %arg5: memref<1x8x256xf32, #tpu.memory_space<vmem>>, %arg6: memref<1x1x1x256xf32, #tpu.memory_space<vmem>>, %arg7: memref<1x1x1x256xf32, #tpu.memory_space<vmem>>, %arg8: memref<8x256xf32, #tpu.memory_space<vmem>>) attributes {dimension_semantics = [#tpu.dimension_semantics<parallel>, #tpu.dimension_semantics<parallel>], iteration_bounds = array<i64: 2, 2>, scalar_prefetch = 0 : i64, scratch_operands = 1 : i64, tpu.core_type = #tpu.core_type<tc>, window_params = [{transform_indices = @transform_0, window_bounds = array<i64: 1, 18, 72>}, {pipeline_mode = #tpu.pipeline_mode<synchronous>, transform_indices = @transform_1, window_bounds = array<i64: 3, 72, 256>}, {pipeline_mode = #tpu.pipeline_mode<synchronous>, transform_indices = @transform_2, window_bounds = array<i64: 1, 256>}, {transform_indices = @transform_3, window_bounds = array<i64: 1, 8, 256>}, {transform_indices = @transform_4, window_bounds = array<i64: 1, 1, 1, 256>}, {transform_indices = @transform_5, window_bounds = array<i64: 1, 1, 1, 256>}]} {
    %c8_i32 = arith.constant 8 : i32
    %0 = arith.muli %arg1, %c8_i32 : i32
    %1 = tpu.assume_multiple %0, 8 : i32
    %c0 = arith.constant 0 : index
    %2 = arith.index_cast %1 : i32 to index
    %c0_0 = arith.constant 0 : index
    %3 = vector.load %arg2[%c0, %2, %c0_0] : memref<1x18x72xbf16, #tpu.memory_space<vmem>>, vector<1x10x72xbf16>
    %4 = vector.shape_cast %3 : vector<1x10x72xbf16> to vector<10x72xbf16>
    %5 = vector.extract_strided_slice %4 {offsets = [0, 0], sizes = [8, 72], strides = [1, 1]} : vector<10x72xbf16> to vector<8x72xbf16>
    %c0_1 = arith.constant 0 : index
    %c0_2 = arith.constant 0 : index
    %c0_3 = arith.constant 0 : index
    %6 = vector.load %arg3[%c0_1, %c0_2, %c0_3] : memref<3x72x256xbf16, #tpu.memory_space<vmem>>, vector<1x72x256xbf16>
    %7 = vector.shape_cast %6 : vector<1x72x256xbf16> to vector<72x256xbf16>
    %cst = arith.constant dense<0.000000e+00> : vector<8x256xf32>
    %8 = tpu.matmul %5, %7, %cst {dimension_numbers = #tpu.dot_dimension_numbers<[1], [0], [0], [1], [0, 0, 1, 1], [], []>} : vector<8x72xbf16>, vector<72x256xbf16>, vector<8x256xf32> -> vector<8x256xf32>
    %c0_4 = arith.constant 0 : index
    %c0_5 = arith.constant 0 : index
    %9 = vector.load %arg8[%c0_4, %c0_5] : memref<8x256xf32, #tpu.memory_space<vmem>>, vector<8x256xf32>
    tpu.vector_store %arg8[%c0_4, %c0_5], %8 {strides = array<i32>} : memref<8x256xf32, #tpu.memory_space<vmem>>, vector<8x256xf32>,
    %10 = vector.extract_strided_slice %4 {offsets = [1, 0], sizes = [8, 72], strides = [1, 1]} : vector<10x72xbf16> to vector<8x72xbf16>
    %c1 = arith.constant 1 : index
    %c0_6 = arith.constant 0 : index
    %c0_7 = arith.constant 0 : index
    %11 = vector.load %arg3[%c1, %c0_6, %c0_7] : memref<3x72x256xbf16, #tpu.memory_space<vmem>>, vector<1x72x256xbf16>
    %12 = vector.shape_cast %11 : vector<1x72x256xbf16> to vector<72x256xbf16>
    %cst_8 = arith.constant dense<0.000000e+00> : vector<8x256xf32>
    %13 = tpu.matmul %10, %12, %cst_8 {dimension_numbers = #tpu.dot_dimension_numbers<[1], [0], [0], [1], [0, 0, 1, 1], [], []>} : vector<8x72xbf16>, vector<72x256xbf16>, vector<8x256xf32> -> vector<8x256xf32>
    %c0_9 = arith.constant 0 : index
    %c0_10 = arith.constant 0 : index
    %14 = vector.load %arg8[%c0_9, %c0_10] : memref<8x256xf32, #tpu.memory_space<vmem>>, vector<8x256xf32>
    %15 = arith.addf %14, %13 : vector<8x256xf32>
    %c0_11 = arith.constant 0 : index
    %c0_12 = arith.constant 0 : index
    %16 = vector.load %arg8[%c0_11, %c0_12] : memref<8x256xf32, #tpu.memory_space<vmem>>, vector<8x256xf32>
    tpu.vector_store %arg8[%c0_11, %c0_12], %15 {strides = array<i32>} : memref<8x256xf32, #tpu.memory_space<vmem>>, vector<8x256xf32>,
    %17 = vector.extract_strided_slice %4 {offsets = [2, 0], sizes = [8, 72], strides = [1, 1]} : vector<10x72xbf16> to vector<8x72xbf16>
    %c2 = arith.constant 2 : index
    %c0_13 = arith.constant 0 : index
    %c0_14 = arith.constant 0 : index
    %18 = vector.load %arg3[%c2, %c0_13, %c0_14] : memref<3x72x256xbf16, #tpu.memory_space<vmem>>, vector<1x72x256xbf16>
    %19 = vector.shape_cast %18 : vector<1x72x256xbf16> to vector<72x256xbf16>
    %cst_15 = arith.constant dense<0.000000e+00> : vector<8x256xf32>
    %20 = tpu.matmul %17, %19, %cst_15 {dimension_numbers = #tpu.dot_dimension_numbers<[1], [0], [0], [1], [0, 0, 1, 1], [], []>} : vector<8x72xbf16>, vector<72x256xbf16>, vector<8x256xf32> -> vector<8x256xf32>
    %c0_16 = arith.constant 0 : index
    %c0_17 = arith.constant 0 : index
    %21 = vector.load %arg8[%c0_16, %c0_17] : memref<8x256xf32, #tpu.memory_space<vmem>>, vector<8x256xf32>
    %22 = arith.addf %21, %20 : vector<8x256xf32>
    %c0_18 = arith.constant 0 : index
    %c0_19 = arith.constant 0 : index
    %23 = vector.load %arg8[%c0_18, %c0_19] : memref<8x256xf32, #tpu.memory_space<vmem>>, vector<8x256xf32>
    tpu.vector_store %arg8[%c0_18, %c0_19], %22 {strides = array<i32>} : memref<8x256xf32, #tpu.memory_space<vmem>>, vector<8x256xf32>,
    %c0_20 = arith.constant 0 : index
    %c0_21 = arith.constant 0 : index
    %24 = vector.load %arg8[%c0_20, %c0_21] : memref<8x256xf32, #tpu.memory_space<vmem>>, vector<8x256xf32>
    %c0_22 = arith.constant 0 : index
    %c0_23 = arith.constant 0 : index
    %25 = vector.load %arg4[%c0_22, %c0_23] : memref<1x256xf32, #tpu.memory_space<vmem>>, vector<1x256xf32>
    %26 = vector.broadcast %25 : vector<1x256xf32> to vector<8x256xf32>
    %27 = arith.addf %24, %26 : vector<8x256xf32>
    %cst_24 = arith.constant 0.000000e+00 : f32
    %28 = vector.broadcast %cst_24 : f32 to vector<8x256xf32>
    %29 = arith.cmpf ogt, %27, %28 : vector<8x256xf32>
    %cst_25 = arith.constant 0.00999999977 : f32
    %30 = vector.broadcast %cst_25 : f32 to vector<8x256xf32>
    %31 = arith.mulf %30, %27 : vector<8x256xf32>
    %32 = arith.select %29, %27, %31 : vector<8x256xi1>, vector<8x256xf32>
    %33 = vector.shape_cast %32 : vector<8x256xf32> to vector<1x8x256xf32>
    %c0_26 = arith.constant 0 : index
    %c0_27 = arith.constant 0 : index
    %c0_28 = arith.constant 0 : index
    %34 = vector.load %arg5[%c0_26, %c0_27, %c0_28] : memref<1x8x256xf32, #tpu.memory_space<vmem>>, vector<1x8x256xf32>
    tpu.vector_store %arg5[%c0_26, %c0_27, %c0_28], %33 {strides = array<i32>} : memref<1x8x256xf32, #tpu.memory_space<vmem>>, vector<1x8x256xf32>,
    %cst_29 = arith.constant dense<0.000000e+00> : vector<256xf32>
    %35 = vector.multi_reduction <add>, %32, %cst_29 [0] : vector<8x256xf32> to vector<256xf32>
    %36 = vector.shape_cast %35 : vector<256xf32> to vector<1x256xf32>
    %37 = vector.shape_cast %36 : vector<1x256xf32> to vector<1x1x1x256xf32>
    %c0_30 = arith.constant 0 : index
    %c0_31 = arith.constant 0 : index
    %c0_32 = arith.constant 0 : index
    %c0_33 = arith.constant 0 : index
    %38 = vector.load %arg6[%c0_30, %c0_31, %c0_32, %c0_33] : memref<1x1x1x256xf32, #tpu.memory_space<vmem>>, vector<1x1x1x256xf32>
    tpu.vector_store %arg6[%c0_30, %c0_31, %c0_32, %c0_33], %37 {strides = array<i32>} : memref<1x1x1x256xf32, #tpu.memory_space<vmem>>, vector<1x1x1x256xf32>,
    %39 = arith.mulf %32, %32 : vector<8x256xf32>
    %cst_34 = arith.constant dense<0.000000e+00> : vector<256xf32>
    %40 = vector.multi_reduction <add>, %39, %cst_34 [0] : vector<8x256xf32> to vector<256xf32>
    %41 = vector.shape_cast %40 : vector<256xf32> to vector<1x256xf32>
    %42 = vector.shape_cast %41 : vector<1x256xf32> to vector<1x1x1x256xf32>
    %c0_35 = arith.constant 0 : index
    %c0_36 = arith.constant 0 : index
    %c0_37 = arith.constant 0 : index
    %c0_38 = arith.constant 0 : index
    %43 = vector.load %arg7[%c0_35, %c0_36, %c0_37, %c0_38] : memref<1x1x1x256xf32, #tpu.memory_space<vmem>>, vector<1x1x1x256xf32>
    tpu.vector_store %arg7[%c0_35, %c0_36, %c0_37, %c0_38], %42 {strides = array<i32>} : memref<1x1x1x256xf32, #tpu.memory_space<vmem>>, vector<1x1x1x256xf32>,
    return
  }
  func.func @transform_0(%arg0: i32, %arg1: i32) -> (i32, i32, i32) {
    %c0_i32 = arith.constant 0 : i32
    %c0_i32_0 = arith.constant 0 : i32
    %c0_i32_1 = arith.constant 0 : i32
    return %arg0, %c0_i32, %c0_i32_0 : i32, i32, i32
  }
  func.func @transform_1(%arg0: i32, %arg1: i32) -> (i32, i32, i32) {
    %c0_i32 = arith.constant 0 : i32
    %c0_i32_0 = arith.constant 0 : i32
    %c0_i32_1 = arith.constant 0 : i32
    %c0_i32_2 = arith.constant 0 : i32
    return %c0_i32, %c0_i32_0, %c0_i32_1 : i32, i32, i32
  }
  func.func @transform_2(%arg0: i32, %arg1: i32) -> (i32, i32) {
    %c0_i32 = arith.constant 0 : i32
    %c0_i32_0 = arith.constant 0 : i32
    %c0_i32_1 = arith.constant 0 : i32
    return %c0_i32, %c0_i32_0 : i32, i32
  }
  func.func @transform_3(%arg0: i32, %arg1: i32) -> (i32, i32, i32) {
    %c0_i32 = arith.constant 0 : i32
    %c0_i32_0 = arith.constant 0 : i32
    return %arg0, %arg1, %c0_i32 : i32, i32, i32
  }
  func.func @transform_4(%arg0: i32, %arg1: i32) -> (i32, i32, i32, i32) {
    %c0_i32 = arith.constant 0 : i32
    %c0_i32_0 = arith.constant 0 : i32
    %c0_i32_1 = arith.constant 0 : i32
    return %arg0, %arg1, %c0_i32, %c0_i32_0 : i32, i32, i32, i32
  }
  func.func @transform_5(%arg0: i32, %arg1: i32) -> (i32, i32, i32, i32) {
    %c0_i32 = arith.constant 0 : i32
    %c0_i32_0 = arith.constant 0 : i32
    %c0_i32_1 = arith.constant 0 : i32
    return %arg0, %arg1, %c0_i32, %c0_i32_0 : i32, i32, i32, i32
  }
}

module attributes {stable_mosaic.version = 11 : i64} {
  func.func @_conv_bias_act_kernel(%arg0: i32, %arg1: i32, %arg2: memref<1x20x80xbf16, #tpu.memory_space<vmem>>, %arg3: memref<3x80x288xbf16, #tpu.memory_space<vmem>>, %arg4: memref<1x288xf32, #tpu.memory_space<vmem>>, %arg5: memref<1x18x288xf32, #tpu.memory_space<vmem>>, %arg6: memref<1x1x1x288xf32, #tpu.memory_space<vmem>>, %arg7: memref<1x1x1x288xf32, #tpu.memory_space<vmem>>, %arg8: memref<18x288xf32, #tpu.memory_space<vmem>>) attributes {dimension_semantics = [#tpu.dimension_semantics<parallel>, #tpu.dimension_semantics<parallel>], iteration_bounds = array<i64: 2, 1>, scalar_prefetch = 0 : i64, scratch_operands = 1 : i64, tpu.core_type = #tpu.core_type<tc>, window_params = [{transform_indices = @transform_0, window_bounds = array<i64: 1, 20, 80>}, {pipeline_mode = #tpu.pipeline_mode<synchronous>, transform_indices = @transform_1, window_bounds = array<i64: 3, 80, 288>}, {pipeline_mode = #tpu.pipeline_mode<synchronous>, transform_indices = @transform_2, window_bounds = array<i64: 1, 288>}, {transform_indices = @transform_3, window_bounds = array<i64: 1, 18, 288>}, {transform_indices = @transform_4, window_bounds = array<i64: 1, 1, 1, 288>}, {transform_indices = @transform_5, window_bounds = array<i64: 1, 1, 1, 288>}]} {
    %c0 = arith.constant 0 : index
    %c0_0 = arith.constant 0 : index
    %c0_1 = arith.constant 0 : index
    %0 = vector.load %arg2[%c0, %c0_0, %c0_1] : memref<1x20x80xbf16, #tpu.memory_space<vmem>>, vector<1x20x80xbf16>
    %1 = vector.shape_cast %0 : vector<1x20x80xbf16> to vector<20x80xbf16>
    %2 = vector.extract_strided_slice %1 {offsets = [0, 0], sizes = [18, 80], strides = [1, 1]} : vector<20x80xbf16> to vector<18x80xbf16>
    %c0_2 = arith.constant 0 : index
    %c0_3 = arith.constant 0 : index
    %c0_4 = arith.constant 0 : index
    %3 = vector.load %arg3[%c0_2, %c0_3, %c0_4] : memref<3x80x288xbf16, #tpu.memory_space<vmem>>, vector<1x80x288xbf16>
    %4 = vector.shape_cast %3 : vector<1x80x288xbf16> to vector<80x288xbf16>
    %cst = arith.constant dense<0.000000e+00> : vector<18x288xf32>
    %5 = tpu.matmul %2, %4, %cst {dimension_numbers = #tpu.dot_dimension_numbers<[1], [0], [0], [1], [0, 0, 1, 1], [], []>} : vector<18x80xbf16>, vector<80x288xbf16>, vector<18x288xf32> -> vector<18x288xf32>
    %c0_5 = arith.constant 0 : index
    %c0_6 = arith.constant 0 : index
    %6 = vector.load %arg8[%c0_5, %c0_6] : memref<18x288xf32, #tpu.memory_space<vmem>>, vector<18x288xf32>
    tpu.vector_store %arg8[%c0_5, %c0_6], %5 {strides = array<i32>} : memref<18x288xf32, #tpu.memory_space<vmem>>, vector<18x288xf32>,
    %7 = vector.extract_strided_slice %1 {offsets = [1, 0], sizes = [18, 80], strides = [1, 1]} : vector<20x80xbf16> to vector<18x80xbf16>
    %c1 = arith.constant 1 : index
    %c0_7 = arith.constant 0 : index
    %c0_8 = arith.constant 0 : index
    %8 = vector.load %arg3[%c1, %c0_7, %c0_8] : memref<3x80x288xbf16, #tpu.memory_space<vmem>>, vector<1x80x288xbf16>
    %9 = vector.shape_cast %8 : vector<1x80x288xbf16> to vector<80x288xbf16>
    %cst_9 = arith.constant dense<0.000000e+00> : vector<18x288xf32>
    %10 = tpu.matmul %7, %9, %cst_9 {dimension_numbers = #tpu.dot_dimension_numbers<[1], [0], [0], [1], [0, 0, 1, 1], [], []>} : vector<18x80xbf16>, vector<80x288xbf16>, vector<18x288xf32> -> vector<18x288xf32>
    %c0_10 = arith.constant 0 : index
    %c0_11 = arith.constant 0 : index
    %11 = vector.load %arg8[%c0_10, %c0_11] : memref<18x288xf32, #tpu.memory_space<vmem>>, vector<18x288xf32>
    %12 = arith.addf %11, %10 : vector<18x288xf32>
    %c0_12 = arith.constant 0 : index
    %c0_13 = arith.constant 0 : index
    %13 = vector.load %arg8[%c0_12, %c0_13] : memref<18x288xf32, #tpu.memory_space<vmem>>, vector<18x288xf32>
    tpu.vector_store %arg8[%c0_12, %c0_13], %12 {strides = array<i32>} : memref<18x288xf32, #tpu.memory_space<vmem>>, vector<18x288xf32>,
    %14 = vector.extract_strided_slice %1 {offsets = [2, 0], sizes = [18, 80], strides = [1, 1]} : vector<20x80xbf16> to vector<18x80xbf16>
    %c2 = arith.constant 2 : index
    %c0_14 = arith.constant 0 : index
    %c0_15 = arith.constant 0 : index
    %15 = vector.load %arg3[%c2, %c0_14, %c0_15] : memref<3x80x288xbf16, #tpu.memory_space<vmem>>, vector<1x80x288xbf16>
    %16 = vector.shape_cast %15 : vector<1x80x288xbf16> to vector<80x288xbf16>
    %cst_16 = arith.constant dense<0.000000e+00> : vector<18x288xf32>
    %17 = tpu.matmul %14, %16, %cst_16 {dimension_numbers = #tpu.dot_dimension_numbers<[1], [0], [0], [1], [0, 0, 1, 1], [], []>} : vector<18x80xbf16>, vector<80x288xbf16>, vector<18x288xf32> -> vector<18x288xf32>
    %c0_17 = arith.constant 0 : index
    %c0_18 = arith.constant 0 : index
    %18 = vector.load %arg8[%c0_17, %c0_18] : memref<18x288xf32, #tpu.memory_space<vmem>>, vector<18x288xf32>
    %19 = arith.addf %18, %17 : vector<18x288xf32>
    %c0_19 = arith.constant 0 : index
    %c0_20 = arith.constant 0 : index
    %20 = vector.load %arg8[%c0_19, %c0_20] : memref<18x288xf32, #tpu.memory_space<vmem>>, vector<18x288xf32>
    tpu.vector_store %arg8[%c0_19, %c0_20], %19 {strides = array<i32>} : memref<18x288xf32, #tpu.memory_space<vmem>>, vector<18x288xf32>,
    %c0_21 = arith.constant 0 : index
    %c0_22 = arith.constant 0 : index
    %21 = vector.load %arg8[%c0_21, %c0_22] : memref<18x288xf32, #tpu.memory_space<vmem>>, vector<18x288xf32>
    %c0_23 = arith.constant 0 : index
    %c0_24 = arith.constant 0 : index
    %22 = vector.load %arg4[%c0_23, %c0_24] : memref<1x288xf32, #tpu.memory_space<vmem>>, vector<1x288xf32>
    %23 = vector.broadcast %22 : vector<1x288xf32> to vector<18x288xf32>
    %24 = arith.addf %21, %23 : vector<18x288xf32>
    %cst_25 = arith.constant 0.000000e+00 : f32
    %25 = vector.broadcast %cst_25 : f32 to vector<18x288xf32>
    %26 = arith.cmpf ogt, %24, %25 : vector<18x288xf32>
    %cst_26 = arith.constant 0.00999999977 : f32
    %27 = vector.broadcast %cst_26 : f32 to vector<18x288xf32>
    %28 = arith.mulf %27, %24 : vector<18x288xf32>
    %29 = arith.select %26, %24, %28 : vector<18x288xi1>, vector<18x288xf32>
    %30 = vector.shape_cast %29 : vector<18x288xf32> to vector<1x18x288xf32>
    %c0_27 = arith.constant 0 : index
    %c0_28 = arith.constant 0 : index
    %c0_29 = arith.constant 0 : index
    %31 = vector.load %arg5[%c0_27, %c0_28, %c0_29] : memref<1x18x288xf32, #tpu.memory_space<vmem>>, vector<1x18x288xf32>
    tpu.vector_store %arg5[%c0_27, %c0_28, %c0_29], %30 {strides = array<i32>} : memref<1x18x288xf32, #tpu.memory_space<vmem>>, vector<1x18x288xf32>,
    %cst_30 = arith.constant dense<0.000000e+00> : vector<288xf32>
    %32 = vector.multi_reduction <add>, %29, %cst_30 [0] : vector<18x288xf32> to vector<288xf32>
    %33 = vector.shape_cast %32 : vector<288xf32> to vector<1x288xf32>
    %34 = vector.shape_cast %33 : vector<1x288xf32> to vector<1x1x1x288xf32>
    %c0_31 = arith.constant 0 : index
    %c0_32 = arith.constant 0 : index
    %c0_33 = arith.constant 0 : index
    %c0_34 = arith.constant 0 : index
    %35 = vector.load %arg6[%c0_31, %c0_32, %c0_33, %c0_34] : memref<1x1x1x288xf32, #tpu.memory_space<vmem>>, vector<1x1x1x288xf32>
    tpu.vector_store %arg6[%c0_31, %c0_32, %c0_33, %c0_34], %34 {strides = array<i32>} : memref<1x1x1x288xf32, #tpu.memory_space<vmem>>, vector<1x1x1x288xf32>,
    %36 = arith.mulf %29, %29 : vector<18x288xf32>
    %cst_35 = arith.constant dense<0.000000e+00> : vector<288xf32>
    %37 = vector.multi_reduction <add>, %36, %cst_35 [0] : vector<18x288xf32> to vector<288xf32>
    %38 = vector.shape_cast %37 : vector<288xf32> to vector<1x288xf32>
    %39 = vector.shape_cast %38 : vector<1x288xf32> to vector<1x1x1x288xf32>
    %c0_36 = arith.constant 0 : index
    %c0_37 = arith.constant 0 : index
    %c0_38 = arith.constant 0 : index
    %c0_39 = arith.constant 0 : index
    %40 = vector.load %arg7[%c0_36, %c0_37, %c0_38, %c0_39] : memref<1x1x1x288xf32, #tpu.memory_space<vmem>>, vector<1x1x1x288xf32>
    tpu.vector_store %arg7[%c0_36, %c0_37, %c0_38, %c0_39], %39 {strides = array<i32>} : memref<1x1x1x288xf32, #tpu.memory_space<vmem>>, vector<1x1x1x288xf32>,
    return
  }
  func.func @transform_0(%arg0: i32, %arg1: i32) -> (i32, i32, i32) {
    %c0_i32 = arith.constant 0 : i32
    %c0_i32_0 = arith.constant 0 : i32
    %c0_i32_1 = arith.constant 0 : i32
    return %arg0, %c0_i32, %c0_i32_0 : i32, i32, i32
  }
  func.func @transform_1(%arg0: i32, %arg1: i32) -> (i32, i32, i32) {
    %c0_i32 = arith.constant 0 : i32
    %c0_i32_0 = arith.constant 0 : i32
    %c0_i32_1 = arith.constant 0 : i32
    %c0_i32_2 = arith.constant 0 : i32
    return %c0_i32, %c0_i32_0, %c0_i32_1 : i32, i32, i32
  }
  func.func @transform_2(%arg0: i32, %arg1: i32) -> (i32, i32) {
    %c0_i32 = arith.constant 0 : i32
    %c0_i32_0 = arith.constant 0 : i32
    %c0_i32_1 = arith.constant 0 : i32
    return %c0_i32, %c0_i32_0 : i32, i32
  }
  func.func @transform_3(%arg0: i32, %arg1: i32) -> (i32, i32, i32) {
    %c0_i32 = arith.constant 0 : i32
    %c0_i32_0 = arith.constant 0 : i32
    return %arg0, %arg1, %c0_i32 : i32, i32, i32
  }
  func.func @transform_4(%arg0: i32, %arg1: i32) -> (i32, i32, i32, i32) {
    %c0_i32 = arith.constant 0 : i32
    %c0_i32_0 = arith.constant 0 : i32
    %c0_i32_1 = arith.constant 0 : i32
    return %arg0, %arg1, %c0_i32, %c0_i32_0 : i32, i32, i32, i32
  }
  func.func @transform_5(%arg0: i32, %arg1: i32) -> (i32, i32, i32, i32) {
    %c0_i32 = arith.constant 0 : i32
    %c0_i32_0 = arith.constant 0 : i32
    %c0_i32_1 = arith.constant 0 : i32
    return %arg0, %arg1, %c0_i32, %c0_i32_0 : i32, i32, i32, i32
  }
}

module attributes {stable_mosaic.version = 11 : i64} {
  func.func @_conv_bias_act_kernel(%arg0: i32, %arg1: i32, %arg2: memref<1x18x72xbf16, #tpu.memory_space<vmem>>, %arg3: memref<3x72x512xbf16, #tpu.memory_space<vmem>>, %arg4: memref<1x512xf32, #tpu.memory_space<vmem>>, %arg5: memref<1x8x512xf32, #tpu.memory_space<vmem>>, %arg6: memref<1x1x1x512xf32, #tpu.memory_space<vmem>>, %arg7: memref<1x1x1x512xf32, #tpu.memory_space<vmem>>, %arg8: memref<8x512xf32, #tpu.memory_space<vmem>>) attributes {dimension_semantics = [#tpu.dimension_semantics<parallel>, #tpu.dimension_semantics<parallel>], iteration_bounds = array<i64: 2, 2>, scalar_prefetch = 0 : i64, scratch_operands = 1 : i64, tpu.core_type = #tpu.core_type<tc>, window_params = [{transform_indices = @transform_0, window_bounds = array<i64: 1, 18, 72>}, {pipeline_mode = #tpu.pipeline_mode<synchronous>, transform_indices = @transform_1, window_bounds = array<i64: 3, 72, 512>}, {pipeline_mode = #tpu.pipeline_mode<synchronous>, transform_indices = @transform_2, window_bounds = array<i64: 1, 512>}, {transform_indices = @transform_3, window_bounds = array<i64: 1, 8, 512>}, {transform_indices = @transform_4, window_bounds = array<i64: 1, 1, 1, 512>}, {transform_indices = @transform_5, window_bounds = array<i64: 1, 1, 1, 512>}]} {
    %c8_i32 = arith.constant 8 : i32
    %0 = arith.muli %arg1, %c8_i32 : i32
    %1 = tpu.assume_multiple %0, 8 : i32
    %c0 = arith.constant 0 : index
    %2 = arith.index_cast %1 : i32 to index
    %c0_0 = arith.constant 0 : index
    %3 = vector.load %arg2[%c0, %2, %c0_0] : memref<1x18x72xbf16, #tpu.memory_space<vmem>>, vector<1x10x72xbf16>
    %4 = vector.shape_cast %3 : vector<1x10x72xbf16> to vector<10x72xbf16>
    %5 = vector.extract_strided_slice %4 {offsets = [0, 0], sizes = [8, 72], strides = [1, 1]} : vector<10x72xbf16> to vector<8x72xbf16>
    %c0_1 = arith.constant 0 : index
    %c0_2 = arith.constant 0 : index
    %c0_3 = arith.constant 0 : index
    %6 = vector.load %arg3[%c0_1, %c0_2, %c0_3] : memref<3x72x512xbf16, #tpu.memory_space<vmem>>, vector<1x72x512xbf16>
    %7 = vector.shape_cast %6 : vector<1x72x512xbf16> to vector<72x512xbf16>
    %cst = arith.constant dense<0.000000e+00> : vector<8x512xf32>
    %8 = tpu.matmul %5, %7, %cst {dimension_numbers = #tpu.dot_dimension_numbers<[1], [0], [0], [1], [0, 0, 1, 1], [], []>} : vector<8x72xbf16>, vector<72x512xbf16>, vector<8x512xf32> -> vector<8x512xf32>
    %c0_4 = arith.constant 0 : index
    %c0_5 = arith.constant 0 : index
    %9 = vector.load %arg8[%c0_4, %c0_5] : memref<8x512xf32, #tpu.memory_space<vmem>>, vector<8x512xf32>
    tpu.vector_store %arg8[%c0_4, %c0_5], %8 {strides = array<i32>} : memref<8x512xf32, #tpu.memory_space<vmem>>, vector<8x512xf32>,
    %10 = vector.extract_strided_slice %4 {offsets = [1, 0], sizes = [8, 72], strides = [1, 1]} : vector<10x72xbf16> to vector<8x72xbf16>
    %c1 = arith.constant 1 : index
    %c0_6 = arith.constant 0 : index
    %c0_7 = arith.constant 0 : index
    %11 = vector.load %arg3[%c1, %c0_6, %c0_7] : memref<3x72x512xbf16, #tpu.memory_space<vmem>>, vector<1x72x512xbf16>
    %12 = vector.shape_cast %11 : vector<1x72x512xbf16> to vector<72x512xbf16>
    %cst_8 = arith.constant dense<0.000000e+00> : vector<8x512xf32>
    %13 = tpu.matmul %10, %12, %cst_8 {dimension_numbers = #tpu.dot_dimension_numbers<[1], [0], [0], [1], [0, 0, 1, 1], [], []>} : vector<8x72xbf16>, vector<72x512xbf16>, vector<8x512xf32> -> vector<8x512xf32>
    %c0_9 = arith.constant 0 : index
    %c0_10 = arith.constant 0 : index
    %14 = vector.load %arg8[%c0_9, %c0_10] : memref<8x512xf32, #tpu.memory_space<vmem>>, vector<8x512xf32>
    %15 = arith.addf %14, %13 : vector<8x512xf32>
    %c0_11 = arith.constant 0 : index
    %c0_12 = arith.constant 0 : index
    %16 = vector.load %arg8[%c0_11, %c0_12] : memref<8x512xf32, #tpu.memory_space<vmem>>, vector<8x512xf32>
    tpu.vector_store %arg8[%c0_11, %c0_12], %15 {strides = array<i32>} : memref<8x512xf32, #tpu.memory_space<vmem>>, vector<8x512xf32>,
    %17 = vector.extract_strided_slice %4 {offsets = [2, 0], sizes = [8, 72], strides = [1, 1]} : vector<10x72xbf16> to vector<8x72xbf16>
    %c2 = arith.constant 2 : index
    %c0_13 = arith.constant 0 : index
    %c0_14 = arith.constant 0 : index
    %18 = vector.load %arg3[%c2, %c0_13, %c0_14] : memref<3x72x512xbf16, #tpu.memory_space<vmem>>, vector<1x72x512xbf16>
    %19 = vector.shape_cast %18 : vector<1x72x512xbf16> to vector<72x512xbf16>
    %cst_15 = arith.constant dense<0.000000e+00> : vector<8x512xf32>
    %20 = tpu.matmul %17, %19, %cst_15 {dimension_numbers = #tpu.dot_dimension_numbers<[1], [0], [0], [1], [0, 0, 1, 1], [], []>} : vector<8x72xbf16>, vector<72x512xbf16>, vector<8x512xf32> -> vector<8x512xf32>
    %c0_16 = arith.constant 0 : index
    %c0_17 = arith.constant 0 : index
    %21 = vector.load %arg8[%c0_16, %c0_17] : memref<8x512xf32, #tpu.memory_space<vmem>>, vector<8x512xf32>
    %22 = arith.addf %21, %20 : vector<8x512xf32>
    %c0_18 = arith.constant 0 : index
    %c0_19 = arith.constant 0 : index
    %23 = vector.load %arg8[%c0_18, %c0_19] : memref<8x512xf32, #tpu.memory_space<vmem>>, vector<8x512xf32>
    tpu.vector_store %arg8[%c0_18, %c0_19], %22 {strides = array<i32>} : memref<8x512xf32, #tpu.memory_space<vmem>>, vector<8x512xf32>,
    %c0_20 = arith.constant 0 : index
    %c0_21 = arith.constant 0 : index
    %24 = vector.load %arg8[%c0_20, %c0_21] : memref<8x512xf32, #tpu.memory_space<vmem>>, vector<8x512xf32>
    %c0_22 = arith.constant 0 : index
    %c0_23 = arith.constant 0 : index
    %25 = vector.load %arg4[%c0_22, %c0_23] : memref<1x512xf32, #tpu.memory_space<vmem>>, vector<1x512xf32>
    %26 = vector.broadcast %25 : vector<1x512xf32> to vector<8x512xf32>
    %27 = arith.addf %24, %26 : vector<8x512xf32>
    %cst_24 = arith.constant 0.000000e+00 : f32
    %28 = vector.broadcast %cst_24 : f32 to vector<8x512xf32>
    %29 = arith.cmpf ogt, %27, %28 : vector<8x512xf32>
    %cst_25 = arith.constant 0.00999999977 : f32
    %30 = vector.broadcast %cst_25 : f32 to vector<8x512xf32>
    %31 = arith.mulf %30, %27 : vector<8x512xf32>
    %32 = arith.select %29, %27, %31 : vector<8x512xi1>, vector<8x512xf32>
    %33 = vector.shape_cast %32 : vector<8x512xf32> to vector<1x8x512xf32>
    %c0_26 = arith.constant 0 : index
    %c0_27 = arith.constant 0 : index
    %c0_28 = arith.constant 0 : index
    %34 = vector.load %arg5[%c0_26, %c0_27, %c0_28] : memref<1x8x512xf32, #tpu.memory_space<vmem>>, vector<1x8x512xf32>
    tpu.vector_store %arg5[%c0_26, %c0_27, %c0_28], %33 {strides = array<i32>} : memref<1x8x512xf32, #tpu.memory_space<vmem>>, vector<1x8x512xf32>,
    %cst_29 = arith.constant dense<0.000000e+00> : vector<512xf32>
    %35 = vector.multi_reduction <add>, %32, %cst_29 [0] : vector<8x512xf32> to vector<512xf32>
    %36 = vector.shape_cast %35 : vector<512xf32> to vector<1x512xf32>
    %37 = vector.shape_cast %36 : vector<1x512xf32> to vector<1x1x1x512xf32>
    %c0_30 = arith.constant 0 : index
    %c0_31 = arith.constant 0 : index
    %c0_32 = arith.constant 0 : index
    %c0_33 = arith.constant 0 : index
    %38 = vector.load %arg6[%c0_30, %c0_31, %c0_32, %c0_33] : memref<1x1x1x512xf32, #tpu.memory_space<vmem>>, vector<1x1x1x512xf32>
    tpu.vector_store %arg6[%c0_30, %c0_31, %c0_32, %c0_33], %37 {strides = array<i32>} : memref<1x1x1x512xf32, #tpu.memory_space<vmem>>, vector<1x1x1x512xf32>,
    %39 = arith.mulf %32, %32 : vector<8x512xf32>
    %cst_34 = arith.constant dense<0.000000e+00> : vector<512xf32>
    %40 = vector.multi_reduction <add>, %39, %cst_34 [0] : vector<8x512xf32> to vector<512xf32>
    %41 = vector.shape_cast %40 : vector<512xf32> to vector<1x512xf32>
    %42 = vector.shape_cast %41 : vector<1x512xf32> to vector<1x1x1x512xf32>
    %c0_35 = arith.constant 0 : index
    %c0_36 = arith.constant 0 : index
    %c0_37 = arith.constant 0 : index
    %c0_38 = arith.constant 0 : index
    %43 = vector.load %arg7[%c0_35, %c0_36, %c0_37, %c0_38] : memref<1x1x1x512xf32, #tpu.memory_space<vmem>>, vector<1x1x1x512xf32>
    tpu.vector_store %arg7[%c0_35, %c0_36, %c0_37, %c0_38], %42 {strides = array<i32>} : memref<1x1x1x512xf32, #tpu.memory_space<vmem>>, vector<1x1x1x512xf32>,
    return
  }
  func.func @transform_0(%arg0: i32, %arg1: i32) -> (i32, i32, i32) {
    %c0_i32 = arith.constant 0 : i32
    %c0_i32_0 = arith.constant 0 : i32
    %c0_i32_1 = arith.constant 0 : i32
    return %arg0, %c0_i32, %c0_i32_0 : i32, i32, i32
  }
  func.func @transform_1(%arg0: i32, %arg1: i32) -> (i32, i32, i32) {
    %c0_i32 = arith.constant 0 : i32
    %c0_i32_0 = arith.constant 0 : i32
    %c0_i32_1 = arith.constant 0 : i32
    %c0_i32_2 = arith.constant 0 : i32
    return %c0_i32, %c0_i32_0, %c0_i32_1 : i32, i32, i32
  }
  func.func @transform_2(%arg0: i32, %arg1: i32) -> (i32, i32) {
    %c0_i32 = arith.constant 0 : i32
    %c0_i32_0 = arith.constant 0 : i32
    %c0_i32_1 = arith.constant 0 : i32
    return %c0_i32, %c0_i32_0 : i32, i32
  }
  func.func @transform_3(%arg0: i32, %arg1: i32) -> (i32, i32, i32) {
    %c0_i32 = arith.constant 0 : i32
    %c0_i32_0 = arith.constant 0 : i32
    return %arg0, %arg1, %c0_i32 : i32, i32, i32
  }
  func.func @transform_4(%arg0: i32, %arg1: i32) -> (i32, i32, i32, i32) {
    %c0_i32 = arith.constant 0 : i32
    %c0_i32_0 = arith.constant 0 : i32
    %c0_i32_1 = arith.constant 0 : i32
    return %arg0, %arg1, %c0_i32, %c0_i32_0 : i32, i32, i32, i32
  }
  func.func @transform_5(%arg0: i32, %arg1: i32) -> (i32, i32, i32, i32) {
    %c0_i32 = arith.constant 0 : i32
    %c0_i32_0 = arith.constant 0 : i32
    %c0_i32_1 = arith.constant 0 : i32
    return %arg0, %arg1, %c0_i32, %c0_i32_0 : i32, i32, i32, i32
  }
}

module attributes {stable_mosaic.version = 11 : i64} {
  func.func @_conv_bias_act_kernel(%arg0: i32, %arg1: i32, %arg2: memref<1x18x288xbf16, #tpu.memory_space<vmem>>, %arg3: memref<3x288x256xbf16, #tpu.memory_space<vmem>>, %arg4: memref<1x256xf32, #tpu.memory_space<vmem>>, %arg5: memref<1x8x256xf32, #tpu.memory_space<vmem>>, %arg6: memref<1x1x1x256xf32, #tpu.memory_space<vmem>>, %arg7: memref<1x1x1x256xf32, #tpu.memory_space<vmem>>, %arg8: memref<8x256xf32, #tpu.memory_space<vmem>>) attributes {dimension_semantics = [#tpu.dimension_semantics<parallel>, #tpu.dimension_semantics<parallel>], iteration_bounds = array<i64: 2, 2>, scalar_prefetch = 0 : i64, scratch_operands = 1 : i64, tpu.core_type = #tpu.core_type<tc>, window_params = [{transform_indices = @transform_0, window_bounds = array<i64: 1, 18, 288>}, {pipeline_mode = #tpu.pipeline_mode<synchronous>, transform_indices = @transform_1, window_bounds = array<i64: 3, 288, 256>}, {pipeline_mode = #tpu.pipeline_mode<synchronous>, transform_indices = @transform_2, window_bounds = array<i64: 1, 256>}, {transform_indices = @transform_3, window_bounds = array<i64: 1, 8, 256>}, {transform_indices = @transform_4, window_bounds = array<i64: 1, 1, 1, 256>}, {transform_indices = @transform_5, window_bounds = array<i64: 1, 1, 1, 256>}]} {
    %c8_i32 = arith.constant 8 : i32
    %0 = arith.muli %arg1, %c8_i32 : i32
    %1 = tpu.assume_multiple %0, 8 : i32
    %c0 = arith.constant 0 : index
    %2 = arith.index_cast %1 : i32 to index
    %c0_0 = arith.constant 0 : index
    %3 = vector.load %arg2[%c0, %2, %c0_0] : memref<1x18x288xbf16, #tpu.memory_space<vmem>>, vector<1x10x288xbf16>
    %4 = vector.shape_cast %3 : vector<1x10x288xbf16> to vector<10x288xbf16>
    %5 = vector.extract_strided_slice %4 {offsets = [0, 0], sizes = [8, 288], strides = [1, 1]} : vector<10x288xbf16> to vector<8x288xbf16>
    %c0_1 = arith.constant 0 : index
    %c0_2 = arith.constant 0 : index
    %c0_3 = arith.constant 0 : index
    %6 = vector.load %arg3[%c0_1, %c0_2, %c0_3] : memref<3x288x256xbf16, #tpu.memory_space<vmem>>, vector<1x288x256xbf16>
    %7 = vector.shape_cast %6 : vector<1x288x256xbf16> to vector<288x256xbf16>
    %cst = arith.constant dense<0.000000e+00> : vector<8x256xf32>
    %8 = tpu.matmul %5, %7, %cst {dimension_numbers = #tpu.dot_dimension_numbers<[1], [0], [0], [1], [0, 0, 1, 1], [], []>} : vector<8x288xbf16>, vector<288x256xbf16>, vector<8x256xf32> -> vector<8x256xf32>
    %c0_4 = arith.constant 0 : index
    %c0_5 = arith.constant 0 : index
    %9 = vector.load %arg8[%c0_4, %c0_5] : memref<8x256xf32, #tpu.memory_space<vmem>>, vector<8x256xf32>
    tpu.vector_store %arg8[%c0_4, %c0_5], %8 {strides = array<i32>} : memref<8x256xf32, #tpu.memory_space<vmem>>, vector<8x256xf32>,
    %10 = vector.extract_strided_slice %4 {offsets = [1, 0], sizes = [8, 288], strides = [1, 1]} : vector<10x288xbf16> to vector<8x288xbf16>
    %c1 = arith.constant 1 : index
    %c0_6 = arith.constant 0 : index
    %c0_7 = arith.constant 0 : index
    %11 = vector.load %arg3[%c1, %c0_6, %c0_7] : memref<3x288x256xbf16, #tpu.memory_space<vmem>>, vector<1x288x256xbf16>
    %12 = vector.shape_cast %11 : vector<1x288x256xbf16> to vector<288x256xbf16>
    %cst_8 = arith.constant dense<0.000000e+00> : vector<8x256xf32>
    %13 = tpu.matmul %10, %12, %cst_8 {dimension_numbers = #tpu.dot_dimension_numbers<[1], [0], [0], [1], [0, 0, 1, 1], [], []>} : vector<8x288xbf16>, vector<288x256xbf16>, vector<8x256xf32> -> vector<8x256xf32>
    %c0_9 = arith.constant 0 : index
    %c0_10 = arith.constant 0 : index
    %14 = vector.load %arg8[%c0_9, %c0_10] : memref<8x256xf32, #tpu.memory_space<vmem>>, vector<8x256xf32>
    %15 = arith.addf %14, %13 : vector<8x256xf32>
    %c0_11 = arith.constant 0 : index
    %c0_12 = arith.constant 0 : index
    %16 = vector.load %arg8[%c0_11, %c0_12] : memref<8x256xf32, #tpu.memory_space<vmem>>, vector<8x256xf32>
    tpu.vector_store %arg8[%c0_11, %c0_12], %15 {strides = array<i32>} : memref<8x256xf32, #tpu.memory_space<vmem>>, vector<8x256xf32>,
    %17 = vector.extract_strided_slice %4 {offsets = [2, 0], sizes = [8, 288], strides = [1, 1]} : vector<10x288xbf16> to vector<8x288xbf16>
    %c2 = arith.constant 2 : index
    %c0_13 = arith.constant 0 : index
    %c0_14 = arith.constant 0 : index
    %18 = vector.load %arg3[%c2, %c0_13, %c0_14] : memref<3x288x256xbf16, #tpu.memory_space<vmem>>, vector<1x288x256xbf16>
    %19 = vector.shape_cast %18 : vector<1x288x256xbf16> to vector<288x256xbf16>
    %cst_15 = arith.constant dense<0.000000e+00> : vector<8x256xf32>
    %20 = tpu.matmul %17, %19, %cst_15 {dimension_numbers = #tpu.dot_dimension_numbers<[1], [0], [0], [1], [0, 0, 1, 1], [], []>} : vector<8x288xbf16>, vector<288x256xbf16>, vector<8x256xf32> -> vector<8x256xf32>
    %c0_16 = arith.constant 0 : index
    %c0_17 = arith.constant 0 : index
    %21 = vector.load %arg8[%c0_16, %c0_17] : memref<8x256xf32, #tpu.memory_space<vmem>>, vector<8x256xf32>
    %22 = arith.addf %21, %20 : vector<8x256xf32>
    %c0_18 = arith.constant 0 : index
    %c0_19 = arith.constant 0 : index
    %23 = vector.load %arg8[%c0_18, %c0_19] : memref<8x256xf32, #tpu.memory_space<vmem>>, vector<8x256xf32>
    tpu.vector_store %arg8[%c0_18, %c0_19], %22 {strides = array<i32>} : memref<8x256xf32, #tpu.memory_space<vmem>>, vector<8x256xf32>,
    %c0_20 = arith.constant 0 : index
    %c0_21 = arith.constant 0 : index
    %24 = vector.load %arg8[%c0_20, %c0_21] : memref<8x256xf32, #tpu.memory_space<vmem>>, vector<8x256xf32>
    %c0_22 = arith.constant 0 : index
    %c0_23 = arith.constant 0 : index
    %25 = vector.load %arg4[%c0_22, %c0_23] : memref<1x256xf32, #tpu.memory_space<vmem>>, vector<1x256xf32>
    %26 = vector.broadcast %25 : vector<1x256xf32> to vector<8x256xf32>
    %27 = arith.addf %24, %26 : vector<8x256xf32>
    %cst_24 = arith.constant 0.000000e+00 : f32
    %28 = vector.broadcast %cst_24 : f32 to vector<8x256xf32>
    %29 = arith.cmpf ogt, %27, %28 : vector<8x256xf32>
    %cst_25 = arith.constant 0.00999999977 : f32
    %30 = vector.broadcast %cst_25 : f32 to vector<8x256xf32>
    %31 = arith.mulf %30, %27 : vector<8x256xf32>
    %32 = arith.select %29, %27, %31 : vector<8x256xi1>, vector<8x256xf32>
    %33 = vector.shape_cast %32 : vector<8x256xf32> to vector<1x8x256xf32>
    %c0_26 = arith.constant 0 : index
    %c0_27 = arith.constant 0 : index
    %c0_28 = arith.constant 0 : index
    %34 = vector.load %arg5[%c0_26, %c0_27, %c0_28] : memref<1x8x256xf32, #tpu.memory_space<vmem>>, vector<1x8x256xf32>
    tpu.vector_store %arg5[%c0_26, %c0_27, %c0_28], %33 {strides = array<i32>} : memref<1x8x256xf32, #tpu.memory_space<vmem>>, vector<1x8x256xf32>,
    %cst_29 = arith.constant dense<0.000000e+00> : vector<256xf32>
    %35 = vector.multi_reduction <add>, %32, %cst_29 [0] : vector<8x256xf32> to vector<256xf32>
    %36 = vector.shape_cast %35 : vector<256xf32> to vector<1x256xf32>
    %37 = vector.shape_cast %36 : vector<1x256xf32> to vector<1x1x1x256xf32>
    %c0_30 = arith.constant 0 : index
    %c0_31 = arith.constant 0 : index
    %c0_32 = arith.constant 0 : index
    %c0_33 = arith.constant 0 : index
    %38 = vector.load %arg6[%c0_30, %c0_31, %c0_32, %c0_33] : memref<1x1x1x256xf32, #tpu.memory_space<vmem>>, vector<1x1x1x256xf32>
    tpu.vector_store %arg6[%c0_30, %c0_31, %c0_32, %c0_33], %37 {strides = array<i32>} : memref<1x1x1x256xf32, #tpu.memory_space<vmem>>, vector<1x1x1x256xf32>,
    %39 = arith.mulf %32, %32 : vector<8x256xf32>
    %cst_34 = arith.constant dense<0.000000e+00> : vector<256xf32>
    %40 = vector.multi_reduction <add>, %39, %cst_34 [0] : vector<8x256xf32> to vector<256xf32>
    %41 = vector.shape_cast %40 : vector<256xf32> to vector<1x256xf32>
    %42 = vector.shape_cast %41 : vector<1x256xf32> to vector<1x1x1x256xf32>
    %c0_35 = arith.constant 0 : index
    %c0_36 = arith.constant 0 : index
    %c0_37 = arith.constant 0 : index
    %c0_38 = arith.constant 0 : index
    %43 = vector.load %arg7[%c0_35, %c0_36, %c0_37, %c0_38] : memref<1x1x1x256xf32, #tpu.memory_space<vmem>>, vector<1x1x1x256xf32>
    tpu.vector_store %arg7[%c0_35, %c0_36, %c0_37, %c0_38], %42 {strides = array<i32>} : memref<1x1x1x256xf32, #tpu.memory_space<vmem>>, vector<1x1x1x256xf32>,
    return
  }
  func.func @transform_0(%arg0: i32, %arg1: i32) -> (i32, i32, i32) {
    %c0_i32 = arith.constant 0 : i32
    %c0_i32_0 = arith.constant 0 : i32
    %c0_i32_1 = arith.constant 0 : i32
    return %arg0, %c0_i32, %c0_i32_0 : i32, i32, i32
  }
  func.func @transform_1(%arg0: i32, %arg1: i32) -> (i32, i32, i32) {
    %c0_i32 = arith.constant 0 : i32
    %c0_i32_0 = arith.constant 0 : i32
    %c0_i32_1 = arith.constant 0 : i32
    %c0_i32_2 = arith.constant 0 : i32
    return %c0_i32, %c0_i32_0, %c0_i32_1 : i32, i32, i32
  }
  func.func @transform_2(%arg0: i32, %arg1: i32) -> (i32, i32) {
    %c0_i32 = arith.constant 0 : i32
    %c0_i32_0 = arith.constant 0 : i32
    %c0_i32_1 = arith.constant 0 : i32
    return %c0_i32, %c0_i32_0 : i32, i32
  }
  func.func @transform_3(%arg0: i32, %arg1: i32) -> (i32, i32, i32) {
    %c0_i32 = arith.constant 0 : i32
    %c0_i32_0 = arith.constant 0 : i32
    return %arg0, %arg1, %c0_i32 : i32, i32, i32
  }
  func.func @transform_4(%arg0: i32, %arg1: i32) -> (i32, i32, i32, i32) {
    %c0_i32 = arith.constant 0 : i32
    %c0_i32_0 = arith.constant 0 : i32
    %c0_i32_1 = arith.constant 0 : i32
    return %arg0, %arg1, %c0_i32, %c0_i32_0 : i32, i32, i32, i32
  }
  func.func @transform_5(%arg0: i32, %arg1: i32) -> (i32, i32, i32, i32) {
    %c0_i32 = arith.constant 0 : i32
    %c0_i32_0 = arith.constant 0 : i32
    %c0_i32_1 = arith.constant 0 : i32
    return %arg0, %arg1, %c0_i32, %c0_i32_0 : i32, i32, i32, i32
  }
}

module attributes {stable_mosaic.version = 11 : i64} {
  func.func @_conv_bias_act_kernel(%arg0: i32, %arg1: i32, %arg2: memref<1x16x288xbf16, #tpu.memory_space<vmem>>, %arg3: memref<1x288x256xbf16, #tpu.memory_space<vmem>>, %arg4: memref<1x256xf32, #tpu.memory_space<vmem>>, %arg5: memref<1x8x256xf32, #tpu.memory_space<vmem>>, %arg6: memref<1x1x1x256xf32, #tpu.memory_space<vmem>>, %arg7: memref<1x1x1x256xf32, #tpu.memory_space<vmem>>, %arg8: memref<8x256xf32, #tpu.memory_space<vmem>>) attributes {dimension_semantics = [#tpu.dimension_semantics<parallel>, #tpu.dimension_semantics<parallel>], iteration_bounds = array<i64: 2, 2>, scalar_prefetch = 0 : i64, scratch_operands = 1 : i64, tpu.core_type = #tpu.core_type<tc>, window_params = [{transform_indices = @transform_0, window_bounds = array<i64: 1, 16, 288>}, {pipeline_mode = #tpu.pipeline_mode<synchronous>, transform_indices = @transform_1, window_bounds = array<i64: 1, 288, 256>}, {pipeline_mode = #tpu.pipeline_mode<synchronous>, transform_indices = @transform_2, window_bounds = array<i64: 1, 256>}, {transform_indices = @transform_3, window_bounds = array<i64: 1, 8, 256>}, {transform_indices = @transform_4, window_bounds = array<i64: 1, 1, 1, 256>}, {transform_indices = @transform_5, window_bounds = array<i64: 1, 1, 1, 256>}]} {
    %c8_i32 = arith.constant 8 : i32
    %0 = arith.muli %arg1, %c8_i32 : i32
    %1 = tpu.assume_multiple %0, 8 : i32
    %c0 = arith.constant 0 : index
    %2 = arith.index_cast %1 : i32 to index
    %c0_0 = arith.constant 0 : index
    %3 = vector.load %arg2[%c0, %2, %c0_0] : memref<1x16x288xbf16, #tpu.memory_space<vmem>>, vector<1x8x288xbf16>
    %4 = vector.shape_cast %3 : vector<1x8x288xbf16> to vector<8x288xbf16>
    %c0_1 = arith.constant 0 : index
    %c0_2 = arith.constant 0 : index
    %c0_3 = arith.constant 0 : index
    %5 = vector.load %arg3[%c0_1, %c0_2, %c0_3] : memref<1x288x256xbf16, #tpu.memory_space<vmem>>, vector<1x288x256xbf16>
    %6 = vector.shape_cast %5 : vector<1x288x256xbf16> to vector<288x256xbf16>
    %cst = arith.constant dense<0.000000e+00> : vector<8x256xf32>
    %7 = tpu.matmul %4, %6, %cst {dimension_numbers = #tpu.dot_dimension_numbers<[1], [0], [0], [1], [0, 0, 1, 1], [], []>} : vector<8x288xbf16>, vector<288x256xbf16>, vector<8x256xf32> -> vector<8x256xf32>
    %c0_4 = arith.constant 0 : index
    %c0_5 = arith.constant 0 : index
    %8 = vector.load %arg8[%c0_4, %c0_5] : memref<8x256xf32, #tpu.memory_space<vmem>>, vector<8x256xf32>
    tpu.vector_store %arg8[%c0_4, %c0_5], %7 {strides = array<i32>} : memref<8x256xf32, #tpu.memory_space<vmem>>, vector<8x256xf32>,
    %c0_6 = arith.constant 0 : index
    %c0_7 = arith.constant 0 : index
    %9 = vector.load %arg8[%c0_6, %c0_7] : memref<8x256xf32, #tpu.memory_space<vmem>>, vector<8x256xf32>
    %c0_8 = arith.constant 0 : index
    %c0_9 = arith.constant 0 : index
    %10 = vector.load %arg4[%c0_8, %c0_9] : memref<1x256xf32, #tpu.memory_space<vmem>>, vector<1x256xf32>
    %11 = vector.broadcast %10 : vector<1x256xf32> to vector<8x256xf32>
    %12 = arith.addf %9, %11 : vector<8x256xf32>
    %cst_10 = arith.constant 0.000000e+00 : f32
    %13 = vector.broadcast %cst_10 : f32 to vector<8x256xf32>
    %14 = arith.cmpf ogt, %12, %13 : vector<8x256xf32>
    %cst_11 = arith.constant 0.00999999977 : f32
    %15 = vector.broadcast %cst_11 : f32 to vector<8x256xf32>
    %16 = arith.mulf %15, %12 : vector<8x256xf32>
    %17 = arith.select %14, %12, %16 : vector<8x256xi1>, vector<8x256xf32>
    %18 = vector.shape_cast %17 : vector<8x256xf32> to vector<1x8x256xf32>
    %c0_12 = arith.constant 0 : index
    %c0_13 = arith.constant 0 : index
    %c0_14 = arith.constant 0 : index
    %19 = vector.load %arg5[%c0_12, %c0_13, %c0_14] : memref<1x8x256xf32, #tpu.memory_space<vmem>>, vector<1x8x256xf32>
    tpu.vector_store %arg5[%c0_12, %c0_13, %c0_14], %18 {strides = array<i32>} : memref<1x8x256xf32, #tpu.memory_space<vmem>>, vector<1x8x256xf32>,
    %cst_15 = arith.constant dense<0.000000e+00> : vector<256xf32>
    %20 = vector.multi_reduction <add>, %17, %cst_15 [0] : vector<8x256xf32> to vector<256xf32>
    %21 = vector.shape_cast %20 : vector<256xf32> to vector<1x256xf32>
    %22 = vector.shape_cast %21 : vector<1x256xf32> to vector<1x1x1x256xf32>
    %c0_16 = arith.constant 0 : index
    %c0_17 = arith.constant 0 : index
    %c0_18 = arith.constant 0 : index
    %c0_19 = arith.constant 0 : index
    %23 = vector.load %arg6[%c0_16, %c0_17, %c0_18, %c0_19] : memref<1x1x1x256xf32, #tpu.memory_space<vmem>>, vector<1x1x1x256xf32>
    tpu.vector_store %arg6[%c0_16, %c0_17, %c0_18, %c0_19], %22 {strides = array<i32>} : memref<1x1x1x256xf32, #tpu.memory_space<vmem>>, vector<1x1x1x256xf32>,
    %24 = arith.mulf %17, %17 : vector<8x256xf32>
    %cst_20 = arith.constant dense<0.000000e+00> : vector<256xf32>
    %25 = vector.multi_reduction <add>, %24, %cst_20 [0] : vector<8x256xf32> to vector<256xf32>
    %26 = vector.shape_cast %25 : vector<256xf32> to vector<1x256xf32>
    %27 = vector.shape_cast %26 : vector<1x256xf32> to vector<1x1x1x256xf32>
    %c0_21 = arith.constant 0 : index
    %c0_22 = arith.constant 0 : index
    %c0_23 = arith.constant 0 : index
    %c0_24 = arith.constant 0 : index
    %28 = vector.load %arg7[%c0_21, %c0_22, %c0_23, %c0_24] : memref<1x1x1x256xf32, #tpu.memory_space<vmem>>, vector<1x1x1x256xf32>
    tpu.vector_store %arg7[%c0_21, %c0_22, %c0_23, %c0_24], %27 {strides = array<i32>} : memref<1x1x1x256xf32, #tpu.memory_space<vmem>>, vector<1x1x1x256xf32>,
    return
  }
  func.func @transform_0(%arg0: i32, %arg1: i32) -> (i32, i32, i32) {
    %c0_i32 = arith.constant 0 : i32
    %c0_i32_0 = arith.constant 0 : i32
    %c0_i32_1 = arith.constant 0 : i32
    return %arg0, %c0_i32, %c0_i32_0 : i32, i32, i32
  }
  func.func @transform_1(%arg0: i32, %arg1: i32) -> (i32, i32, i32) {
    %c0_i32 = arith.constant 0 : i32
    %c0_i32_0 = arith.constant 0 : i32
    %c0_i32_1 = arith.constant 0 : i32
    %c0_i32_2 = arith.constant 0 : i32
    return %c0_i32, %c0_i32_0, %c0_i32_1 : i32, i32, i32
  }
  func.func @transform_2(%arg0: i32, %arg1: i32) -> (i32, i32) {
    %c0_i32 = arith.constant 0 : i32
    %c0_i32_0 = arith.constant 0 : i32
    %c0_i32_1 = arith.constant 0 : i32
    return %c0_i32, %c0_i32_0 : i32, i32
  }
  func.func @transform_3(%arg0: i32, %arg1: i32) -> (i32, i32, i32) {
    %c0_i32 = arith.constant 0 : i32
    %c0_i32_0 = arith.constant 0 : i32
    return %arg0, %arg1, %c0_i32 : i32, i32, i32
  }
  func.func @transform_4(%arg0: i32, %arg1: i32) -> (i32, i32, i32, i32) {
    %c0_i32 = arith.constant 0 : i32
    %c0_i32_0 = arith.constant 0 : i32
    %c0_i32_1 = arith.constant 0 : i32
    return %arg0, %arg1, %c0_i32, %c0_i32_0 : i32, i32, i32, i32
  }
  func.func @transform_5(%arg0: i32, %arg1: i32) -> (i32, i32, i32, i32) {
    %c0_i32 = arith.constant 0 : i32
    %c0_i32_0 = arith.constant 0 : i32
    %c0_i32_1 = arith.constant 0 : i32
    return %arg0, %arg1, %c0_i32, %c0_i32_0 : i32, i32, i32, i32
  }
}

module attributes {stable_mosaic.version = 11 : i64} {
  func.func @_conv_bias_act_kernel(%arg0: i32, %arg1: i32, %arg2: memref<1x18x288xbf16, #tpu.memory_space<vmem>>, %arg3: memref<3x288x512xbf16, #tpu.memory_space<vmem>>, %arg4: memref<1x512xf32, #tpu.memory_space<vmem>>, %arg5: memref<1x8x512xf32, #tpu.memory_space<vmem>>, %arg6: memref<1x1x1x512xf32, #tpu.memory_space<vmem>>, %arg7: memref<1x1x1x512xf32, #tpu.memory_space<vmem>>, %arg8: memref<8x512xf32, #tpu.memory_space<vmem>>) attributes {dimension_semantics = [#tpu.dimension_semantics<parallel>, #tpu.dimension_semantics<parallel>], iteration_bounds = array<i64: 2, 2>, scalar_prefetch = 0 : i64, scratch_operands = 1 : i64, tpu.core_type = #tpu.core_type<tc>, window_params = [{transform_indices = @transform_0, window_bounds = array<i64: 1, 18, 288>}, {pipeline_mode = #tpu.pipeline_mode<synchronous>, transform_indices = @transform_1, window_bounds = array<i64: 3, 288, 512>}, {pipeline_mode = #tpu.pipeline_mode<synchronous>, transform_indices = @transform_2, window_bounds = array<i64: 1, 512>}, {transform_indices = @transform_3, window_bounds = array<i64: 1, 8, 512>}, {transform_indices = @transform_4, window_bounds = array<i64: 1, 1, 1, 512>}, {transform_indices = @transform_5, window_bounds = array<i64: 1, 1, 1, 512>}]} {
    %c8_i32 = arith.constant 8 : i32
    %0 = arith.muli %arg1, %c8_i32 : i32
    %1 = tpu.assume_multiple %0, 8 : i32
    %c0 = arith.constant 0 : index
    %2 = arith.index_cast %1 : i32 to index
    %c0_0 = arith.constant 0 : index
    %3 = vector.load %arg2[%c0, %2, %c0_0] : memref<1x18x288xbf16, #tpu.memory_space<vmem>>, vector<1x10x288xbf16>
    %4 = vector.shape_cast %3 : vector<1x10x288xbf16> to vector<10x288xbf16>
    %5 = vector.extract_strided_slice %4 {offsets = [0, 0], sizes = [8, 288], strides = [1, 1]} : vector<10x288xbf16> to vector<8x288xbf16>
    %c0_1 = arith.constant 0 : index
    %c0_2 = arith.constant 0 : index
    %c0_3 = arith.constant 0 : index
    %6 = vector.load %arg3[%c0_1, %c0_2, %c0_3] : memref<3x288x512xbf16, #tpu.memory_space<vmem>>, vector<1x288x512xbf16>
    %7 = vector.shape_cast %6 : vector<1x288x512xbf16> to vector<288x512xbf16>
    %cst = arith.constant dense<0.000000e+00> : vector<8x512xf32>
    %8 = tpu.matmul %5, %7, %cst {dimension_numbers = #tpu.dot_dimension_numbers<[1], [0], [0], [1], [0, 0, 1, 1], [], []>} : vector<8x288xbf16>, vector<288x512xbf16>, vector<8x512xf32> -> vector<8x512xf32>
    %c0_4 = arith.constant 0 : index
    %c0_5 = arith.constant 0 : index
    %9 = vector.load %arg8[%c0_4, %c0_5] : memref<8x512xf32, #tpu.memory_space<vmem>>, vector<8x512xf32>
    tpu.vector_store %arg8[%c0_4, %c0_5], %8 {strides = array<i32>} : memref<8x512xf32, #tpu.memory_space<vmem>>, vector<8x512xf32>,
    %10 = vector.extract_strided_slice %4 {offsets = [1, 0], sizes = [8, 288], strides = [1, 1]} : vector<10x288xbf16> to vector<8x288xbf16>
    %c1 = arith.constant 1 : index
    %c0_6 = arith.constant 0 : index
    %c0_7 = arith.constant 0 : index
    %11 = vector.load %arg3[%c1, %c0_6, %c0_7] : memref<3x288x512xbf16, #tpu.memory_space<vmem>>, vector<1x288x512xbf16>
    %12 = vector.shape_cast %11 : vector<1x288x512xbf16> to vector<288x512xbf16>
    %cst_8 = arith.constant dense<0.000000e+00> : vector<8x512xf32>
    %13 = tpu.matmul %10, %12, %cst_8 {dimension_numbers = #tpu.dot_dimension_numbers<[1], [0], [0], [1], [0, 0, 1, 1], [], []>} : vector<8x288xbf16>, vector<288x512xbf16>, vector<8x512xf32> -> vector<8x512xf32>
    %c0_9 = arith.constant 0 : index
    %c0_10 = arith.constant 0 : index
    %14 = vector.load %arg8[%c0_9, %c0_10] : memref<8x512xf32, #tpu.memory_space<vmem>>, vector<8x512xf32>
    %15 = arith.addf %14, %13 : vector<8x512xf32>
    %c0_11 = arith.constant 0 : index
    %c0_12 = arith.constant 0 : index
    %16 = vector.load %arg8[%c0_11, %c0_12] : memref<8x512xf32, #tpu.memory_space<vmem>>, vector<8x512xf32>
    tpu.vector_store %arg8[%c0_11, %c0_12], %15 {strides = array<i32>} : memref<8x512xf32, #tpu.memory_space<vmem>>, vector<8x512xf32>,
    %17 = vector.extract_strided_slice %4 {offsets = [2, 0], sizes = [8, 288], strides = [1, 1]} : vector<10x288xbf16> to vector<8x288xbf16>
    %c2 = arith.constant 2 : index
    %c0_13 = arith.constant 0 : index
    %c0_14 = arith.constant 0 : index
    %18 = vector.load %arg3[%c2, %c0_13, %c0_14] : memref<3x288x512xbf16, #tpu.memory_space<vmem>>, vector<1x288x512xbf16>
    %19 = vector.shape_cast %18 : vector<1x288x512xbf16> to vector<288x512xbf16>
    %cst_15 = arith.constant dense<0.000000e+00> : vector<8x512xf32>
    %20 = tpu.matmul %17, %19, %cst_15 {dimension_numbers = #tpu.dot_dimension_numbers<[1], [0], [0], [1], [0, 0, 1, 1], [], []>} : vector<8x288xbf16>, vector<288x512xbf16>, vector<8x512xf32> -> vector<8x512xf32>
    %c0_16 = arith.constant 0 : index
    %c0_17 = arith.constant 0 : index
    %21 = vector.load %arg8[%c0_16, %c0_17] : memref<8x512xf32, #tpu.memory_space<vmem>>, vector<8x512xf32>
    %22 = arith.addf %21, %20 : vector<8x512xf32>
    %c0_18 = arith.constant 0 : index
    %c0_19 = arith.constant 0 : index
    %23 = vector.load %arg8[%c0_18, %c0_19] : memref<8x512xf32, #tpu.memory_space<vmem>>, vector<8x512xf32>
    tpu.vector_store %arg8[%c0_18, %c0_19], %22 {strides = array<i32>} : memref<8x512xf32, #tpu.memory_space<vmem>>, vector<8x512xf32>,
    %c0_20 = arith.constant 0 : index
    %c0_21 = arith.constant 0 : index
    %24 = vector.load %arg8[%c0_20, %c0_21] : memref<8x512xf32, #tpu.memory_space<vmem>>, vector<8x512xf32>
    %c0_22 = arith.constant 0 : index
    %c0_23 = arith.constant 0 : index
    %25 = vector.load %arg4[%c0_22, %c0_23] : memref<1x512xf32, #tpu.memory_space<vmem>>, vector<1x512xf32>
    %26 = vector.broadcast %25 : vector<1x512xf32> to vector<8x512xf32>
    %27 = arith.addf %24, %26 : vector<8x512xf32>
    %cst_24 = arith.constant 0.000000e+00 : f32
    %28 = vector.broadcast %cst_24 : f32 to vector<8x512xf32>
    %29 = arith.cmpf ogt, %27, %28 : vector<8x512xf32>
    %cst_25 = arith.constant 0.00999999977 : f32
    %30 = vector.broadcast %cst_25 : f32 to vector<8x512xf32>
    %31 = arith.mulf %30, %27 : vector<8x512xf32>
    %32 = arith.select %29, %27, %31 : vector<8x512xi1>, vector<8x512xf32>
    %33 = vector.shape_cast %32 : vector<8x512xf32> to vector<1x8x512xf32>
    %c0_26 = arith.constant 0 : index
    %c0_27 = arith.constant 0 : index
    %c0_28 = arith.constant 0 : index
    %34 = vector.load %arg5[%c0_26, %c0_27, %c0_28] : memref<1x8x512xf32, #tpu.memory_space<vmem>>, vector<1x8x512xf32>
    tpu.vector_store %arg5[%c0_26, %c0_27, %c0_28], %33 {strides = array<i32>} : memref<1x8x512xf32, #tpu.memory_space<vmem>>, vector<1x8x512xf32>,
    %cst_29 = arith.constant dense<0.000000e+00> : vector<512xf32>
    %35 = vector.multi_reduction <add>, %32, %cst_29 [0] : vector<8x512xf32> to vector<512xf32>
    %36 = vector.shape_cast %35 : vector<512xf32> to vector<1x512xf32>
    %37 = vector.shape_cast %36 : vector<1x512xf32> to vector<1x1x1x512xf32>
    %c0_30 = arith.constant 0 : index
    %c0_31 = arith.constant 0 : index
    %c0_32 = arith.constant 0 : index
    %c0_33 = arith.constant 0 : index
    %38 = vector.load %arg6[%c0_30, %c0_31, %c0_32, %c0_33] : memref<1x1x1x512xf32, #tpu.memory_space<vmem>>, vector<1x1x1x512xf32>
    tpu.vector_store %arg6[%c0_30, %c0_31, %c0_32, %c0_33], %37 {strides = array<i32>} : memref<1x1x1x512xf32, #tpu.memory_space<vmem>>, vector<1x1x1x512xf32>,
    %39 = arith.mulf %32, %32 : vector<8x512xf32>
    %cst_34 = arith.constant dense<0.000000e+00> : vector<512xf32>
    %40 = vector.multi_reduction <add>, %39, %cst_34 [0] : vector<8x512xf32> to vector<512xf32>
    %41 = vector.shape_cast %40 : vector<512xf32> to vector<1x512xf32>
    %42 = vector.shape_cast %41 : vector<1x512xf32> to vector<1x1x1x512xf32>
    %c0_35 = arith.constant 0 : index
    %c0_36 = arith.constant 0 : index
    %c0_37 = arith.constant 0 : index
    %c0_38 = arith.constant 0 : index
    %43 = vector.load %arg7[%c0_35, %c0_36, %c0_37, %c0_38] : memref<1x1x1x512xf32, #tpu.memory_space<vmem>>, vector<1x1x1x512xf32>
    tpu.vector_store %arg7[%c0_35, %c0_36, %c0_37, %c0_38], %42 {strides = array<i32>} : memref<1x1x1x512xf32, #tpu.memory_space<vmem>>, vector<1x1x1x512xf32>,
    return
  }
  func.func @transform_0(%arg0: i32, %arg1: i32) -> (i32, i32, i32) {
    %c0_i32 = arith.constant 0 : i32
    %c0_i32_0 = arith.constant 0 : i32
    %c0_i32_1 = arith.constant 0 : i32
    return %arg0, %c0_i32, %c0_i32_0 : i32, i32, i32
  }
  func.func @transform_1(%arg0: i32, %arg1: i32) -> (i32, i32, i32) {
    %c0_i32 = arith.constant 0 : i32
    %c0_i32_0 = arith.constant 0 : i32
    %c0_i32_1 = arith.constant 0 : i32
    %c0_i32_2 = arith.constant 0 : i32
    return %c0_i32, %c0_i32_0, %c0_i32_1 : i32, i32, i32
  }
  func.func @transform_2(%arg0: i32, %arg1: i32) -> (i32, i32) {
    %c0_i32 = arith.constant 0 : i32
    %c0_i32_0 = arith.constant 0 : i32
    %c0_i32_1 = arith.constant 0 : i32
    return %c0_i32, %c0_i32_0 : i32, i32
  }
  func.func @transform_3(%arg0: i32, %arg1: i32) -> (i32, i32, i32) {
    %c0_i32 = arith.constant 0 : i32
    %c0_i32_0 = arith.constant 0 : i32
    return %arg0, %arg1, %c0_i32 : i32, i32, i32
  }
  func.func @transform_4(%arg0: i32, %arg1: i32) -> (i32, i32, i32, i32) {
    %c0_i32 = arith.constant 0 : i32
    %c0_i32_0 = arith.constant 0 : i32
    %c0_i32_1 = arith.constant 0 : i32
    return %arg0, %arg1, %c0_i32, %c0_i32_0 : i32, i32, i32, i32
  }
  func.func @transform_5(%arg0: i32, %arg1: i32) -> (i32, i32, i32, i32) {
    %c0_i32 = arith.constant 0 : i32
    %c0_i32_0 = arith.constant 0 : i32
    %c0_i32_1 = arith.constant 0 : i32
    return %arg0, %arg1, %c0_i32, %c0_i32_0 : i32, i32, i32, i32
  }
}

module attributes {stable_mosaic.version = 11 : i64} {
  func.func @_conv_bias_act_kernel(%arg0: i32, %arg1: i32, %arg2: memref<1x22x352xbf16, #tpu.memory_space<vmem>>, %arg3: memref<3x352x288xbf16, #tpu.memory_space<vmem>>, %arg4: memref<1x288xf32, #tpu.memory_space<vmem>>, %arg5: memref<1x18x288xf32, #tpu.memory_space<vmem>>, %arg6: memref<1x1x1x288xf32, #tpu.memory_space<vmem>>, %arg7: memref<1x1x1x288xf32, #tpu.memory_space<vmem>>, %arg8: memref<18x288xf32, #tpu.memory_space<vmem>>) attributes {dimension_semantics = [#tpu.dimension_semantics<parallel>, #tpu.dimension_semantics<parallel>], iteration_bounds = array<i64: 2, 1>, scalar_prefetch = 0 : i64, scratch_operands = 1 : i64, tpu.core_type = #tpu.core_type<tc>, window_params = [{transform_indices = @transform_0, window_bounds = array<i64: 1, 22, 352>}, {pipeline_mode = #tpu.pipeline_mode<synchronous>, transform_indices = @transform_1, window_bounds = array<i64: 3, 352, 288>}, {pipeline_mode = #tpu.pipeline_mode<synchronous>, transform_indices = @transform_2, window_bounds = array<i64: 1, 288>}, {transform_indices = @transform_3, window_bounds = array<i64: 1, 18, 288>}, {transform_indices = @transform_4, window_bounds = array<i64: 1, 1, 1, 288>}, {transform_indices = @transform_5, window_bounds = array<i64: 1, 1, 1, 288>}]} {
    %c0 = arith.constant 0 : index
    %c0_0 = arith.constant 0 : index
    %c0_1 = arith.constant 0 : index
    %0 = vector.load %arg2[%c0, %c0_0, %c0_1] : memref<1x22x352xbf16, #tpu.memory_space<vmem>>, vector<1x22x352xbf16>
    %1 = vector.shape_cast %0 : vector<1x22x352xbf16> to vector<22x352xbf16>
    %2 = vector.extract_strided_slice %1 {offsets = [0, 0], sizes = [18, 352], strides = [1, 1]} : vector<22x352xbf16> to vector<18x352xbf16>
    %c0_2 = arith.constant 0 : index
    %c0_3 = arith.constant 0 : index
    %c0_4 = arith.constant 0 : index
    %3 = vector.load %arg3[%c0_2, %c0_3, %c0_4] : memref<3x352x288xbf16, #tpu.memory_space<vmem>>, vector<1x352x288xbf16>
    %4 = vector.shape_cast %3 : vector<1x352x288xbf16> to vector<352x288xbf16>
    %cst = arith.constant dense<0.000000e+00> : vector<18x288xf32>
    %5 = tpu.matmul %2, %4, %cst {dimension_numbers = #tpu.dot_dimension_numbers<[1], [0], [0], [1], [0, 0, 1, 1], [], []>} : vector<18x352xbf16>, vector<352x288xbf16>, vector<18x288xf32> -> vector<18x288xf32>
    %c0_5 = arith.constant 0 : index
    %c0_6 = arith.constant 0 : index
    %6 = vector.load %arg8[%c0_5, %c0_6] : memref<18x288xf32, #tpu.memory_space<vmem>>, vector<18x288xf32>
    tpu.vector_store %arg8[%c0_5, %c0_6], %5 {strides = array<i32>} : memref<18x288xf32, #tpu.memory_space<vmem>>, vector<18x288xf32>,
    %7 = vector.extract_strided_slice %1 {offsets = [2, 0], sizes = [18, 352], strides = [1, 1]} : vector<22x352xbf16> to vector<18x352xbf16>
    %c1 = arith.constant 1 : index
    %c0_7 = arith.constant 0 : index
    %c0_8 = arith.constant 0 : index
    %8 = vector.load %arg3[%c1, %c0_7, %c0_8] : memref<3x352x288xbf16, #tpu.memory_space<vmem>>, vector<1x352x288xbf16>
    %9 = vector.shape_cast %8 : vector<1x352x288xbf16> to vector<352x288xbf16>
    %cst_9 = arith.constant dense<0.000000e+00> : vector<18x288xf32>
    %10 = tpu.matmul %7, %9, %cst_9 {dimension_numbers = #tpu.dot_dimension_numbers<[1], [0], [0], [1], [0, 0, 1, 1], [], []>} : vector<18x352xbf16>, vector<352x288xbf16>, vector<18x288xf32> -> vector<18x288xf32>
    %c0_10 = arith.constant 0 : index
    %c0_11 = arith.constant 0 : index
    %11 = vector.load %arg8[%c0_10, %c0_11] : memref<18x288xf32, #tpu.memory_space<vmem>>, vector<18x288xf32>
    %12 = arith.addf %11, %10 : vector<18x288xf32>
    %c0_12 = arith.constant 0 : index
    %c0_13 = arith.constant 0 : index
    %13 = vector.load %arg8[%c0_12, %c0_13] : memref<18x288xf32, #tpu.memory_space<vmem>>, vector<18x288xf32>
    tpu.vector_store %arg8[%c0_12, %c0_13], %12 {strides = array<i32>} : memref<18x288xf32, #tpu.memory_space<vmem>>, vector<18x288xf32>,
    %14 = vector.extract_strided_slice %1 {offsets = [4, 0], sizes = [18, 352], strides = [1, 1]} : vector<22x352xbf16> to vector<18x352xbf16>
    %c2 = arith.constant 2 : index
    %c0_14 = arith.constant 0 : index
    %c0_15 = arith.constant 0 : index
    %15 = vector.load %arg3[%c2, %c0_14, %c0_15] : memref<3x352x288xbf16, #tpu.memory_space<vmem>>, vector<1x352x288xbf16>
    %16 = vector.shape_cast %15 : vector<1x352x288xbf16> to vector<352x288xbf16>
    %cst_16 = arith.constant dense<0.000000e+00> : vector<18x288xf32>
    %17 = tpu.matmul %14, %16, %cst_16 {dimension_numbers = #tpu.dot_dimension_numbers<[1], [0], [0], [1], [0, 0, 1, 1], [], []>} : vector<18x352xbf16>, vector<352x288xbf16>, vector<18x288xf32> -> vector<18x288xf32>
    %c0_17 = arith.constant 0 : index
    %c0_18 = arith.constant 0 : index
    %18 = vector.load %arg8[%c0_17, %c0_18] : memref<18x288xf32, #tpu.memory_space<vmem>>, vector<18x288xf32>
    %19 = arith.addf %18, %17 : vector<18x288xf32>
    %c0_19 = arith.constant 0 : index
    %c0_20 = arith.constant 0 : index
    %20 = vector.load %arg8[%c0_19, %c0_20] : memref<18x288xf32, #tpu.memory_space<vmem>>, vector<18x288xf32>
    tpu.vector_store %arg8[%c0_19, %c0_20], %19 {strides = array<i32>} : memref<18x288xf32, #tpu.memory_space<vmem>>, vector<18x288xf32>,
    %c0_21 = arith.constant 0 : index
    %c0_22 = arith.constant 0 : index
    %21 = vector.load %arg8[%c0_21, %c0_22] : memref<18x288xf32, #tpu.memory_space<vmem>>, vector<18x288xf32>
    %c0_23 = arith.constant 0 : index
    %c0_24 = arith.constant 0 : index
    %22 = vector.load %arg4[%c0_23, %c0_24] : memref<1x288xf32, #tpu.memory_space<vmem>>, vector<1x288xf32>
    %23 = vector.broadcast %22 : vector<1x288xf32> to vector<18x288xf32>
    %24 = arith.addf %21, %23 : vector<18x288xf32>
    %cst_25 = arith.constant 0.000000e+00 : f32
    %25 = vector.broadcast %cst_25 : f32 to vector<18x288xf32>
    %26 = arith.cmpf ogt, %24, %25 : vector<18x288xf32>
    %cst_26 = arith.constant 0.00999999977 : f32
    %27 = vector.broadcast %cst_26 : f32 to vector<18x288xf32>
    %28 = arith.mulf %27, %24 : vector<18x288xf32>
    %29 = arith.select %26, %24, %28 : vector<18x288xi1>, vector<18x288xf32>
    %30 = vector.shape_cast %29 : vector<18x288xf32> to vector<1x18x288xf32>
    %c0_27 = arith.constant 0 : index
    %c0_28 = arith.constant 0 : index
    %c0_29 = arith.constant 0 : index
    %31 = vector.load %arg5[%c0_27, %c0_28, %c0_29] : memref<1x18x288xf32, #tpu.memory_space<vmem>>, vector<1x18x288xf32>
    tpu.vector_store %arg5[%c0_27, %c0_28, %c0_29], %30 {strides = array<i32>} : memref<1x18x288xf32, #tpu.memory_space<vmem>>, vector<1x18x288xf32>,
    %cst_30 = arith.constant dense<0.000000e+00> : vector<288xf32>
    %32 = vector.multi_reduction <add>, %29, %cst_30 [0] : vector<18x288xf32> to vector<288xf32>
    %33 = vector.shape_cast %32 : vector<288xf32> to vector<1x288xf32>
    %34 = vector.shape_cast %33 : vector<1x288xf32> to vector<1x1x1x288xf32>
    %c0_31 = arith.constant 0 : index
    %c0_32 = arith.constant 0 : index
    %c0_33 = arith.constant 0 : index
    %c0_34 = arith.constant 0 : index
    %35 = vector.load %arg6[%c0_31, %c0_32, %c0_33, %c0_34] : memref<1x1x1x288xf32, #tpu.memory_space<vmem>>, vector<1x1x1x288xf32>
    tpu.vector_store %arg6[%c0_31, %c0_32, %c0_33, %c0_34], %34 {strides = array<i32>} : memref<1x1x1x288xf32, #tpu.memory_space<vmem>>, vector<1x1x1x288xf32>,
    %36 = arith.mulf %29, %29 : vector<18x288xf32>
    %cst_35 = arith.constant dense<0.000000e+00> : vector<288xf32>
    %37 = vector.multi_reduction <add>, %36, %cst_35 [0] : vector<18x288xf32> to vector<288xf32>
    %38 = vector.shape_cast %37 : vector<288xf32> to vector<1x288xf32>
    %39 = vector.shape_cast %38 : vector<1x288xf32> to vector<1x1x1x288xf32>
    %c0_36 = arith.constant 0 : index
    %c0_37 = arith.constant 0 : index
    %c0_38 = arith.constant 0 : index
    %c0_39 = arith.constant 0 : index
    %40 = vector.load %arg7[%c0_36, %c0_37, %c0_38, %c0_39] : memref<1x1x1x288xf32, #tpu.memory_space<vmem>>, vector<1x1x1x288xf32>
    tpu.vector_store %arg7[%c0_36, %c0_37, %c0_38, %c0_39], %39 {strides = array<i32>} : memref<1x1x1x288xf32, #tpu.memory_space<vmem>>, vector<1x1x1x288xf32>,
    return
  }
  func.func @transform_0(%arg0: i32, %arg1: i32) -> (i32, i32, i32) {
    %c0_i32 = arith.constant 0 : i32
    %c0_i32_0 = arith.constant 0 : i32
    %c0_i32_1 = arith.constant 0 : i32
    return %arg0, %c0_i32, %c0_i32_0 : i32, i32, i32
  }
  func.func @transform_1(%arg0: i32, %arg1: i32) -> (i32, i32, i32) {
    %c0_i32 = arith.constant 0 : i32
    %c0_i32_0 = arith.constant 0 : i32
    %c0_i32_1 = arith.constant 0 : i32
    %c0_i32_2 = arith.constant 0 : i32
    return %c0_i32, %c0_i32_0, %c0_i32_1 : i32, i32, i32
  }
  func.func @transform_2(%arg0: i32, %arg1: i32) -> (i32, i32) {
    %c0_i32 = arith.constant 0 : i32
    %c0_i32_0 = arith.constant 0 : i32
    %c0_i32_1 = arith.constant 0 : i32
    return %c0_i32, %c0_i32_0 : i32, i32
  }
  func.func @transform_3(%arg0: i32, %arg1: i32) -> (i32, i32, i32) {
    %c0_i32 = arith.constant 0 : i32
    %c0_i32_0 = arith.constant 0 : i32
    return %arg0, %arg1, %c0_i32 : i32, i32, i32
  }
  func.func @transform_4(%arg0: i32, %arg1: i32) -> (i32, i32, i32, i32) {
    %c0_i32 = arith.constant 0 : i32
    %c0_i32_0 = arith.constant 0 : i32
    %c0_i32_1 = arith.constant 0 : i32
    return %arg0, %arg1, %c0_i32, %c0_i32_0 : i32, i32, i32, i32
  }
  func.func @transform_5(%arg0: i32, %arg1: i32) -> (i32, i32, i32, i32) {
    %c0_i32 = arith.constant 0 : i32
    %c0_i32_0 = arith.constant 0 : i32
    %c0_i32_1 = arith.constant 0 : i32
    return %arg0, %arg1, %c0_i32, %c0_i32_0 : i32, i32, i32, i32
  }
}

module attributes {stable_mosaic.version = 11 : i64} {
  func.func @_conv_bias_act_kernel(%arg0: i32, %arg1: i32, %arg2: memref<1x22x352xbf16, #tpu.memory_space<vmem>>, %arg3: memref<3x352x256xbf16, #tpu.memory_space<vmem>>, %arg4: memref<1x256xf32, #tpu.memory_space<vmem>>, %arg5: memref<1x8x256xf32, #tpu.memory_space<vmem>>, %arg6: memref<1x1x1x256xf32, #tpu.memory_space<vmem>>, %arg7: memref<1x1x1x256xf32, #tpu.memory_space<vmem>>, %arg8: memref<8x256xf32, #tpu.memory_space<vmem>>) attributes {dimension_semantics = [#tpu.dimension_semantics<parallel>, #tpu.dimension_semantics<parallel>], iteration_bounds = array<i64: 2, 2>, scalar_prefetch = 0 : i64, scratch_operands = 1 : i64, tpu.core_type = #tpu.core_type<tc>, window_params = [{transform_indices = @transform_0, window_bounds = array<i64: 1, 22, 352>}, {pipeline_mode = #tpu.pipeline_mode<synchronous>, transform_indices = @transform_1, window_bounds = array<i64: 3, 352, 256>}, {pipeline_mode = #tpu.pipeline_mode<synchronous>, transform_indices = @transform_2, window_bounds = array<i64: 1, 256>}, {transform_indices = @transform_3, window_bounds = array<i64: 1, 8, 256>}, {transform_indices = @transform_4, window_bounds = array<i64: 1, 1, 1, 256>}, {transform_indices = @transform_5, window_bounds = array<i64: 1, 1, 1, 256>}]} {
    %c8_i32 = arith.constant 8 : i32
    %0 = arith.muli %arg1, %c8_i32 : i32
    %1 = tpu.assume_multiple %0, 8 : i32
    %c0 = arith.constant 0 : index
    %2 = arith.index_cast %1 : i32 to index
    %c0_0 = arith.constant 0 : index
    %3 = vector.load %arg2[%c0, %2, %c0_0] : memref<1x22x352xbf16, #tpu.memory_space<vmem>>, vector<1x14x352xbf16>
    %4 = vector.shape_cast %3 : vector<1x14x352xbf16> to vector<14x352xbf16>
    %5 = vector.extract_strided_slice %4 {offsets = [0, 0], sizes = [8, 352], strides = [1, 1]} : vector<14x352xbf16> to vector<8x352xbf16>
    %c0_1 = arith.constant 0 : index
    %c0_2 = arith.constant 0 : index
    %c0_3 = arith.constant 0 : index
    %6 = vector.load %arg3[%c0_1, %c0_2, %c0_3] : memref<3x352x256xbf16, #tpu.memory_space<vmem>>, vector<1x352x256xbf16>
    %7 = vector.shape_cast %6 : vector<1x352x256xbf16> to vector<352x256xbf16>
    %cst = arith.constant dense<0.000000e+00> : vector<8x256xf32>
    %8 = tpu.matmul %5, %7, %cst {dimension_numbers = #tpu.dot_dimension_numbers<[1], [0], [0], [1], [0, 0, 1, 1], [], []>} : vector<8x352xbf16>, vector<352x256xbf16>, vector<8x256xf32> -> vector<8x256xf32>
    %c0_4 = arith.constant 0 : index
    %c0_5 = arith.constant 0 : index
    %9 = vector.load %arg8[%c0_4, %c0_5] : memref<8x256xf32, #tpu.memory_space<vmem>>, vector<8x256xf32>
    tpu.vector_store %arg8[%c0_4, %c0_5], %8 {strides = array<i32>} : memref<8x256xf32, #tpu.memory_space<vmem>>, vector<8x256xf32>,
    %10 = vector.extract_strided_slice %4 {offsets = [3, 0], sizes = [8, 352], strides = [1, 1]} : vector<14x352xbf16> to vector<8x352xbf16>
    %c1 = arith.constant 1 : index
    %c0_6 = arith.constant 0 : index
    %c0_7 = arith.constant 0 : index
    %11 = vector.load %arg3[%c1, %c0_6, %c0_7] : memref<3x352x256xbf16, #tpu.memory_space<vmem>>, vector<1x352x256xbf16>
    %12 = vector.shape_cast %11 : vector<1x352x256xbf16> to vector<352x256xbf16>
    %cst_8 = arith.constant dense<0.000000e+00> : vector<8x256xf32>
    %13 = tpu.matmul %10, %12, %cst_8 {dimension_numbers = #tpu.dot_dimension_numbers<[1], [0], [0], [1], [0, 0, 1, 1], [], []>} : vector<8x352xbf16>, vector<352x256xbf16>, vector<8x256xf32> -> vector<8x256xf32>
    %c0_9 = arith.constant 0 : index
    %c0_10 = arith.constant 0 : index
    %14 = vector.load %arg8[%c0_9, %c0_10] : memref<8x256xf32, #tpu.memory_space<vmem>>, vector<8x256xf32>
    %15 = arith.addf %14, %13 : vector<8x256xf32>
    %c0_11 = arith.constant 0 : index
    %c0_12 = arith.constant 0 : index
    %16 = vector.load %arg8[%c0_11, %c0_12] : memref<8x256xf32, #tpu.memory_space<vmem>>, vector<8x256xf32>
    tpu.vector_store %arg8[%c0_11, %c0_12], %15 {strides = array<i32>} : memref<8x256xf32, #tpu.memory_space<vmem>>, vector<8x256xf32>,
    %17 = vector.extract_strided_slice %4 {offsets = [6, 0], sizes = [8, 352], strides = [1, 1]} : vector<14x352xbf16> to vector<8x352xbf16>
    %c2 = arith.constant 2 : index
    %c0_13 = arith.constant 0 : index
    %c0_14 = arith.constant 0 : index
    %18 = vector.load %arg3[%c2, %c0_13, %c0_14] : memref<3x352x256xbf16, #tpu.memory_space<vmem>>, vector<1x352x256xbf16>
    %19 = vector.shape_cast %18 : vector<1x352x256xbf16> to vector<352x256xbf16>
    %cst_15 = arith.constant dense<0.000000e+00> : vector<8x256xf32>
    %20 = tpu.matmul %17, %19, %cst_15 {dimension_numbers = #tpu.dot_dimension_numbers<[1], [0], [0], [1], [0, 0, 1, 1], [], []>} : vector<8x352xbf16>, vector<352x256xbf16>, vector<8x256xf32> -> vector<8x256xf32>
    %c0_16 = arith.constant 0 : index
    %c0_17 = arith.constant 0 : index
    %21 = vector.load %arg8[%c0_16, %c0_17] : memref<8x256xf32, #tpu.memory_space<vmem>>, vector<8x256xf32>
    %22 = arith.addf %21, %20 : vector<8x256xf32>
    %c0_18 = arith.constant 0 : index
    %c0_19 = arith.constant 0 : index
    %23 = vector.load %arg8[%c0_18, %c0_19] : memref<8x256xf32, #tpu.memory_space<vmem>>, vector<8x256xf32>
    tpu.vector_store %arg8[%c0_18, %c0_19], %22 {strides = array<i32>} : memref<8x256xf32, #tpu.memory_space<vmem>>, vector<8x256xf32>,
    %c0_20 = arith.constant 0 : index
    %c0_21 = arith.constant 0 : index
    %24 = vector.load %arg8[%c0_20, %c0_21] : memref<8x256xf32, #tpu.memory_space<vmem>>, vector<8x256xf32>
    %c0_22 = arith.constant 0 : index
    %c0_23 = arith.constant 0 : index
    %25 = vector.load %arg4[%c0_22, %c0_23] : memref<1x256xf32, #tpu.memory_space<vmem>>, vector<1x256xf32>
    %26 = vector.broadcast %25 : vector<1x256xf32> to vector<8x256xf32>
    %27 = arith.addf %24, %26 : vector<8x256xf32>
    %cst_24 = arith.constant 0.000000e+00 : f32
    %28 = vector.broadcast %cst_24 : f32 to vector<8x256xf32>
    %29 = arith.cmpf ogt, %27, %28 : vector<8x256xf32>
    %cst_25 = arith.constant 0.00999999977 : f32
    %30 = vector.broadcast %cst_25 : f32 to vector<8x256xf32>
    %31 = arith.mulf %30, %27 : vector<8x256xf32>
    %32 = arith.select %29, %27, %31 : vector<8x256xi1>, vector<8x256xf32>
    %33 = vector.shape_cast %32 : vector<8x256xf32> to vector<1x8x256xf32>
    %c0_26 = arith.constant 0 : index
    %c0_27 = arith.constant 0 : index
    %c0_28 = arith.constant 0 : index
    %34 = vector.load %arg5[%c0_26, %c0_27, %c0_28] : memref<1x8x256xf32, #tpu.memory_space<vmem>>, vector<1x8x256xf32>
    tpu.vector_store %arg5[%c0_26, %c0_27, %c0_28], %33 {strides = array<i32>} : memref<1x8x256xf32, #tpu.memory_space<vmem>>, vector<1x8x256xf32>,
    %cst_29 = arith.constant dense<0.000000e+00> : vector<256xf32>
    %35 = vector.multi_reduction <add>, %32, %cst_29 [0] : vector<8x256xf32> to vector<256xf32>
    %36 = vector.shape_cast %35 : vector<256xf32> to vector<1x256xf32>
    %37 = vector.shape_cast %36 : vector<1x256xf32> to vector<1x1x1x256xf32>
    %c0_30 = arith.constant 0 : index
    %c0_31 = arith.constant 0 : index
    %c0_32 = arith.constant 0 : index
    %c0_33 = arith.constant 0 : index
    %38 = vector.load %arg6[%c0_30, %c0_31, %c0_32, %c0_33] : memref<1x1x1x256xf32, #tpu.memory_space<vmem>>, vector<1x1x1x256xf32>
    tpu.vector_store %arg6[%c0_30, %c0_31, %c0_32, %c0_33], %37 {strides = array<i32>} : memref<1x1x1x256xf32, #tpu.memory_space<vmem>>, vector<1x1x1x256xf32>,
    %39 = arith.mulf %32, %32 : vector<8x256xf32>
    %cst_34 = arith.constant dense<0.000000e+00> : vector<256xf32>
    %40 = vector.multi_reduction <add>, %39, %cst_34 [0] : vector<8x256xf32> to vector<256xf32>
    %41 = vector.shape_cast %40 : vector<256xf32> to vector<1x256xf32>
    %42 = vector.shape_cast %41 : vector<1x256xf32> to vector<1x1x1x256xf32>
    %c0_35 = arith.constant 0 : index
    %c0_36 = arith.constant 0 : index
    %c0_37 = arith.constant 0 : index
    %c0_38 = arith.constant 0 : index
    %43 = vector.load %arg7[%c0_35, %c0_36, %c0_37, %c0_38] : memref<1x1x1x256xf32, #tpu.memory_space<vmem>>, vector<1x1x1x256xf32>
    tpu.vector_store %arg7[%c0_35, %c0_36, %c0_37, %c0_38], %42 {strides = array<i32>} : memref<1x1x1x256xf32, #tpu.memory_space<vmem>>, vector<1x1x1x256xf32>,
    return
  }
  func.func @transform_0(%arg0: i32, %arg1: i32) -> (i32, i32, i32) {
    %c0_i32 = arith.constant 0 : i32
    %c0_i32_0 = arith.constant 0 : i32
    %c0_i32_1 = arith.constant 0 : i32
    return %arg0, %c0_i32, %c0_i32_0 : i32, i32, i32
  }
  func.func @transform_1(%arg0: i32, %arg1: i32) -> (i32, i32, i32) {
    %c0_i32 = arith.constant 0 : i32
    %c0_i32_0 = arith.constant 0 : i32
    %c0_i32_1 = arith.constant 0 : i32
    %c0_i32_2 = arith.constant 0 : i32
    return %c0_i32, %c0_i32_0, %c0_i32_1 : i32, i32, i32
  }
  func.func @transform_2(%arg0: i32, %arg1: i32) -> (i32, i32) {
    %c0_i32 = arith.constant 0 : i32
    %c0_i32_0 = arith.constant 0 : i32
    %c0_i32_1 = arith.constant 0 : i32
    return %c0_i32, %c0_i32_0 : i32, i32
  }
  func.func @transform_3(%arg0: i32, %arg1: i32) -> (i32, i32, i32) {
    %c0_i32 = arith.constant 0 : i32
    %c0_i32_0 = arith.constant 0 : i32
    return %arg0, %arg1, %c0_i32 : i32, i32, i32
  }
  func.func @transform_4(%arg0: i32, %arg1: i32) -> (i32, i32, i32, i32) {
    %c0_i32 = arith.constant 0 : i32
    %c0_i32_0 = arith.constant 0 : i32
    %c0_i32_1 = arith.constant 0 : i32
    return %arg0, %arg1, %c0_i32, %c0_i32_0 : i32, i32, i32, i32
  }
  func.func @transform_5(%arg0: i32, %arg1: i32) -> (i32, i32, i32, i32) {
    %c0_i32 = arith.constant 0 : i32
    %c0_i32_0 = arith.constant 0 : i32
    %c0_i32_1 = arith.constant 0 : i32
    return %arg0, %arg1, %c0_i32, %c0_i32_0 : i32, i32, i32, i32
  }
}

module attributes {stable_mosaic.version = 11 : i64} {
  func.func @_sum_affine_stats_kernel(%arg0: i32, %arg1: memref<16x256xf32, #tpu.memory_space<vmem>>, %arg2: memref<16x256xf32, #tpu.memory_space<vmem>>, %arg3: memref<16x256xf32, #tpu.memory_space<vmem>>, %arg4: memref<16x256xf32, #tpu.memory_space<vmem>>, %arg5: memref<16x256xf32, #tpu.memory_space<vmem>>, %arg6: memref<16x256xf32, #tpu.memory_space<vmem>>, %arg7: memref<6x256xf32, #tpu.memory_space<vmem>>, %arg8: memref<6x256xf32, #tpu.memory_space<vmem>>, %arg9: memref<16x256xf32, #tpu.memory_space<vmem>>, %arg10: memref<1x1x256xf32, #tpu.memory_space<vmem>>, %arg11: memref<1x1x256xf32, #tpu.memory_space<vmem>>) attributes {dimension_semantics = [#tpu.dimension_semantics<parallel>], iteration_bounds = array<i64: 2>, scalar_prefetch = 0 : i64, scratch_operands = 0 : i64, tpu.core_type = #tpu.core_type<tc>, window_params = [{transform_indices = @transform_0, window_bounds = array<i64: 16, 256>}, {transform_indices = @transform_1, window_bounds = array<i64: 16, 256>}, {transform_indices = @transform_2, window_bounds = array<i64: 16, 256>}, {transform_indices = @transform_3, window_bounds = array<i64: 16, 256>}, {transform_indices = @transform_4, window_bounds = array<i64: 16, 256>}, {transform_indices = @transform_5, window_bounds = array<i64: 16, 256>}, {pipeline_mode = #tpu.pipeline_mode<synchronous>, transform_indices = @transform_6, window_bounds = array<i64: 6, 256>}, {pipeline_mode = #tpu.pipeline_mode<synchronous>, transform_indices = @transform_7, window_bounds = array<i64: 6, 256>}, {transform_indices = @transform_8, window_bounds = array<i64: 16, 256>}, {transform_indices = @transform_9, window_bounds = array<i64: 1, 1, 256>}, {transform_indices = @transform_10, window_bounds = array<i64: 1, 1, 256>}]} {
    %c0 = arith.constant 0 : index
    %c0_0 = arith.constant 0 : index
    %0 = vector.load %arg7[%c0, %c0_0] : memref<6x256xf32, #tpu.memory_space<vmem>>, vector<6x256xf32>
    %c0_1 = arith.constant 0 : index
    %c0_2 = arith.constant 0 : index
    %1 = vector.load %arg8[%c0_1, %c0_2] : memref<6x256xf32, #tpu.memory_space<vmem>>, vector<6x256xf32>
    %c0_3 = arith.constant 0 : index
    %c0_4 = arith.constant 0 : index
    %2 = vector.load %arg1[%c0_3, %c0_4] : memref<16x256xf32, #tpu.memory_space<vmem>>, vector<16x256xf32>
    %3 = vector.extract_strided_slice %0 {offsets = [0, 0], sizes = [1, 256], strides = [1, 1]} : vector<6x256xf32> to vector<1x256xf32>
    %4 = vector.broadcast %3 : vector<1x256xf32> to vector<16x256xf32>
    %5 = arith.mulf %2, %4 : vector<16x256xf32>
    %6 = vector.extract_strided_slice %1 {offsets = [0, 0], sizes = [1, 256], strides = [1, 1]} : vector<6x256xf32> to vector<1x256xf32>
    %7 = vector.broadcast %6 : vector<1x256xf32> to vector<16x256xf32>
    %8 = arith.addf %5, %7 : vector<16x256xf32>
    %c0_5 = arith.constant 0 : index
    %c0_6 = arith.constant 0 : index
    %9 = vector.load %arg2[%c0_5, %c0_6] : memref<16x256xf32, #tpu.memory_space<vmem>>, vector<16x256xf32>
    %10 = vector.extract_strided_slice %0 {offsets = [1, 0], sizes = [1, 256], strides = [1, 1]} : vector<6x256xf32> to vector<1x256xf32>
    %11 = vector.broadcast %10 : vector<1x256xf32> to vector<16x256xf32>
    %12 = arith.mulf %9, %11 : vector<16x256xf32>
    %13 = arith.addf %8, %12 : vector<16x256xf32>
    %14 = vector.extract_strided_slice %1 {offsets = [1, 0], sizes = [1, 256], strides = [1, 1]} : vector<6x256xf32> to vector<1x256xf32>
    %15 = vector.broadcast %14 : vector<1x256xf32> to vector<16x256xf32>
    %16 = arith.addf %13, %15 : vector<16x256xf32>
    %c0_7 = arith.constant 0 : index
    %c0_8 = arith.constant 0 : index
    %17 = vector.load %arg3[%c0_7, %c0_8] : memref<16x256xf32, #tpu.memory_space<vmem>>, vector<16x256xf32>
    %18 = vector.extract_strided_slice %0 {offsets = [2, 0], sizes = [1, 256], strides = [1, 1]} : vector<6x256xf32> to vector<1x256xf32>
    %19 = vector.broadcast %18 : vector<1x256xf32> to vector<16x256xf32>
    %20 = arith.mulf %17, %19 : vector<16x256xf32>
    %21 = arith.addf %16, %20 : vector<16x256xf32>
    %22 = vector.extract_strided_slice %1 {offsets = [2, 0], sizes = [1, 256], strides = [1, 1]} : vector<6x256xf32> to vector<1x256xf32>
    %23 = vector.broadcast %22 : vector<1x256xf32> to vector<16x256xf32>
    %24 = arith.addf %21, %23 : vector<16x256xf32>
    %c0_9 = arith.constant 0 : index
    %c0_10 = arith.constant 0 : index
    %25 = vector.load %arg4[%c0_9, %c0_10] : memref<16x256xf32, #tpu.memory_space<vmem>>, vector<16x256xf32>
    %26 = vector.extract_strided_slice %0 {offsets = [3, 0], sizes = [1, 256], strides = [1, 1]} : vector<6x256xf32> to vector<1x256xf32>
    %27 = vector.broadcast %26 : vector<1x256xf32> to vector<16x256xf32>
    %28 = arith.mulf %25, %27 : vector<16x256xf32>
    %29 = arith.addf %24, %28 : vector<16x256xf32>
    %30 = vector.extract_strided_slice %1 {offsets = [3, 0], sizes = [1, 256], strides = [1, 1]} : vector<6x256xf32> to vector<1x256xf32>
    %31 = vector.broadcast %30 : vector<1x256xf32> to vector<16x256xf32>
    %32 = arith.addf %29, %31 : vector<16x256xf32>
    %c0_11 = arith.constant 0 : index
    %c0_12 = arith.constant 0 : index
    %33 = vector.load %arg5[%c0_11, %c0_12] : memref<16x256xf32, #tpu.memory_space<vmem>>, vector<16x256xf32>
    %34 = vector.extract_strided_slice %0 {offsets = [4, 0], sizes = [1, 256], strides = [1, 1]} : vector<6x256xf32> to vector<1x256xf32>
    %35 = vector.broadcast %34 : vector<1x256xf32> to vector<16x256xf32>
    %36 = arith.mulf %33, %35 : vector<16x256xf32>
    %37 = arith.addf %32, %36 : vector<16x256xf32>
    %38 = vector.extract_strided_slice %1 {offsets = [4, 0], sizes = [1, 256], strides = [1, 1]} : vector<6x256xf32> to vector<1x256xf32>
    %39 = vector.broadcast %38 : vector<1x256xf32> to vector<16x256xf32>
    %40 = arith.addf %37, %39 : vector<16x256xf32>
    %c0_13 = arith.constant 0 : index
    %c0_14 = arith.constant 0 : index
    %41 = vector.load %arg6[%c0_13, %c0_14] : memref<16x256xf32, #tpu.memory_space<vmem>>, vector<16x256xf32>
    %42 = vector.extract_strided_slice %0 {offsets = [5, 0], sizes = [1, 256], strides = [1, 1]} : vector<6x256xf32> to vector<1x256xf32>
    %43 = vector.broadcast %42 : vector<1x256xf32> to vector<16x256xf32>
    %44 = arith.mulf %41, %43 : vector<16x256xf32>
    %45 = arith.addf %40, %44 : vector<16x256xf32>
    %46 = vector.extract_strided_slice %1 {offsets = [5, 0], sizes = [1, 256], strides = [1, 1]} : vector<6x256xf32> to vector<1x256xf32>
    %47 = vector.broadcast %46 : vector<1x256xf32> to vector<16x256xf32>
    %48 = arith.addf %45, %47 : vector<16x256xf32>
    %c0_15 = arith.constant 0 : index
    %c0_16 = arith.constant 0 : index
    %49 = vector.load %arg9[%c0_15, %c0_16] : memref<16x256xf32, #tpu.memory_space<vmem>>, vector<16x256xf32>
    tpu.vector_store %arg9[%c0_15, %c0_16], %48 {strides = array<i32>} : memref<16x256xf32, #tpu.memory_space<vmem>>, vector<16x256xf32>,
    %cst = arith.constant dense<0.000000e+00> : vector<256xf32>
    %50 = vector.multi_reduction <add>, %48, %cst [0] : vector<16x256xf32> to vector<256xf32>
    %51 = vector.shape_cast %50 : vector<256xf32> to vector<1x256xf32>
    %52 = vector.shape_cast %51 : vector<1x256xf32> to vector<1x1x256xf32>
    %c0_17 = arith.constant 0 : index
    %c0_18 = arith.constant 0 : index
    %c0_19 = arith.constant 0 : index
    %53 = vector.load %arg10[%c0_17, %c0_18, %c0_19] : memref<1x1x256xf32, #tpu.memory_space<vmem>>, vector<1x1x256xf32>
    tpu.vector_store %arg10[%c0_17, %c0_18, %c0_19], %52 {strides = array<i32>} : memref<1x1x256xf32, #tpu.memory_space<vmem>>, vector<1x1x256xf32>,
    %54 = arith.mulf %48, %48 : vector<16x256xf32>
    %cst_20 = arith.constant dense<0.000000e+00> : vector<256xf32>
    %55 = vector.multi_reduction <add>, %54, %cst_20 [0] : vector<16x256xf32> to vector<256xf32>
    %56 = vector.shape_cast %55 : vector<256xf32> to vector<1x256xf32>
    %57 = vector.shape_cast %56 : vector<1x256xf32> to vector<1x1x256xf32>
    %c0_21 = arith.constant 0 : index
    %c0_22 = arith.constant 0 : index
    %c0_23 = arith.constant 0 : index
    %58 = vector.load %arg11[%c0_21, %c0_22, %c0_23] : memref<1x1x256xf32, #tpu.memory_space<vmem>>, vector<1x1x256xf32>
    tpu.vector_store %arg11[%c0_21, %c0_22, %c0_23], %57 {strides = array<i32>} : memref<1x1x256xf32, #tpu.memory_space<vmem>>, vector<1x1x256xf32>,
    return
  }
  func.func @transform_0(%arg0: i32) -> (i32, i32) {
    %c0_i32 = arith.constant 0 : i32
    %c0_i32_0 = arith.constant 0 : i32
    return %arg0, %c0_i32 : i32, i32
  }
  func.func @transform_1(%arg0: i32) -> (i32, i32) {
    %c0_i32 = arith.constant 0 : i32
    %c0_i32_0 = arith.constant 0 : i32
    return %arg0, %c0_i32 : i32, i32
  }
  func.func @transform_2(%arg0: i32) -> (i32, i32) {
    %c0_i32 = arith.constant 0 : i32
    %c0_i32_0 = arith.constant 0 : i32
    return %arg0, %c0_i32 : i32, i32
  }
  func.func @transform_3(%arg0: i32) -> (i32, i32) {
    %c0_i32 = arith.constant 0 : i32
    %c0_i32_0 = arith.constant 0 : i32
    return %arg0, %c0_i32 : i32, i32
  }
  func.func @transform_4(%arg0: i32) -> (i32, i32) {
    %c0_i32 = arith.constant 0 : i32
    %c0_i32_0 = arith.constant 0 : i32
    return %arg0, %c0_i32 : i32, i32
  }
  func.func @transform_5(%arg0: i32) -> (i32, i32) {
    %c0_i32 = arith.constant 0 : i32
    %c0_i32_0 = arith.constant 0 : i32
    return %arg0, %c0_i32 : i32, i32
  }
  func.func @transform_6(%arg0: i32) -> (i32, i32) {
    %c0_i32 = arith.constant 0 : i32
    %c0_i32_0 = arith.constant 0 : i32
    %c0_i32_1 = arith.constant 0 : i32
    return %c0_i32, %c0_i32_0 : i32, i32
  }
  func.func @transform_7(%arg0: i32) -> (i32, i32) {
    %c0_i32 = arith.constant 0 : i32
    %c0_i32_0 = arith.constant 0 : i32
    %c0_i32_1 = arith.constant 0 : i32
    return %c0_i32, %c0_i32_0 : i32, i32
  }
  func.func @transform_8(%arg0: i32) -> (i32, i32) {
    %c0_i32 = arith.constant 0 : i32
    %c0_i32_0 = arith.constant 0 : i32
    return %arg0, %c0_i32 : i32, i32
  }
  func.func @transform_9(%arg0: i32) -> (i32, i32, i32) {
    %c0_i32 = arith.constant 0 : i32
    %c0_i32_0 = arith.constant 0 : i32
    %c0_i32_1 = arith.constant 0 : i32
    return %arg0, %c0_i32, %c0_i32_0 : i32, i32, i32
  }
  func.func @transform_10(%arg0: i32) -> (i32, i32, i32) {
    %c0_i32 = arith.constant 0 : i32
    %c0_i32_0 = arith.constant 0 : i32
    %c0_i32_1 = arith.constant 0 : i32
    return %arg0, %c0_i32, %c0_i32_0 : i32, i32, i32
  }
}

module attributes {stable_mosaic.version = 11 : i64} {
  func.func @_affine_kernel(%arg0: i32, %arg1: memref<16x256xf32, #tpu.memory_space<vmem>>, %arg2: memref<1x256xf32, #tpu.memory_space<vmem>>, %arg3: memref<1x256xf32, #tpu.memory_space<vmem>>, %arg4: memref<16x256xf32, #tpu.memory_space<vmem>>) attributes {dimension_semantics = [#tpu.dimension_semantics<parallel>], iteration_bounds = array<i64: 2>, scalar_prefetch = 0 : i64, scratch_operands = 0 : i64, tpu.core_type = #tpu.core_type<tc>, window_params = [{transform_indices = @transform_0, window_bounds = array<i64: 16, 256>}, {pipeline_mode = #tpu.pipeline_mode<synchronous>, transform_indices = @transform_1, window_bounds = array<i64: 1, 256>}, {pipeline_mode = #tpu.pipeline_mode<synchronous>, transform_indices = @transform_2, window_bounds = array<i64: 1, 256>}, {transform_indices = @transform_3, window_bounds = array<i64: 16, 256>}]} {
    %c0 = arith.constant 0 : index
    %c0_0 = arith.constant 0 : index
    %0 = vector.load %arg1[%c0, %c0_0] : memref<16x256xf32, #tpu.memory_space<vmem>>, vector<16x256xf32>
    %c0_1 = arith.constant 0 : index
    %c0_2 = arith.constant 0 : index
    %1 = vector.load %arg2[%c0_1, %c0_2] : memref<1x256xf32, #tpu.memory_space<vmem>>, vector<1x256xf32>
    %2 = vector.broadcast %1 : vector<1x256xf32> to vector<16x256xf32>
    %3 = arith.mulf %0, %2 : vector<16x256xf32>
    %c0_3 = arith.constant 0 : index
    %c0_4 = arith.constant 0 : index
    %4 = vector.load %arg3[%c0_3, %c0_4] : memref<1x256xf32, #tpu.memory_space<vmem>>, vector<1x256xf32>
    %5 = vector.broadcast %4 : vector<1x256xf32> to vector<16x256xf32>
    %6 = arith.addf %3, %5 : vector<16x256xf32>
    %c0_5 = arith.constant 0 : index
    %c0_6 = arith.constant 0 : index
    %7 = vector.load %arg4[%c0_5, %c0_6] : memref<16x256xf32, #tpu.memory_space<vmem>>, vector<16x256xf32>
    tpu.vector_store %arg4[%c0_5, %c0_6], %6 {strides = array<i32>} : memref<16x256xf32, #tpu.memory_space<vmem>>, vector<16x256xf32>,
    return
  }
  func.func @transform_0(%arg0: i32) -> (i32, i32) {
    %c0_i32 = arith.constant 0 : i32
    %c0_i32_0 = arith.constant 0 : i32
    return %arg0, %c0_i32 : i32, i32
  }
  func.func @transform_1(%arg0: i32) -> (i32, i32) {
    %c0_i32 = arith.constant 0 : i32
    %c0_i32_0 = arith.constant 0 : i32
    %c0_i32_1 = arith.constant 0 : i32
    return %c0_i32, %c0_i32_0 : i32, i32
  }
  func.func @transform_2(%arg0: i32) -> (i32, i32) {
    %c0_i32 = arith.constant 0 : i32
    %c0_i32_0 = arith.constant 0 : i32
    %c0_i32_1 = arith.constant 0 : i32
    return %c0_i32, %c0_i32_0 : i32, i32
  }
  func.func @transform_3(%arg0: i32) -> (i32, i32) {
    %c0_i32 = arith.constant 0 : i32
    %c0_i32_0 = arith.constant 0 : i32
    return %arg0, %c0_i32 : i32, i32
  }
}

</mosaic_0001>

<bundles_post_ra>
// kernel: duck_conv2d_block.24
= control target key start
LH: loop header
LB: loop body
LE: loop exit
PB: predicated region body
PF: predicated region fallthrough
CT: control target
= control target key end

     0   :  { %s1143_s18 = smov 0   ;;  %s1145_s19 = smov 0   ;;  %s1312_s0 = inlined_call_operand.vmem [shape: bf16[2,18,72], index: 0, kind: input, shape index: {}]   ;;  %s1313_s1 = inlined_call_operand.vmem [shape: bf16[3,72,256], index: 1, kind: input, shape index: {}]   ;;  %s1314_s2 = inlined_call_operand.vmem [shape: f32[1,256], index: 2, kind: input, shape index: {}]   ;;  %s1315_s3 = inlined_call_operand.vmem [shape: f32[2,16,256], index: 3, kind: output, shape index: {0}]   ;;  %s1316_s4 = inlined_call_operand.vmem [shape: f32[2,2,1,256], index: 4, kind: output, shape index: {1}]   ;;  %s1317_s5 = inlined_call_operand.vmem [shape: f32[2,2,1,256], index: 5, kind: output, shape index: {2}]  }
   0x1   :  { %s1147_s20 = smov 0   ;;  %s1149_s21 = smov 0  }
   0x2   :  { %s1151_s22 = smov 0  }
   0x3 LB: > { %s25_s23 = sadd.s32 1, %s1101_s20  ;;  %s28_s24 = sadd.s32 1, %s1105_s21  ;;  %s1109_s22 = sphi %s1151_s22, %s16_s22   ;;  %s1105_s21 = sphi %s1149_s21, %s1321_s21   ;;  %s1101_s20 = sphi %s1147_s20, %s1320_s20   ;;  %s1097_s19 = sphi %s1145_s19, %s1319_s19   ;;  %s1093_s18 = sphi %s1143_s18, %s1318_s18  }
   0x4   : > { %p26_p0 = scmp.ge.s32.totalorder %s25_s23, 2  ;;  %p917_p1 = scmp.ge.s32.totalorder %s1109_s22, 1 }
   0x5   : > { %p210_p2 = scmp.lt.s32.totalorder %s1109_s22, 5 }
   0x6   : > { %s1323_s23 = smov (%p26_p0, %s25_s23), 0  ;;  %s1325_s24 = smov (!%p26_p0, %s28_s24), %s1105_s21 }
   0x7   : > { %p211_p3 = pnand %p917_p1, %p210_p2  ;;  %p30_p4 = scmp.ge.s32.totalorder %s1325_s24, 2 }
   0x8   : > { %v1028_v0 = vld [vmem:[%s1313_s1 + $0x4] ss:$8 sps:$4 sm:$0xff] (!%p211_p3)   ;;  %v1111_v2 = vmov (!%p211_p3), 0   ;;  %p258_p5 = scmp.lt.s32.totalorder (!%p211_p3), %s1097_s19, 1  ;;  %v1032_v3 = vld [vmem:[%s1313_s1] ss:$8 sps:$4 sm:$0xff] (!%p211_p3)   ;;  %v643_v55 = vlaneseq (!%p211_p3) }
   0x9   : > { %s1327_s24 = smov (%p30_p4, %s1325_s24), 0  ;;  %214 = sbr.rel (%p211_p3) target bundleno = 292 (0x124), region = 32 }
   0xa   : > { %v1030_v1 = vld [vmem:[%s1313_s1 + $0x4c] ss:$8 sps:$4 sm:$0xff] (!%p211_p3)   ;;  %393 = vmatprep.mubr.bf16.mxu0 (!%p211_p3), %v1111_v2  ;;  %512 = vmatprep.mubr.bf16.mxu1 (!%p211_p3), %v1111_v2  ;;  %v1033_v4 = vld [vmem:[%s1313_s1 + $0x48] ss:$8 sps:$4 sm:$0xff] (!%p211_p3)   ;;  %s926_s8 = sshll.u32 (!%p211_p3), %s1093_s18, 3  ;;  %v304_v16 = vld [vmem:[%s1313_s1 + $0x40] sm:$0xff] (!%p211_p3) }
   0xb   : > { %361 = vmatprep.subr.bf16.mxu0 (!%p211_p3), %v1028_v0  ;;  %480 = vmatprep.subr.bf16.mxu1 (!%p211_p3), %v1030_v1  ;;  %v1034_v5 = vld [vmem:[%s1313_s1 + $0x14] ss:$8 sps:$4 sm:$0xff] (!%p211_p3)   ;;  %v1038_v7 = vld [vmem:[%s1313_s1 + $0x10] ss:$8 sps:$4 sm:$0xff] (!%p211_p3)   ;;  %v1040_v9 = vld [vmem:[%s1313_s1 + $0x24] ss:$8 sps:$4 sm:$0xff] (!%p211_p3)   ;;  %v937_v21 = vcombine.high (!%p211_p3), %v304_v16, %v304_v16  ;;  %v936_v24 = vcombine.low (!%p211_p3), %v304_v16, %v304_v16 }
   0xc   : > { %362 = vmatpush1.bf16.msra.mxu0 (!%p211_p3), %v1032_v3  ;;  %481 = vmatpush1.bf16.msra.mxu1 (!%p211_p3), %v1033_v4  ;;  %v1036_v6 = vld [vmem:[%s1313_s1 + $0x5c] ss:$8 sps:$4 sm:$0xff] (!%p211_p3)   ;;  %v1039_v8 = vld [vmem:[%s1313_s1 + $0x58] ss:$8 sps:$4 sm:$0xff] (!%p211_p3)   ;;  %s290_s27 = sshra.s32 (!%p211_p3), %s926_s8, 3  ;;  %v948_v17 = vld [vmem:[%s1313_s1 + $0x88] sm:$0xff] (!%p211_p3) }
   0xd   : > { %363 = vmatprep.subr.bf16.mxu0 (!%p211_p3), %v1034_v5  ;;  %482 = vmatprep.subr.bf16.mxu1 (!%p211_p3), %v1036_v6  ;;  %v1042_v10 = vld [vmem:[%s1313_s1 + $0x6c] ss:$8 sps:$4 sm:$0xff] (!%p211_p3)   ;;  %v1044_v11 = vld [vmem:[%s1313_s1 + $0x20] ss:$8 sps:$4 sm:$0xff] (!%p211_p3)   ;;  %v1048_v14 = vld [vmem:[%s1313_s1 + $0x7c] ss:$8 sps:$4 sm:$0xff] (!%p211_p3)   ;;  %v959_v23 = vcombine.high (!%p211_p3), %v948_v17, %v948_v17  ;;  %v958_v25 = vcombine.low (!%p211_p3), %v948_v17, %v948_v17 }
   0xe   : > { %v1045_v12 = vld [vmem:[%s1313_s1 + $0x68] ss:$8 sps:$4 sm:$0xff] (!%p211_p3)   ;;  %v1046_v13 = vld [vmem:[%s1313_s1 + $0x34] ss:$8 sps:$4 sm:$0xff] (!%p211_p3)   ;;  %s927_s16 = sshll.u32 (!%p211_p3), %s290_s27, 2  ;;  %vm354_vm0 = vcmask (!%p211_p3), 1043456  }
   0xf   : > { %v1050_v15 = vld [vmem:[%s1313_s1 + $0x30] ss:$8 sps:$4 sm:$0xff] (!%p211_p3)   ;;  %v356_v29 = vsel (!%p211_p3), %vm354_vm0, %v936_v24, 0  ;;  %v475_v30 = vsel (!%p211_p3), %vm354_vm0, %v958_v25, 0  ;;  %v1059_v31 = vld [vmem:[%s1313_s1 + $0x94] ss:$8 sps:$4 sm:$0xff] (!%p211_p3)  }
  0x10   : > { %s1329_s19 = smov (!%p258_p5, %s1097_s19), 1  ;;  %364 = vmatpush1.bf16.msra.mxu0 %v1038_v7  ;;  %483 = vmatpush1.bf16.msra.mxu1 %v1039_v8  ;;  %v1051_v20 = vld [vmem:[%s1313_s1 + $0x78] ss:$8 sps:$4 sm:$0xff]   ;;  %vm350_vm1 = vcmask 588800   ;;  %v1062_v34 = vld [vmem:[%s1313_s1 + $0xa4] ss:$8 sps:$4 sm:$0xff]  }
  0x11   : > { %s985_s17 = smul.u32 12, %s1329_s19  ;;  %365 = vmatprep.subr.bf16.mxu0 %v1040_v9  ;;  %484 = vmatprep.subr.bf16.mxu1 %v1042_v10  ;;  %v1057_v33 = vld [vmem:[%s1313_s1 + $0x90] ss:$8 sps:$4 sm:$0xff]   ;;  %v1060_v35 = vld [vmem:[%s1313_s1 + $0xa0] ss:$8 sps:$4 sm:$0xff]   ;;  %p265_p6 = scmp.lt.s32.totalorder %s1093_s18, 1 }
  0x12   : > { %v1065_v36 = vld [vmem:[%s1313_s1 + $0xb4] ss:$8 sps:$4 sm:$0xff]   ;;  %v1063_v37 = vld [vmem:[%s1313_s1 + $0xb0] ss:$8 sps:$4 sm:$0xff]   ;;  %v1068_v38 = vld [vmem:[%s1313_s1 + $0xc4] ss:$8 sps:$4 sm:$0xff]  }
  0x13   : > { %s262_s12 = scalar_lea.vmem %s1312_s0, %s985_s17  ;;  %v970_v39 = vld [vmem:[%s1313_s1 + $0xd0] sm:$0xff]  ;;  %v1066_v40 = vld [vmem:[%s1313_s1 + $0xc0] ss:$8 sps:$4 sm:$0xff]   ;;  %v644_v56 = vshrl.u32 %v643_v55, 7  ;;  %s1331_s18 = smov (!%p265_p6, %s1093_s18), 1  ;;  %vm695_vm4 = vcmp.lt.s32.totalorder %v643_v55, 256 }
  0x14   : > { %s293_s17 = scalar_lea.vmem %s262_s12, %s927_s16  ;;  %366 = vmatpush1.bf16.msra.mxu0 %v1044_v11  ;;  %485 = vmatpush1.bf16.msra.mxu1 %v1045_v12  ;;  %v980_v41 = vcombine.high %v970_v39, %v970_v39  ;;  %v979_v42 = vcombine.low %v970_v39, %v970_v39  ;;  %s919_s27 = sshll.u32 %s1331_s18, 1  ;;  %v641_v58 = vld [vmem:[%s1314_s2] sm:$0x3]  ;;  %v1112_v16 = vmov 1966171168  }
  0x15   : > { %v294_v18 = vld [vmem:[%s293_s17] sm:$0xf]  ;;  %v295_v19 = vld [vmem:[%s293_s17 + $0x4] sm:$0x1]  ;;  %367 = vmatprep.subr.bf16.mxu0 %v1046_v13  ;;  %486 = vmatprep.subr.bf16.mxu1 %v1048_v14  ;;  %v645_v57 = vsub.s32 0, %v644_v56  ;;  %s920_s10 = sshll.u32 %s1329_s19, 2  ;;  %v679_v17 = vunpack.c.l.s4 %v1112_v16 }
  0x16   : > { %v949_v22 = vcombine.low %v294_v18, %v295_v19  ;;  %v587_v43 = vsel %vm354_vm0, %v979_v42, 0  ;;  %v649_v59 = vsub.s32 1, %v644_v56  ;;  %s1282_s13 = sadd.s32 %s920_s10, %s919_s27 }
  0x17   : > { %v646_v60 = vrot.slane %v641_v58, %v645_v57  ;;  %s921_s8 = sshll.u32 %s1282_s13, 3  ;;  %s279_s25 = scalar_lea.vmem %s1316_s4, %s1282_s13 }
  0x18   : > { %v422_v26 = vshll.u32 %v949_v22, 16  ;;  %v420_v27 = vshrl.u32 %v949_v22, 16  ;;  %368 = vmatpush1.bf16.msra.mxu0 %v1050_v15  ;;  %487 = vmatpush1.bf16.msra.mxu1 %v1051_v20  ;;  %v537_v44 = vrot.slane %v949_v22, 1  ;;  %v650_v62 = vrot.slane %v641_v58, %v649_v59  ;;  %s271_s14 = scalar_lea.vmem %s1315_s3, %s921_s8  ;;  %s287_s29 = scalar_lea.vmem %s1317_s5, %s1282_s13 }
  0x19   : > { %938 = vmatprep.subr.msk.bf16.mxu0 %vm354_vm0, %v937_v21  ;;  %960 = vmatprep.subr.msk.bf16.mxu1 %vm354_vm0, %v959_v23 }
  0x1a   : > { %v424_v28 = vrot.slane %v422_v26, 1  ;;  %v680_v26 = vunpack.c.0.s8 %v679_v17 }
  0x1c   : > { %v425_v32 = vor.u32 %v424_v28, %v420_v27  ;;  %370 = vmatpush1.bf16.msra.mxu0 %v356_v29  ;;  %489 = vmatpush1.bf16.msra.mxu1 %v475_v30 }
  0x1d   : > { %592 = vmatprep.subr.bf16.mxu0 %v1059_v31 }
  0x1f   : > { %939 = vmatmul.mubr.msk.bf16.vlgmr.msra.gmra.mrb[0].mxu0 %vm350_vm1, %v294_v18  ;;  %961 = vmatmul.mubr.msk.bf16.vlgmr.msra.gmra.mrb[0].mxu1 %vm350_vm1, %v425_v32 }
  0x20   : > { %593 = vmatpush1.bf16.msra.mxu0 %v1057_v33  ;;  %624 = vmatprep.mubr.bf16.mxu0 %v1111_v2 }
  0x21   : > { %594 = vmatprep.subr.bf16.mxu0 %v1062_v34 }
  0x24   : > { %595 = vmatpush1.bf16.msra.mxu0 %v1060_v35  ;;  %v683_v35 = vsub.s32 %v680_v26, %v644_v56 }
  0x25   : > { %596 = vmatprep.subr.bf16.mxu0 %v1065_v36 }
  0x28   : > { %597 = vmatpush1.bf16.msra.mxu0 %v1063_v37 }
  0x29   : > { %598 = vmatprep.subr.bf16.mxu0 %v1068_v38 }
  0x2c   : > { %599 = vmatpush1.bf16.msra.mxu0 %v1066_v40 }
  0x2d   : > { %981 = vmatprep.subr.msk.bf16.mxu0 %vm354_vm0, %v980_v41 }
  0x30   : > { %601 = vmatpush1.bf16.msra.mxu0 %v587_v43 }
  0x33   : > { %982 = vmatmul.mubr.msk.bf16.vlgmr.msra.gmra.mrb[4].mxu0 %vm350_vm1, %v537_v44 }
  0xf2   : > { %v395_v45 = vpop.f32.mrb[0].mxu0  ;;  %v514_v46 = vpop.f32.mrb[0].mxu1 }
  0xf3   : > { %v523_v47 = vadd.f32 %v514_v46, %v395_v45  ;;  %v397_v48 = vpop.f32.mrb[1].mxu0  ;;  %v516_v49 = vpop.f32.mrb[1].mxu1 }
  0xf4   : > { %v524_v50 = vadd.f32 %v516_v49, %v397_v48  ;;  %v399_v51 = vpop.f32.mrb[2].mxu0  ;;  %v518_v52 = vpop.f32.mrb[2].mxu1 }
  0xf5   : > { %v400_v53 = vpop.f32.mrb[3].mxu0  ;;  %v519_v54 = vpop.f32.mrb[3].mxu1 }
 0x106   : > { %v626_v61 = vpop.f32.mrb[4].mxu0 }
 0x107   : > { %v635_v63 = vadd.f32 %v626_v61, %v523_v47  ;;  %v628_v0 = vpop.f32.mrb[5].mxu0 }
 0x108   : > { %v636_v1 = vadd.f32 %v628_v0, %v524_v50  ;;  %v630_v2 = vpop.f32.mrb[6].mxu0 }
 0x109   : > { %v653_v3 = vadd.f32 %v646_v60, %v635_v63  ;;  %v631_v4 = vpop.f32.mrb[7].mxu0 }
 0x10a   : > { %v654_v5 = vadd.f32 %v650_v62, %v636_v1 }
 0x10b   : > { %vm655_vm2 = vcmp.gt.f32.partialorder %v653_v3, 0.0  ;;  %v657_v6 = vmul.f32 0.01, %v653_v3 }
 0x10c   : > { %vm656_vm3 = vcmp.gt.f32.partialorder %v654_v5, 0.0  ;;  %v658_v7 = vmul.f32 0.01, %v654_v5 }
 0x10d   : > { %v659_v8 = vsel %vm655_vm2, %v653_v3, %v657_v6 }
 0x10e   : > { %661 = vst [vmem:[%s271_s14] sm:$0xff] %v659_v8  ;;  %v663_v9 = vrot.slane %v659_v8, 4  ;;  %v698_v10 = vmul.f32 %v659_v8, %v659_v8  ;;  %v660_v11 = vsel %vm656_vm3, %v654_v5, %v658_v7 }
 0x10f   : > { %662 = vst [vmem:[%s271_s14 + $0x8] sm:$0xff] %v660_v11  ;;  %v669_v12 = vrot.slane %v660_v11, 4  ;;  %v699_v13 = vmul.f32 %v660_v11, %v660_v11 }
 0x110   : > { %v664_v14 = vadd.f32 %v663_v9, %v659_v8  ;;  %v700_v15 = vrot.slane %v698_v10, 4 }
 0x111   : > { %v670_v18 = vadd.f32 %v669_v12, %v660_v11  ;;  %v706_v19 = vrot.slane %v699_v13, 4 }
 0x112   : > { %v665_v20 = vrot.slane %v664_v14, 2  ;;  %v701_v21 = vadd.f32 %v700_v15, %v698_v10 }
 0x113   : > { %v671_v22 = vrot.slane %v670_v18, 2  ;;  %v707_v23 = vadd.f32 %v706_v19, %v699_v13 }
 0x114   : > { %v666_v24 = vadd.f32 %v665_v20, %v664_v14  ;;  %v702_v25 = vrot.slane %v701_v21, 2 }
 0x115   : > { %v672_v27 = vadd.f32 %v671_v22, %v670_v18  ;;  %v708_v28 = vrot.slane %v707_v23, 2 }
 0x116   : > { %v667_v29 = vrot.slane %v666_v24, 1  ;;  %v703_v30 = vadd.f32 %v702_v25, %v701_v21 }
 0x117   : > { %v673_v31 = vrot.slane %v672_v27, 1  ;;  %v709_v32 = vadd.f32 %v708_v28, %v707_v23 }
 0x118   : > { %v668_v33 = vadd.f32 %v667_v29, %v666_v24  ;;  %v704_v34 = vrot.slane %v703_v30, 1 }
 0x119   : > { %v674_v36 = vadd.f32 %v673_v31, %v672_v27  ;;  %v710_v37 = vrot.slane %v709_v32, 1 }
 0x11a   : > { %v705_v38 = vadd.f32 %v704_v34, %v703_v30 }
 0x11b   : > { %v677_v39 = vcombine.low %v668_v33, %v674_v36  ;;  %v711_v40 = vadd.f32 %v710_v37, %v709_v32 }
 0x11d   : > { %v684_v41 = vrot.slane %v677_v39, %v683_v35  ;;  %v714_v42 = vcombine.low %v705_v38, %v711_v40 }
 0x11f   : > { %v691_v43 = vrot.slane %v684_v41, %v683_v35  ;;  %v721_v44 = vrot.slane %v714_v42, %v683_v35 }
 0x121   : > { %697 = vst.msk [vmem:[%s279_s25] sm:$0x3] %vm695_vm4, %v691_v43  ;;  %v728_v45 = vrot.slane %v721_v44, %v683_v35 }
 0x123   : > { %730 = vst.msk [vmem:[%s287_s29] sm:$0x3] %vm695_vm4, %v728_v45 }
 0x124 PF: > { %s16_s22 = sadd.s32 1, %s1109_s22   ;;  %s1318_s18 = smov %s1101_s20 }
 0x125   : > { %p13_p7 = scmp.ge.s32.totalorder %s16_s22, 6   ;;  %s1319_s19 = smov %s1105_s21 }
 0x126   : > { %s1320_s20 = smov %s1323_s23  ;;  %s1321_s21 = smov %s1327_s24 }
 0x127   :  { %15 = sbr.rel (!%p13_p7) target bundleno = 3 (0x3), region = 89 }

// kernel: duck_conv2d_block.38
= control target key start
LH: loop header
LB: loop body
LE: loop exit
PB: predicated region body
PF: predicated region fallthrough
CT: control target
= control target key end

     0   :  { %s1089_s18 = smov 0   ;;  %s1091_s19 = smov 0   ;;  %s1240_s0 = inlined_call_operand.vmem [shape: bf16[2,18,64], index: 0, kind: input, shape index: {}]   ;;  %s1241_s1 = inlined_call_operand.vmem [shape: bf16[3,64,256], index: 1, kind: input, shape index: {}]   ;;  %s1242_s2 = inlined_call_operand.vmem [shape: f32[1,256], index: 2, kind: input, shape index: {}]   ;;  %s1243_s3 = inlined_call_operand.vmem [shape: f32[2,16,256], index: 3, kind: output, shape index: {0}]   ;;  %s1244_s4 = inlined_call_operand.vmem [shape: f32[2,2,1,256], index: 4, kind: output, shape index: {1}]   ;;  %s1245_s5 = inlined_call_operand.vmem [shape: f32[2,2,1,256], index: 5, kind: output, shape index: {2}]  }
   0x1   :  { %s1093_s20 = smov 0   ;;  %s1095_s21 = smov 0  }
   0x2   :  { %s1097_s22 = smov 0  }
   0x3 LB: > { %s25_s23 = sadd.s32 1, %s1047_s20  ;;  %s28_s24 = sadd.s32 1, %s1051_s21  ;;  %s1055_s22 = sphi %s1097_s22, %s16_s22   ;;  %s1051_s21 = sphi %s1095_s21, %s1249_s21   ;;  %s1047_s20 = sphi %s1093_s20, %s1248_s20   ;;  %s1043_s19 = sphi %s1091_s19, %s1247_s19   ;;  %s1039_s18 = sphi %s1089_s18, %s1246_s18  }
   0x4   : > { %p26_p0 = scmp.ge.s32.totalorder %s25_s23, 2  ;;  %p880_p1 = scmp.ge.s32.totalorder %s1055_s22, 1 }
   0x5   : > { %p210_p2 = scmp.lt.s32.totalorder %s1055_s22, 5 }
   0x6   : > { %s1251_s23 = smov (%p26_p0, %s25_s23), 0  ;;  %s1253_s24 = smov (!%p26_p0, %s28_s24), %s1051_s21 }
   0x7   : > { %p211_p3 = pnand %p880_p1, %p210_p2  ;;  %p30_p4 = scmp.ge.s32.totalorder %s1253_s24, 2 }
   0x8   : > { %v980_v0 = vld [vmem:[%s1241_s1 + $0x4] ss:$8 sps:$4 sm:$0xff] (!%p211_p3)   ;;  %p258_p5 = scmp.lt.s32.totalorder (!%p211_p3), %s1043_s19, 1  ;;  %v1057_v2 = vmov (!%p211_p3), 0   ;;  %v984_v3 = vld [vmem:[%s1241_s1] ss:$8 sps:$4 sm:$0xff] (!%p211_p3)   ;;  %v606_v42 = vlaneseq (!%p211_p3) }
   0x9   : > { %s1255_s24 = smov (%p30_p4, %s1253_s24), 0  ;;  %214 = sbr.rel (%p211_p3) target bundleno = 284 (0x11c), region = 32 }
   0xa   : > { %v982_v1 = vld [vmem:[%s1241_s1 + $0x44] ss:$8 sps:$4 sm:$0xff] (!%p211_p3)   ;;  %380 = vmatprep.mubr.bf16.mxu0 (!%p211_p3), %v1057_v2  ;;  %487 = vmatprep.mubr.bf16.mxu1 (!%p211_p3), %v1057_v2  ;;  %v985_v4 = vld [vmem:[%s1241_s1 + $0x40] ss:$8 sps:$4 sm:$0xff] (!%p211_p3)   ;;  %v986_v5 = vld [vmem:[%s1241_s1 + $0x14] ss:$8 sps:$4 sm:$0xff] (!%p211_p3)  }
   0xb   : > { %348 = vmatprep.subr.bf16.mxu0 (!%p211_p3), %v980_v0  ;;  %455 = vmatprep.subr.bf16.mxu1 (!%p211_p3), %v982_v1  ;;  %v988_v6 = vld [vmem:[%s1241_s1 + $0x54] ss:$8 sps:$4 sm:$0xff] (!%p211_p3)   ;;  %v990_v7 = vld [vmem:[%s1241_s1 + $0x10] ss:$8 sps:$4 sm:$0xff] (!%p211_p3)   ;;  %s889_s17 = sshll.u32 (!%p211_p3), %s1039_s18, 3  ;;  %vm344_vm0 = vcmask (!%p211_p3), 523264  }
   0xc   : > { %349 = vmatpush1.bf16.msra.mxu0 (!%p211_p3), %v984_v3  ;;  %456 = vmatpush1.bf16.msra.mxu1 (!%p211_p3), %v985_v4  ;;  %v991_v8 = vld [vmem:[%s1241_s1 + $0x50] ss:$8 sps:$4 sm:$0xff] (!%p211_p3)   ;;  %v992_v9 = vld [vmem:[%s1241_s1 + $0x24] ss:$8 sps:$4 sm:$0xff] (!%p211_p3)   ;;  %v996_v11 = vld [vmem:[%s1241_s1 + $0x20] ss:$8 sps:$4 sm:$0xff] (!%p211_p3)  }
   0xd   : > { %350 = vmatprep.subr.bf16.mxu0 (!%p211_p3), %v986_v5  ;;  %457 = vmatprep.subr.bf16.mxu1 (!%p211_p3), %v988_v6  ;;  %v994_v10 = vld [vmem:[%s1241_s1 + $0x64] ss:$8 sps:$4 sm:$0xff] (!%p211_p3)   ;;  %v997_v12 = vld [vmem:[%s1241_s1 + $0x60] ss:$8 sps:$4 sm:$0xff] (!%p211_p3)   ;;  %v998_v13 = vld [vmem:[%s1241_s1 + $0x34] ss:$8 sps:$4 sm:$0xff] (!%p211_p3)  }
   0xe   : > { %s290_s13 = sshra.s32 (!%p211_p3), %s889_s17, 3  ;;  %v1000_v14 = vld [vmem:[%s1241_s1 + $0x74] ss:$8 sps:$4 sm:$0xff] (!%p211_p3)   ;;  %v1002_v17 = vld [vmem:[%s1241_s1 + $0x30] ss:$8 sps:$4 sm:$0xff] (!%p211_p3)   ;;  %p265_p6 = scmp.lt.s32.totalorder (!%p211_p3), %s1039_s18, 1 }
   0xf   : > { %s890_s25 = sshll.u32 (!%p211_p3), %s290_s13, 2  ;;  %v1003_v18 = vld [vmem:[%s1241_s1 + $0x70] ss:$8 sps:$4 sm:$0xff] (!%p211_p3)   ;;  %v1007_v20 = vld [vmem:[%s1241_s1 + $0x84] ss:$8 sps:$4 sm:$0xff] (!%p211_p3)   ;;  %v607_v44 = vshrl.u32 (!%p211_p3), %v606_v42, 7 }
  0x10   : > { %s1257_s19 = smov (!%p258_p5, %s1043_s19), 1  ;;  %351 = vmatpush1.bf16.msra.mxu0 %v990_v7  ;;  %458 = vmatpush1.bf16.msra.mxu1 %v991_v8  ;;  %v1005_v24 = vld [vmem:[%s1241_s1 + $0x80] ss:$8 sps:$4 sm:$0xff]   ;;  %v1010_v25 = vld [vmem:[%s1241_s1 + $0x94] ss:$8 sps:$4 sm:$0xff]   ;;  %s1259_s18 = smov (!%p265_p6, %s1039_s18), 1 }
  0x11   : > { %s937_s14 = smul.u32 12, %s1257_s19  ;;  %352 = vmatprep.subr.bf16.mxu0 %v992_v9  ;;  %459 = vmatprep.subr.bf16.mxu1 %v994_v10  ;;  %v1008_v27 = vld [vmem:[%s1241_s1 + $0x90] ss:$8 sps:$4 sm:$0xff]   ;;  %v1013_v28 = vld [vmem:[%s1241_s1 + $0xa4] ss:$8 sps:$4 sm:$0xff]   ;;  %v608_v45 = vsub.s32 0, %v607_v44 }
  0x12   : > { %v1011_v29 = vld [vmem:[%s1241_s1 + $0xa0] ss:$8 sps:$4 sm:$0xff]   ;;  %v1016_v30 = vld [vmem:[%s1241_s1 + $0xb4] ss:$8 sps:$4 sm:$0xff]   ;;  %v1014_v31 = vld [vmem:[%s1241_s1 + $0xb0] ss:$8 sps:$4 sm:$0xff]  }
  0x13   : > { %s262_s10 = scalar_lea.vmem %s1240_s0, %s937_s14  ;;  %s882_s28 = sshll.u32 %s1259_s18, 1  ;;  %v604_v46 = vld [vmem:[%s1242_s2] sm:$0x3]  ;;  %v612_v47 = vsub.s32 1, %v607_v44  ;;  %v1058_v4 = vmov 1966171168  }
  0x14   : > { %s293_s26 = scalar_lea.vmem %s262_s10, %s890_s25  ;;  %353 = vmatpush1.bf16.msra.mxu0 %v996_v11  ;;  %460 = vmatpush1.bf16.msra.mxu1 %v997_v12  ;;  %s883_s29 = sshll.u32 %s1257_s19, 2  ;;  %v609_v48 = vrot.slane %v604_v46, %v608_v45  ;;  %v642_v5 = vunpack.c.l.s4 %v1058_v4  ;;  %vm658_vm3 = vcmp.lt.s32.totalorder %v606_v42, 256 }
  0x15   : > { %v294_v15 = vld [vmem:[%s293_s26] sm:$0xf]  ;;  %v295_v16 = vld [vmem:[%s293_s26 + $0x4] sm:$0x1]  ;;  %354 = vmatprep.subr.bf16.mxu0 %v998_v13  ;;  %461 = vmatprep.subr.bf16.mxu1 %v1000_v14  ;;  %s1210_s6 = sadd.s32 %s883_s29, %s882_s28  ;;  %v613_v50 = vrot.slane %v604_v46, %v612_v47 }
  0x16   : > { %v908_v19 = vcombine.low %v294_v15, %v295_v16  ;;  %s884_s7 = sshll.u32 %s1210_s6, 3  ;;  %v643_v14 = vunpack.c.0.s8 %v642_v5  ;;  %s279_s11 = scalar_lea.vmem %s1244_s4, %s1210_s6 }
  0x17   : > { %s271_s8 = scalar_lea.vmem %s1243_s3, %s884_s7  ;;  %s287_s15 = scalar_lea.vmem %s1245_s5, %s1210_s6 }
  0x18   : > { %v406_v21 = vshrl.u32 %v908_v19, 16  ;;  %v408_v22 = vshll.u32 %v908_v19, 16  ;;  %355 = vmatpush1.bf16.msra.mxu0 %v1002_v17  ;;  %462 = vmatpush1.bf16.msra.mxu1 %v1003_v18  ;;  %v511_v32 = vrot.slane %v908_v19, 1 }
  0x19   : > { %555 = vmatprep.subr.bf16.mxu0 %v1007_v20 }
  0x1a   : > { %v410_v23 = vrot.slane %v408_v22, 1 }
  0x1b   : > { %899 = vmatmul.mubr.msk.bf16.vlgmr.msra.gmra.mrb[0].mxu0 %vm344_vm0, %v294_v15 }
  0x1c   : > { %v411_v26 = vor.u32 %v410_v23, %v406_v21  ;;  %556 = vmatpush1.bf16.msra.mxu0 %v1005_v24  ;;  %587 = vmatprep.mubr.bf16.mxu0 %v1057_v2  ;;  %v646_v23 = vsub.s32 %v643_v14, %v607_v44 }
  0x1d   : > { %557 = vmatprep.subr.bf16.mxu0 %v1010_v25 }
  0x1e   : > { %917 = vmatmul.mubr.msk.bf16.vlgmr.msra.gmra.mrb[0].mxu1 %vm344_vm0, %v411_v26 }
  0x20   : > { %558 = vmatpush1.bf16.msra.mxu0 %v1008_v27 }
  0x21   : > { %559 = vmatprep.subr.bf16.mxu0 %v1013_v28 }
  0x24   : > { %560 = vmatpush1.bf16.msra.mxu0 %v1011_v29 }
  0x25   : > { %561 = vmatprep.subr.bf16.mxu0 %v1016_v30 }
  0x28   : > { %562 = vmatpush1.bf16.msra.mxu0 %v1014_v31 }
  0x2b   : > { %934 = vmatmul.mubr.msk.bf16.vlgmr.msra.gmra.mrb[4].mxu0 %vm344_vm0, %v511_v32 }
  0xee   : > { %v382_v33 = vpop.f32.mrb[0].mxu0 }
  0xef   : > { %v384_v35 = vpop.f32.mrb[1].mxu0 }
  0xf0   : > { %v386_v38 = vpop.f32.mrb[2].mxu0 }
  0xf1   : > { %v489_v34 = vpop.f32.mrb[0].mxu1  ;;  %v387_v40 = vpop.f32.mrb[3].mxu0 }
  0xf2   : > { %v498_v36 = vadd.f32 %v489_v34, %v382_v33  ;;  %v491_v37 = vpop.f32.mrb[1].mxu1 }
  0xf3   : > { %v499_v39 = vadd.f32 %v491_v37, %v384_v35  ;;  %v493_v41 = vpop.f32.mrb[2].mxu1 }
  0xf4   : > { %v494_v43 = vpop.f32.mrb[3].mxu1 }
  0xfe   : > { %v589_v49 = vpop.f32.mrb[4].mxu0 }
  0xff   : > { %v598_v51 = vadd.f32 %v589_v49, %v498_v36  ;;  %v591_v52 = vpop.f32.mrb[5].mxu0 }
 0x100   : > { %v599_v53 = vadd.f32 %v591_v52, %v499_v39  ;;  %v593_v54 = vpop.f32.mrb[6].mxu0 }
 0x101   : > { %v616_v55 = vadd.f32 %v609_v48, %v598_v51  ;;  %v594_v56 = vpop.f32.mrb[7].mxu0 }
 0x102   : > { %v617_v57 = vadd.f32 %v613_v50, %v599_v53 }
 0x103   : > { %vm618_vm1 = vcmp.gt.f32.partialorder %v616_v55, 0.0  ;;  %v620_v58 = vmul.f32 0.01, %v616_v55 }
 0x104   : > { %vm619_vm2 = vcmp.gt.f32.partialorder %v617_v57, 0.0  ;;  %v621_v59 = vmul.f32 0.01, %v617_v57 }
 0x105   : > { %v622_v60 = vsel %vm618_vm1, %v616_v55, %v620_v58 }
 0x106   : > { %624 = vst [vmem:[%s271_s8] sm:$0xff] %v622_v60  ;;  %v626_v61 = vrot.slane %v622_v60, 4  ;;  %v661_v62 = vmul.f32 %v622_v60, %v622_v60  ;;  %v623_v63 = vsel %vm619_vm2, %v617_v57, %v621_v59 }
 0x107   : > { %625 = vst [vmem:[%s271_s8 + $0x8] sm:$0xff] %v623_v63  ;;  %v632_v0 = vrot.slane %v623_v63, 4  ;;  %v662_v1 = vmul.f32 %v623_v63, %v623_v63 }
 0x108   : > { %v627_v2 = vadd.f32 %v626_v61, %v622_v60  ;;  %v663_v3 = vrot.slane %v661_v62, 4 }
 0x109   : > { %v633_v6 = vadd.f32 %v632_v0, %v623_v63  ;;  %v669_v7 = vrot.slane %v662_v1, 4 }
 0x10a   : > { %v628_v8 = vrot.slane %v627_v2, 2  ;;  %v664_v9 = vadd.f32 %v663_v3, %v661_v62 }
 0x10b   : > { %v634_v10 = vrot.slane %v633_v6, 2  ;;  %v670_v11 = vadd.f32 %v669_v7, %v662_v1 }
 0x10c   : > { %v629_v12 = vadd.f32 %v628_v8, %v627_v2  ;;  %v665_v13 = vrot.slane %v664_v9, 2 }
 0x10d   : > { %v635_v15 = vadd.f32 %v634_v10, %v633_v6  ;;  %v671_v16 = vrot.slane %v670_v11, 2 }
 0x10e   : > { %v630_v17 = vrot.slane %v629_v12, 1  ;;  %v666_v18 = vadd.f32 %v665_v13, %v664_v9 }
 0x10f   : > { %v636_v19 = vrot.slane %v635_v15, 1  ;;  %v672_v20 = vadd.f32 %v671_v16, %v670_v11 }
 0x110   : > { %v631_v21 = vadd.f32 %v630_v17, %v629_v12  ;;  %v667_v22 = vrot.slane %v666_v18, 1 }
 0x111   : > { %v637_v24 = vadd.f32 %v636_v19, %v635_v15  ;;  %v673_v25 = vrot.slane %v672_v20, 1 }
 0x112   : > { %v668_v26 = vadd.f32 %v667_v22, %v666_v18 }
 0x113   : > { %v640_v27 = vcombine.low %v631_v21, %v637_v24  ;;  %v674_v28 = vadd.f32 %v673_v25, %v672_v20 }
 0x115   : > { %v647_v29 = vrot.slane %v640_v27, %v646_v23  ;;  %v677_v30 = vcombine.low %v668_v26, %v674_v28 }
 0x117   : > { %v654_v31 = vrot.slane %v647_v29, %v646_v23  ;;  %v684_v32 = vrot.slane %v677_v30, %v646_v23 }
 0x119   : > { %660 = vst.msk [vmem:[%s279_s11] sm:$0x3] %vm658_vm3, %v654_v31  ;;  %v691_v33 = vrot.slane %v684_v32, %v646_v23 }
 0x11b   : > { %693 = vst.msk [vmem:[%s287_s15] sm:$0x3] %vm658_vm3, %v691_v33 }
 0x11c PF: > { %s16_s22 = sadd.s32 1, %s1055_s22   ;;  %s1246_s18 = smov %s1047_s20 }
 0x11d   : > { %p13_p7 = scmp.ge.s32.totalorder %s16_s22, 6   ;;  %s1247_s19 = smov %s1051_s21 }
 0x11e   : > { %s1248_s20 = smov %s1251_s23  ;;  %s1249_s21 = smov %s1255_s24 }
 0x11f   :  { %15 = sbr.rel (!%p13_p7) target bundleno = 3 (0x3), region = 89 }

// kernel: duck_conv2d_block.21
= control target key start
LH: loop header
LB: loop body
LE: loop exit
PB: predicated region body
PF: predicated region fallthrough
CT: control target
= control target key end

     0   :  { %s1702_s18 = smov 0   ;;  %s1704_s19 = smov 0   ;;  %s1961_s0 = inlined_call_operand.vmem [shape: bf16[2,20,80], index: 0, kind: input, shape index: {}]   ;;  %s1962_s1 = inlined_call_operand.vmem [shape: bf16[3,80,288], index: 1, kind: input, shape index: {}]   ;;  %s1963_s2 = inlined_call_operand.vmem [shape: f32[1,288], index: 2, kind: input, shape index: {}]   ;;  %s1964_s3 = inlined_call_operand.vmem [shape: f32[2,18,288], index: 3, kind: output, shape index: {0}]   ;;  %s1965_s4 = inlined_call_operand.vmem [shape: f32[2,1,1,288], index: 4, kind: output, shape index: {1}]   ;;  %s1966_s5 = inlined_call_operand.vmem [shape: f32[2,1,1,288], index: 5, kind: output, shape index: {2}]  }
   0x1   :  { %s1706_s20 = smov 0  }
   0x2 LB: > { %s28_s21 = sadd.s32 1, %s1664_s19  ;;  %p1388_p0 = scmp.ge.s32.totalorder %s1668_s20, 1  ;;  %s1668_s20 = sphi %s1706_s20, %s16_s20   ;;  %s1664_s19 = sphi %s1704_s19, %s1968_s19   ;;  %s1660_s18 = sphi %s1702_s18, %s1967_s18  }
   0x3   : > { %p30_p1 = scmp.ge.s32.totalorder %s28_s21, 2  ;;  %p210_p2 = scmp.lt.s32.totalorder %s1668_s20, 3 }
   0x5   : > { %s1970_s21 = smov (%p30_p1, %s28_s21), 0  ;;  %p211_p3 = pnand %p1388_p0, %p210_p2 }
   0x6   : > { %v1584_v0 = vld [vmem:[%s1962_s1 + $0x4] ss:$12 sps:$4 sm:$0xff] (!%p211_p3)   ;;  %p259_p4 = scmp.lt.s32.totalorder (!%p211_p3), %s1660_s18, 1  ;;  %v1586_v1 = vld [vmem:[%s1962_s1 + $0x8] ss:$12 sps:$4 sm:$0xff] (!%p211_p3)   ;;  %v1670_v2 = vmov (!%p211_p3), 0  }
   0x7   : > { %214 = sbr.rel (%p211_p3) target bundleno = 331 (0x14b), region = 32  ;;  %442 = vmatprep.mubr.bf16.mxu0 (!%p211_p3), %v1670_v2  ;;  %410 = vmatprep.subr.bf16.mxu0 (!%p211_p3), %v1584_v0  ;;  %v1587_v3 = vld [vmem:[%s1962_s1] ss:$12 sps:$4 sm:$0xff] (!%p211_p3)   ;;  %v1588_v4 = vld [vmem:[%s1962_s1 + $0x1c] ss:$12 sps:$4 sm:$0xff] (!%p211_p3)   ;;  %vm403_vm0 = vcmask (!%p211_p3), 654336  }
   0x8   : > { %1513 = vmatprep.subr.bf16.mxu1 (!%p211_p3), %v1586_v1  ;;  %411 = vmatpush1.bf16.msra.mxu0 (!%p211_p3), %v1587_v3  ;;  %v1590_v5 = vld [vmem:[%s1962_s1 + $0x20] ss:$12 sps:$4 sm:$0xff] (!%p211_p3)   ;;  %v1591_v6 = vld [vmem:[%s1962_s1 + $0x18] ss:$12 sps:$4 sm:$0xff] (!%p211_p3)   ;;  %v1595_v9 = vld [vmem:[%s1962_s1 + $0x30] ss:$12 sps:$4 sm:$0xff] (!%p211_p3)  }
   0x9   : > { %1514 = vmatpush3.bf16.msra.mxu1 (!%p211_p3), %v1586_v1  ;;  %412 = vmatprep.subr.bf16.mxu0 (!%p211_p3), %v1588_v4  ;;  %v1592_v7 = vld [vmem:[%s1962_s1 + $0x34] ss:$12 sps:$4 sm:$0xff] (!%p211_p3)   ;;  %v1594_v8 = vld [vmem:[%s1962_s1 + $0x38] ss:$12 sps:$4 sm:$0xff] (!%p211_p3)   ;;  %v1598_v11 = vld [vmem:[%s1962_s1 + $0x50] ss:$12 sps:$4 sm:$0xff] (!%p211_p3)  }
   0xa   : > { %1515 = vmatprep.subr.bf16.mxu1 (!%p211_p3), %v1590_v5  ;;  %v1596_v10 = vld [vmem:[%s1962_s1 + $0x4c] ss:$12 sps:$4 sm:$0xff] (!%p211_p3)   ;;  %v1599_v12 = vld [vmem:[%s1962_s1 + $0x48] ss:$12 sps:$4 sm:$0xff] (!%p211_p3)   ;;  %v1600_v14 = vld [vmem:[%s1962_s1 + $0x64] ss:$12 sps:$4 sm:$0xff] (!%p211_p3)  }
   0xb   : > { %v1602_v15 = vld [vmem:[%s1962_s1 + $0x68] ss:$12 sps:$4 sm:$0xff] (!%p211_p3)   ;;  %v1603_v16 = vld [vmem:[%s1962_s1 + $0x60] ss:$12 sps:$4 sm:$0xff] (!%p211_p3)   ;;  %vm541_vm1 = vsmask.f32 (!%p211_p3), 7424 }
   0xc   : > { %413 = vmatpush1.bf16.msra.mxu0 (!%p211_p3), %v1591_v6  ;;  %v1607_v17 = vld [vmem:[%s1962_s1 + $0x7c] ss:$12 sps:$4 sm:$0xff] (!%p211_p3)   ;;  %v1608_v19 = vld [vmem:[%s1962_s1 + $0x80] ss:$12 sps:$4 sm:$0xff] (!%p211_p3)   ;;  %v1605_v23 = vld [vmem:[%s1962_s1 + $0x78] ss:$12 sps:$4 sm:$0xff] (!%p211_p3)  }
   0xd   : > { %1516 = vmatpush3.bf16.msra.mxu1 (!%p211_p3), %v1590_v5  ;;  %414 = vmatprep.subr.bf16.mxu0 (!%p211_p3), %v1592_v7  ;;  %v1612_v26 = vld [vmem:[%s1962_s1 + $0x94] ss:$12 sps:$4 sm:$0xff] (!%p211_p3)   ;;  %v1613_v27 = vld [vmem:[%s1962_s1 + $0x98] ss:$12 sps:$4 sm:$0xff] (!%p211_p3)   ;;  %v1610_v29 = vld [vmem:[%s1962_s1 + $0x90] ss:$12 sps:$4 sm:$0xff] (!%p211_p3)  }
   0xe   : > { %s1972_s18 = smov (!%p259_p4, %s1660_s18), 1  ;;  %1517 = vmatprep.subr.bf16.mxu1 %v1594_v8  ;;  %v1616_v30 = vld [vmem:[%s1962_s1 + $0xac] ss:$12 sps:$4 sm:$0xff]   ;;  %v1617_v32 = vld [vmem:[%s1962_s1 + $0xb0] ss:$12 sps:$4 sm:$0xff]   ;;  %vm788_vm2 = vcmask 1046528  }
   0xf   : > { %s1555_s11 = smul.u32 12, %s1972_s18  ;;  %v1614_v33 = vld [vmem:[%s1962_s1 + $0xa8] ss:$12 sps:$4 sm:$0xff]   ;;  %v1620_v34 = vld [vmem:[%s1962_s1 + $0xc4] ss:$12 sps:$4 sm:$0xff]   ;;  %vm518_vm3 = vcmask 254976  }
  0x10   : > { %415 = vmatpush1.bf16.msra.mxu0 %v1595_v9  ;;  %v1621_v35 = vld [vmem:[%s1962_s1 + $0xc8] ss:$12 sps:$4 sm:$0xff]   ;;  %v1618_v36 = vld [vmem:[%s1962_s1 + $0xc0] ss:$12 sps:$4 sm:$0xff]   ;;  %v1622_v40 = vld [vmem:[%s1962_s1 + $0xd8] ss:$12 sps:$4 sm:$0xff]  }
  0x11   : > { %s263_s26 = scalar_lea.vmem %s1961_s0, %s1555_s11  ;;  %1518 = vmatpush3.bf16.msra.mxu1 %v1594_v8  ;;  %416 = vmatprep.subr.bf16.mxu0 %v1596_v10  ;;  %v1624_v37 = vld [vmem:[%s1962_s1 + $0xdc] ss:$12 sps:$4 sm:$0xff]   ;;  %v1625_v38 = vld [vmem:[%s1962_s1 + $0xe0] ss:$12 sps:$4 sm:$0xff]   ;;  %v1629_v42 = vld [vmem:[%s1962_s1 + $0xf8] ss:$12 sps:$4 sm:$0xff]  }
  0x12   : > { %v1763_v13 = vld [vmem:[%s263_s26] sm:$0xff]   ;;  %1519 = vmatprep.subr.bf16.mxu1 %v1598_v11  ;;  %v1609_v18 = vld [vmem:[%s263_s26 + $0x8] ss:$0 sps:$4 sm:$0x33]   ;;  %v1626_v46 = vld [vmem:[%s1962_s1 + $0xf0] ss:$12 sps:$4 sm:$0xff]  }
  0x13   : > { %1523 = vmatprep.mubr.msk.bf16.mxu1 %vm403_vm0, %v1763_v13  ;;  %v542_v20 = vshrl.u32 %v1763_v13, 16  ;;  %v544_v21 = vshll.u32 %v1763_v13, 16  ;;  %v548_v22 = vshll.u32 %v1609_v18, 16  ;;  %v552_v39 = vshrl.u32 %v1609_v18, 16  ;;  %v1628_v41 = vld [vmem:[%s1962_s1 + $0xf4] ss:$12 sps:$4 sm:$0xff]  }
  0x14   : > { %417 = vmatpush1.bf16.msra.mxu0 %v1599_v12  ;;  %v789_v44 = vrot.slane %v1763_v13, 1  ;;  %v790_v45 = vrot.slane %v1609_v18, 1  ;;  %v1632_v47 = vld [vmem:[%s1962_s1 + $0x10c] ss:$12 sps:$4 sm:$0xff]   ;;  %v1633_v48 = vld [vmem:[%s1962_s1 + $0x110] ss:$12 sps:$4 sm:$0xff]  }
  0x15   : > { %1520 = vmatpush3.bf16.msra.mxu1 %v1598_v11  ;;  %418 = vmatprep.subr.bf16.mxu0 %v1600_v14  ;;  %v546_v24 = vrot.slane %v544_v21, 1  ;;  %v550_v25 = vrot.slane %v548_v22, 1  ;;  %v1630_v50 = vld [vmem:[%s1962_s1 + $0x108] ss:$12 sps:$4 sm:$0xff]   ;;  %v1636_v51 = vld [vmem:[%s1962_s1 + $0x124] ss:$12 sps:$4 sm:$0xff]  }
  0x16   : > { %1521 = vmatprep.subr.bf16.mxu1 %v1602_v15  ;;  %v791_v49 = vsel %vm788_vm2, %v789_v44, %v790_v45  ;;  %v1637_v52 = vld [vmem:[%s1962_s1 + $0x128] ss:$12 sps:$4 sm:$0xff]   ;;  %v1634_v53 = vld [vmem:[%s1962_s1 + $0x120] ss:$12 sps:$4 sm:$0xff]   ;;  %v1638_v56 = vld [vmem:[%s1962_s1 + $0x138] ss:$12 sps:$4 sm:$0xff]  }
  0x17   : > { %v547_v28 = vor.u32 %v546_v24, %v542_v20  ;;  %v554_v43 = vor.u32 %v552_v39, %v550_v25  ;;  %v1640_v54 = vld [vmem:[%s1962_s1 + $0x13c] ss:$12 sps:$4 sm:$0xff]   ;;  %v1641_v55 = vld [vmem:[%s1962_s1 + $0x140] ss:$12 sps:$4 sm:$0xff]   ;;  %v1645_v58 = vld [vmem:[%s1962_s1 + $0x158] ss:$12 sps:$4 sm:$0xff]  }
  0x18   : > { %419 = vmatpush1.bf16.msra.mxu0 %v1603_v16  ;;  %v1644_v57 = vld [vmem:[%s1962_s1 + $0x154] ss:$12 sps:$4 sm:$0xff]   ;;  %v1642_v59 = vld [vmem:[%s1962_s1 + $0x150] ss:$12 sps:$4 sm:$0xff]   ;;  %vm511_vm4 = vcmask 261120   ;;  %s1556_s9 = smul.u32 72, %s1972_s18 }
  0x19   : > { %1522 = vmatpush3.bf16.msra.mxu1 %v1602_v15  ;;  %641 = vmatprep.subr.bf16.mxu0 %v1607_v17  ;;  %v551_v31 = vsel %vm541_vm1, %v547_v28, %v550_v25  ;;  %vm1076_vm12 = vcmask 1041408   ;;  %s1557_s13 = smul.u32 3, %s1972_s18 }
  0x1a   : > { %1527 = vmatprep.subr.bf16.mxu1 %v1608_v19  ;;  %s1914_s12 = scalar_lea.vmem %s1964_s3, %s1556_s9 }
  0x1b   : > { %1408 = vmatmul.mubr.msk.bf16.vlgmr.msra.gmra.mrb[0].mxu0 %vm403_vm0, %v1763_v13  ;;  %s282_s16 = scalar_lea.vmem %s1965_s4, %s1557_s13  ;;  %s290_s18 = scalar_lea.vmem %s1966_s5, %s1557_s13 }
  0x1c   : > { %1524 = vmatmul.mubr.msk.bf16.vlgmr.msra.gmra.mrb[0].mxu1 %vm403_vm0, %v1609_v18  ;;  %642 = vmatpush1.bf16.msra.mxu0 %v1605_v23 }
  0x1d   : > { %1528 = vmatpush3.bf16.msra.mxu1 %v1608_v19  ;;  %643 = vmatprep.subr.bf16.mxu0 %v1612_v26  ;;  %v1015_v26 = vlaneseq }
  0x1e   : > { %1529 = vmatprep.subr.bf16.mxu1 %v1613_v27  ;;  %452 = vmatprep.mubr.bf16.mxu0 %v1670_v2 }
  0x1f   : > { %1537 = vmatprep.mubr.msk.bf16.mxu1 %vm403_vm0, %v551_v31  ;;  %vm1134_vm15 = vcmp.lt.s32.totalorder %v1015_v26, 288 }
  0x20   : > { %644 = vmatpush1.bf16.msra.mxu0 %v1610_v29 }
  0x21   : > { %1530 = vmatpush3.bf16.msra.mxu1 %v1613_v27  ;;  %645 = vmatprep.subr.bf16.mxu0 %v1616_v30 }
  0x22   : > { %1531 = vmatprep.subr.bf16.mxu1 %v1617_v32 }
  0x23   : > { %1409 = vmatmul.mubr.msk.bf16.gmra.mrb[4].mxu0 %vm403_vm0, %v1609_v18 }
  0x24   : > { %646 = vmatpush1.bf16.msra.mxu0 %v1614_v33  ;;  %673 = vmatprep.mubr.bf16.mxu0 %v1670_v2 }
  0x25   : > { %1532 = vmatpush3.bf16.msra.mxu1 %v1617_v32  ;;  %647 = vmatprep.subr.bf16.mxu0 %v1620_v34 }
  0x26   : > { %1533 = vmatprep.subr.bf16.mxu1 %v1621_v35 }
  0x28   : > { %648 = vmatpush1.bf16.msra.mxu0 %v1618_v36 }
  0x29   : > { %1534 = vmatpush3.bf16.msra.mxu1 %v1621_v35  ;;  %649 = vmatprep.subr.bf16.mxu0 %v1624_v37  ;;  %v1894_v35 = vshrl.u32 %v1015_v26, 7  ;;  %v1013_v37 = vld [vmem:[%s1963_s2] sm:$0x7] }
  0x2a   : > { %1535 = vmatprep.subr.bf16.mxu1 %v1625_v38 }
  0x2b   : > { %v1017_v36 = vsub.s32 0, %v1894_v35 }
  0x2c   : > { %650 = vmatpush1.bf16.msra.mxu0 %v1622_v40 }
  0x2d   : > { %1536 = vmatpush3.bf16.msra.mxu1 %v1625_v38  ;;  %878 = vmatprep.subr.bf16.mxu0 %v1628_v41  ;;  %v1021_v38 = vsub.s32 1, %v1894_v35  ;;  %v1901_v39 = vrot.slane %v1013_v37, %v1017_v36 }
  0x2e   : > { %1541 = vmatprep.subr.bf16.mxu1 %v1629_v42 }
  0x2f   : > { %1447 = vmatmul.mubr.msk.bf16.vlgmr.msra.gmra.mrb[8].mxu0 %vm403_vm0, %v551_v31 }
  0x30   : > { %1538 = vmatmul.mubr.msk.bf16.vlgmr.msra.gmra.mrb[4].mxu1 %vm403_vm0, %v554_v43  ;;  %879 = vmatpush1.bf16.msra.mxu0 %v1626_v46 }
  0x31   : > { %1542 = vmatpush3.bf16.msra.mxu1 %v1629_v42  ;;  %880 = vmatprep.subr.bf16.mxu0 %v1632_v47 }
  0x32   : > { %1543 = vmatprep.subr.bf16.mxu1 %v1633_v48  ;;  %683 = vmatprep.mubr.bf16.mxu0 %v1670_v2 }
  0x33   : > { %1551 = vmatprep.mubr.msk.bf16.mxu1 %vm403_vm0, %v791_v49 }
  0x34   : > { %881 = vmatpush1.bf16.msra.mxu0 %v1630_v50 }
  0x35   : > { %1544 = vmatpush3.bf16.msra.mxu1 %v1633_v48  ;;  %882 = vmatprep.subr.bf16.mxu0 %v1636_v51 }
  0x36   : > { %1545 = vmatprep.subr.bf16.mxu1 %v1637_v52 }
  0x37   : > { %1448 = vmatmul.mubr.msk.bf16.gmra.mrb[12].mxu0 %vm403_vm0, %v554_v43  ;;  %v1903_v43 = vrot.slane %v1013_v37, %v1021_v38 }
  0x38   : > { %883 = vmatpush1.bf16.msra.mxu0 %v1634_v53  ;;  %910 = vmatprep.mubr.bf16.mxu0 %v1670_v2 }
  0x39   : > { %1546 = vmatpush3.bf16.msra.mxu1 %v1637_v52  ;;  %884 = vmatprep.subr.bf16.mxu0 %v1640_v54  ;;  %v1025_v54 = vsub.s32 2, %v1894_v35 }
  0x3a   : > { %1547 = vmatprep.subr.bf16.mxu1 %v1641_v55 }
  0x3c   : > { %885 = vmatpush1.bf16.msra.mxu0 %v1638_v56 }
  0x3d   : > { %1548 = vmatpush3.bf16.msra.mxu1 %v1641_v55  ;;  %886 = vmatprep.subr.bf16.mxu0 %v1644_v57 }
  0x3e   : > { %1549 = vmatprep.subr.bf16.mxu1 %v1645_v58 }
  0x40   : > { %887 = vmatpush1.bf16.msra.mxu0 %v1642_v59 }
  0x41   : > { %1550 = vmatpush3.bf16.msra.mxu1 %v1645_v58 }
  0x43   : > { %1486 = vmatmul.mubr.msk.bf16.vlgmr.msra.gmra.mrb[16].mxu0 %vm403_vm0, %v791_v49 }
  0x44   : > { %1552 = vmatmul.mubr.msk.bf16.vlgmr.msra.gmra.mrb[8].mxu1 %vm403_vm0, %v790_v45  ;;  %920 = vmatprep.mubr.bf16.mxu0 %v1670_v2 }
  0x4b   : > { %1487 = vmatmul.mubr.msk.bf16.gmra.mrb[20].mxu0 %vm403_vm0, %v790_v45 }
  0xee   : > { %v444_v60 = vpop.f32.mrb[0].mxu0 }
  0xef   : > { %v1525_v61 = vpop.f32.mrb[0].mxu1  ;;  %v446_v62 = vpop.f32.mrb[1].mxu0 }
  0xf0   : > { %519 = vst.msk [vmem:[#allocation2 + $0x40] sm:$0x3] %vm518_vm3, %v1525_v61  ;;  %v495_v63 = vpop.f32.mrb[1].mxu1  ;;  %v448_v0 = vpop.f32.mrb[2].mxu0 }
  0xf1   : > { %512 = vst.msk [vmem:[#allocation2 + $0x10] sm:$0xff] %vm511_vm4, %v495_v63  ;;  %v1526_v1 = vpop.f32.mrb[2].mxu1  ;;  %v450_v3 = vpop.f32.mrb[3].mxu0 }
  0xf2   : > { %v498_v4 = vpop.f32.mrb[3].mxu1 }
  0xf3   : > { %515 = vst.msk [vmem:[#allocation2 + $0x28] sm:$0xff] %vm511_vm4, %v498_v4  ;;  %v1026_v4 = vrot.slane %v1013_v37, %v1025_v54 }
  0xf6   : > { %v454_v5 = vpop.f32.mrb[4].mxu0 }
  0xf7   : > { %516 = vst [vmem:[#allocation2 + $0x30] sm:$0x3] %v454_v5  ;;  %v456_v2 = vpop.f32.mrb[5].mxu0  ;;  %v748_v10 = vld [vmem:[#allocation2 + $0x40] sm:$0x3] }
  0xf8   : > { %517 = vst [vmem:[#allocation2 + $0x38] sm:$0x3] %v456_v2  ;;  %v458_v6 = vpop.f32.mrb[6].mxu0  ;;  %v742_v15 = vld [vmem:[#allocation2 + $0x10] sm:$0xff] }
  0xf9   : > { %v459_v7 = vpop.f32.mrb[7].mxu0 }
  0xfa   : > { %v745_v23 = vld [vmem:[#allocation2 + $0x28] sm:$0xff] }
  0xfe   : > { %v746_v28 = vld [vmem:[#allocation2 + $0x30] sm:$0x3] }
  0xff   : > { %v747_v31 = vld [vmem:[#allocation2 + $0x38] sm:$0x3] }
 0x102   : > { %v675_v8 = vpop.f32.mrb[8].mxu0 }
 0x103   : > { %v1539_v9 = vpop.f32.mrb[4].mxu1  ;;  %v749_v11 = vadd.f32 %v675_v8, %v444_v60  ;;  %v677_v13 = vpop.f32.mrb[9].mxu0 }
 0x104   : > { %v757_v12 = vadd.f32 %v1539_v9, %v748_v10  ;;  %v726_v14 = vpop.f32.mrb[5].mxu1  ;;  %v750_v16 = vadd.f32 %v677_v13, %v446_v62  ;;  %v679_v18 = vpop.f32.mrb[10].mxu0 }
 0x105   : > { %v751_v17 = vadd.f32 %v742_v15, %v726_v14  ;;  %v1540_v19 = vpop.f32.mrb[6].mxu1  ;;  %v752_v20 = vadd.f32 %v679_v18, %v448_v0  ;;  %v681_v21 = vpop.f32.mrb[11].mxu0 }
 0x106   : > { %766 = vst.msk [vmem:[#allocation2 + $0x40] sm:$0x3] %vm518_vm3, %v757_v12  ;;  %v729_v22 = vpop.f32.mrb[7].mxu1  ;;  %v753_v24 = vadd.f32 %v681_v21, %v450_v3 }
 0x107   : > { %760 = vst.msk [vmem:[#allocation2 + $0x10] sm:$0xff] %vm511_vm4, %v751_v17  ;;  %v754_v25 = vadd.f32 %v745_v23, %v729_v22 }
 0x109   : > { %763 = vst.msk [vmem:[#allocation2 + $0x28] sm:$0xff] %vm511_vm4, %v754_v25 }
 0x10a   : > { %v685_v27 = vpop.f32.mrb[12].mxu0 }
 0x10b   : > { %v755_v29 = vadd.f32 %v746_v28, %v685_v27  ;;  %v687_v30 = vpop.f32.mrb[13].mxu0 }
 0x10c   : > { %v756_v32 = vadd.f32 %v747_v31, %v687_v30  ;;  %v689_v33 = vpop.f32.mrb[14].mxu0 }
 0x10d   : > { %764 = vst [vmem:[#allocation2 + $0x30] sm:$0x3] %v755_v29  ;;  %v690_v34 = vpop.f32.mrb[15].mxu0  ;;  %v985_v42 = vld [vmem:[#allocation2 + $0x40] sm:$0x3] }
 0x10e   : > { %765 = vst [vmem:[#allocation2 + $0x38] sm:$0x3] %v756_v32  ;;  %v979_v48 = vld [vmem:[#allocation2 + $0x10] sm:$0xff] }
 0x110   : > { %v982_v58 = vld [vmem:[#allocation2 + $0x28] sm:$0xff] }
 0x114   : > { %v983_v8 = vld [vmem:[#allocation2 + $0x30] sm:$0x3] }
 0x115   : > { %v984_v13 = vld [vmem:[#allocation2 + $0x38] sm:$0x3] }
 0x116   : > { %v912_v40 = vpop.f32.mrb[16].mxu0 }
 0x117   : > { %v1553_v41 = vpop.f32.mrb[8].mxu1  ;;  %v986_v44 = vadd.f32 %v912_v40, %v749_v11  ;;  %v914_v46 = vpop.f32.mrb[17].mxu0 }
 0x118   : > { %v994_v45 = vadd.f32 %v1553_v41, %v985_v42  ;;  %v963_v47 = vpop.f32.mrb[9].mxu1  ;;  %v987_v49 = vadd.f32 %v914_v46, %v750_v16  ;;  %v916_v51 = vpop.f32.mrb[18].mxu0 }
 0x119   : > { %v988_v50 = vadd.f32 %v979_v48, %v963_v47  ;;  %v1554_v52 = vpop.f32.mrb[10].mxu1  ;;  %v1030_v53 = vadd.f32 %v1901_v39, %v986_v44  ;;  %v989_v55 = vadd.f32 %v916_v51, %v752_v20  ;;  %v918_v56 = vpop.f32.mrb[19].mxu0 }
 0x11a   : > { %1003 = vst.msk [vmem:[#allocation2 + $0x40] sm:$0x3] %vm518_vm3, %v994_v45  ;;  %v966_v57 = vpop.f32.mrb[11].mxu1  ;;  %v1031_v59 = vadd.f32 %v1903_v43, %v987_v49  ;;  %v990_v60 = vadd.f32 %v918_v56, %v753_v24 }
 0x11b   : > { %997 = vst.msk [vmem:[#allocation2 + $0x10] sm:$0xff] %vm511_vm4, %v988_v50  ;;  %v991_v61 = vadd.f32 %v982_v58, %v966_v57  ;;  %vm1039_vm5 = vcmp.gt.f32.partialorder %v1030_v53, 0.0  ;;  %v1048_v62 = vmul.f32 0.01, %v1030_v53  ;;  %v1033_v63 = vadd.f32 %v1901_v39, %v989_v55 }
 0x11c   : > { %vm1040_vm6 = vcmp.gt.f32.partialorder %v1031_v59, 0.0  ;;  %v1049_v0 = vmul.f32 0.01, %v1031_v59  ;;  %v1034_v1 = vadd.f32 %v1903_v43, %v990_v60 }
 0x11d   : > { %1000 = vst.msk [vmem:[#allocation2 + $0x28] sm:$0xff] %vm511_vm4, %v991_v61  ;;  %v1057_v3 = vsel %vm1039_vm5, %v1030_v53, %v1048_v62  ;;  %vm1042_vm7 = vcmp.gt.f32.partialorder %v1033_v63, 0.0  ;;  %v1051_v5 = vmul.f32 0.01, %v1033_v63 }
 0x11e   : > { %1066 = vst [vmem:[%s1914_s12] sm:$0xff] %v1057_v3  ;;  %v1058_v2 = vsel %vm1040_vm6, %v1031_v59, %v1049_v0  ;;  %vm1043_vm8 = vcmp.gt.f32.partialorder %v1034_v1, 0.0  ;;  %v1052_v6 = vmul.f32 0.01, %v1034_v1  ;;  %v922_v7 = vpop.f32.mrb[20].mxu0  ;;  %v1137_v9 = vmul.f32 %v1057_v3, %v1057_v3 }
 0x11f   : > { %1067 = vst [vmem:[%s1914_s12 + $0x8] sm:$0xff] %v1058_v2  ;;  %v1060_v10 = vsel %vm1042_vm7, %v1033_v63, %v1051_v5  ;;  %v992_v11 = vadd.f32 %v983_v8, %v922_v7  ;;  %v924_v12 = vpop.f32.mrb[21].mxu0  ;;  %v1138_v21 = vmul.f32 %v1058_v2, %v1058_v2  ;;  %v1671_v8 = vmov 1966171168  }
 0x120   : > { %1069 = vst [vmem:[%s1914_s12 + $0x18] sm:$0xff] %v1060_v10  ;;  %v1075_v15 = vadd.f32 %v1060_v10, %v1057_v3  ;;  %v1140_v16 = vmul.f32 %v1060_v10, %v1060_v10  ;;  %v1061_v17 = vsel %vm1043_vm8, %v1034_v1, %v1052_v6  ;;  %v993_v18 = vadd.f32 %v984_v13, %v924_v12  ;;  %v926_v19 = vpop.f32.mrb[22].mxu0 }
 0x121   : > { %v1012_v14 = vld [vmem:[#allocation2 + $0x40] sm:$0x3]  ;;  %1070 = vst [vmem:[%s1914_s12 + $0x20] sm:$0xff] %v1061_v17  ;;  %v1085_v23 = vadd.f32 %v1061_v17, %v1058_v2  ;;  %v1141_v24 = vmul.f32 %v1061_v17, %v1061_v17  ;;  %1001 = vst [vmem:[#allocation2 + $0x30] sm:$0x3] %v992_v11  ;;  %v927_v25 = vpop.f32.mrb[23].mxu0 }
 0x122   : > { %v1038_v20 = vadd.f32 %v1026_v4, %v1012_v14  ;;  %v1006_v22 = vld [vmem:[#allocation2 + $0x10] sm:$0xff]  ;;  %v1146_v28 = vadd.f32 %v1140_v16, %v1137_v9  ;;  %1002 = vst [vmem:[#allocation2 + $0x38] sm:$0x3] %v993_v18  ;;  %v1110_v9 = vunpack.c.l.s4 %v1671_v8 }
 0x123   : > { %v1032_v27 = vadd.f32 %v1026_v4, %v1006_v22  ;;  %v1155_v30 = vadd.f32 %v1141_v24, %v1138_v21 }
 0x124   : > { %vm1047_vm9 = vcmp.gt.f32.partialorder %v1038_v20, 0.0  ;;  %v1056_v29 = vmul.f32 0.01, %v1038_v20  ;;  %v1009_v31 = vld [vmem:[#allocation2 + $0x28] sm:$0xff]  ;;  %v1111_v24 = vunpack.c.0.s8 %v1110_v9 }
 0x125   : > { %vm1041_vm10 = vcmp.gt.f32.partialorder %v1032_v27, 0.0  ;;  %v1050_v32 = vmul.f32 0.01, %v1032_v27  ;;  %v1035_v33 = vadd.f32 %v1026_v4, %v1009_v31 }
 0x126   : > { %v1065_v34 = vsel %vm1047_vm9, %v1038_v20, %v1056_v29 }
 0x127   : > { %1074 = vst.msk [vmem:[%s1914_s12 + $0x40] sm:$0x3] %vm518_vm3, %v1065_v34  ;;  %v1059_v36 = vsel %vm1041_vm10, %v1032_v27, %v1050_v32  ;;  %vm1044_vm11 = vcmp.gt.f32.partialorder %v1035_v33, 0.0  ;;  %v1053_v37 = vmul.f32 0.01, %v1035_v33  ;;  %v1145_v41 = vmul.f32 %v1065_v34, %v1065_v34 }
 0x128   : > { %1068 = vst.msk [vmem:[%s1914_s12 + $0x10] sm:$0xff] %vm511_vm4, %v1059_v36  ;;  %v1139_v38 = vmul.f32 %v1059_v36, %v1059_v36  ;;  %v1010_v40 = vld [vmem:[#allocation2 + $0x30] sm:$0x3]  ;;  %v1094_v46 = vsel %vm511_vm4, %v1059_v36, 0.0  ;;  %v1097_v50 = vsel %vm518_vm3, %v1065_v34, 0.0 }
 0x129   : > { %v1062_v42 = vsel %vm1044_vm11, %v1035_v33, %v1053_v37  ;;  %v1036_v44 = vadd.f32 %v1901_v39, %v1010_v40  ;;  %v1011_v45 = vld [vmem:[#allocation2 + $0x38] sm:$0x3]  ;;  %v1167_v58 = vsel %vm518_vm3, %v1145_v41, 0.0 }
 0x12a   : > { %1071 = vst.msk [vmem:[%s1914_s12 + $0x28] sm:$0xff] %vm511_vm4, %v1062_v42  ;;  %v1095_v47 = vsel %vm511_vm4, %v1062_v42, 0.0  ;;  %v1142_v48 = vmul.f32 %v1062_v42, %v1062_v42  ;;  %v1037_v49 = vadd.f32 %v1903_v43, %v1011_v45  ;;  %v1164_v39 = vsel %vm511_vm4, %v1139_v38, 0.0 }
 0x12b   : > { %v1096_v51 = vadd.f32 %v1095_v47, %v1094_v46  ;;  %vm1045_vm13 = vcmp.gt.f32.partialorder %v1036_v44, 0.0  ;;  %v1054_v52 = vmul.f32 0.01, %v1036_v44 }
 0x12c   : > { %v1165_v53 = vsel %vm511_vm4, %v1142_v48, 0.0  ;;  %vm1046_vm14 = vcmp.gt.f32.partialorder %v1037_v49, 0.0  ;;  %v1055_v54 = vmul.f32 0.01, %v1037_v49 }
 0x12d   : > { %v1098_v55 = vadd.f32 %v1097_v50, %v1096_v51  ;;  %v1166_v56 = vadd.f32 %v1165_v53, %v1164_v39  ;;  %v1063_v57 = vsel %vm1045_vm13, %v1036_v44, %v1054_v52 }
 0x12e   : > { %1072 = vst [vmem:[%s1914_s12 + $0x30] sm:$0x3] %v1063_v57  ;;  %v1077_v43 = vsel %vm1076_vm12, %v1063_v57, 0.0  ;;  %v1143_v59 = vmul.f32 %v1063_v57, %v1063_v57  ;;  %v1064_v60 = vsel %vm1046_vm14, %v1037_v49, %v1055_v54 }
 0x12f   : > { %v1099_v61 = vrot.slane %v1098_v55, 4  ;;  %v1168_v62 = vadd.f32 %v1167_v58, %v1166_v56  ;;  %v1078_v63 = vadd.f32 %v1077_v43, %v1075_v15  ;;  %1073 = vst [vmem:[%s1914_s12 + $0x38] sm:$0x3] %v1064_v60  ;;  %v1086_v0 = vsel %vm1076_vm12, %v1064_v60, 0.0 }
 0x130   : > { %v1147_v1 = vsel %vm1076_vm12, %v1143_v59, 0.0  ;;  %v1087_v3 = vadd.f32 %v1086_v0, %v1085_v23  ;;  %v1144_v4 = vmul.f32 %v1064_v60, %v1064_v60 }
 0x131   : > { %v1100_v5 = vadd.f32 %v1099_v61, %v1098_v55  ;;  %v1169_v2 = vrot.slane %v1168_v62, 4  ;;  %v1079_v6 = vrot.slane %v1078_v63, 4  ;;  %v1148_v7 = vadd.f32 %v1147_v1, %v1146_v28 }
 0x132   : > { %v1088_v10 = vrot.slane %v1087_v3, 4  ;;  %v1156_v11 = vsel %vm1076_vm12, %v1144_v4, 0.0 }
 0x133   : > { %v1101_v12 = vrot.slane %v1100_v5, 2  ;;  %v1170_v13 = vadd.f32 %v1169_v2, %v1168_v62  ;;  %v1080_v14 = vadd.f32 %v1079_v6, %v1078_v63  ;;  %v1149_v15 = vrot.slane %v1148_v7, 4 }
 0x134   : > { %v1089_v16 = vadd.f32 %v1088_v10, %v1087_v3  ;;  %v1157_v17 = vadd.f32 %v1156_v11, %v1155_v30  ;;  %v1114_v30 = vsub.s32 %v1111_v24, %v1894_v35 }
 0x135   : > { %v1102_v18 = vadd.f32 %v1101_v12, %v1100_v5  ;;  %v1171_v19 = vrot.slane %v1170_v13, 2  ;;  %v1081_v20 = vrot.slane %v1080_v14, 2  ;;  %v1150_v21 = vadd.f32 %v1149_v15, %v1148_v7 }
 0x136   : > { %v1090_v22 = vrot.slane %v1089_v16, 2  ;;  %v1158_v23 = vrot.slane %v1157_v17, 4 }
 0x137   : > { %v1082_v25 = vadd.f32 %v1081_v20, %v1080_v14  ;;  %v1151_v27 = vrot.slane %v1150_v21, 2  ;;  %v1103_v28 = vrot.slane %v1102_v18, 1  ;;  %v1172_v29 = vadd.f32 %v1171_v19, %v1170_v13 }
 0x138   : > { %v1091_v31 = vadd.f32 %v1090_v22, %v1089_v16  ;;  %v1159_v32 = vadd.f32 %v1158_v23, %v1157_v17 }
 0x139   : > { %v1083_v33 = vrot.slane %v1082_v25, 1  ;;  %v1152_v34 = vadd.f32 %v1151_v27, %v1150_v21  ;;  %v1104_v41 = vadd.f32 %v1103_v28, %v1102_v18  ;;  %v1173_v42 = vrot.slane %v1172_v29, 1 }
 0x13a   : > { %v1092_v36 = vrot.slane %v1091_v31, 1  ;;  %v1160_v37 = vrot.slane %v1159_v32, 2 }
 0x13b   : > { %v1084_v38 = vadd.f32 %v1083_v33, %v1082_v25  ;;  %v1153_v40 = vrot.slane %v1152_v34, 1  ;;  %v1122_v49 = vrot.slane %v1104_v41, %v1114_v30  ;;  %v1174_v50 = vadd.f32 %v1173_v42, %v1172_v29 }
 0x13c   : > { %v1093_v44 = vadd.f32 %v1092_v36, %v1091_v31  ;;  %v1161_v45 = vadd.f32 %v1160_v37, %v1159_v32 }
 0x13d   : > { %v1154_v46 = vadd.f32 %v1153_v40, %v1152_v34  ;;  %v1192_v35 = vrot.slane %v1174_v50, %v1114_v30 }
 0x13e   : > { %v1108_v47 = vcombine.low %v1084_v38, %v1093_v44  ;;  %v1162_v48 = vrot.slane %v1161_v45, 1 }
 0x140   : > { %v1115_v51 = vrot.slane %v1108_v47, %v1114_v30  ;;  %v1163_v52 = vadd.f32 %v1162_v48, %v1161_v45 }
 0x142   : > { %v1123_v39 = vcombine.low %v1115_v51, %v1122_v49  ;;  %v1178_v53 = vcombine.low %v1154_v46, %v1163_v52 }
 0x144   : > { %v1130_v54 = vrot.slane %v1123_v39, %v1114_v30  ;;  %v1185_v55 = vrot.slane %v1178_v53, %v1114_v30 }
 0x146   : > { %1136 = vst.msk [vmem:[%s282_s16] sm:$0x7] %vm1134_vm15, %v1130_v54  ;;  %v1193_v56 = vcombine.low %v1185_v55, %v1192_v35 }
 0x148   : > { %v1200_v57 = vrot.slane %v1193_v56, %v1114_v30 }
 0x14a   : > { %1202 = vst.msk [vmem:[%s290_s18] sm:$0x7] %vm1134_vm15, %v1200_v57 }
 0x14b PF: > { %s16_s20 = sadd.s32 1, %s1668_s20   ;;  %s1967_s18 = smov %s1664_s19 }
 0x14c   : > { %p13_p5 = scmp.ge.s32.totalorder %s16_s20, 4   ;;  %s1968_s19 = smov %s1970_s21 }
 0x14e   :  { %15 = sbr.rel (!%p13_p5) target bundleno = 2 (0x2), region = 88 }

// kernel: duck_conv2d_block.32
= control target key start
LH: loop header
LB: loop body
LE: loop exit
PB: predicated region body
PF: predicated region fallthrough
CT: control target
= control target key end

     0   :  { %s1626_s18 = smov 0   ;;  %s1628_s19 = smov 0   ;;  %s1907_s0 = inlined_call_operand.vmem [shape: bf16[2,18,72], index: 0, kind: input, shape index: {}]   ;;  %s1908_s1 = inlined_call_operand.vmem [shape: bf16[3,72,512], index: 1, kind: input, shape index: {}]   ;;  %s1909_s2 = inlined_call_operand.vmem [shape: f32[1,512], index: 2, kind: input, shape index: {}]   ;;  %s1910_s3 = inlined_call_operand.vmem [shape: f32[2,16,512], index: 3, kind: output, shape index: {0}]   ;;  %s1911_s4 = inlined_call_operand.vmem [shape: f32[2,2,1,512], index: 4, kind: output, shape index: {1}]   ;;  %s1912_s5 = inlined_call_operand.vmem [shape: f32[2,2,1,512], index: 5, kind: output, shape index: {2}]  }
   0x1   :  { %s1630_s20 = smov 0   ;;  %s1632_s21 = smov 0  }
   0x2   :  { %s1634_s22 = smov 0  }
   0x3 LB: > { %s25_s23 = sadd.s32 1, %s1584_s20  ;;  %s28_s24 = sadd.s32 1, %s1588_s21  ;;  %s1592_s22 = sphi %s1634_s22, %s16_s22   ;;  %s1588_s21 = sphi %s1632_s21, %s1916_s21   ;;  %s1584_s20 = sphi %s1630_s20, %s1915_s20   ;;  %s1580_s19 = sphi %s1628_s19, %s1914_s19   ;;  %s1576_s18 = sphi %s1626_s18, %s1913_s18  }
   0x4   : > { %p26_p0 = scmp.ge.s32.totalorder %s25_s23, 2  ;;  %p1304_p1 = scmp.ge.s32.totalorder %s1592_s22, 1 }
   0x5   : > { %p210_p2 = scmp.lt.s32.totalorder %s1592_s22, 5 }
   0x6   : > { %s1918_s23 = smov (%p26_p0, %s25_s23), 0  ;;  %s1920_s24 = smov (!%p26_p0, %s28_s24), %s1588_s21 }
   0x7   : > { %p211_p3 = pnand %p1304_p1, %p210_p2  ;;  %p30_p4 = scmp.ge.s32.totalorder %s1920_s24, 2 }
   0x8   : > { %v1469_v0 = vld [vmem:[%s1908_s1 + $0x4] ss:$16 sps:$4 sm:$0xff] (!%p211_p3)   ;;  %v1471_v1 = vld [vmem:[%s1908_s1 + $0xc] ss:$16 sps:$4 sm:$0xff] (!%p211_p3)   ;;  %v1594_v2 = vmov (!%p211_p3), 0   ;;  %p258_p5 = scmp.lt.s32.totalorder (!%p211_p3), %s1580_s19, 1 }
   0x9   : > { %s1922_s24 = smov (%p30_p4, %s1920_s24), 0  ;;  %214 = sbr.rel (%p211_p3) target bundleno = 316 (0x13c), region = 32 }
   0xa   : > { %453 = vmatprep.mubr.bf16.mxu0 (!%p211_p3), %v1594_v2  ;;  %494 = vmatprep.mubr.bf16.mxu1 (!%p211_p3), %v1594_v2  ;;  %v1473_v3 = vld [vmem:[%s1908_s1] ss:$16 sps:$4 sm:$0xff] (!%p211_p3)   ;;  %v1474_v4 = vld [vmem:[%s1908_s1 + $0x8] ss:$16 sps:$4 sm:$0xff] (!%p211_p3)   ;;  %v1475_v5 = vld [vmem:[%s1908_s1 + $0x24] ss:$16 sps:$4 sm:$0xff] (!%p211_p3)  }
   0xb   : > { %421 = vmatprep.subr.bf16.mxu0 (!%p211_p3), %v1469_v0  ;;  %462 = vmatprep.subr.bf16.mxu1 (!%p211_p3), %v1471_v1  ;;  %v1477_v6 = vld [vmem:[%s1908_s1 + $0x2c] ss:$16 sps:$4 sm:$0xff] (!%p211_p3)   ;;  %v1479_v7 = vld [vmem:[%s1908_s1 + $0x20] ss:$16 sps:$4 sm:$0xff] (!%p211_p3)   ;;  %v1480_v8 = vld [vmem:[%s1908_s1 + $0x28] ss:$16 sps:$4 sm:$0xff] (!%p211_p3)  }
   0xc   : > { %422 = vmatpush1.bf16.msra.mxu0 (!%p211_p3), %v1473_v3  ;;  %463 = vmatpush1.bf16.msra.mxu1 (!%p211_p3), %v1474_v4  ;;  %v1481_v9 = vld [vmem:[%s1908_s1 + $0x44] ss:$16 sps:$4 sm:$0xff] (!%p211_p3)   ;;  %s1313_s25 = sshll.u32 (!%p211_p3), %s1576_s18, 3  ;;  %v1483_v10 = vld [vmem:[%s1908_s1 + $0x4c] ss:$16 sps:$4 sm:$0xff] (!%p211_p3)   ;;  %vm408_vm0 = vcmask (!%p211_p3), 1043456  }
   0xd   : > { %423 = vmatprep.subr.bf16.mxu0 (!%p211_p3), %v1475_v5  ;;  %464 = vmatprep.subr.bf16.mxu1 (!%p211_p3), %v1477_v6  ;;  %v1485_v11 = vld [vmem:[%s1908_s1 + $0x40] ss:$16 sps:$4 sm:$0xff] (!%p211_p3)   ;;  %v1486_v12 = vld [vmem:[%s1908_s1 + $0x48] ss:$16 sps:$4 sm:$0xff] (!%p211_p3)   ;;  %v1487_v13 = vld [vmem:[%s1908_s1 + $0x64] ss:$16 sps:$4 sm:$0xff] (!%p211_p3)  }
   0xe   : > { %v1489_v14 = vld [vmem:[%s1908_s1 + $0x6c] ss:$16 sps:$4 sm:$0xff] (!%p211_p3)   ;;  %s290_s12 = sshra.s32 (!%p211_p3), %s1313_s25, 3  ;;  %v312_v15 = vld [vmem:[%s1908_s1 + $0x80] sm:$0xff] (!%p211_p3)  ;;  %v1492_v18 = vld [vmem:[%s1908_s1 + $0x68] ss:$16 sps:$4 sm:$0xff] (!%p211_p3)  }
   0xf   : > { %v313_v16 = vld [vmem:[%s1908_s1 + $0x88] sm:$0xff] (!%p211_p3)  ;;  %v1491_v17 = vld [vmem:[%s1908_s1 + $0x60] ss:$16 sps:$4 sm:$0xff] (!%p211_p3)   ;;  %v1331_v19 = vcombine.low (!%p211_p3), %v312_v15, %v312_v15  ;;  %s1314_s6 = sshll.u32 (!%p211_p3), %s290_s12, 2  ;;  %v1332_v20 = vcombine.high (!%p211_p3), %v312_v15, %v312_v15  ;;  %v1500_v25 = vld [vmem:[%s1908_s1 + $0x94] ss:$16 sps:$4 sm:$0xff] (!%p211_p3)  }
  0x10   : > { %s1924_s19 = smov (!%p258_p5, %s1580_s19), 1  ;;  %424 = vmatpush1.bf16.msra.mxu0 %v1479_v7  ;;  %465 = vmatpush1.bf16.msra.mxu1 %v1480_v8  ;;  %v1334_v21 = vcombine.high %v313_v16, %v313_v16  ;;  %v1333_v22 = vcombine.low %v313_v16, %v313_v16  ;;  %v1503_v26 = vld [vmem:[%s1908_s1 + $0x9c] ss:$16 sps:$4 sm:$0xff]   ;;  %v1498_v28 = vld [vmem:[%s1908_s1 + $0x90] ss:$16 sps:$4 sm:$0xff]   ;;  %vm404_vm1 = vcmask 588800  }
  0x11   : > { %s1426_s9 = smul.u32 12, %s1924_s19  ;;  %425 = vmatprep.subr.bf16.mxu0 %v1481_v9  ;;  %466 = vmatprep.subr.bf16.mxu1 %v1483_v10  ;;  %v410_v23 = vsel %vm408_vm0, %v1331_v19, 0  ;;  %v1501_v29 = vld [vmem:[%s1908_s1 + $0x98] ss:$16 sps:$4 sm:$0xff]   ;;  %v1506_v30 = vld [vmem:[%s1908_s1 + $0xb4] ss:$16 sps:$4 sm:$0xff]  }
  0x12   : > { %v416_v24 = vsel %vm408_vm0, %v1333_v22, 0  ;;  %v1509_v31 = vld [vmem:[%s1908_s1 + $0xbc] ss:$16 sps:$4 sm:$0xff]   ;;  %v1504_v33 = vld [vmem:[%s1908_s1 + $0xb0] ss:$16 sps:$4 sm:$0xff]   ;;  %p265_p6 = scmp.lt.s32.totalorder %s1576_s18, 1 }
  0x13   : > { %s262_s30 = scalar_lea.vmem %s1907_s0, %s1426_s9  ;;  %v1507_v34 = vld [vmem:[%s1908_s1 + $0xb8] ss:$16 sps:$4 sm:$0xff]   ;;  %v1512_v35 = vld [vmem:[%s1908_s1 + $0xd4] ss:$16 sps:$4 sm:$0xff]   ;;  %v1515_v36 = vld [vmem:[%s1908_s1 + $0xdc] ss:$16 sps:$4 sm:$0xff]  }
  0x14   : > { %426 = vmatpush1.bf16.msra.mxu0 %v1485_v11  ;;  %467 = vmatpush1.bf16.msra.mxu1 %v1486_v12  ;;  %s293_s7 = scalar_lea.vmem %s262_s30, %s1314_s6  ;;  %v1510_v38 = vld [vmem:[%s1908_s1 + $0xd0] ss:$16 sps:$4 sm:$0xff]   ;;  %v1513_v39 = vld [vmem:[%s1908_s1 + $0xd8] ss:$16 sps:$4 sm:$0xff]   ;;  %v1518_v40 = vld [vmem:[%s1908_s1 + $0xf4] ss:$16 sps:$4 sm:$0xff]  }
  0x15   : > { %427 = vmatprep.subr.bf16.mxu0 %v1487_v13  ;;  %468 = vmatprep.subr.bf16.mxu1 %v1489_v14  ;;  %v294_v27 = vld [vmem:[%s293_s7] sm:$0xf]  ;;  %v295_v32 = vld [vmem:[%s293_s7 + $0x4] sm:$0x1]  ;;  %v1521_v41 = vld [vmem:[%s1908_s1 + $0xfc] ss:$16 sps:$4 sm:$0xff]  }
  0x16   : > { %v1763_v37 = vcombine.low %v294_v27, %v295_v32  ;;  %v1355_v42 = vld [vmem:[%s1908_s1 + $0x110] sm:$0xff]  ;;  %v1356_v43 = vld [vmem:[%s1908_s1 + $0x118] sm:$0xff]  ;;  %v1398_v6 = vld [vmem:[%s1908_s1 + $0x1a0] sm:$0xff]  ;;  %s1926_s18 = smov (!%p265_p6, %s1576_s18), 1  ;;  %s1307_s9 = sshll.u32 %s1924_s19, 3 }
  0x17   : > { %v1516_v45 = vld [vmem:[%s1908_s1 + $0xf0] ss:$16 sps:$4 sm:$0xff]   ;;  %v1519_v46 = vld [vmem:[%s1908_s1 + $0xf8] ss:$16 sps:$4 sm:$0xff]   ;;  %v1375_v47 = vcombine.high %v1355_v42, %v1355_v42  ;;  %v1377_v48 = vcombine.high %v1356_v43, %v1356_v43  ;;  %v1374_v49 = vcombine.low %v1355_v42, %v1355_v42  ;;  %v1376_v50 = vcombine.low %v1356_v43, %v1356_v43  ;;  %v1528_v55 = vld [vmem:[%s1908_s1 + $0x124] ss:$16 sps:$4 sm:$0xff]  }
  0x18   : > { %428 = vmatpush1.bf16.msra.mxu0 %v1491_v17  ;;  %469 = vmatpush1.bf16.msra.mxu1 %v1492_v18  ;;  %v534_v44 = vshll.u32 %v1763_v37, 16  ;;  %v532_v51 = vshrl.u32 %v1763_v37, 16  ;;  %v1531_v56 = vld [vmem:[%s1908_s1 + $0x12c] ss:$16 sps:$4 sm:$0xff]   ;;  %v1526_v58 = vld [vmem:[%s1908_s1 + $0x120] ss:$16 sps:$4 sm:$0xff]   ;;  %v1417_v10 = vcombine.high %v1398_v6, %v1398_v6  ;;  %v1416_v12 = vcombine.low %v1398_v6, %v1398_v6 }
  0x19   : > { %1335 = vmatprep.subr.msk.bf16.mxu0 %vm408_vm0, %v1332_v20  ;;  %1337 = vmatprep.subr.msk.bf16.mxu1 %vm408_vm0, %v1334_v21  ;;  %v632_v53 = vsel %vm408_vm0, %v1374_v49, 0  ;;  %v638_v54 = vsel %vm408_vm0, %v1376_v50, 0  ;;  %v1529_v59 = vld [vmem:[%s1908_s1 + $0x128] ss:$16 sps:$4 sm:$0xff]   ;;  %v1534_v60 = vld [vmem:[%s1908_s1 + $0x144] ss:$16 sps:$4 sm:$0xff]  }
  0x1a   : > { %v536_v52 = vrot.slane %v534_v44, 1  ;;  %v1537_v61 = vld [vmem:[%s1908_s1 + $0x14c] ss:$16 sps:$4 sm:$0xff]   ;;  %v1532_v62 = vld [vmem:[%s1908_s1 + $0x140] ss:$16 sps:$4 sm:$0xff]   ;;  %v851_v14 = vsel %vm408_vm0, %v1416_v12, 0 }
  0x1b   : > { %v1535_v63 = vld [vmem:[%s1908_s1 + $0x148] ss:$16 sps:$4 sm:$0xff]   ;;  %v1540_v0 = vld [vmem:[%s1908_s1 + $0x164] ss:$16 sps:$4 sm:$0xff]   ;;  %v1543_v1 = vld [vmem:[%s1908_s1 + $0x16c] ss:$16 sps:$4 sm:$0xff]  }
  0x1c   : > { %430 = vmatpush1.bf16.msra.mxu0 %v410_v23  ;;  %471 = vmatpush1.bf16.msra.mxu1 %v416_v24  ;;  %v537_v57 = vor.u32 %v536_v52, %v532_v51  ;;  %v1538_v3 = vld [vmem:[%s1908_s1 + $0x160] ss:$16 sps:$4 sm:$0xff]   ;;  %v1541_v4 = vld [vmem:[%s1908_s1 + $0x168] ss:$16 sps:$4 sm:$0xff]   ;;  %v1546_v5 = vld [vmem:[%s1908_s1 + $0x184] ss:$16 sps:$4 sm:$0xff]  }
  0x1d   : > { %643 = vmatprep.subr.bf16.mxu0 %v1500_v25  ;;  %684 = vmatprep.subr.bf16.mxu1 %v1503_v26  ;;  %v1399_v7 = vld [vmem:[%s1908_s1 + $0x1a8] sm:$0xff]  ;;  %v1544_v8 = vld [vmem:[%s1908_s1 + $0x180] ss:$16 sps:$4 sm:$0xff]   ;;  %v756_v16 = vrot.slane %v1763_v37, 1  ;;  %v962_v37 = vlaneseq  ;;  %s1306_s7 = sshll.u32 %s1926_s18, 2 }
  0x1e   : > { %v1547_v9 = vld [vmem:[%s1908_s1 + $0x188] ss:$16 sps:$4 sm:$0xff]   ;;  %v1419_v11 = vcombine.high %v1399_v7, %v1399_v7  ;;  %v1418_v13 = vcombine.low %v1399_v7, %v1399_v7  ;;  %s1873_s12 = sadd.s32 %s1307_s9, %s1306_s7 }
  0x1f   : > { %1336 = vmatmul.mubr.msk.bf16.vlgmr.msra.gmra.mrb[0].mxu0 %vm404_vm1, %v294_v27  ;;  %1338 = vmatmul.mubr.msk.bf16.vlgmr.msra.gmra.mrb[0].mxu1 %vm404_vm1, %v294_v27  ;;  %s1308_s18 = sshll.u32 %s1873_s12, 3  ;;  %s279_s17 = scalar_lea.vmem %s1911_s4, %s1873_s12  ;;  %vm1057_vm6 = vcmp.lt.s32.totalorder %v962_v37, 512 }
  0x20   : > { %644 = vmatpush1.bf16.msra.mxu0 %v1498_v28  ;;  %685 = vmatpush1.bf16.msra.mxu1 %v1501_v29  ;;  %v857_v15 = vsel %vm408_vm0, %v1418_v13, 0  ;;  %s271_s14 = scalar_lea.vmem %s1910_s3, %s1308_s18  ;;  %s287_s28 = scalar_lea.vmem %s1912_s5, %s1873_s12 }
  0x21   : > { %645 = vmatprep.subr.bf16.mxu0 %v1506_v30  ;;  %686 = vmatprep.subr.bf16.mxu1 %v1509_v31 }
  0x22   : > { %675 = vmatprep.mubr.bf16.mxu0 %v1594_v2  ;;  %716 = vmatprep.mubr.bf16.mxu1 %v1594_v2 }
  0x24   : > { %646 = vmatpush1.bf16.msra.mxu0 %v1504_v33  ;;  %687 = vmatpush1.bf16.msra.mxu1 %v1507_v34 }
  0x25   : > { %647 = vmatprep.subr.bf16.mxu0 %v1512_v35  ;;  %688 = vmatprep.subr.bf16.mxu1 %v1515_v36 }
  0x28   : > { %648 = vmatpush1.bf16.msra.mxu0 %v1510_v38  ;;  %689 = vmatpush1.bf16.msra.mxu1 %v1513_v39  ;;  %v1862_v38 = vshrl.u32 %v962_v37, 7 }
  0x29   : > { %649 = vmatprep.subr.bf16.mxu0 %v1518_v40  ;;  %690 = vmatprep.subr.bf16.mxu1 %v1521_v41  ;;  %v960_v41 = vld [vmem:[%s1909_s2] sm:$0xf] }
  0x2a   : > { %v964_v39 = vsub.s32 0, %v1862_v38  ;;  %v972_v40 = vsub.s32 2, %v1862_v38  ;;  %v968_v42 = vsub.s32 1, %v1862_v38  ;;  %v976_v43 = vsub.s32 3, %v1862_v38 }
  0x2c   : > { %650 = vmatpush1.bf16.msra.mxu0 %v1516_v45  ;;  %691 = vmatpush1.bf16.msra.mxu1 %v1519_v46  ;;  %v965_v44 = vrot.slane %v960_v41, %v964_v39  ;;  %v973_v45 = vrot.slane %v960_v41, %v972_v40  ;;  %v977_v49 = vrot.slane %v960_v41, %v976_v43 }
  0x2d   : > { %1378 = vmatprep.subr.msk.bf16.mxu0 %vm408_vm0, %v1375_v47  ;;  %1380 = vmatprep.subr.msk.bf16.mxu1 %vm408_vm0, %v1377_v48  ;;  %v969_v48 = vrot.slane %v960_v41, %v968_v42 }
  0x30   : > { %652 = vmatpush1.bf16.msra.mxu0 %v632_v53  ;;  %693 = vmatpush1.bf16.msra.mxu1 %v638_v54 }
  0x31   : > { %862 = vmatprep.subr.bf16.mxu0 %v1528_v55  ;;  %903 = vmatprep.subr.bf16.mxu1 %v1531_v56 }
  0x33   : > { %1379 = vmatmul.mubr.msk.bf16.vlgmr.msra.gmra.mrb[4].mxu0 %vm404_vm1, %v537_v57  ;;  %1381 = vmatmul.mubr.msk.bf16.vlgmr.msra.gmra.mrb[4].mxu1 %vm404_vm1, %v537_v57 }
  0x34   : > { %863 = vmatpush1.bf16.msra.mxu0 %v1526_v58  ;;  %904 = vmatpush1.bf16.msra.mxu1 %v1529_v59 }
  0x35   : > { %864 = vmatprep.subr.bf16.mxu0 %v1534_v60  ;;  %905 = vmatprep.subr.bf16.mxu1 %v1537_v61 }
  0x36   : > { %894 = vmatprep.mubr.bf16.mxu0 %v1594_v2  ;;  %935 = vmatprep.mubr.bf16.mxu1 %v1594_v2  ;;  %v1549_v2 = vld [vmem:[%s1908_s1 + $0x18c] ss:$16 sps:$4 sm:$0xff]  }
  0x38   : > { %865 = vmatpush1.bf16.msra.mxu0 %v1532_v62  ;;  %906 = vmatpush1.bf16.msra.mxu1 %v1535_v63  ;;  %v1595_v62 = vmov 1966171168  }
  0x39   : > { %866 = vmatprep.subr.bf16.mxu0 %v1540_v0  ;;  %907 = vmatprep.subr.bf16.mxu1 %v1543_v1  ;;  %v1876_v63 = vunpack.c.l.s4 %v1595_v62 }
  0x3b   : > { %v1034_v12 = vunpack.c.0.s8 %v1876_v63 }
  0x3c   : > { %867 = vmatpush1.bf16.msra.mxu0 %v1538_v3  ;;  %908 = vmatpush1.bf16.msra.mxu1 %v1541_v4 }
  0x3d   : > { %868 = vmatprep.subr.bf16.mxu0 %v1546_v5  ;;  %909 = vmatprep.subr.bf16.mxu1 %v1549_v2 }
  0x40   : > { %869 = vmatpush1.bf16.msra.mxu0 %v1544_v8  ;;  %910 = vmatpush1.bf16.msra.mxu1 %v1547_v9 }
  0x41   : > { %1420 = vmatprep.subr.msk.bf16.mxu0 %vm408_vm0, %v1417_v10  ;;  %1422 = vmatprep.subr.msk.bf16.mxu1 %vm408_vm0, %v1419_v11 }
  0x44   : > { %871 = vmatpush1.bf16.msra.mxu0 %v851_v14  ;;  %912 = vmatpush1.bf16.msra.mxu1 %v857_v15 }
  0x47   : > { %1421 = vmatmul.mubr.msk.bf16.vlgmr.msra.gmra.mrb[8].mxu0 %vm404_vm1, %v756_v16  ;;  %1423 = vmatmul.mubr.msk.bf16.vlgmr.msra.gmra.mrb[8].mxu1 %vm404_vm1, %v756_v16 }
  0xf2   : > { %v455_v17 = vpop.f32.mrb[0].mxu0  ;;  %v496_v18 = vpop.f32.mrb[0].mxu1 }
  0xf3   : > { %v457_v19 = vpop.f32.mrb[1].mxu0  ;;  %v498_v20 = vpop.f32.mrb[1].mxu1 }
  0xf4   : > { %v459_v21 = vpop.f32.mrb[2].mxu0  ;;  %v500_v22 = vpop.f32.mrb[2].mxu1 }
  0xf5   : > { %v460_v23 = vpop.f32.mrb[3].mxu0  ;;  %v501_v24 = vpop.f32.mrb[3].mxu1 }
 0x106   : > { %v677_v25 = vpop.f32.mrb[4].mxu0  ;;  %v718_v26 = vpop.f32.mrb[4].mxu1 }
 0x107   : > { %v729_v27 = vadd.f32 %v677_v25, %v455_v17  ;;  %v731_v28 = vadd.f32 %v718_v26, %v496_v18  ;;  %v679_v29 = vpop.f32.mrb[5].mxu0  ;;  %v720_v30 = vpop.f32.mrb[5].mxu1 }
 0x108   : > { %v730_v31 = vadd.f32 %v679_v29, %v457_v19  ;;  %v732_v32 = vadd.f32 %v720_v30, %v498_v20  ;;  %v681_v33 = vpop.f32.mrb[6].mxu0  ;;  %v722_v34 = vpop.f32.mrb[6].mxu1 }
 0x109   : > { %v682_v35 = vpop.f32.mrb[7].mxu0  ;;  %v723_v36 = vpop.f32.mrb[7].mxu1 }
 0x11a   : > { %v896_v46 = vpop.f32.mrb[8].mxu0  ;;  %v937_v47 = vpop.f32.mrb[8].mxu1 }
 0x11b   : > { %v948_v50 = vadd.f32 %v896_v46, %v729_v27  ;;  %v950_v51 = vadd.f32 %v937_v47, %v731_v28  ;;  %v898_v52 = vpop.f32.mrb[9].mxu0  ;;  %v939_v53 = vpop.f32.mrb[9].mxu1 }
 0x11c   : > { %v949_v54 = vadd.f32 %v898_v52, %v730_v31  ;;  %v951_v55 = vadd.f32 %v939_v53, %v732_v32  ;;  %v900_v56 = vpop.f32.mrb[10].mxu0  ;;  %v941_v57 = vpop.f32.mrb[10].mxu1 }
 0x11d   : > { %v982_v58 = vadd.f32 %v965_v44, %v948_v50  ;;  %v984_v59 = vadd.f32 %v973_v45, %v950_v51  ;;  %v901_v60 = vpop.f32.mrb[11].mxu0  ;;  %v942_v61 = vpop.f32.mrb[11].mxu1  ;;  %v1037_v57 = vsub.s32 %v1034_v12, %v1862_v38 }
 0x11e   : > { %v983_v0 = vadd.f32 %v969_v48, %v949_v54  ;;  %v985_v1 = vadd.f32 %v977_v49, %v951_v55 }
 0x11f   : > { %vm986_vm2 = vcmp.gt.f32.partialorder %v982_v58, 0.0  ;;  %v990_v3 = vmul.f32 0.01, %v982_v58  ;;  %vm988_vm3 = vcmp.gt.f32.partialorder %v984_v59, 0.0  ;;  %v992_v4 = vmul.f32 0.01, %v984_v59 }
 0x120   : > { %vm987_vm4 = vcmp.gt.f32.partialorder %v983_v0, 0.0  ;;  %v991_v5 = vmul.f32 0.01, %v983_v0  ;;  %vm989_vm5 = vcmp.gt.f32.partialorder %v985_v1, 0.0  ;;  %v993_v2 = vmul.f32 0.01, %v985_v1 }
 0x121   : > { %v994_v6 = vsel %vm986_vm2, %v982_v58, %v990_v3  ;;  %v996_v7 = vsel %vm988_vm3, %v984_v59, %v992_v4 }
 0x122   : > { %998 = vst [vmem:[%s271_s14] sm:$0xff] %v994_v6  ;;  %v1002_v8 = vrot.slane %v994_v6, 4  ;;  %v1060_v9 = vmul.f32 %v994_v6, %v994_v6  ;;  %1000 = vst [vmem:[%s271_s14 + $0x10] sm:$0xff] %v996_v7  ;;  %v1014_v10 = vrot.slane %v996_v7, 4  ;;  %v1062_v11 = vmul.f32 %v996_v7, %v996_v7 }
 0x123   : > { %v995_v13 = vsel %vm987_vm4, %v983_v0, %v991_v5  ;;  %v997_v14 = vsel %vm989_vm5, %v985_v1, %v993_v2 }
 0x124   : > { %v1003_v15 = vadd.f32 %v1002_v8, %v994_v6  ;;  %v1064_v16 = vrot.slane %v1060_v9, 4  ;;  %v1015_v17 = vadd.f32 %v1014_v10, %v996_v7  ;;  %v1076_v18 = vrot.slane %v1062_v11, 4  ;;  %999 = vst [vmem:[%s271_s14 + $0x8] sm:$0xff] %v995_v13  ;;  %1001 = vst [vmem:[%s271_s14 + $0x18] sm:$0xff] %v997_v14 }
 0x125   : > { %v1008_v19 = vrot.slane %v995_v13, 4  ;;  %v1061_v20 = vmul.f32 %v995_v13, %v995_v13  ;;  %v1020_v21 = vrot.slane %v997_v14, 4  ;;  %v1063_v22 = vmul.f32 %v997_v14, %v997_v14 }
 0x126   : > { %v1004_v23 = vrot.slane %v1003_v15, 2  ;;  %v1065_v24 = vadd.f32 %v1064_v16, %v1060_v9  ;;  %v1016_v25 = vrot.slane %v1015_v17, 2  ;;  %v1077_v26 = vadd.f32 %v1076_v18, %v1062_v11 }
 0x127   : > { %v1009_v27 = vadd.f32 %v1008_v19, %v995_v13  ;;  %v1070_v28 = vrot.slane %v1061_v20, 4  ;;  %v1021_v29 = vadd.f32 %v1020_v21, %v997_v14  ;;  %v1082_v30 = vrot.slane %v1063_v22, 4 }
 0x128   : > { %v1005_v31 = vadd.f32 %v1004_v23, %v1003_v15  ;;  %v1066_v32 = vrot.slane %v1065_v24, 2  ;;  %v1017_v33 = vadd.f32 %v1016_v25, %v1015_v17  ;;  %v1078_v34 = vrot.slane %v1077_v26, 2 }
 0x129   : > { %v1010_v35 = vrot.slane %v1009_v27, 2  ;;  %v1071_v36 = vadd.f32 %v1070_v28, %v1061_v20  ;;  %v1022_v39 = vrot.slane %v1021_v29, 2  ;;  %v1083_v40 = vadd.f32 %v1082_v30, %v1063_v22 }
 0x12a   : > { %v1006_v41 = vrot.slane %v1005_v31, 1  ;;  %v1067_v42 = vadd.f32 %v1066_v32, %v1065_v24  ;;  %v1018_v43 = vrot.slane %v1017_v33, 1  ;;  %v1079_v44 = vadd.f32 %v1078_v34, %v1077_v26 }
 0x12b   : > { %v1011_v45 = vadd.f32 %v1010_v35, %v1009_v27  ;;  %v1072_v46 = vrot.slane %v1071_v36, 2  ;;  %v1023_v47 = vadd.f32 %v1022_v39, %v1021_v29  ;;  %v1084_v48 = vrot.slane %v1083_v40, 2 }
 0x12c   : > { %v1007_v49 = vadd.f32 %v1006_v41, %v1005_v31  ;;  %v1068_v50 = vrot.slane %v1067_v42, 1  ;;  %v1019_v51 = vadd.f32 %v1018_v43, %v1017_v33  ;;  %v1080_v52 = vrot.slane %v1079_v44, 1 }
 0x12d   : > { %v1012_v53 = vrot.slane %v1011_v45, 1  ;;  %v1073_v54 = vadd.f32 %v1072_v46, %v1071_v36  ;;  %v1024_v55 = vrot.slane %v1023_v47, 1  ;;  %v1085_v56 = vadd.f32 %v1084_v48, %v1083_v40 }
 0x12e   : > { %v1069_v58 = vadd.f32 %v1068_v50, %v1067_v42  ;;  %v1081_v59 = vadd.f32 %v1080_v52, %v1079_v44 }
 0x12f   : > { %v1013_v60 = vadd.f32 %v1012_v53, %v1011_v45  ;;  %v1074_v61 = vrot.slane %v1073_v54, 1  ;;  %v1025_v62 = vadd.f32 %v1024_v55, %v1023_v47  ;;  %v1086_v63 = vrot.slane %v1085_v56, 1 }
 0x131   : > { %v1030_v0 = vcombine.low %v1007_v49, %v1013_v60  ;;  %v1075_v1 = vadd.f32 %v1074_v61, %v1073_v54  ;;  %v1031_v3 = vcombine.low %v1019_v51, %v1025_v62  ;;  %v1087_v4 = vadd.f32 %v1086_v63, %v1085_v56 }
 0x133   : > { %v1038_v5 = vrot.slane %v1030_v0, %v1037_v57  ;;  %v1092_v2 = vcombine.low %v1069_v58, %v1075_v1  ;;  %v1045_v6 = vrot.slane %v1031_v3, %v1037_v57  ;;  %v1093_v7 = vcombine.low %v1081_v59, %v1087_v4 }
 0x135   : > { %v1100_v8 = vrot.slane %v1092_v2, %v1037_v57  ;;  %v1046_v9 = vcombine.low %v1038_v5, %v1045_v6  ;;  %v1107_v10 = vrot.slane %v1093_v7, %v1037_v57 }
 0x137   : > { %v1053_v38 = vrot.slane %v1046_v9, %v1037_v57  ;;  %v1108_v11 = vcombine.low %v1100_v8, %v1107_v10 }
 0x139   : > { %1059 = vst.msk [vmem:[%s279_s17] sm:$0xf] %vm1057_vm6, %v1053_v38  ;;  %v1115_v12 = vrot.slane %v1108_v11, %v1037_v57 }
 0x13b   : > { %1117 = vst.msk [vmem:[%s287_s28] sm:$0xf] %vm1057_vm6, %v1115_v12 }
 0x13c PF: > { %s16_s22 = sadd.s32 1, %s1592_s22   ;;  %s1913_s18 = smov %s1584_s20 }
 0x13d   : > { %p13_p7 = scmp.ge.s32.totalorder %s16_s22, 6   ;;  %s1914_s19 = smov %s1588_s21 }
 0x13e   : > { %s1915_s20 = smov %s1918_s23  ;;  %s1916_s21 = smov %s1922_s24 }
 0x13f   :  { %15 = sbr.rel (!%p13_p7) target bundleno = 3 (0x3), region = 89 }

// kernel: tile.111
= control target key start
LH: loop header
LB: loop body
LE: loop exit
PB: predicated region body
PF: predicated region fallthrough
CT: control target
= control target key end

     0   :  { %s28_s0 = inlined_call_operand.vmem [shape: f32[16], index: 0, kind: input, shape index: {}]   ;;  %s29_s1 = inlined_call_operand.vmem [shape: f32[16,16], index: 1, kind: output, shape index: {}]  }
   0x1   :  { %v4_v0 = vld [vmem:[%s28_s0] ss:$0 sm:$0xff] }
   0x2   :  { %5 = vst [vmem:[%s29_s1] sm:$0xff] %v4_v0  ;;  %8 = vst [vmem:[%s29_s1 + $0x8] sm:$0xff] %v4_v0 }

// kernel: tile.126
= control target key start
LH: loop header
LB: loop body
LE: loop exit
PB: predicated region body
PF: predicated region fallthrough
CT: control target
= control target key end

     0   :  { %s7_s6 = smov 3  ;;  %s21_s9 = smov 3  ;;  %vm4_vm0 = vcmask 130048   ;;  %vm11_vm1 = vcmask 1048448   ;;  %vm18_vm2 = vcmask 917248   ;;  %vm25_vm3 = vcmask 786048   ;;  %s128_s0 = inlined_call_operand.vmem [shape: f32[16,16], index: 0, kind: input, shape index: {}]   ;;  %s129_s1 = inlined_call_operand.vmem [shape: f32[1,256], index: 1, kind: output, shape index: {}]  }
   0x1   :  { %v66_v0 = vld [vmem:[%s128_s0 + $0x7] ss:$8 sm:%s7_s6]   ;;  %s81_s10 = smov 112   ;;  %v68_v1 = vld [vmem:[%s128_s0 + $0x5] ss:$8 sm:%s21_s9]   ;;  %s14_s13 = smov 3 }
   0x2   :  { %9 = vrot.lane.b32.xlu0 %v66_v0, %s81_s10  ;;  %s82_s14 = smov 80   ;;  %v67_v2 = vld [vmem:[%s128_s0 + $0x6] ss:$8 sm:%s14_s13]   ;;  %s28_s17 = smov 3  ;;  %vm32_vm4 = vcmask 654848   ;;  %vm39_vm5 = vcmask 523648  }
   0x3   :  { %23 = vrot.lane.b32.xlu1 %v68_v1, %s82_s14  ;;  %v69_v3 = vld [vmem:[%s128_s0 + $0x4] ss:$8 sm:%s28_s17]   ;;  %s35_s20 = smov 3  ;;  %s42_s21 = smov 3  ;;  %vm46_vm6 = vcmask 392448   ;;  %vm53_vm7 = vcmask 261248  }
   0x4   :  { %s83_s22 = smov 96   ;;  %s84_s23 = smov 64   ;;  %v70_v4 = vld [vmem:[%s128_s0 + $0x3] ss:$8 sm:%s35_s20]   ;;  %v71_v5 = vld [vmem:[%s128_s0 + $0x2] ss:$8 sm:%s42_s21]  }
   0x5   :  { %s2_s26 = smov 3  ;;  %s49_s29 = smov 3 }
   0x6   :  { %16 = vrot.lane.b32.xlu0 %v67_v2, %s83_s22  ;;  %v3_v6 = vld [vmem:[%s128_s0] ss:$8 sm:%s2_s26]   ;;  %s85_s3 = smov 48   ;;  %s86_s4 = smov 32  }
   0x7   :  { %30 = vrot.lane.b32.xlu1 %v69_v3, %s84_s23  ;;  %5 = vst.msk [vmem:[#allocation0] ss:$8 sm:$0x3] %vm4_vm0, %v3_v6   ;;  %v72_v7 = vld [vmem:[%s128_s0 + $0x1] ss:$8 sm:%s49_s29]   ;;  %s87_s0 = smov 16  }
   0xa   :  { %37 = vrot.lane.b32.xlu0 %v70_v4, %s85_s3 }
   0xb   :  { %44 = vrot.lane.b32.xlu1 %v71_v5, %s86_s4 }
   0xe   :  { %51 = vrot.lane.b32.xlu0 %v72_v7, %s87_s0 }
  0x74   :  { %v10_v8 = vpop.permute.xlu0 %9  }
  0x75   :  { %12 = vst.msk [vmem:[#allocation0] ss:$8 sm:$0x3] %vm11_vm1, %v10_v8   ;;  %v24_v9 = vpop.permute.xlu1 %23  }
  0x78   :  { %v17_v10 = vpop.permute.xlu0 %16  }
  0x79   :  { %19 = vst.msk [vmem:[#allocation0] ss:$8 sm:$0x3] %vm18_vm2, %v17_v10   ;;  %v31_v11 = vpop.permute.xlu1 %30  }
  0x7a   :  { %26 = vst.msk [vmem:[#allocation0] ss:$8 sm:$0x3] %vm25_vm3, %v24_v9  }
  0x7b   :  { %33 = vst.msk [vmem:[#allocation0] ss:$8 sm:$0x3] %vm32_vm4, %v31_v11  }
  0x7c   :  { %v38_v12 = vpop.permute.xlu0 %37  }
  0x7d   :  { %40 = vst.msk [vmem:[#allocation0] ss:$8 sm:$0x3] %vm39_vm5, %v38_v12   ;;  %v45_v13 = vpop.permute.xlu1 %44  }
  0x7e   :  { %47 = vst.msk [vmem:[#allocation0] ss:$8 sm:$0x3] %vm46_vm6, %v45_v13  }
  0x80   :  { %v52_v14 = vpop.permute.xlu0 %51  }
  0x81   :  { %54 = vst.msk [vmem:[#allocation0] ss:$8 sm:$0x3] %vm53_vm7, %v52_v14  }
  0x88   :  { %v58_v15 = vld [vmem:[#allocation0] sm:$0x1]  ;;  %v62_v16 = vld [vmem:[#allocation0 + $0x8] sm:$0x1] }
  0x89   :  { %60 = vst [vmem:[%s129_s1] sm:$0x1] %v58_v15  ;;  %73 = vst [vmem:[%s129_s1 + $0x1] sm:$0x1] %v62_v16 }

// kernel: duck_conv2d_block.27
= control target key start
LH: loop header
LB: loop body
LE: loop exit
PB: predicated region body
PF: predicated region fallthrough
CT: control target
= control target key end

     0   :  { %s2029_s18 = smov 0   ;;  %s2031_s19 = smov 0   ;;  %s2456_s0 = inlined_call_operand.vmem [shape: bf16[2,18,288], index: 0, kind: input, shape index: {}]   ;;  %s2457_s1 = inlined_call_operand.vmem [shape: bf16[3,288,256], index: 1, kind: input, shape index: {}]   ;;  %s2458_s2 = inlined_call_operand.vmem [shape: f32[1,256], index: 2, kind: input, shape index: {}]   ;;  %s2459_s3 = inlined_call_operand.vmem [shape: f32[2,16,256], index: 3, kind: output, shape index: {0}]   ;;  %s2460_s4 = inlined_call_operand.vmem [shape: f32[2,2,1,256], index: 4, kind: output, shape index: {1}]   ;;  %s2461_s5 = inlined_call_operand.vmem [shape: f32[2,2,1,256], index: 5, kind: output, shape index: {2}]  }
   0x1   :  { %s2033_s20 = smov 0   ;;  %s2035_s21 = smov 0  }
   0x2   :  { %s2037_s22 = smov 0  }
   0x3 LB: > { %s25_s23 = sadd.s32 1, %s1987_s20  ;;  %s28_s24 = sadd.s32 1, %s1991_s21  ;;  %s1995_s22 = sphi %s2037_s22, %s16_s22   ;;  %s1991_s21 = sphi %s2035_s21, %s2465_s21   ;;  %s1987_s20 = sphi %s2033_s20, %s2464_s20   ;;  %s1983_s19 = sphi %s2031_s19, %s2463_s19   ;;  %s1979_s18 = sphi %s2029_s18, %s2462_s18  }
   0x4   : > { %p26_p0 = scmp.ge.s32.totalorder %s25_s23, 2  ;;  %p1543_p1 = scmp.ge.s32.totalorder %s1995_s22, 1 }
   0x5   : > { %p210_p2 = scmp.lt.s32.totalorder %s1995_s22, 5 }
   0x6   : > { %s2467_s23 = smov (%p26_p0, %s25_s23), 0  ;;  %s2469_s24 = smov (!%p26_p0, %s28_s24), %s1991_s21 }
   0x7   : > { %p211_p3 = pnand %p1543_p1, %p210_p2  ;;  %p30_p4 = scmp.ge.s32.totalorder %s2469_s24, 2 }
   0x8   : > { %v1789_v0 = vld [vmem:[%s2457_s1 + $0x4] ss:$8 sps:$4 sm:$0xff] (!%p211_p3)   ;;  %p258_p5 = scmp.lt.s32.totalorder (!%p211_p3), %s1983_s19, 1  ;;  %v1997_v2 = vmov (!%p211_p3), 0   ;;  %s1552_s29 = sshll.u32 (!%p211_p3), %s1979_s18, 3  ;;  %vm525_vm0 = vcmask (!%p211_p3), 261120  }
   0x9   : > { %s2471_s24 = smov (%p30_p4, %s2469_s24), 0  ;;  %214 = sbr.rel (%p211_p3) target bundleno = 381 (0x17d), region = 32 }
   0xa   : > { %v1791_v1 = vld [vmem:[%s2457_s1 + $0x104] ss:$8 sps:$4 sm:$0xff] (!%p211_p3)   ;;  %602 = vmatprep.mubr.bf16.mxu1 (!%p211_p3), %v1997_v2  ;;  %529 = vmatprep.subr.bf16.mxu0 (!%p211_p3), %v1789_v0  ;;  %v1793_v3 = vld [vmem:[%s2457_s1] ss:$8 sps:$4 sm:$0xff] (!%p211_p3)   ;;  %v1795_v5 = vld [vmem:[%s2457_s1 + $0x14] ss:$8 sps:$4 sm:$0xff] (!%p211_p3)  }
   0xb   : > { %v1794_v4 = vld [vmem:[%s2457_s1 + $0x100] ss:$8 sps:$4 sm:$0xff] (!%p211_p3)   ;;  %570 = vmatprep.subr.bf16.mxu1 (!%p211_p3), %v1791_v1  ;;  %s290_s11 = sshra.s32 (!%p211_p3), %s1552_s29, 3  ;;  %530 = vmatpush1.bf16.msra.mxu0 (!%p211_p3), %v1793_v3  ;;  %v1797_v6 = vld [vmem:[%s2457_s1 + $0x114] ss:$8 sps:$4 sm:$0xff] (!%p211_p3)   ;;  %p265_p6 = scmp.lt.s32.totalorder (!%p211_p3), %s1979_s18, 1 }
   0xc   : > { %571 = vmatpush1.bf16.msra.mxu1 (!%p211_p3), %v1794_v4  ;;  %v1799_v7 = vld [vmem:[%s2457_s1 + $0x10] ss:$8 sps:$4 sm:$0xff] (!%p211_p3)   ;;  %531 = vmatprep.subr.bf16.mxu0 (!%p211_p3), %v1795_v5  ;;  %s1745_s26 = smul.u32 (!%p211_p3), 12, %s290_s11  ;;  %v1801_v9 = vld [vmem:[%s2457_s1 + $0x24] ss:$8 sps:$4 sm:$0xff] (!%p211_p3)  }
   0xd   : > { %v1800_v8 = vld [vmem:[%s2457_s1 + $0x110] ss:$8 sps:$4 sm:$0xff] (!%p211_p3)   ;;  %572 = vmatprep.subr.bf16.mxu1 (!%p211_p3), %v1797_v6  ;;  %v1803_v10 = vld [vmem:[%s2457_s1 + $0x120] ss:$8 sps:$4 sm:$0xff] (!%p211_p3)   ;;  %v1805_v11 = vld [vmem:[%s2457_s1 + $0x124] ss:$8 sps:$4 sm:$0xff] (!%p211_p3)  }
   0xe   : > { %v1806_v12 = vld [vmem:[%s2457_s1 + $0x20] ss:$8 sps:$4 sm:$0xff] (!%p211_p3)   ;;  %v1809_v17 = vld [vmem:[%s2457_s1 + $0x34] ss:$8 sps:$4 sm:$0xff] (!%p211_p3)   ;;  %v1811_v19 = vld [vmem:[%s2457_s1 + $0x130] ss:$8 sps:$4 sm:$0xff] (!%p211_p3)  }
   0xf   : > { %532 = vmatpush1.bf16.msra.mxu0 (!%p211_p3), %v1799_v7  ;;  %v1813_v18 = vld [vmem:[%s2457_s1 + $0x134] ss:$8 sps:$4 sm:$0xff] (!%p211_p3)   ;;  %v1814_v20 = vld [vmem:[%s2457_s1 + $0x30] ss:$8 sps:$4 sm:$0xff] (!%p211_p3)   ;;  %v1815_v21 = vld [vmem:[%s2457_s1 + $0x44] ss:$8 sps:$4 sm:$0xff] (!%p211_p3)  }
  0x10   : > { %s2473_s19 = smov (!%p258_p5, %s1983_s19), 1  ;;  %573 = vmatpush1.bf16.msra.mxu1 %v1800_v8  ;;  %533 = vmatprep.subr.bf16.mxu0 %v1801_v9  ;;  %v1819_v22 = vld [vmem:[%s2457_s1 + $0x144] ss:$8 sps:$4 sm:$0xff]   ;;  %v1817_v23 = vld [vmem:[%s2457_s1 + $0x140] ss:$8 sps:$4 sm:$0xff]   ;;  %s2475_s18 = smov (!%p265_p6, %s1979_s18), 1 }
  0x11   : > { %s1746_s16 = smul.u32 36, %s2473_s19  ;;  %864 = vmatprep.subr.bf16.mxu1 %v1805_v11  ;;  %v1820_v24 = vld [vmem:[%s2457_s1 + $0x40] ss:$8 sps:$4 sm:$0xff]   ;;  %v1821_v25 = vld [vmem:[%s2457_s1 + $0x54] ss:$8 sps:$4 sm:$0xff]   ;;  %s1545_s12 = sshll.u32 %s2475_s18, 1 }
  0x12   : > { %v1825_v26 = vld [vmem:[%s2457_s1 + $0x154] ss:$8 sps:$4 sm:$0xff]   ;;  %v1823_v27 = vld [vmem:[%s2457_s1 + $0x150] ss:$8 sps:$4 sm:$0xff]   ;;  %v1827_v29 = vld [vmem:[%s2457_s1 + $0x64] ss:$8 sps:$4 sm:$0xff]  }
  0x13   : > { %s262_s6 = scalar_lea.vmem %s2456_s0, %s1746_s16  ;;  %534 = vmatpush1.bf16.msra.mxu0 %v1806_v12  ;;  %v1826_v28 = vld [vmem:[%s2457_s1 + $0x50] ss:$8 sps:$4 sm:$0xff]   ;;  %v1831_v30 = vld [vmem:[%s2457_s1 + $0x164] ss:$8 sps:$4 sm:$0xff]   ;;  %v1829_v31 = vld [vmem:[%s2457_s1 + $0x160] ss:$8 sps:$4 sm:$0xff]  }
  0x14   : > { %s2105_s11 = scalar_lea.vmem %s262_s6, %s1745_s26  ;;  %535 = vmatprep.subr.bf16.mxu0 %v1809_v17  ;;  %v1832_v32 = vld [vmem:[%s2457_s1 + $0x60] ss:$8 sps:$4 sm:$0xff]   ;;  %v1833_v33 = vld [vmem:[%s2457_s1 + $0x74] ss:$8 sps:$4 sm:$0xff]   ;;  %v1835_v35 = vld [vmem:[%s2457_s1 + $0x170] ss:$8 sps:$4 sm:$0xff]  }
  0x15   : > { %v296_v13 = vld [vmem:[%s2105_s11 + $0x8] sm:$0xf]  ;;  %v298_v14 = vld [vmem:[%s2105_s11 + $0x14] sm:$0x1]  ;;  %v1838_v36 = vld [vmem:[%s2457_s1 + $0x70] ss:$8 sps:$4 sm:$0xff]  }
  0x16   : > { %v1556_v15 = vcombine.low %v296_v13, %v296_v13  ;;  %v2109_v16 = vcombine.low %v296_v13, %v298_v14  ;;  %v1837_v34 = vld [vmem:[%s2457_s1 + $0x174] ss:$8 sps:$4 sm:$0xff]   ;;  %v1839_v37 = vld [vmem:[%s2457_s1 + $0x84] ss:$8 sps:$4 sm:$0xff]   ;;  %v1841_v39 = vld [vmem:[%s2457_s1 + $0x180] ss:$8 sps:$4 sm:$0xff]  }
  0x17   : > { %536 = vmatpush1.bf16.msra.mxu0 %v1814_v20  ;;  %v1843_v38 = vld [vmem:[%s2457_s1 + $0x184] ss:$8 sps:$4 sm:$0xff]   ;;  %v1844_v40 = vld [vmem:[%s2457_s1 + $0x80] ss:$8 sps:$4 sm:$0xff]   ;;  %v1845_v41 = vld [vmem:[%s2457_s1 + $0x94] ss:$8 sps:$4 sm:$0xff]  }
  0x18   : > { %1593 = vmatmul.mubr.msk.bf16.vlgmr.msra.gmra.mrb[0].mxu1 %vm525_vm0, %v1556_v15  ;;  %537 = vmatprep.subr.bf16.mxu0 %v1815_v21  ;;  %v1849_v42 = vld [vmem:[%s2457_s1 + $0x194] ss:$8 sps:$4 sm:$0xff]   ;;  %v1847_v43 = vld [vmem:[%s2457_s1 + $0x190] ss:$8 sps:$4 sm:$0xff]   ;;  %v1851_v45 = vld [vmem:[%s2457_s1 + $0xa4] ss:$8 sps:$4 sm:$0xff]  }
  0x19   : > { %865 = vmatpush1.bf16.msra.mxu1 %v1803_v10  ;;  %v1850_v44 = vld [vmem:[%s2457_s1 + $0x90] ss:$8 sps:$4 sm:$0xff]   ;;  %v1855_v46 = vld [vmem:[%s2457_s1 + $0x1a4] ss:$8 sps:$4 sm:$0xff]   ;;  %v1853_v47 = vld [vmem:[%s2457_s1 + $0x1a0] ss:$8 sps:$4 sm:$0xff]  }
  0x1a   : > { %866 = vmatprep.subr.bf16.mxu1 %v1813_v18  ;;  %v1856_v48 = vld [vmem:[%s2457_s1 + $0xa0] ss:$8 sps:$4 sm:$0xff]   ;;  %v1857_v49 = vld [vmem:[%s2457_s1 + $0xb4] ss:$8 sps:$4 sm:$0xff]   ;;  %v1859_v51 = vld [vmem:[%s2457_s1 + $0x1b0] ss:$8 sps:$4 sm:$0xff]  }
  0x1b   : > { %538 = vmatpush1.bf16.msra.mxu0 %v1820_v24  ;;  %v1861_v50 = vld [vmem:[%s2457_s1 + $0x1b4] ss:$8 sps:$4 sm:$0xff]   ;;  %v1862_v52 = vld [vmem:[%s2457_s1 + $0xb0] ss:$8 sps:$4 sm:$0xff]   ;;  %v295_v53 = vld [vmem:[%s2105_s11] sm:$0xff]  ;;  %s1546_s13 = sshll.u32 %s2473_s19, 2 }
  0x1c   : > { %539 = vmatprep.subr.bf16.mxu0 %v1821_v25  ;;  %v297_v54 = vld [vmem:[%s2105_s11 + $0xc] sm:$0x11]  ;;  %v1555_v56 = vcombine.high %v295_v53, %v295_v53  ;;  %v1865_v59 = vld [vmem:[%s2457_s1 + $0x1c0] ss:$8 sps:$4 sm:$0xff]   ;;  %v1869_v63 = vld [vmem:[%s2457_s1 + $0xd4] ss:$8 sps:$4 sm:$0xff]   ;;  %v1554_v18 = vcombine.low %v295_v53, %v295_v53  ;;  %s2426_s16 = sadd.s32 %s1546_s13, %s1545_s12 }
  0x1d   : > { %867 = vmatpush1.bf16.msra.mxu1 %v1811_v19  ;;  %v1863_v55 = vld [vmem:[%s2457_s1 + $0xc4] ss:$8 sps:$4 sm:$0xff]   ;;  %v2225_v57 = vcombine.high %v295_v53, %v297_v54  ;;  %v1868_v60 = vld [vmem:[%s2457_s1 + $0xc0] ss:$8 sps:$4 sm:$0xff]   ;;  %v1873_v0 = vld [vmem:[%s2457_s1 + $0x1d4] ss:$8 sps:$4 sm:$0xff]   ;;  %v2274_v14 = vcombine.low %v295_v53, %v297_v54  ;;  %s279_s28 = scalar_lea.vmem %s2460_s4, %s2426_s16  ;;  %s287_s11 = scalar_lea.vmem %s2461_s5, %s2426_s16 }
  0x1e   : > { %868 = vmatprep.subr.bf16.mxu1 %v1819_v22  ;;  %v1867_v58 = vld [vmem:[%s2457_s1 + $0x1c4] ss:$8 sps:$4 sm:$0xff]   ;;  %561 = vmatprep.mubr.bf16.mxu0 %v1555_v56  ;;  %v1871_v3 = vld [vmem:[%s2457_s1 + $0x1d0] ss:$8 sps:$4 sm:$0xff]   ;;  %v1877_v8 = vld [vmem:[%s2457_s1 + $0x1e0] ss:$8 sps:$4 sm:$0xff]  }
  0x1f   : > { %540 = vmatpush1.bf16.msra.mxu0 %v1826_v28  ;;  %v666_v61 = vshrl.u32 %v2225_v57, 16  ;;  %v668_v62 = vshll.u32 %v2225_v57, 16  ;;  %v1874_v4 = vld [vmem:[%s2457_s1 + $0xd0] ss:$8 sps:$4 sm:$0xff]   ;;  %v1875_v6 = vld [vmem:[%s2457_s1 + $0xe4] ss:$8 sps:$4 sm:$0xff]  }
  0x20   : > { %541 = vmatprep.subr.bf16.mxu0 %v1827_v29  ;;  %v1879_v7 = vld [vmem:[%s2457_s1 + $0x1e4] ss:$8 sps:$4 sm:$0xff]   ;;  %v1880_v9 = vld [vmem:[%s2457_s1 + $0xe0] ss:$8 sps:$4 sm:$0xff]   ;;  %v1881_v10 = vld [vmem:[%s2457_s1 + $0xf4] ss:$8 sps:$4 sm:$0xff]  }
  0x21   : > { %869 = vmatpush1.bf16.msra.mxu1 %v1817_v23  ;;  %v670_v1 = vrot.slane %v668_v62, 1  ;;  %v1885_v11 = vld [vmem:[%s2457_s1 + $0x1f4] ss:$8 sps:$4 sm:$0xff]   ;;  %v1883_v12 = vld [vmem:[%s2457_s1 + $0x1f0] ss:$8 sps:$4 sm:$0xff]   ;;  %v661_v21 = vshll.u32 %v2274_v14, 16 }
  0x22   : > { %870 = vmatprep.subr.bf16.mxu1 %v1825_v26  ;;  %v1886_v13 = vld [vmem:[%s2457_s1 + $0xf0] ss:$8 sps:$4 sm:$0xff]   ;;  %v1893_v15 = vld [vmem:[%s2457_s1 + $0x204] ss:$8 sps:$4 sm:$0xff]   ;;  %v1891_v19 = vld [vmem:[%s2457_s1 + $0x200] ss:$8 sps:$4 sm:$0xff]  }
  0x23   : > { %542 = vmatpush1.bf16.msra.mxu0 %v1832_v32  ;;  %v671_v5 = vor.u32 %v670_v1, %v666_v61  ;;  %v1896_v17 = vld [vmem:[%s2457_s1 + $0x244] ss:$8 sps:$4 sm:$0xff]   ;;  %v1894_v20 = vld [vmem:[%s2457_s1 + $0x240] ss:$8 sps:$4 sm:$0xff]   ;;  %v1899_v22 = vld [vmem:[%s2457_s1 + $0x214] ss:$8 sps:$4 sm:$0xff]  }
  0x24   : > { %543 = vmatprep.subr.bf16.mxu0 %v1833_v33  ;;  %v1902_v23 = vld [vmem:[%s2457_s1 + $0x254] ss:$8 sps:$4 sm:$0xff]   ;;  %v1897_v24 = vld [vmem:[%s2457_s1 + $0x210] ss:$8 sps:$4 sm:$0xff]   ;;  %v990_v25 = vrot.slane %v2225_v57, 1  ;;  %v663_v28 = vrot.slane %v661_v21, 1 }
  0x25   : > { %871 = vmatpush1.bf16.msra.mxu1 %v1823_v27  ;;  %896 = vmatprep.mubr.bf16.mxu1 %v671_v5  ;;  %v1900_v26 = vld [vmem:[%s2457_s1 + $0x250] ss:$8 sps:$4 sm:$0xff]   ;;  %v659_v27 = vshrl.u32 %v2274_v14, 16  ;;  %v1905_v29 = vld [vmem:[%s2457_s1 + $0x224] ss:$8 sps:$4 sm:$0xff]   ;;  %s1547_s17 = sshll.u32 %s2426_s16, 3 }
  0x26   : > { %872 = vmatprep.subr.bf16.mxu1 %v1831_v30  ;;  %v1908_v30 = vld [vmem:[%s2457_s1 + $0x264] ss:$8 sps:$4 sm:$0xff]   ;;  %v1903_v33 = vld [vmem:[%s2457_s1 + $0x220] ss:$8 sps:$4 sm:$0xff]   ;;  %v1926_v53 = vld [vmem:[%s2457_s1 + $0x2b4] ss:$8 sps:$4 sm:$0xff]   ;;  %s271_s25 = scalar_lea.vmem %s2459_s3, %s1547_s17 }
  0x27   : > { %544 = vmatpush1.bf16.msra.mxu0 %v1838_v36  ;;  %v664_v32 = vor.u32 %v663_v28, %v659_v27  ;;  %v1914_v36 = vld [vmem:[%s2457_s1 + $0x274] ss:$8 sps:$4 sm:$0xff]   ;;  %v1927_v54 = vld [vmem:[%s2457_s1 + $0x2c0] ss:$8 sps:$4 sm:$0xff]   ;;  %v1930_v56 = vld [vmem:[%s2457_s1 + $0x2d0] ss:$8 sps:$4 sm:$0xff]  }
  0x28   : > { %545 = vmatprep.subr.bf16.mxu0 %v1839_v37  ;;  %v673_v37 = vshrl.u32 %v2109_v16, 16  ;;  %v1935_v57 = vld [vmem:[%s2457_s1 + $0x2e4] ss:$8 sps:$4 sm:$0xff]   ;;  %v1939_v62 = vld [vmem:[%s2457_s1 + $0x300] ss:$8 sps:$4 sm:$0xff]  }
  0x29   : > { %873 = vmatpush1.bf16.msra.mxu1 %v1829_v31  ;;  %v675_v31 = vshll.u32 %v2109_v16, 16  ;;  %v1941_v61 = vld [vmem:[%s2457_s1 + $0x304] ss:$8 sps:$4 sm:$0xff]   ;;  %v1954_v5 = vld [vmem:[%s2457_s1 + $0x330] ss:$8 sps:$4 sm:$0xff]  }
  0x2a   : > { %874 = vmatprep.subr.bf16.mxu1 %v1837_v34  ;;  %v1906_v34 = vld [vmem:[%s2457_s1 + $0x260] ss:$8 sps:$4 sm:$0xff]   ;;  %v1950_v1 = vld [vmem:[%s2457_s1 + $0x324] ss:$8 sps:$4 sm:$0xff]  }
  0x2b   : > { %546 = vmatpush1.bf16.msra.mxu0 %v1844_v40  ;;  %v1912_v40 = vld [vmem:[%s2457_s1 + $0x270] ss:$8 sps:$4 sm:$0xff]  }
  0x2c   : > { %547 = vmatprep.subr.bf16.mxu0 %v1845_v41  ;;  %v1917_v41 = vld [vmem:[%s2457_s1 + $0x284] ss:$8 sps:$4 sm:$0xff]  }
  0x2d   : > { %875 = vmatpush1.bf16.msra.mxu1 %v1835_v35  ;;  %v1911_v35 = vld [vmem:[%s2457_s1 + $0x234] ss:$8 sps:$4 sm:$0xff]  }
  0x2e   : > { %876 = vmatprep.subr.bf16.mxu1 %v1843_v38  ;;  %v677_v38 = vrot.slane %v675_v31, 1 }
  0x2f   : > { %548 = vmatpush1.bf16.msra.mxu0 %v1850_v44  ;;  %v1915_v44 = vld [vmem:[%s2457_s1 + $0x280] ss:$8 sps:$4 sm:$0xff]  }
  0x30   : > { %549 = vmatprep.subr.bf16.mxu0 %v1851_v45  ;;  %v1945_v45 = vld [vmem:[%s2457_s1 + $0x340] ss:$8 sps:$4 sm:$0xff]  }
  0x31   : > { %877 = vmatpush1.bf16.msra.mxu1 %v1841_v39  ;;  %v1909_v39 = vld [vmem:[%s2457_s1 + $0x230] ss:$8 sps:$4 sm:$0xff]  }
  0x32   : > { %878 = vmatprep.subr.bf16.mxu1 %v1849_v42  ;;  %v1947_v42 = vld [vmem:[%s2457_s1 + $0x344] ss:$8 sps:$4 sm:$0xff]  }
  0x33   : > { %550 = vmatpush1.bf16.msra.mxu0 %v1856_v48  ;;  %v1918_v48 = vld [vmem:[%s2457_s1 + $0x290] ss:$8 sps:$4 sm:$0xff]  }
  0x34   : > { %551 = vmatprep.subr.bf16.mxu0 %v1857_v49  ;;  %v1951_v49 = vld [vmem:[%s2457_s1 + $0x350] ss:$8 sps:$4 sm:$0xff]  }
  0x35   : > { %879 = vmatpush1.bf16.msra.mxu1 %v1847_v43  ;;  %v678_v43 = vor.u32 %v677_v38, %v673_v37  ;;  %v1267_v37 = vld [vmem:[%s2458_s2] sm:$0x3] }
  0x36   : > { %880 = vmatprep.subr.bf16.mxu1 %v1855_v46  ;;  %v1920_v46 = vld [vmem:[%s2457_s1 + $0x294] ss:$8 sps:$4 sm:$0xff]  }
  0x37   : > { %552 = vmatpush1.bf16.msra.mxu0 %v1862_v52  ;;  %v1921_v52 = vld [vmem:[%s2457_s1 + $0x2a0] ss:$8 sps:$4 sm:$0xff]  }
  0x38   : > { %553 = vmatprep.subr.bf16.mxu0 %v1863_v55  ;;  %v1932_v55 = vld [vmem:[%s2457_s1 + $0x2d4] ss:$8 sps:$4 sm:$0xff]  }
  0x39   : > { %881 = vmatpush1.bf16.msra.mxu1 %v1853_v47  ;;  %v1953_v47 = vld [vmem:[%s2457_s1 + $0x354] ss:$8 sps:$4 sm:$0xff]  }
  0x3a   : > { %882 = vmatprep.subr.bf16.mxu1 %v1861_v50  ;;  %v1923_v50 = vld [vmem:[%s2457_s1 + $0x2a4] ss:$8 sps:$4 sm:$0xff]  }
  0x3b   : > { %554 = vmatpush1.bf16.msra.mxu0 %v1868_v60  ;;  %v1936_v60 = vld [vmem:[%s2457_s1 + $0x2f0] ss:$8 sps:$4 sm:$0xff]  }
  0x3c   : > { %555 = vmatprep.subr.bf16.mxu0 %v1869_v63  ;;  %v1944_v63 = vld [vmem:[%s2457_s1 + $0x314] ss:$8 sps:$4 sm:$0xff]  }
  0x3d   : > { %883 = vmatpush1.bf16.msra.mxu1 %v1859_v51  ;;  %v991_v51 = vrot.slane %v2109_v16, 1  ;;  %v1929_v16 = vld [vmem:[%s2457_s1 + $0x2c4] ss:$8 sps:$4 sm:$0xff]  }
  0x3e   : > { %884 = vmatprep.subr.bf16.mxu1 %v1867_v58  ;;  %v1933_v58 = vld [vmem:[%s2457_s1 + $0x2e0] ss:$8 sps:$4 sm:$0xff]  }
  0x3f   : > { %556 = vmatpush1.bf16.msra.mxu0 %v1874_v4  ;;  %v1956_v4 = vld [vmem:[%s2457_s1 + $0x334] ss:$8 sps:$4 sm:$0xff]  }
  0x40   : > { %557 = vmatprep.subr.bf16.mxu0 %v1875_v6  ;;  %v989_v6 = vrot.slane %v2274_v14, 1 }
  0x41   : > { %885 = vmatpush1.bf16.msra.mxu1 %v1865_v59  ;;  %v1938_v59 = vld [vmem:[%s2457_s1 + $0x2f4] ss:$8 sps:$4 sm:$0xff]  }
  0x42   : > { %886 = vmatprep.subr.bf16.mxu1 %v1873_v0  ;;  %v1942_v0 = vld [vmem:[%s2457_s1 + $0x310] ss:$8 sps:$4 sm:$0xff]  }
  0x43   : > { %558 = vmatpush1.bf16.msra.mxu0 %v1880_v9 }
  0x44   : > { %559 = vmatprep.subr.bf16.mxu0 %v1881_v10 }
  0x45   : > { %887 = vmatpush1.bf16.msra.mxu1 %v1871_v3  ;;  %v1948_v3 = vld [vmem:[%s2457_s1 + $0x320] ss:$8 sps:$4 sm:$0xff]  }
  0x46   : > { %888 = vmatprep.subr.bf16.mxu1 %v1879_v7 }
  0x47   : > { %560 = vmatpush1.bf16.msra.mxu0 %v1886_v13 }
  0x48   : > { %1177 = vmatprep.subr.bf16.mxu0 %v1896_v17 }
  0x49   : > { %889 = vmatpush1.bf16.msra.mxu1 %v1877_v8 }
  0x4a   : > { %890 = vmatprep.subr.bf16.mxu1 %v1885_v11  ;;  %562 = vmatmul.mubr.bf16.vlgmr.msra.gmra.mrb[0].mxu0 %v1554_v18 }
  0x4b   : > { %1178 = vmatpush1.bf16.msra.mxu0 %v1894_v20  ;;  %1209 = vmatprep.mubr.bf16.mxu0 %v990_v25 }
  0x4c   : > { %1179 = vmatprep.subr.bf16.mxu0 %v1902_v23 }
  0x4d   : > { %891 = vmatpush1.bf16.msra.mxu1 %v1883_v12 }
  0x4e   : > { %892 = vmatprep.subr.bf16.mxu1 %v1893_v15 }
  0x4f   : > { %1180 = vmatpush1.bf16.msra.mxu0 %v1900_v26 }
  0x50   : > { %1181 = vmatprep.subr.bf16.mxu0 %v1908_v30 }
  0x51   : > { %893 = vmatpush1.bf16.msra.mxu1 %v1891_v19 }
  0x52   : > { %894 = vmatprep.subr.bf16.mxu1 %v1899_v22 }
  0x53   : > { %1182 = vmatpush1.bf16.msra.mxu0 %v1906_v34  ;;  %v1269_v34 = vlaneseq }
  0x54   : > { %1183 = vmatprep.subr.bf16.mxu0 %v1914_v36 }
  0x55   : > { %895 = vmatpush1.bf16.msra.mxu1 %v1897_v24  ;;  %vm1321_vm3 = vcmp.lt.s32.totalorder %v1269_v34, 256 }
  0x56   : > { %905 = vmatprep.subr.bf16.mxu1 %v1905_v29 }
  0x57   : > { %1184 = vmatpush1.bf16.msra.mxu0 %v1912_v40 }
  0x58   : > { %897 = vmatmul.mubr.bf16.vlgmr.msra.gmra.mrb[4].mxu1 %v664_v32  ;;  %1185 = vmatprep.subr.bf16.mxu0 %v1917_v41 }
  0x59   : > { %906 = vmatpush1.bf16.msra.mxu1 %v1903_v33  ;;  %937 = vmatprep.mubr.bf16.mxu1 %v1997_v2 }
  0x5a   : > { %907 = vmatprep.subr.bf16.mxu1 %v1911_v35  ;;  %v1270_v35 = vshrl.u32 %v1269_v34, 7 }
  0x5b   : > { %1186 = vmatpush1.bf16.msra.mxu0 %v1915_v44 }
  0x5c   : > { %1187 = vmatprep.subr.bf16.mxu0 %v1920_v46  ;;  %v1271_v36 = vsub.s32 0, %v1270_v35  ;;  %v1275_v38 = vsub.s32 1, %v1270_v35 }
  0x5d   : > { %908 = vmatpush1.bf16.msra.mxu1 %v1909_v39 }
  0x5e   : > { %1218 = vmatprep.subr.bf16.mxu1 %v1947_v42  ;;  %v1272_v41 = vrot.slane %v1267_v37, %v1271_v36  ;;  %v1276_v44 = vrot.slane %v1267_v37, %v1275_v38 }
  0x5f   : > { %1188 = vmatpush1.bf16.msra.mxu0 %v1918_v48 }
  0x60   : > { %1669 = vmatmul.mubr.msk.bf16.vlgmr.msra.gmra.mrb[8].mxu1 %vm525_vm0, %v678_v43  ;;  %1189 = vmatprep.subr.bf16.mxu0 %v1923_v50 }
  0x61   : > { %1219 = vmatpush1.bf16.msra.mxu1 %v1945_v45  ;;  %1250 = vmatprep.mubr.bf16.mxu1 %v1997_v2  ;;  %v1924_v2 = vld [vmem:[%s2457_s1 + $0x2b0] ss:$8 sps:$4 sm:$0xff]  }
  0x62   : > { %1220 = vmatprep.subr.bf16.mxu1 %v1953_v47 }
  0x63   : > { %1190 = vmatpush1.bf16.msra.mxu0 %v1921_v52 }
  0x64   : > { %1191 = vmatprep.subr.bf16.mxu0 %v1926_v53 }
  0x65   : > { %1221 = vmatpush1.bf16.msra.mxu1 %v1951_v49 }
  0x67   : > { %1192 = vmatpush1.bf16.msra.mxu0 %v1924_v2 }
  0x68   : > { %1742 = vmatmul.mubr.msk.bf16.vlgmr.msra.gmra.mrb[12].mxu1 %vm525_vm0, %v991_v51  ;;  %1193 = vmatprep.subr.bf16.mxu0 %v1929_v16 }
  0x6b   : > { %1194 = vmatpush1.bf16.msra.mxu0 %v1927_v54 }
  0x6c   : > { %1195 = vmatprep.subr.bf16.mxu0 %v1932_v55 }
  0x6f   : > { %1196 = vmatpush1.bf16.msra.mxu0 %v1930_v56 }
  0x70   : > { %1197 = vmatprep.subr.bf16.mxu0 %v1935_v57 }
  0x73   : > { %1198 = vmatpush1.bf16.msra.mxu0 %v1933_v58 }
  0x74   : > { %1199 = vmatprep.subr.bf16.mxu0 %v1938_v59  ;;  %v1998_v59 = vmov 1966171168  }
  0x77   : > { %1200 = vmatpush1.bf16.msra.mxu0 %v1936_v60  ;;  %v1305_v60 = vunpack.c.l.s4 %v1998_v59 }
  0x78   : > { %1201 = vmatprep.subr.bf16.mxu0 %v1941_v61 }
  0x7b   : > { %1202 = vmatpush1.bf16.msra.mxu0 %v1939_v62 }
  0x7c   : > { %1203 = vmatprep.subr.bf16.mxu0 %v1944_v63 }
  0x7f   : > { %1204 = vmatpush1.bf16.msra.mxu0 %v1942_v0 }
  0x80   : > { %1205 = vmatprep.subr.bf16.mxu0 %v1950_v1 }
  0x83   : > { %1206 = vmatpush1.bf16.msra.mxu0 %v1948_v3 }
  0x84   : > { %1207 = vmatprep.subr.bf16.mxu0 %v1956_v4 }
  0x87   : > { %1208 = vmatpush1.bf16.msra.mxu0 %v1954_v5 }
  0x8a   : > { %1210 = vmatmul.mubr.bf16.vlgmr.msra.gmra.mrb[4].mxu0 %v989_v6  ;;  %v1306_v6 = vunpack.c.0.s8 %v1305_v60 }
  0xeb   : > { %v604_v7 = vpop.f32.mrb[0].mxu1 }
  0xec   : > { %v606_v8 = vpop.f32.mrb[1].mxu1 }
  0xed   : > { %v608_v9 = vpop.f32.mrb[2].mxu1 }
  0xee   : > { %v609_v10 = vpop.f32.mrb[3].mxu1 }
 0x11d   : > { %v563_v11 = vpop.f32.mrb[0].mxu0 }
 0x11e   : > { %v605_v12 = vadd.f32 %v604_v7, %v563_v11  ;;  %v565_v13 = vpop.f32.mrb[1].mxu0 }
 0x11f   : > { %v607_v15 = vadd.f32 %v606_v8, %v565_v13  ;;  %v567_v17 = vpop.f32.mrb[2].mxu0 }
 0x120   : > { %v568_v18 = vpop.f32.mrb[3].mxu0  ;;  %v1309_v17 = vsub.s32 %v1306_v6, %v1270_v35 }
 0x12b   : > { %v898_v19 = vpop.f32.mrb[4].mxu1 }
 0x12c   : > { %v900_v20 = vpop.f32.mrb[5].mxu1 }
 0x12d   : > { %v902_v21 = vpop.f32.mrb[6].mxu1 }
 0x12e   : > { %v903_v22 = vpop.f32.mrb[7].mxu1 }
 0x133   : > { %v939_v23 = vpop.f32.mrb[8].mxu1 }
 0x134   : > { %v940_v14 = vadd.f32 %v939_v23, %v898_v19  ;;  %v941_v24 = vpop.f32.mrb[9].mxu1 }
 0x135   : > { %v942_v25 = vadd.f32 %v941_v24, %v900_v20  ;;  %v943_v26 = vpop.f32.mrb[10].mxu1 }
 0x136   : > { %v948_v27 = vadd.f32 %v940_v14, %v605_v12  ;;  %v944_v28 = vpop.f32.mrb[11].mxu1 }
 0x137   : > { %v949_v29 = vadd.f32 %v942_v25, %v607_v15 }
 0x13b   : > { %v1252_v30 = vpop.f32.mrb[12].mxu1 }
 0x13c   : > { %v1254_v31 = vpop.f32.mrb[13].mxu1 }
 0x13d   : > { %v1256_v32 = vpop.f32.mrb[14].mxu1 }
 0x13e   : > { %v1257_v33 = vpop.f32.mrb[15].mxu1 }
 0x15d   : > { %v1211_v39 = vpop.f32.mrb[4].mxu0 }
 0x15e   : > { %v1253_v40 = vadd.f32 %v1252_v30, %v1211_v39  ;;  %v1213_v42 = vpop.f32.mrb[5].mxu0 }
 0x15f   : > { %v1255_v43 = vadd.f32 %v1254_v31, %v1213_v42  ;;  %v1215_v45 = vpop.f32.mrb[6].mxu0 }
 0x160   : > { %v1261_v46 = vadd.f32 %v1253_v40, %v948_v27  ;;  %v1216_v47 = vpop.f32.mrb[7].mxu0 }
 0x161   : > { %v1262_v48 = vadd.f32 %v1255_v43, %v949_v29 }
 0x162   : > { %v1279_v49 = vadd.f32 %v1272_v41, %v1261_v46 }
 0x163   : > { %v1280_v50 = vadd.f32 %v1276_v44, %v1262_v48 }
 0x164   : > { %vm1281_vm1 = vcmp.gt.f32.partialorder %v1279_v49, 0.0  ;;  %v1283_v51 = vmul.f32 0.01, %v1279_v49 }
 0x165   : > { %vm1282_vm2 = vcmp.gt.f32.partialorder %v1280_v50, 0.0  ;;  %v1284_v52 = vmul.f32 0.01, %v1280_v50 }
 0x166   : > { %v1285_v53 = vsel %vm1281_vm1, %v1279_v49, %v1283_v51 }
 0x167   : > { %1287 = vst [vmem:[%s271_s25] sm:$0xff] %v1285_v53  ;;  %v1289_v2 = vrot.slane %v1285_v53, 4  ;;  %v1324_v16 = vmul.f32 %v1285_v53, %v1285_v53  ;;  %v1286_v54 = vsel %vm1282_vm2, %v1280_v50, %v1284_v52 }
 0x168   : > { %1288 = vst [vmem:[%s271_s25 + $0x8] sm:$0xff] %v1286_v54  ;;  %v1295_v55 = vrot.slane %v1286_v54, 4  ;;  %v1325_v56 = vmul.f32 %v1286_v54, %v1286_v54 }
 0x169   : > { %v1290_v57 = vadd.f32 %v1289_v2, %v1285_v53  ;;  %v1326_v58 = vrot.slane %v1324_v16, 4 }
 0x16a   : > { %v1296_v61 = vadd.f32 %v1295_v55, %v1286_v54  ;;  %v1332_v62 = vrot.slane %v1325_v56, 4 }
 0x16b   : > { %v1291_v63 = vrot.slane %v1290_v57, 2  ;;  %v1327_v0 = vadd.f32 %v1326_v58, %v1324_v16 }
 0x16c   : > { %v1297_v1 = vrot.slane %v1296_v61, 2  ;;  %v1333_v3 = vadd.f32 %v1332_v62, %v1325_v56 }
 0x16d   : > { %v1292_v4 = vadd.f32 %v1291_v63, %v1290_v57  ;;  %v1328_v5 = vrot.slane %v1327_v0, 2 }
 0x16e   : > { %v1298_v7 = vadd.f32 %v1297_v1, %v1296_v61  ;;  %v1334_v8 = vrot.slane %v1333_v3, 2 }
 0x16f   : > { %v1293_v9 = vrot.slane %v1292_v4, 1  ;;  %v1329_v10 = vadd.f32 %v1328_v5, %v1327_v0 }
 0x170   : > { %v1299_v11 = vrot.slane %v1298_v7, 1  ;;  %v1335_v12 = vadd.f32 %v1334_v8, %v1333_v3 }
 0x171   : > { %v1294_v13 = vadd.f32 %v1293_v9, %v1292_v4  ;;  %v1330_v15 = vrot.slane %v1329_v10, 1 }
 0x172   : > { %v1300_v18 = vadd.f32 %v1299_v11, %v1298_v7  ;;  %v1336_v19 = vrot.slane %v1335_v12, 1 }
 0x173   : > { %v1331_v20 = vadd.f32 %v1330_v15, %v1329_v10 }
 0x174   : > { %v1303_v21 = vcombine.low %v1294_v13, %v1300_v18  ;;  %v1337_v22 = vadd.f32 %v1336_v19, %v1335_v12 }
 0x176   : > { %v1310_v23 = vrot.slane %v1303_v21, %v1309_v17  ;;  %v1340_v14 = vcombine.low %v1331_v20, %v1337_v22 }
 0x178   : > { %v1317_v24 = vrot.slane %v1310_v23, %v1309_v17  ;;  %v1347_v25 = vrot.slane %v1340_v14, %v1309_v17 }
 0x17a   : > { %1323 = vst.msk [vmem:[%s279_s28] sm:$0x3] %vm1321_vm3, %v1317_v24  ;;  %v1354_v26 = vrot.slane %v1347_v25, %v1309_v17 }
 0x17c   : > { %1356 = vst.msk [vmem:[%s287_s11] sm:$0x3] %vm1321_vm3, %v1354_v26 }
 0x17d PF: > { %s16_s22 = sadd.s32 1, %s1995_s22   ;;  %s2462_s18 = smov %s1987_s20 }
 0x17e   : > { %p13_p7 = scmp.ge.s32.totalorder %s16_s22, 6   ;;  %s2463_s19 = smov %s1991_s21 }
 0x17f   : > { %s2464_s20 = smov %s2467_s23  ;;  %s2465_s21 = smov %s2471_s24 }
 0x180   :  { %15 = sbr.rel (!%p13_p7) target bundleno = 3 (0x3), region = 89 }

// kernel: duck_conv2d_block.39
= control target key start
LH: loop header
LB: loop body
LE: loop exit
PB: predicated region body
PF: predicated region fallthrough
CT: control target
= control target key end

     0   :  { %s1115_s18 = smov 0   ;;  %s1117_s19 = smov 0   ;;  %s1303_s0 = inlined_call_operand.vmem [shape: bf16[2,16,288], index: 0, kind: input, shape index: {}]   ;;  %s1304_s1 = inlined_call_operand.vmem [shape: bf16[1,288,256], index: 1, kind: input, shape index: {}]   ;;  %s1305_s2 = inlined_call_operand.vmem [shape: f32[1,256], index: 2, kind: input, shape index: {}]   ;;  %s1306_s3 = inlined_call_operand.vmem [shape: f32[2,16,256], index: 3, kind: output, shape index: {0}]   ;;  %s1307_s4 = inlined_call_operand.vmem [shape: f32[2,2,1,256], index: 4, kind: output, shape index: {1}]   ;;  %s1308_s5 = inlined_call_operand.vmem [shape: f32[2,2,1,256], index: 5, kind: output, shape index: {2}]  }
   0x1   :  { %s1119_s20 = smov 0   ;;  %s1121_s21 = smov 0  }
   0x2   :  { %s1123_s22 = smov 0  }
   0x3 LB: > { %s25_s23 = sadd.s32 1, %s1073_s20  ;;  %s28_s24 = sadd.s32 1, %s1077_s21  ;;  %s1081_s22 = sphi %s1123_s22, %s16_s22   ;;  %s1077_s21 = sphi %s1121_s21, %s1312_s21   ;;  %s1073_s20 = sphi %s1119_s20, %s1311_s20   ;;  %s1069_s19 = sphi %s1117_s19, %s1310_s19   ;;  %s1065_s18 = sphi %s1115_s18, %s1309_s18  }
   0x4   : > { %p26_p0 = scmp.ge.s32.totalorder %s25_s23, 2  ;;  %p889_p1 = scmp.ge.s32.totalorder %s1081_s22, 1 }
   0x5   : > { %p210_p2 = scmp.lt.s32.totalorder %s1081_s22, 5 }
   0x6   : > { %s1314_s23 = smov (%p26_p0, %s25_s23), 0  ;;  %s1316_s24 = smov (!%p26_p0, %s28_s24), %s1077_s21 }
   0x7   : > { %p211_p3 = pnand %p889_p1, %p210_p2  ;;  %p30_p4 = scmp.ge.s32.totalorder %s1316_s24, 2 }
   0x8   : > { %v986_v0 = vld [vmem:[%s1304_s1 + $0x4] ss:$8 sps:$4 sm:$0xff] (!%p211_p3)   ;;  %v988_v1 = vld [vmem:[%s1304_s1] ss:$8 sps:$4 sm:$0xff] (!%p211_p3)   ;;  %v1083_v2 = vmov (!%p211_p3), 0   ;;  %p258_p5 = scmp.lt.s32.totalorder (!%p211_p3), %s1069_s19, 1  ;;  %v615_v45 = vlaneseq (!%p211_p3) }
   0x9   : > { %s1318_s24 = smov (%p30_p4, %s1316_s24), 0  ;;  %214 = sbr.rel (%p211_p3) target bundleno = 315 (0x13b), region = 32 }
   0xa   : > { %600 = vmatprep.mubr.bf16.mxu1 (!%p211_p3), %v1083_v2  ;;  %527 = vmatprep.subr.bf16.mxu0 (!%p211_p3), %v986_v0  ;;  %v989_v3 = vld [vmem:[%s1304_s1 + $0x14] ss:$8 sps:$4 sm:$0xff] (!%p211_p3)   ;;  %v991_v4 = vld [vmem:[%s1304_s1 + $0x10] ss:$8 sps:$4 sm:$0xff] (!%p211_p3)   ;;  %v992_v5 = vld [vmem:[%s1304_s1 + $0x24] ss:$8 sps:$4 sm:$0xff] (!%p211_p3)  }
   0xb   : > { %528 = vmatpush1.bf16.msra.mxu0 (!%p211_p3), %v988_v1  ;;  %v994_v6 = vld [vmem:[%s1304_s1 + $0x20] ss:$8 sps:$4 sm:$0xff] (!%p211_p3)   ;;  %v995_v7 = vld [vmem:[%s1304_s1 + $0x34] ss:$8 sps:$4 sm:$0xff] (!%p211_p3)   ;;  %v997_v8 = vld [vmem:[%s1304_s1 + $0x30] ss:$8 sps:$4 sm:$0xff] (!%p211_p3)  }
   0xc   : > { %529 = vmatprep.subr.bf16.mxu0 (!%p211_p3), %v989_v3  ;;  %s898_s16 = sshll.u32 (!%p211_p3), %s1065_s18, 3  ;;  %v998_v9 = vld [vmem:[%s1304_s1 + $0x44] ss:$8 sps:$4 sm:$0xff] (!%p211_p3)   ;;  %v1000_v10 = vld [vmem:[%s1304_s1 + $0x40] ss:$8 sps:$4 sm:$0xff] (!%p211_p3)   ;;  %vm523_vm0 = vcmask (!%p211_p3), 261120  }
   0xd   : > { %s290_s27 = sshra.s32 (!%p211_p3), %s898_s16, 3  ;;  %v1001_v11 = vld [vmem:[%s1304_s1 + $0x54] ss:$8 sps:$4 sm:$0xff] (!%p211_p3)   ;;  %v1003_v12 = vld [vmem:[%s1304_s1 + $0x50] ss:$8 sps:$4 sm:$0xff] (!%p211_p3)   ;;  %p265_p6 = scmp.lt.s32.totalorder (!%p211_p3), %s1065_s18, 1 }
   0xe   : > { %s942_s7 = smul.u32 (!%p211_p3), 12, %s290_s27  ;;  %v1028_v13 = vld [vmem:[%s1304_s1 + $0x104] ss:$8 sps:$4 sm:$0xff] (!%p211_p3)   ;;  %v1030_v14 = vld [vmem:[%s1304_s1 + $0x100] ss:$8 sps:$4 sm:$0xff] (!%p211_p3)   ;;  %v616_v46 = vshrl.u32 (!%p211_p3), %v615_v45, 7 }
   0xf   : > { %530 = vmatpush1.bf16.msra.mxu0 (!%p211_p3), %v991_v4  ;;  %v1004_v15 = vld [vmem:[%s1304_s1 + $0x64] ss:$8 sps:$4 sm:$0xff] (!%p211_p3)   ;;  %568 = vmatprep.subr.bf16.mxu1 (!%p211_p3), %v1028_v13  ;;  %v1034_v16 = vld [vmem:[%s1304_s1 + $0x114] ss:$8 sps:$4 sm:$0xff] (!%p211_p3)   ;;  %v1036_v17 = vld [vmem:[%s1304_s1 + $0x110] ss:$8 sps:$4 sm:$0xff] (!%p211_p3)  }
  0x10   : > { %531 = vmatprep.subr.bf16.mxu0 %v992_v5  ;;  %s1320_s19 = smov (!%p258_p5, %s1069_s19), 1  ;;  %569 = vmatpush1.bf16.msra.mxu1 %v1030_v14  ;;  %v1006_v18 = vld [vmem:[%s1304_s1 + $0x60] ss:$8 sps:$4 sm:$0xff]   ;;  %v1007_v19 = vld [vmem:[%s1304_s1 + $0x74] ss:$8 sps:$4 sm:$0xff]   ;;  %s1322_s18 = smov (!%p265_p6, %s1065_s18), 1 }
  0x11   : > { %s943_s26 = smul.u32 24, %s1320_s19  ;;  %570 = vmatprep.subr.bf16.mxu1 %v1034_v16  ;;  %v1009_v23 = vld [vmem:[%s1304_s1 + $0x70] ss:$8 sps:$4 sm:$0xff]   ;;  %v1010_v24 = vld [vmem:[%s1304_s1 + $0x84] ss:$8 sps:$4 sm:$0xff]   ;;  %v617_v47 = vsub.s32 0, %v616_v46 }
  0x12   : > { %v1012_v25 = vld [vmem:[%s1304_s1 + $0x80] ss:$8 sps:$4 sm:$0xff]   ;;  %v1013_v26 = vld [vmem:[%s1304_s1 + $0x94] ss:$8 sps:$4 sm:$0xff]   ;;  %v1015_v27 = vld [vmem:[%s1304_s1 + $0x90] ss:$8 sps:$4 sm:$0xff]  }
  0x13   : > { %532 = vmatpush1.bf16.msra.mxu0 %v994_v6  ;;  %s262_s12 = scalar_lea.vmem %s1303_s0, %s943_s26  ;;  %v1016_v28 = vld [vmem:[%s1304_s1 + $0xa4] ss:$8 sps:$4 sm:$0xff]   ;;  %v1018_v29 = vld [vmem:[%s1304_s1 + $0xa0] ss:$8 sps:$4 sm:$0xff]   ;;  %v1019_v30 = vld [vmem:[%s1304_s1 + $0xb4] ss:$8 sps:$4 sm:$0xff]  }
  0x14   : > { %533 = vmatprep.subr.bf16.mxu0 %v995_v7  ;;  %s294_s27 = scalar_lea.vmem %s262_s12, %s942_s7  ;;  %571 = vmatpush1.bf16.msra.mxu1 %v1036_v17  ;;  %v1021_v31 = vld [vmem:[%s1304_s1 + $0xb0] ss:$8 sps:$4 sm:$0xff]   ;;  %v1022_v32 = vld [vmem:[%s1304_s1 + $0xc4] ss:$8 sps:$4 sm:$0xff]   ;;  %v1024_v33 = vld [vmem:[%s1304_s1 + $0xc0] ss:$8 sps:$4 sm:$0xff]  }
  0x15   : > { %v295_v20 = vld [vmem:[%s294_s27] sm:$0xff]  ;;  %v1040_v21 = vld [vmem:[%s294_s27 + $0x8] ss:$0 sps:$4 sm:$0xff]   ;;  %v1025_v34 = vld [vmem:[%s1304_s1 + $0xd4] ss:$8 sps:$4 sm:$0xff]   ;;  %s892_s9 = sshll.u32 %s1320_s19, 2 }
  0x16   : > { %v901_v22 = vcombine.high %v295_v20, %v295_v20  ;;  %v1027_v35 = vld [vmem:[%s1304_s1 + $0xd0] ss:$8 sps:$4 sm:$0xff]   ;;  %v1031_v36 = vld [vmem:[%s1304_s1 + $0xe4] ss:$8 sps:$4 sm:$0xff]   ;;  %v1033_v37 = vld [vmem:[%s1304_s1 + $0xe0] ss:$8 sps:$4 sm:$0xff]   ;;  %v900_v40 = vcombine.low %v295_v20, %v295_v20 }
  0x17   : > { %534 = vmatpush1.bf16.msra.mxu0 %v997_v8  ;;  %939 = vmatmul.mubr.msk.bf16.vlgmr.msra.gmra.mrb[0].mxu1 %vm523_vm0, %v1040_v21  ;;  %v1037_v38 = vld [vmem:[%s1304_s1 + $0xf4] ss:$8 sps:$4 sm:$0xff]   ;;  %v1039_v39 = vld [vmem:[%s1304_s1 + $0xf0] ss:$8 sps:$4 sm:$0xff]   ;;  %s891_s10 = sshll.u32 %s1322_s18, 1  ;;  %v621_v49 = vsub.s32 1, %v616_v46 }
  0x18   : > { %535 = vmatprep.subr.bf16.mxu0 %v998_v9  ;;  %559 = vmatprep.mubr.bf16.mxu0 %v901_v22  ;;  %v613_v48 = vld [vmem:[%s1305_s2] sm:$0x3]  ;;  %s1273_s12 = sadd.s32 %s892_s9, %s891_s10  ;;  %v1084_v6 = vmov 1966171168   ;;  %vm667_vm3 = vcmp.lt.s32.totalorder %v615_v45, 256 }
  0x19   : > { %v618_v50 = vrot.slane %v613_v48, %v617_v47  ;;  %v622_v52 = vrot.slane %v613_v48, %v621_v49  ;;  %s893_s13 = sshll.u32 %s1273_s12, 3  ;;  %v651_v7 = vunpack.c.l.s4 %v1084_v6  ;;  %s279_s17 = scalar_lea.vmem %s1307_s4, %s1273_s12 }
  0x1a   : > { %s271_s14 = scalar_lea.vmem %s1306_s3, %s893_s13  ;;  %s287_s28 = scalar_lea.vmem %s1308_s5, %s1273_s12 }
  0x1b   : > { %536 = vmatpush1.bf16.msra.mxu0 %v1000_v10  ;;  %v652_v16 = vunpack.c.0.s8 %v651_v7 }
  0x1c   : > { %537 = vmatprep.subr.bf16.mxu0 %v1001_v11 }
  0x1f   : > { %538 = vmatpush1.bf16.msra.mxu0 %v1003_v12 }
  0x20   : > { %539 = vmatprep.subr.bf16.mxu0 %v1004_v15 }
  0x23   : > { %540 = vmatpush1.bf16.msra.mxu0 %v1006_v18 }
  0x24   : > { %541 = vmatprep.subr.bf16.mxu0 %v1007_v19 }
  0x27   : > { %542 = vmatpush1.bf16.msra.mxu0 %v1009_v23 }
  0x28   : > { %543 = vmatprep.subr.bf16.mxu0 %v1010_v24 }
  0x2b   : > { %544 = vmatpush1.bf16.msra.mxu0 %v1012_v25  ;;  %v655_v25 = vsub.s32 %v652_v16, %v616_v46 }
  0x2c   : > { %545 = vmatprep.subr.bf16.mxu0 %v1013_v26 }
  0x2f   : > { %546 = vmatpush1.bf16.msra.mxu0 %v1015_v27 }
  0x30   : > { %547 = vmatprep.subr.bf16.mxu0 %v1016_v28 }
  0x33   : > { %548 = vmatpush1.bf16.msra.mxu0 %v1018_v29 }
  0x34   : > { %549 = vmatprep.subr.bf16.mxu0 %v1019_v30 }
  0x37   : > { %550 = vmatpush1.bf16.msra.mxu0 %v1021_v31 }
  0x38   : > { %551 = vmatprep.subr.bf16.mxu0 %v1022_v32 }
  0x3b   : > { %552 = vmatpush1.bf16.msra.mxu0 %v1024_v33 }
  0x3c   : > { %553 = vmatprep.subr.bf16.mxu0 %v1025_v34 }
  0x3f   : > { %554 = vmatpush1.bf16.msra.mxu0 %v1027_v35 }
  0x40   : > { %555 = vmatprep.subr.bf16.mxu0 %v1031_v36 }
  0x43   : > { %556 = vmatpush1.bf16.msra.mxu0 %v1033_v37 }
  0x44   : > { %557 = vmatprep.subr.bf16.mxu0 %v1037_v38 }
  0x47   : > { %558 = vmatpush1.bf16.msra.mxu0 %v1039_v39 }
  0x4a   : > { %560 = vmatmul.mubr.bf16.vlgmr.msra.gmra.mrb[0].mxu0 %v900_v40 }
  0xea   : > { %v602_v41 = vpop.f32.mrb[0].mxu1 }
  0xeb   : > { %v604_v42 = vpop.f32.mrb[1].mxu1 }
  0xec   : > { %v606_v43 = vpop.f32.mrb[2].mxu1 }
  0xed   : > { %v607_v44 = vpop.f32.mrb[3].mxu1 }
 0x11d   : > { %v561_v51 = vpop.f32.mrb[0].mxu0 }
 0x11e   : > { %v603_v53 = vadd.f32 %v602_v41, %v561_v51  ;;  %v563_v54 = vpop.f32.mrb[1].mxu0 }
 0x11f   : > { %v605_v55 = vadd.f32 %v604_v42, %v563_v54  ;;  %v565_v56 = vpop.f32.mrb[2].mxu0 }
 0x120   : > { %v625_v57 = vadd.f32 %v618_v50, %v603_v53  ;;  %v566_v58 = vpop.f32.mrb[3].mxu0 }
 0x121   : > { %v626_v59 = vadd.f32 %v622_v52, %v605_v55 }
 0x122   : > { %vm627_vm1 = vcmp.gt.f32.partialorder %v625_v57, 0.0  ;;  %v629_v60 = vmul.f32 0.01, %v625_v57 }
 0x123   : > { %vm628_vm2 = vcmp.gt.f32.partialorder %v626_v59, 0.0  ;;  %v630_v61 = vmul.f32 0.01, %v626_v59 }
 0x124   : > { %v631_v62 = vsel %vm627_vm1, %v625_v57, %v629_v60 }
 0x125   : > { %633 = vst [vmem:[%s271_s14] sm:$0xff] %v631_v62  ;;  %v635_v63 = vrot.slane %v631_v62, 4  ;;  %v670_v0 = vmul.f32 %v631_v62, %v631_v62  ;;  %v632_v1 = vsel %vm628_vm2, %v626_v59, %v630_v61 }
 0x126   : > { %634 = vst [vmem:[%s271_s14 + $0x8] sm:$0xff] %v632_v1  ;;  %v641_v2 = vrot.slane %v632_v1, 4  ;;  %v671_v3 = vmul.f32 %v632_v1, %v632_v1 }
 0x127   : > { %v636_v4 = vadd.f32 %v635_v63, %v631_v62  ;;  %v672_v5 = vrot.slane %v670_v0, 4 }
 0x128   : > { %v642_v8 = vadd.f32 %v641_v2, %v632_v1  ;;  %v678_v9 = vrot.slane %v671_v3, 4 }
 0x129   : > { %v637_v10 = vrot.slane %v636_v4, 2  ;;  %v673_v11 = vadd.f32 %v672_v5, %v670_v0 }
 0x12a   : > { %v643_v12 = vrot.slane %v642_v8, 2  ;;  %v679_v13 = vadd.f32 %v678_v9, %v671_v3 }
 0x12b   : > { %v638_v14 = vadd.f32 %v637_v10, %v636_v4  ;;  %v674_v15 = vrot.slane %v673_v11, 2 }
 0x12c   : > { %v644_v17 = vadd.f32 %v643_v12, %v642_v8  ;;  %v680_v18 = vrot.slane %v679_v13, 2 }
 0x12d   : > { %v639_v19 = vrot.slane %v638_v14, 1  ;;  %v675_v20 = vadd.f32 %v674_v15, %v673_v11 }
 0x12e   : > { %v645_v21 = vrot.slane %v644_v17, 1  ;;  %v681_v22 = vadd.f32 %v680_v18, %v679_v13 }
 0x12f   : > { %v640_v23 = vadd.f32 %v639_v19, %v638_v14  ;;  %v676_v24 = vrot.slane %v675_v20, 1 }
 0x130   : > { %v646_v26 = vadd.f32 %v645_v21, %v644_v17  ;;  %v682_v27 = vrot.slane %v681_v22, 1 }
 0x131   : > { %v677_v28 = vadd.f32 %v676_v24, %v675_v20 }
 0x132   : > { %v649_v29 = vcombine.low %v640_v23, %v646_v26  ;;  %v683_v30 = vadd.f32 %v682_v27, %v681_v22 }
 0x134   : > { %v656_v31 = vrot.slane %v649_v29, %v655_v25  ;;  %v686_v32 = vcombine.low %v677_v28, %v683_v30 }
 0x136   : > { %v663_v33 = vrot.slane %v656_v31, %v655_v25  ;;  %v693_v34 = vrot.slane %v686_v32, %v655_v25 }
 0x138   : > { %669 = vst.msk [vmem:[%s279_s17] sm:$0x3] %vm667_vm3, %v663_v33  ;;  %v700_v35 = vrot.slane %v693_v34, %v655_v25 }
 0x13a   : > { %702 = vst.msk [vmem:[%s287_s28] sm:$0x3] %vm667_vm3, %v700_v35 }
 0x13b PF: > { %s16_s22 = sadd.s32 1, %s1081_s22   ;;  %s1309_s18 = smov %s1073_s20 }
 0x13c   : > { %p13_p7 = scmp.ge.s32.totalorder %s16_s22, 6   ;;  %s1310_s19 = smov %s1077_s21 }
 0x13d   : > { %s1311_s20 = smov %s1314_s23  ;;  %s1312_s21 = smov %s1318_s24 }
 0x13e   :  { %15 = sbr.rel (!%p13_p7) target bundleno = 3 (0x3), region = 87 }

// kernel: duck_conv2d_block.34
= control target key start
LH: loop header
LB: loop body
LE: loop exit
PB: predicated region body
PF: predicated region fallthrough
CT: control target
= control target key end

     0   :  { %s3352_s18 = smov 0   ;;  %s3354_s19 = smov 0   ;;  %s4152_s0 = inlined_call_operand.vmem [shape: bf16[2,18,288], index: 0, kind: input, shape index: {}]   ;;  %s4153_s1 = inlined_call_operand.vmem [shape: bf16[3,288,512], index: 1, kind: input, shape index: {}]   ;;  %s4154_s2 = inlined_call_operand.vmem [shape: f32[1,512], index: 2, kind: input, shape index: {}]   ;;  %s4155_s3 = inlined_call_operand.vmem [shape: f32[2,16,512], index: 3, kind: output, shape index: {0}]   ;;  %s4156_s4 = inlined_call_operand.vmem [shape: f32[2,2,1,512], index: 4, kind: output, shape index: {1}]   ;;  %s4157_s5 = inlined_call_operand.vmem [shape: f32[2,2,1,512], index: 5, kind: output, shape index: {2}]  }
   0x1   :  { %s3356_s20 = smov 0   ;;  %s3358_s21 = smov 0  }
   0x2   :  { %s3360_s22 = smov 0  }
   0x3 LB: > { %s25_s23 = sadd.s32 1, %s3310_s20  ;;  %s28_s24 = sadd.s32 1, %s3314_s21  ;;  %s3318_s22 = sphi %s3360_s22, %s16_s22   ;;  %s3314_s21 = sphi %s3358_s21, %s4161_s21   ;;  %s3310_s20 = sphi %s3356_s20, %s4160_s20   ;;  %s3306_s19 = sphi %s3354_s19, %s4159_s19   ;;  %s3302_s18 = sphi %s3352_s18, %s4158_s18  }
   0x4   : > { %p26_p0 = scmp.ge.s32.totalorder %s25_s23, 2  ;;  %p2521_p1 = scmp.ge.s32.totalorder %s3318_s22, 1 }
   0x5   : > { %p210_p2 = scmp.lt.s32.totalorder %s3318_s22, 5 }
   0x6   : > { %s4163_s23 = smov (%p26_p0, %s25_s23), 0  ;;  %s4165_s24 = smov (!%p26_p0, %s28_s24), %s3314_s21 }
   0x7   : > { %p211_p3 = pnand %p2521_p1, %p210_p2  ;;  %p30_p4 = scmp.ge.s32.totalorder %s4165_s24, 2 }
   0x8   : > { %v2950_v0 = vld [vmem:[%s4153_s1 + $0x4] ss:$16 sps:$4 sm:$0xff] (!%p211_p3)   ;;  %p258_p5 = scmp.lt.s32.totalorder (!%p211_p3), %s3306_s19, 1  ;;  %v3320_v2 = vmov (!%p211_p3), 0   ;;  %v2954_v3 = vld [vmem:[%s4153_s1] ss:$16 sps:$4 sm:$0xff] (!%p211_p3)  }
   0x9   : > { %s4167_s24 = smov (%p30_p4, %s4165_s24), 0  ;;  %214 = sbr.rel (%p211_p3) target bundleno = 477 (0x1dd), region = 32 }
   0xa   : > { %v2952_v1 = vld [vmem:[%s4153_s1 + $0x204] ss:$16 sps:$4 sm:$0xff] (!%p211_p3)   ;;  %818 = vmatprep.mubr.bf16.mxu1 (!%p211_p3), %v3320_v2  ;;  %745 = vmatprep.subr.bf16.mxu0 (!%p211_p3), %v2950_v0  ;;  %v2955_v4 = vld [vmem:[%s4153_s1 + $0x200] ss:$16 sps:$4 sm:$0xff] (!%p211_p3)   ;;  %s2530_s17 = sshll.u32 (!%p211_p3), %s3302_s18, 3  ;;  %vm741_vm0 = vcmask (!%p211_p3), 261120  }
   0xb   : > { %786 = vmatprep.subr.bf16.mxu1 (!%p211_p3), %v2952_v1  ;;  %v2956_v5 = vld [vmem:[%s4153_s1 + $0x24] ss:$16 sps:$4 sm:$0xff] (!%p211_p3)   ;;  %746 = vmatpush1.bf16.msra.mxu0 (!%p211_p3), %v2954_v3  ;;  %v2960_v7 = vld [vmem:[%s4153_s1 + $0x20] ss:$16 sps:$4 sm:$0xff] (!%p211_p3)   ;;  %v2968_v10 = vld [vmem:[%s4153_s1 + $0xc] ss:$16 sps:$4 sm:$0xff] (!%p211_p3)  }
   0xc   : > { %787 = vmatpush1.bf16.msra.mxu1 (!%p211_p3), %v2955_v4  ;;  %v2958_v6 = vld [vmem:[%s4153_s1 + $0x224] ss:$16 sps:$4 sm:$0xff] (!%p211_p3)   ;;  %747 = vmatprep.subr.bf16.mxu0 (!%p211_p3), %v2956_v5  ;;  %v2961_v8 = vld [vmem:[%s4153_s1 + $0x220] ss:$16 sps:$4 sm:$0xff] (!%p211_p3)   ;;  %s290_s7 = sshra.s32 (!%p211_p3), %s2530_s17, 3  ;;  %p265_p6 = scmp.lt.s32.totalorder (!%p211_p3), %s3302_s18, 1 }
   0xd   : > { %788 = vmatprep.subr.bf16.mxu1 (!%p211_p3), %v2958_v6  ;;  %v2962_v9 = vld [vmem:[%s4153_s1 + $0x44] ss:$16 sps:$4 sm:$0xff] (!%p211_p3)   ;;  %v2969_v11 = vld [vmem:[%s4153_s1 + $0x40] ss:$16 sps:$4 sm:$0xff] (!%p211_p3)   ;;  %s2906_s10 = smul.u32 (!%p211_p3), 12, %s290_s7 }
   0xe   : > { %v2970_v12 = vld [vmem:[%s4153_s1 + $0x64] ss:$16 sps:$4 sm:$0xff] (!%p211_p3)   ;;  %v2966_v13 = vld [vmem:[%s4153_s1 + $0x8] ss:$16 sps:$4 sm:$0xff] (!%p211_p3)   ;;  %v2975_v14 = vld [vmem:[%s4153_s1 + $0x60] ss:$16 sps:$4 sm:$0xff] (!%p211_p3)  }
   0xf   : > { %748 = vmatpush1.bf16.msra.mxu0 (!%p211_p3), %v2960_v7  ;;  %v2974_v19 = vld [vmem:[%s4153_s1 + $0x2c] ss:$16 sps:$4 sm:$0xff] (!%p211_p3)   ;;  %v2976_v20 = vld [vmem:[%s4153_s1 + $0x84] ss:$16 sps:$4 sm:$0xff] (!%p211_p3)   ;;  %v2972_v21 = vld [vmem:[%s4153_s1 + $0x28] ss:$16 sps:$4 sm:$0xff] (!%p211_p3)  }
  0x10   : > { %s4169_s19 = smov (!%p258_p5, %s3306_s19), 1  ;;  %789 = vmatpush1.bf16.msra.mxu1 %v2961_v8  ;;  %749 = vmatprep.subr.bf16.mxu0 %v2962_v9  ;;  %v2980_v22 = vld [vmem:[%s4153_s1 + $0x4c] ss:$16 sps:$4 sm:$0xff]   ;;  %v2981_v23 = vld [vmem:[%s4153_s1 + $0x80] ss:$16 sps:$4 sm:$0xff]   ;;  %s4171_s18 = smov (!%p265_p6, %s3302_s18), 1 }
  0x11   : > { %s2907_s14 = smul.u32 36, %s4169_s19  ;;  %827 = vmatprep.subr.bf16.mxu1 %v2968_v10  ;;  %v2982_v24 = vld [vmem:[%s4153_s1 + $0xa4] ss:$16 sps:$4 sm:$0xff]   ;;  %v2978_v25 = vld [vmem:[%s4153_s1 + $0x48] ss:$16 sps:$4 sm:$0xff]   ;;  %s2523_s13 = sshll.u32 %s4171_s18, 2 }
  0x12   : > { %v2987_v26 = vld [vmem:[%s4153_s1 + $0xa0] ss:$16 sps:$4 sm:$0xff]   ;;  %v2986_v27 = vld [vmem:[%s4153_s1 + $0x6c] ss:$16 sps:$4 sm:$0xff]   ;;  %v2988_v28 = vld [vmem:[%s4153_s1 + $0xc4] ss:$16 sps:$4 sm:$0xff]  }
  0x13   : > { %s262_s6 = scalar_lea.vmem %s4152_s0, %s2907_s14  ;;  %750 = vmatpush1.bf16.msra.mxu0 %v2969_v11  ;;  %v2984_v29 = vld [vmem:[%s4153_s1 + $0x68] ss:$16 sps:$4 sm:$0xff]   ;;  %v2992_v30 = vld [vmem:[%s4153_s1 + $0x8c] ss:$16 sps:$4 sm:$0xff]   ;;  %v2993_v31 = vld [vmem:[%s4153_s1 + $0xc0] ss:$16 sps:$4 sm:$0xff]  }
  0x14   : > { %s3431_s16 = scalar_lea.vmem %s262_s6, %s2906_s10  ;;  %751 = vmatprep.subr.bf16.mxu0 %v2970_v12  ;;  %v2994_v32 = vld [vmem:[%s4153_s1 + $0xe4] ss:$16 sps:$4 sm:$0xff]   ;;  %v2990_v33 = vld [vmem:[%s4153_s1 + $0x88] ss:$16 sps:$4 sm:$0xff]   ;;  %v2999_v34 = vld [vmem:[%s4153_s1 + $0xe0] ss:$16 sps:$4 sm:$0xff]  }
  0x15   : > { %v296_v15 = vld [vmem:[%s3431_s16 + $0x8] sm:$0xf]  ;;  %v298_v16 = vld [vmem:[%s3431_s16 + $0x14] sm:$0x1]  ;;  %v2998_v35 = vld [vmem:[%s4153_s1 + $0xac] ss:$16 sps:$4 sm:$0xff]  }
  0x16   : > { %v3438_v17 = vcombine.low %v296_v15, %v296_v15  ;;  %v3440_v18 = vcombine.low %v296_v15, %v298_v16  ;;  %v3000_v36 = vld [vmem:[%s4153_s1 + $0x104] ss:$16 sps:$4 sm:$0xff]   ;;  %v2996_v37 = vld [vmem:[%s4153_s1 + $0xa8] ss:$16 sps:$4 sm:$0xff]   ;;  %v3004_v38 = vld [vmem:[%s4153_s1 + $0xcc] ss:$16 sps:$4 sm:$0xff]  }
  0x17   : > { %752 = vmatpush1.bf16.msra.mxu0 %v2975_v14  ;;  %v3005_v39 = vld [vmem:[%s4153_s1 + $0x100] ss:$16 sps:$4 sm:$0xff]   ;;  %v3006_v40 = vld [vmem:[%s4153_s1 + $0x124] ss:$16 sps:$4 sm:$0xff]   ;;  %v3002_v41 = vld [vmem:[%s4153_s1 + $0xc8] ss:$16 sps:$4 sm:$0xff]  }
  0x18   : > { %2607 = vmatmul.mubr.msk.bf16.vlgmr.msra.gmra.mrb[0].mxu1 %vm741_vm0, %v3438_v17  ;;  %753 = vmatprep.subr.bf16.mxu0 %v2976_v20  ;;  %v3011_v42 = vld [vmem:[%s4153_s1 + $0x120] ss:$16 sps:$4 sm:$0xff]   ;;  %v3010_v43 = vld [vmem:[%s4153_s1 + $0xec] ss:$16 sps:$4 sm:$0xff]   ;;  %v3012_v44 = vld [vmem:[%s4153_s1 + $0x144] ss:$16 sps:$4 sm:$0xff]  }
  0x19   : > { %828 = vmatpush1.bf16.msra.mxu1 %v2966_v13  ;;  %v3008_v45 = vld [vmem:[%s4153_s1 + $0xe8] ss:$16 sps:$4 sm:$0xff]   ;;  %v3016_v46 = vld [vmem:[%s4153_s1 + $0x10c] ss:$16 sps:$4 sm:$0xff]   ;;  %v3017_v47 = vld [vmem:[%s4153_s1 + $0x140] ss:$16 sps:$4 sm:$0xff]  }
  0x1a   : > { %829 = vmatprep.subr.bf16.mxu1 %v2974_v19  ;;  %v3018_v48 = vld [vmem:[%s4153_s1 + $0x164] ss:$16 sps:$4 sm:$0xff]   ;;  %v3014_v49 = vld [vmem:[%s4153_s1 + $0x108] ss:$16 sps:$4 sm:$0xff]   ;;  %v3022_v50 = vld [vmem:[%s4153_s1 + $0x12c] ss:$16 sps:$4 sm:$0xff]  }
  0x1b   : > { %754 = vmatpush1.bf16.msra.mxu0 %v2981_v23  ;;  %v3541_v51 = vld [vmem:[%s3431_s16] sm:$0xff]  ;;  %v3020_v55 = vld [vmem:[%s4153_s1 + $0x128] ss:$16 sps:$4 sm:$0xff]   ;;  %v3028_v56 = vld [vmem:[%s4153_s1 + $0x14c] ss:$16 sps:$4 sm:$0xff]   ;;  %s2524_s15 = sshll.u32 %s4169_s19, 3 }
  0x1c   : > { %755 = vmatprep.subr.bf16.mxu0 %v2982_v24  ;;  %v3023_v52 = vld [vmem:[%s4153_s1 + $0x160] ss:$16 sps:$4 sm:$0xff]   ;;  %v2533_v53 = vcombine.high %v3541_v51, %v3541_v51  ;;  %v3024_v54 = vld [vmem:[%s4153_s1 + $0x184] ss:$16 sps:$4 sm:$0xff]   ;;  %v3026_v59 = vld [vmem:[%s4153_s1 + $0x148] ss:$16 sps:$4 sm:$0xff]   ;;  %v2532_v11 = vcombine.low %v3541_v51, %v3541_v51 }
  0x1d   : > { %830 = vmatpush1.bf16.msra.mxu1 %v2972_v21  ;;  %v3029_v57 = vld [vmem:[%s4153_s1 + $0x180] ss:$16 sps:$4 sm:$0xff]   ;;  %v3030_v58 = vld [vmem:[%s4153_s1 + $0x1a4] ss:$16 sps:$4 sm:$0xff]   ;;  %v3034_v60 = vld [vmem:[%s4153_s1 + $0x16c] ss:$16 sps:$4 sm:$0xff]  }
  0x1e   : > { %831 = vmatprep.subr.bf16.mxu1 %v2980_v22  ;;  %777 = vmatprep.mubr.bf16.mxu0 %v2533_v53  ;;  %v3035_v61 = vld [vmem:[%s4153_s1 + $0x1a0] ss:$16 sps:$4 sm:$0xff]   ;;  %v3036_v62 = vld [vmem:[%s4153_s1 + $0x1c4] ss:$16 sps:$4 sm:$0xff]   ;;  %v3032_v63 = vld [vmem:[%s4153_s1 + $0x168] ss:$16 sps:$4 sm:$0xff]  }
  0x1f   : > { %756 = vmatpush1.bf16.msra.mxu0 %v2987_v26  ;;  %859 = vmatprep.mubr.bf16.mxu1 %v2533_v53  ;;  %v3040_v0 = vld [vmem:[%s4153_s1 + $0x18c] ss:$16 sps:$4 sm:$0xff]   ;;  %v3041_v1 = vld [vmem:[%s4153_s1 + $0x1c0] ss:$16 sps:$4 sm:$0xff]   ;;  %v3042_v3 = vld [vmem:[%s4153_s1 + $0x1e4] ss:$16 sps:$4 sm:$0xff]  }
  0x20   : > { %757 = vmatprep.subr.bf16.mxu0 %v2988_v28  ;;  %v3038_v4 = vld [vmem:[%s4153_s1 + $0x188] ss:$16 sps:$4 sm:$0xff]   ;;  %v3046_v5 = vld [vmem:[%s4153_s1 + $0x1ac] ss:$16 sps:$4 sm:$0xff]   ;;  %v3047_v7 = vld [vmem:[%s4153_s1 + $0x1e0] ss:$16 sps:$4 sm:$0xff]  }
  0x21   : > { %832 = vmatpush1.bf16.msra.mxu1 %v2978_v25  ;;  %v3594_v6 = vld [vmem:[%s3431_s16 + $0xc] sm:$0x11]  ;;  %v3044_v10 = vld [vmem:[%s4153_s1 + $0x1a8] ss:$16 sps:$4 sm:$0xff]   ;;  %v3066_v21 = vld [vmem:[%s4153_s1 + $0x244] ss:$16 sps:$4 sm:$0xff]   ;;  %s4111_s16 = sadd.s32 %s2524_s15, %s2523_s13 }
  0x22   : > { %833 = vmatprep.subr.bf16.mxu1 %v2986_v27  ;;  %v3057_v8 = vld [vmem:[%s4153_s1 + $0x20c] ss:$16 sps:$4 sm:$0xff]   ;;  %v3604_v9 = vcombine.high %v3541_v51, %v3594_v6  ;;  %v3055_v13 = vld [vmem:[%s4153_s1 + $0x208] ss:$16 sps:$4 sm:$0xff]   ;;  %v3064_v25 = vld [vmem:[%s4153_s1 + $0x240] ss:$16 sps:$4 sm:$0xff]   ;;  %s279_s29 = scalar_lea.vmem %s4156_s4, %s4111_s16  ;;  %s287_s7 = scalar_lea.vmem %s4157_s5, %s4111_s16 }
  0x23   : > { %758 = vmatpush1.bf16.msra.mxu0 %v2993_v31  ;;  %v3054_v12 = vld [vmem:[%s4153_s1 + $0x1cc] ss:$16 sps:$4 sm:$0xff]   ;;  %v3052_v16 = vld [vmem:[%s4153_s1 + $0x1c8] ss:$16 sps:$4 sm:$0xff]   ;;  %v3069_v26 = vld [vmem:[%s4153_s1 + $0x444] ss:$16 sps:$4 sm:$0xff]  }
  0x24   : > { %759 = vmatprep.subr.bf16.mxu0 %v2994_v32  ;;  %v3063_v14 = vld [vmem:[%s4153_s1 + $0x22c] ss:$16 sps:$4 sm:$0xff]   ;;  %v1004_v15 = vshll.u32 %v3604_v9, 16  ;;  %v3061_v20 = vld [vmem:[%s4153_s1 + $0x228] ss:$16 sps:$4 sm:$0xff]   ;;  %v1002_v22 = vshrl.u32 %v3604_v9, 16 }
  0x25   : > { %834 = vmatpush1.bf16.msra.mxu1 %v2984_v29  ;;  %v3060_v19 = vld [vmem:[%s4153_s1 + $0x1ec] ss:$16 sps:$4 sm:$0xff]   ;;  %v3058_v24 = vld [vmem:[%s4153_s1 + $0x1e8] ss:$16 sps:$4 sm:$0xff]   ;;  %v3072_v27 = vld [vmem:[%s4153_s1 + $0x264] ss:$16 sps:$4 sm:$0xff]  }
  0x26   : > { %835 = vmatprep.subr.bf16.mxu1 %v2992_v30  ;;  %v1006_v23 = vrot.slane %v1004_v15, 1  ;;  %v1011_v29 = vshll.u32 %v3440_v18, 16  ;;  %v3067_v30 = vld [vmem:[%s4153_s1 + $0x440] ss:$16 sps:$4 sm:$0xff]   ;;  %v3075_v32 = vld [vmem:[%s4153_s1 + $0x464] ss:$16 sps:$4 sm:$0xff]  }
  0x27   : > { %760 = vmatpush1.bf16.msra.mxu0 %v2999_v34  ;;  %v3070_v31 = vld [vmem:[%s4153_s1 + $0x260] ss:$16 sps:$4 sm:$0xff]   ;;  %v3097_v53 = vld [vmem:[%s4153_s1 + $0x2a8] ss:$16 sps:$4 sm:$0xff]   ;;  %v3138_v15 = vld [vmem:[%s4153_s1 + $0x3c4] ss:$16 sps:$4 sm:$0xff]  }
  0x28   : > { %761 = vmatprep.subr.bf16.mxu0 %v3000_v36  ;;  %v1007_v28 = vor.u32 %v1006_v23, %v1002_v22  ;;  %v3073_v34 = vld [vmem:[%s4153_s1 + $0x460] ss:$16 sps:$4 sm:$0xff]   ;;  %v1013_v36 = vrot.slane %v1011_v29, 1  ;;  %v3802_v22 = vcombine.low %v3541_v51, %v3594_v6  ;;  %v3139_v23 = vld [vmem:[%s4153_s1 + $0x388] ss:$16 sps:$4 sm:$0xff]   ;;  %s2525_s18 = sshll.u32 %s4111_s16, 3 }
  0x29   : > { %836 = vmatpush1.bf16.msra.mxu1 %v2990_v33  ;;  %v1009_v33 = vshrl.u32 %v3440_v18, 16  ;;  %v3150_v51 = vld [vmem:[%s4153_s1 + $0x404] ss:$16 sps:$4 sm:$0xff]   ;;  %v3145_v6 = vld [vmem:[%s4153_s1 + $0x3a8] ss:$16 sps:$4 sm:$0xff]   ;;  %s4117_s26 = scalar_lea.vmem %s4155_s3, %s2525_s18 }
  0x2a   : > { %837 = vmatprep.subr.bf16.mxu1 %v2998_v35  ;;  %v3076_v35 = vld [vmem:[%s4153_s1 + $0x280] ss:$16 sps:$4 sm:$0xff]   ;;  %v3156_v29 = vld [vmem:[%s4153_s1 + $0x424] ss:$16 sps:$4 sm:$0xff]  }
  0x2b   : > { %762 = vmatpush1.bf16.msra.mxu0 %v3005_v39  ;;  %v3676_v39 = vor.u32 %v1013_v36, %v1009_v33  ;;  %v3159_v33 = vld [vmem:[%s4153_s1 + $0x3ec] ss:$16 sps:$4 sm:$0xff]  }
  0x2c   : > { %763 = vmatprep.subr.bf16.mxu0 %v3006_v40  ;;  %v3079_v40 = vld [vmem:[%s4153_s1 + $0x248] ss:$16 sps:$4 sm:$0xff]  }
  0x2d   : > { %838 = vmatpush1.bf16.msra.mxu1 %v2996_v37  ;;  %v3081_v37 = vld [vmem:[%s4153_s1 + $0x24c] ss:$16 sps:$4 sm:$0xff]  }
  0x2e   : > { %839 = vmatprep.subr.bf16.mxu1 %v3004_v38  ;;  %v3084_v38 = vld [vmem:[%s4153_s1 + $0x2a4] ss:$16 sps:$4 sm:$0xff]  }
  0x2f   : > { %764 = vmatpush1.bf16.msra.mxu0 %v3011_v42  ;;  %v3087_v42 = vld [vmem:[%s4153_s1 + $0x26c] ss:$16 sps:$4 sm:$0xff]  }
  0x30   : > { %765 = vmatprep.subr.bf16.mxu0 %v3012_v44  ;;  %v3085_v44 = vld [vmem:[%s4153_s1 + $0x268] ss:$16 sps:$4 sm:$0xff]  }
  0x31   : > { %840 = vmatpush1.bf16.msra.mxu1 %v3002_v41  ;;  %v3082_v41 = vld [vmem:[%s4153_s1 + $0x2a0] ss:$16 sps:$4 sm:$0xff]  }
  0x32   : > { %841 = vmatprep.subr.bf16.mxu1 %v3010_v43  ;;  %v3090_v43 = vld [vmem:[%s4153_s1 + $0x2c4] ss:$16 sps:$4 sm:$0xff]  }
  0x33   : > { %766 = vmatpush1.bf16.msra.mxu0 %v3017_v47  ;;  %v3096_v47 = vld [vmem:[%s4153_s1 + $0x2e4] ss:$16 sps:$4 sm:$0xff]  }
  0x34   : > { %767 = vmatprep.subr.bf16.mxu0 %v3018_v48  ;;  %v3091_v48 = vld [vmem:[%s4153_s1 + $0x288] ss:$16 sps:$4 sm:$0xff]  }
  0x35   : > { %842 = vmatpush1.bf16.msra.mxu1 %v3008_v45  ;;  %v3088_v45 = vld [vmem:[%s4153_s1 + $0x2c0] ss:$16 sps:$4 sm:$0xff]  }
  0x36   : > { %843 = vmatprep.subr.bf16.mxu1 %v3016_v46  ;;  %v3093_v46 = vld [vmem:[%s4153_s1 + $0x28c] ss:$16 sps:$4 sm:$0xff]  }
  0x37   : > { %768 = vmatpush1.bf16.msra.mxu0 %v3023_v52  ;;  %v3102_v52 = vld [vmem:[%s4153_s1 + $0x304] ss:$16 sps:$4 sm:$0xff]  }
  0x38   : > { %769 = vmatprep.subr.bf16.mxu0 %v3024_v54  ;;  %v3100_v54 = vld [vmem:[%s4153_s1 + $0x300] ss:$16 sps:$4 sm:$0xff]  }
  0x39   : > { %844 = vmatpush1.bf16.msra.mxu1 %v3014_v49  ;;  %v3094_v49 = vld [vmem:[%s4153_s1 + $0x2e0] ss:$16 sps:$4 sm:$0xff]  }
  0x3a   : > { %845 = vmatprep.subr.bf16.mxu1 %v3022_v50  ;;  %v3099_v50 = vld [vmem:[%s4153_s1 + $0x2ac] ss:$16 sps:$4 sm:$0xff]  }
  0x3b   : > { %770 = vmatpush1.bf16.msra.mxu0 %v3029_v57  ;;  %v3103_v57 = vld [vmem:[%s4153_s1 + $0x2c8] ss:$16 sps:$4 sm:$0xff]  }
  0x3c   : > { %771 = vmatprep.subr.bf16.mxu0 %v3030_v58  ;;  %v3106_v58 = vld [vmem:[%s4153_s1 + $0x320] ss:$16 sps:$4 sm:$0xff]  }
  0x3d   : > { %846 = vmatpush1.bf16.msra.mxu1 %v3020_v55  ;;  %v3105_v55 = vld [vmem:[%s4153_s1 + $0x2cc] ss:$16 sps:$4 sm:$0xff]  }
  0x3e   : > { %847 = vmatprep.subr.bf16.mxu1 %v3028_v56  ;;  %v3108_v56 = vld [vmem:[%s4153_s1 + $0x324] ss:$16 sps:$4 sm:$0xff]  }
  0x3f   : > { %772 = vmatpush1.bf16.msra.mxu0 %v3035_v61  ;;  %v3109_v61 = vld [vmem:[%s4153_s1 + $0x2e8] ss:$16 sps:$4 sm:$0xff]  }
  0x40   : > { %773 = vmatprep.subr.bf16.mxu0 %v3036_v62  ;;  %v3112_v62 = vld [vmem:[%s4153_s1 + $0x340] ss:$16 sps:$4 sm:$0xff]  }
  0x41   : > { %848 = vmatpush1.bf16.msra.mxu1 %v3026_v59  ;;  %v3111_v59 = vld [vmem:[%s4153_s1 + $0x2ec] ss:$16 sps:$4 sm:$0xff]  }
  0x42   : > { %849 = vmatprep.subr.bf16.mxu1 %v3034_v60  ;;  %v3114_v60 = vld [vmem:[%s4153_s1 + $0x344] ss:$16 sps:$4 sm:$0xff]  }
  0x43   : > { %774 = vmatpush1.bf16.msra.mxu0 %v3041_v1  ;;  %v3115_v1 = vld [vmem:[%s4153_s1 + $0x308] ss:$16 sps:$4 sm:$0xff]  }
  0x44   : > { %775 = vmatprep.subr.bf16.mxu0 %v3042_v3  ;;  %v3118_v3 = vld [vmem:[%s4153_s1 + $0x360] ss:$16 sps:$4 sm:$0xff]  }
  0x45   : > { %850 = vmatpush1.bf16.msra.mxu1 %v3032_v63  ;;  %v3117_v63 = vld [vmem:[%s4153_s1 + $0x30c] ss:$16 sps:$4 sm:$0xff]  }
  0x46   : > { %851 = vmatprep.subr.bf16.mxu1 %v3040_v0  ;;  %v3120_v0 = vld [vmem:[%s4153_s1 + $0x364] ss:$16 sps:$4 sm:$0xff]  }
  0x47   : > { %776 = vmatpush1.bf16.msra.mxu0 %v3047_v7  ;;  %v3121_v7 = vld [vmem:[%s4153_s1 + $0x328] ss:$16 sps:$4 sm:$0xff]  }
  0x48   : > { %868 = vmatprep.subr.bf16.mxu0 %v3057_v8  ;;  %v3124_v8 = vld [vmem:[%s4153_s1 + $0x380] ss:$16 sps:$4 sm:$0xff]  }
  0x49   : > { %852 = vmatpush1.bf16.msra.mxu1 %v3038_v4  ;;  %v3123_v4 = vld [vmem:[%s4153_s1 + $0x32c] ss:$16 sps:$4 sm:$0xff]  }
  0x4a   : > { %853 = vmatprep.subr.bf16.mxu1 %v3046_v5  ;;  %778 = vmatmul.mubr.bf16.vlgmr.msra.gmra.mrb[0].mxu0 %v2532_v11  ;;  %v3126_v5 = vld [vmem:[%s4153_s1 + $0x384] ss:$16 sps:$4 sm:$0xff]  }
  0x4b   : > { %869 = vmatpush1.bf16.msra.mxu0 %v3055_v13  ;;  %900 = vmatprep.mubr.bf16.mxu0 %v3320_v2  ;;  %v3130_v13 = vld [vmem:[%s4153_s1 + $0x3a0] ss:$16 sps:$4 sm:$0xff]  }
  0x4c   : > { %870 = vmatprep.subr.bf16.mxu0 %v3063_v14  ;;  %v3135_v14 = vld [vmem:[%s4153_s1 + $0x36c] ss:$16 sps:$4 sm:$0xff]  }
  0x4d   : > { %854 = vmatpush1.bf16.msra.mxu1 %v3044_v10  ;;  %v3129_v10 = vld [vmem:[%s4153_s1 + $0x34c] ss:$16 sps:$4 sm:$0xff]  }
  0x4e   : > { %855 = vmatprep.subr.bf16.mxu1 %v3054_v12  ;;  %v3127_v12 = vld [vmem:[%s4153_s1 + $0x348] ss:$16 sps:$4 sm:$0xff]  }
  0x4f   : > { %871 = vmatpush1.bf16.msra.mxu0 %v3061_v20  ;;  %v3141_v20 = vld [vmem:[%s4153_s1 + $0x38c] ss:$16 sps:$4 sm:$0xff]  }
  0x50   : > { %1380 = vmatprep.subr.bf16.mxu0 %v3066_v21  ;;  %v3144_v21 = vld [vmem:[%s4153_s1 + $0x3e4] ss:$16 sps:$4 sm:$0xff]  }
  0x51   : > { %856 = vmatpush1.bf16.msra.mxu1 %v3052_v16  ;;  %v3133_v16 = vld [vmem:[%s4153_s1 + $0x368] ss:$16 sps:$4 sm:$0xff]  }
  0x52   : > { %857 = vmatprep.subr.bf16.mxu1 %v3060_v19  ;;  %2608 = vmatmul.mubr.msk.bf16.vlgmr.msra.gmra.mrb[4].mxu0 %vm741_vm0, %v3438_v17  ;;  %v3078_v17 = vld [vmem:[%s4153_s1 + $0x284] ss:$16 sps:$4 sm:$0xff]   ;;  %v3136_v19 = vld [vmem:[%s4153_s1 + $0x3c0] ss:$16 sps:$4 sm:$0xff]  }
  0x53   : > { %1381 = vmatpush1.bf16.msra.mxu0 %v3064_v25  ;;  %1412 = vmatprep.mubr.bf16.mxu0 %v1007_v28  ;;  %v3147_v25 = vld [vmem:[%s4153_s1 + $0x3ac] ss:$16 sps:$4 sm:$0xff]  }
  0x54   : > { %1382 = vmatprep.subr.bf16.mxu0 %v3072_v27  ;;  %v997_v27 = vshll.u32 %v3802_v22, 16 }
  0x55   : > { %858 = vmatpush1.bf16.msra.mxu1 %v3058_v24  ;;  %v3142_v24 = vld [vmem:[%s4153_s1 + $0x3e0] ss:$16 sps:$4 sm:$0xff]  }
  0x56   : > { %1421 = vmatprep.subr.bf16.mxu1 %v3069_v26  ;;  %v3148_v26 = vld [vmem:[%s4153_s1 + $0x400] ss:$16 sps:$4 sm:$0xff]  }
  0x57   : > { %1383 = vmatpush1.bf16.msra.mxu0 %v3070_v31  ;;  %v3151_v31 = vld [vmem:[%s4153_s1 + $0x3c8] ss:$16 sps:$4 sm:$0xff]  }
  0x58   : > { %860 = vmatmul.mubr.bf16.vlgmr.msra.gmra.mrb[4].mxu1 %v2532_v11  ;;  %1384 = vmatprep.subr.bf16.mxu0 %v3078_v17  ;;  %v3132_v11 = vld [vmem:[%s4153_s1 + $0x3a4] ss:$16 sps:$4 sm:$0xff]   ;;  %v999_v17 = vrot.slane %v997_v27, 1  ;;  %v3232_v27 = vld [vmem:[%s4153_s1 + $0x5c0] ss:$16 sps:$4 sm:$0xff]  }
  0x59   : > { %1422 = vmatpush1.bf16.msra.mxu1 %v3067_v30  ;;  %1453 = vmatprep.mubr.bf16.mxu1 %v3320_v2  ;;  %v995_v30 = vshrl.u32 %v3802_v22, 16 }
  0x5a   : > { %1423 = vmatprep.subr.bf16.mxu1 %v3075_v32  ;;  %v3154_v32 = vld [vmem:[%s4153_s1 + $0x420] ss:$16 sps:$4 sm:$0xff]  }
  0x5b   : > { %1385 = vmatpush1.bf16.msra.mxu0 %v3076_v35  ;;  %v3157_v35 = vld [vmem:[%s4153_s1 + $0x3e8] ss:$16 sps:$4 sm:$0xff]   ;;  %v1000_v36 = vor.u32 %v999_v17, %v995_v30  ;;  %v3246_v17 = vld [vmem:[%s4153_s1 + $0x604] ss:$16 sps:$4 sm:$0xff]  }
  0x5c   : > { %1386 = vmatprep.subr.bf16.mxu0 %v3084_v38  ;;  %v3163_v38 = vld [vmem:[%s4153_s1 + $0x448] ss:$16 sps:$4 sm:$0xff]  }
  0x5d   : > { %1424 = vmatpush1.bf16.msra.mxu1 %v3073_v34  ;;  %v3165_v34 = vld [vmem:[%s4153_s1 + $0x44c] ss:$16 sps:$4 sm:$0xff]   ;;  %v3235_v30 = vld [vmem:[%s4153_s1 + $0x588] ss:$16 sps:$4 sm:$0xff]  }
  0x5e   : > { %1462 = vmatprep.subr.bf16.mxu1 %v3081_v37  ;;  %v3162_v37 = vld [vmem:[%s4153_s1 + $0x40c] ss:$16 sps:$4 sm:$0xff]  }
  0x5f   : > { %1387 = vmatpush1.bf16.msra.mxu0 %v3082_v41  ;;  %v3160_v41 = vld [vmem:[%s4153_s1 + $0x408] ss:$16 sps:$4 sm:$0xff]  }
  0x60   : > { %2756 = vmatmul.mubr.msk.bf16.vlgmr.msra.gmra.mrb[8].mxu1 %vm741_vm0, %v3676_v39  ;;  %1388 = vmatprep.subr.bf16.mxu0 %v3090_v43  ;;  %v3169_v43 = vld [vmem:[%s4153_s1 + $0x468] ss:$16 sps:$4 sm:$0xff]  }
  0x61   : > { %1463 = vmatpush1.bf16.msra.mxu1 %v3079_v40  ;;  %1494 = vmatprep.mubr.bf16.mxu1 %v1007_v28  ;;  %v3153_v28 = vld [vmem:[%s4153_s1 + $0x3cc] ss:$16 sps:$4 sm:$0xff]  }
  0x62   : > { %1464 = vmatprep.subr.bf16.mxu1 %v3087_v42  ;;  %v3171_v40 = vld [vmem:[%s4153_s1 + $0x46c] ss:$16 sps:$4 sm:$0xff]  }
  0x63   : > { %1389 = vmatpush1.bf16.msra.mxu0 %v3088_v45  ;;  %v3168_v42 = vld [vmem:[%s4153_s1 + $0x42c] ss:$16 sps:$4 sm:$0xff]   ;;  %v3166_v45 = vld [vmem:[%s4153_s1 + $0x428] ss:$16 sps:$4 sm:$0xff]  }
  0x64   : > { %1390 = vmatprep.subr.bf16.mxu0 %v3096_v47  ;;  %v3177_v47 = vld [vmem:[%s4153_s1 + $0x684] ss:$16 sps:$4 sm:$0xff]  }
  0x65   : > { %1465 = vmatpush1.bf16.msra.mxu1 %v3085_v44  ;;  %v3174_v44 = vld [vmem:[%s4153_s1 + $0x484] ss:$16 sps:$4 sm:$0xff]  }
  0x66   : > { %1466 = vmatprep.subr.bf16.mxu1 %v3093_v46  ;;  %v3172_v46 = vld [vmem:[%s4153_s1 + $0x480] ss:$16 sps:$4 sm:$0xff]  }
  0x67   : > { %1391 = vmatpush1.bf16.msra.mxu0 %v3094_v49  ;;  %v1630_v49 = vrot.slane %v3604_v9, 1  ;;  %v3186_v9 = vld [vmem:[%s4153_s1 + $0x4c4] ss:$16 sps:$4 sm:$0xff]  }
  0x68   : > { %1392 = vmatprep.subr.bf16.mxu0 %v3102_v52  ;;  %v3178_v52 = vld [vmem:[%s4153_s1 + $0x4a0] ss:$16 sps:$4 sm:$0xff]  }
  0x69   : > { %1467 = vmatpush1.bf16.msra.mxu1 %v3091_v48  ;;  %v3180_v48 = vld [vmem:[%s4153_s1 + $0x4a4] ss:$16 sps:$4 sm:$0xff]  }
  0x6a   : > { %1468 = vmatprep.subr.bf16.mxu1 %v3099_v50  ;;  %v3175_v50 = vld [vmem:[%s4153_s1 + $0x680] ss:$16 sps:$4 sm:$0xff]  }
  0x6b   : > { %1393 = vmatpush1.bf16.msra.mxu0 %v3100_v54  ;;  %v3184_v54 = vld [vmem:[%s4153_s1 + $0x4c0] ss:$16 sps:$4 sm:$0xff]  }
  0x6c   : > { %1394 = vmatprep.subr.bf16.mxu0 %v3108_v56  ;;  %v3192_v56 = vld [vmem:[%s4153_s1 + $0x4e4] ss:$16 sps:$4 sm:$0xff]  }
  0x6d   : > { %1469 = vmatpush1.bf16.msra.mxu1 %v3097_v53  ;;  %v3183_v53 = vld [vmem:[%s4153_s1 + $0x6a4] ss:$16 sps:$4 sm:$0xff]  }
  0x6e   : > { %1470 = vmatprep.subr.bf16.mxu1 %v3105_v55  ;;  %v3189_v55 = vld [vmem:[%s4153_s1 + $0x48c] ss:$16 sps:$4 sm:$0xff]  }
  0x6f   : > { %1395 = vmatpush1.bf16.msra.mxu0 %v3106_v58  ;;  %v3187_v58 = vld [vmem:[%s4153_s1 + $0x488] ss:$16 sps:$4 sm:$0xff]  }
  0x70   : > { %1396 = vmatprep.subr.bf16.mxu0 %v3114_v60  ;;  %v3195_v60 = vld [vmem:[%s4153_s1 + $0x4ac] ss:$16 sps:$4 sm:$0xff]  }
  0x71   : > { %1471 = vmatpush1.bf16.msra.mxu1 %v3103_v57  ;;  %v1631_v57 = vrot.slane %v3440_v18, 1 }
  0x72   : > { %1472 = vmatprep.subr.bf16.mxu1 %v3111_v59  ;;  %v3190_v59 = vld [vmem:[%s4153_s1 + $0x4e0] ss:$16 sps:$4 sm:$0xff]  }
  0x73   : > { %1397 = vmatpush1.bf16.msra.mxu0 %v3112_v62  ;;  %v3193_v62 = vld [vmem:[%s4153_s1 + $0x4a8] ss:$16 sps:$4 sm:$0xff]  }
  0x74   : > { %1398 = vmatprep.subr.bf16.mxu0 %v3120_v0  ;;  %v3201_v0 = vld [vmem:[%s4153_s1 + $0x4cc] ss:$16 sps:$4 sm:$0xff]  }
  0x75   : > { %1473 = vmatpush1.bf16.msra.mxu1 %v3109_v61  ;;  %v3198_v61 = vld [vmem:[%s4153_s1 + $0x504] ss:$16 sps:$4 sm:$0xff]  }
  0x76   : > { %1474 = vmatprep.subr.bf16.mxu1 %v3117_v63  ;;  %v3196_v63 = vld [vmem:[%s4153_s1 + $0x500] ss:$16 sps:$4 sm:$0xff]  }
  0x77   : > { %1399 = vmatpush1.bf16.msra.mxu0 %v3118_v3  ;;  %v3199_v3 = vld [vmem:[%s4153_s1 + $0x4c8] ss:$16 sps:$4 sm:$0xff]  }
  0x78   : > { %1400 = vmatprep.subr.bf16.mxu0 %v3126_v5  ;;  %v3207_v5 = vld [vmem:[%s4153_s1 + $0x4ec] ss:$16 sps:$4 sm:$0xff]  }
  0x79   : > { %1475 = vmatpush1.bf16.msra.mxu1 %v3115_v1  ;;  %v3204_v1 = vld [vmem:[%s4153_s1 + $0x524] ss:$16 sps:$4 sm:$0xff]  }
  0x7a   : > { %1476 = vmatprep.subr.bf16.mxu1 %v3123_v4  ;;  %v3202_v4 = vld [vmem:[%s4153_s1 + $0x520] ss:$16 sps:$4 sm:$0xff]  }
  0x7b   : > { %1401 = vmatpush1.bf16.msra.mxu0 %v3124_v8  ;;  %v3205_v8 = vld [vmem:[%s4153_s1 + $0x4e8] ss:$16 sps:$4 sm:$0xff]  }
  0x7c   : > { %1402 = vmatprep.subr.bf16.mxu0 %v3132_v11  ;;  %v3213_v11 = vld [vmem:[%s4153_s1 + $0x50c] ss:$16 sps:$4 sm:$0xff]  }
  0x7d   : > { %1477 = vmatpush1.bf16.msra.mxu1 %v3121_v7  ;;  %v3210_v7 = vld [vmem:[%s4153_s1 + $0x544] ss:$16 sps:$4 sm:$0xff]  }
  0x7e   : > { %1478 = vmatprep.subr.bf16.mxu1 %v3129_v10  ;;  %v3208_v10 = vld [vmem:[%s4153_s1 + $0x540] ss:$16 sps:$4 sm:$0xff]  }
  0x7f   : > { %1403 = vmatpush1.bf16.msra.mxu0 %v3130_v13  ;;  %v3211_v13 = vld [vmem:[%s4153_s1 + $0x508] ss:$16 sps:$4 sm:$0xff]  }
  0x80   : > { %1404 = vmatprep.subr.bf16.mxu0 %v3138_v15  ;;  %v3219_v15 = vld [vmem:[%s4153_s1 + $0x52c] ss:$16 sps:$4 sm:$0xff]  }
  0x81   : > { %1479 = vmatpush1.bf16.msra.mxu1 %v3127_v12  ;;  %v3216_v12 = vld [vmem:[%s4153_s1 + $0x564] ss:$16 sps:$4 sm:$0xff]  }
  0x82   : > { %1480 = vmatprep.subr.bf16.mxu1 %v3135_v14  ;;  %v3214_v14 = vld [vmem:[%s4153_s1 + $0x560] ss:$16 sps:$4 sm:$0xff]  }
  0x83   : > { %1405 = vmatpush1.bf16.msra.mxu0 %v3136_v19  ;;  %v3217_v19 = vld [vmem:[%s4153_s1 + $0x528] ss:$16 sps:$4 sm:$0xff]  }
  0x84   : > { %1406 = vmatprep.subr.bf16.mxu0 %v3144_v21  ;;  %v3225_v21 = vld [vmem:[%s4153_s1 + $0x54c] ss:$16 sps:$4 sm:$0xff]  }
  0x85   : > { %1481 = vmatpush1.bf16.msra.mxu1 %v3133_v16  ;;  %v3222_v16 = vld [vmem:[%s4153_s1 + $0x584] ss:$16 sps:$4 sm:$0xff]  }
  0x86   : > { %1482 = vmatprep.subr.bf16.mxu1 %v3141_v20  ;;  %v3220_v20 = vld [vmem:[%s4153_s1 + $0x580] ss:$16 sps:$4 sm:$0xff]  }
  0x87   : > { %1407 = vmatpush1.bf16.msra.mxu0 %v3142_v24  ;;  %v3223_v24 = vld [vmem:[%s4153_s1 + $0x548] ss:$16 sps:$4 sm:$0xff]  }
  0x88   : > { %1408 = vmatprep.subr.bf16.mxu0 %v3150_v51  ;;  %v3231_v51 = vld [vmem:[%s4153_s1 + $0x56c] ss:$16 sps:$4 sm:$0xff]  }
  0x89   : > { %1483 = vmatpush1.bf16.msra.mxu1 %v3139_v23  ;;  %v3228_v23 = vld [vmem:[%s4153_s1 + $0x5a4] ss:$16 sps:$4 sm:$0xff]  }
  0x8a   : > { %1484 = vmatprep.subr.bf16.mxu1 %v3147_v25  ;;  %v3226_v25 = vld [vmem:[%s4153_s1 + $0x5a0] ss:$16 sps:$4 sm:$0xff]  }
  0x8b   : > { %1409 = vmatpush1.bf16.msra.mxu0 %v3148_v26  ;;  %v3229_v26 = vld [vmem:[%s4153_s1 + $0x568] ss:$16 sps:$4 sm:$0xff]  }
  0x8c   : > { %1410 = vmatprep.subr.bf16.mxu0 %v3156_v29  ;;  %v3240_v29 = vld [vmem:[%s4153_s1 + $0x5e4] ss:$16 sps:$4 sm:$0xff]  }
  0x8d   : > { %1485 = vmatpush1.bf16.msra.mxu1 %v3145_v6  ;;  %v3234_v6 = vld [vmem:[%s4153_s1 + $0x5c4] ss:$16 sps:$4 sm:$0xff]  }
  0x8e   : > { %1486 = vmatprep.subr.bf16.mxu1 %v3153_v28  ;;  %v3237_v28 = vld [vmem:[%s4153_s1 + $0x58c] ss:$16 sps:$4 sm:$0xff]  }
  0x8f   : > { %1411 = vmatpush1.bf16.msra.mxu0 %v3154_v32  ;;  %v3243_v32 = vld [vmem:[%s4153_s1 + $0x5ac] ss:$16 sps:$4 sm:$0xff]  }
  0x90   : > { %1503 = vmatprep.subr.bf16.mxu0 %v3165_v34  ;;  %v3244_v34 = vld [vmem:[%s4153_s1 + $0x600] ss:$16 sps:$4 sm:$0xff]  }
  0x91   : > { %1487 = vmatpush1.bf16.msra.mxu1 %v3151_v31  ;;  %v3238_v31 = vld [vmem:[%s4153_s1 + $0x5e0] ss:$16 sps:$4 sm:$0xff]  }
  0x92   : > { %1488 = vmatprep.subr.bf16.mxu1 %v3159_v33  ;;  %1413 = vmatmul.mubr.bf16.vlgmr.msra.gmra.mrb[8].mxu0 %v1000_v36  ;;  %v3241_v33 = vld [vmem:[%s4153_s1 + $0x5a8] ss:$16 sps:$4 sm:$0xff]  }
  0x93   : > { %1504 = vmatpush1.bf16.msra.mxu0 %v3163_v38  ;;  %1535 = vmatprep.mubr.bf16.mxu0 %v3320_v2  ;;  %v3250_v38 = vld [vmem:[%s4153_s1 + $0x620] ss:$16 sps:$4 sm:$0xff]  }
  0x94   : > { %1505 = vmatprep.subr.bf16.mxu0 %v3171_v40  ;;  %v3255_v40 = vld [vmem:[%s4153_s1 + $0x5ec] ss:$16 sps:$4 sm:$0xff]  }
  0x95   : > { %1489 = vmatpush1.bf16.msra.mxu1 %v3157_v35  ;;  %v3249_v35 = vld [vmem:[%s4153_s1 + $0x5cc] ss:$16 sps:$4 sm:$0xff]  }
  0x96   : > { %1490 = vmatprep.subr.bf16.mxu1 %v3162_v37  ;;  %v3247_v37 = vld [vmem:[%s4153_s1 + $0x5c8] ss:$16 sps:$4 sm:$0xff]  }
  0x97   : > { %1506 = vmatpush1.bf16.msra.mxu0 %v3169_v43  ;;  %v3256_v43 = vld [vmem:[%s4153_s1 + $0x640] ss:$16 sps:$4 sm:$0xff]  }
  0x98   : > { %1997 = vmatprep.subr.bf16.mxu0 %v3174_v44  ;;  %v3261_v44 = vld [vmem:[%s4153_s1 + $0x60c] ss:$16 sps:$4 sm:$0xff]  }
  0x99   : > { %1491 = vmatpush1.bf16.msra.mxu1 %v3160_v41  ;;  %v3258_v41 = vld [vmem:[%s4153_s1 + $0x644] ss:$16 sps:$4 sm:$0xff]  }
  0x9a   : > { %1492 = vmatprep.subr.bf16.mxu1 %v3168_v42  ;;  %2757 = vmatmul.mubr.msk.bf16.vlgmr.msra.gmra.mrb[12].mxu0 %vm741_vm0, %v3676_v39  ;;  %v3181_v39 = vld [vmem:[%s4153_s1 + $0x6a0] ss:$16 sps:$4 sm:$0xff]   ;;  %v3253_v42 = vld [vmem:[%s4153_s1 + $0x5e8] ss:$16 sps:$4 sm:$0xff]  }
  0x9b   : > { %1998 = vmatpush1.bf16.msra.mxu0 %v3172_v46  ;;  %2029 = vmatprep.mubr.bf16.mxu0 %v1630_v49  ;;  %v3259_v46 = vld [vmem:[%s4153_s1 + $0x608] ss:$16 sps:$4 sm:$0xff]  }
  0x9c   : > { %1999 = vmatprep.subr.bf16.mxu0 %v3180_v48  ;;  %v3267_v48 = vld [vmem:[%s4153_s1 + $0x62c] ss:$16 sps:$4 sm:$0xff]  }
  0x9d   : > { %1493 = vmatpush1.bf16.msra.mxu1 %v3166_v45  ;;  %v3264_v45 = vld [vmem:[%s4153_s1 + $0x664] ss:$16 sps:$4 sm:$0xff]  }
  0x9e   : > { %2038 = vmatprep.subr.bf16.mxu1 %v3177_v47  ;;  %v3262_v47 = vld [vmem:[%s4153_s1 + $0x660] ss:$16 sps:$4 sm:$0xff]  }
  0x9f   : > { %2000 = vmatpush1.bf16.msra.mxu0 %v3178_v52  ;;  %v3265_v52 = vld [vmem:[%s4153_s1 + $0x628] ss:$16 sps:$4 sm:$0xff]  }
  0xa0   : > { %1495 = vmatmul.mubr.bf16.vlgmr.msra.gmra.mrb[12].mxu1 %v1000_v36  ;;  %2001 = vmatprep.subr.bf16.mxu0 %v3186_v9  ;;  %v3252_v36 = vld [vmem:[%s4153_s1 + $0x624] ss:$16 sps:$4 sm:$0xff]   ;;  %v3270_v9 = vld [vmem:[%s4153_s1 + $0x64c] ss:$16 sps:$4 sm:$0xff]  }
  0xa1   : > { %2039 = vmatpush1.bf16.msra.mxu1 %v3175_v50  ;;  %2070 = vmatprep.mubr.bf16.mxu1 %v3320_v2  ;;  %v1629_v50 = vrot.slane %v3802_v22, 1  ;;  %v3279_v22 = vld [vmem:[%s4153_s1 + $0x6ac] ss:$16 sps:$4 sm:$0xff]  }
  0xa2   : > { %2040 = vmatprep.subr.bf16.mxu1 %v3183_v53  ;;  %v3271_v53 = vld [vmem:[%s4153_s1 + $0x688] ss:$16 sps:$4 sm:$0xff]  }
  0xa3   : > { %2002 = vmatpush1.bf16.msra.mxu0 %v3184_v54  ;;  %v3277_v54 = vld [vmem:[%s4153_s1 + $0x6a8] ss:$16 sps:$4 sm:$0xff]  }
  0xa4   : > { %2003 = vmatprep.subr.bf16.mxu0 %v3192_v56  ;;  %v3274_v56 = vld [vmem:[%s4153_s1 + $0x668] ss:$16 sps:$4 sm:$0xff]  }
  0xa5   : > { %2041 = vmatpush1.bf16.msra.mxu1 %v3181_v39  ;;  %v3268_v39 = vld [vmem:[%s4153_s1 + $0x648] ss:$16 sps:$4 sm:$0xff]  }
  0xa6   : > { %2079 = vmatprep.subr.bf16.mxu1 %v3189_v55  ;;  %v3276_v55 = vld [vmem:[%s4153_s1 + $0x66c] ss:$16 sps:$4 sm:$0xff]  }
  0xa7   : > { %2004 = vmatpush1.bf16.msra.mxu0 %v3190_v59 }
  0xa8   : > { %2902 = vmatmul.mubr.msk.bf16.vlgmr.msra.gmra.mrb[16].mxu1 %vm741_vm0, %v1631_v57  ;;  %2005 = vmatprep.subr.bf16.mxu0 %v3198_v61 }
  0xa9   : > { %2080 = vmatpush1.bf16.msra.mxu1 %v3187_v58  ;;  %2111 = vmatprep.mubr.bf16.mxu1 %v1630_v49  ;;  %v3273_v49 = vld [vmem:[%s4153_s1 + $0x68c] ss:$16 sps:$4 sm:$0xff]  }
  0xaa   : > { %2081 = vmatprep.subr.bf16.mxu1 %v3195_v60 }
  0xab   : > { %2006 = vmatpush1.bf16.msra.mxu0 %v3196_v63 }
  0xac   : > { %2007 = vmatprep.subr.bf16.mxu0 %v3204_v1 }
  0xad   : > { %2082 = vmatpush1.bf16.msra.mxu1 %v3193_v62 }
  0xae   : > { %2083 = vmatprep.subr.bf16.mxu1 %v3201_v0 }
  0xaf   : > { %2008 = vmatpush1.bf16.msra.mxu0 %v3202_v4 }
  0xb0   : > { %2009 = vmatprep.subr.bf16.mxu0 %v3210_v7 }
  0xb1   : > { %2084 = vmatpush1.bf16.msra.mxu1 %v3199_v3 }
  0xb2   : > { %2085 = vmatprep.subr.bf16.mxu1 %v3207_v5 }
  0xb3   : > { %2010 = vmatpush1.bf16.msra.mxu0 %v3208_v10 }
  0xb4   : > { %2011 = vmatprep.subr.bf16.mxu0 %v3216_v12 }
  0xb5   : > { %2086 = vmatpush1.bf16.msra.mxu1 %v3205_v8 }
  0xb6   : > { %2087 = vmatprep.subr.bf16.mxu1 %v3213_v11 }
  0xb7   : > { %2012 = vmatpush1.bf16.msra.mxu0 %v3214_v14 }
  0xb8   : > { %2013 = vmatprep.subr.bf16.mxu0 %v3222_v16 }
  0xb9   : > { %2088 = vmatpush1.bf16.msra.mxu1 %v3211_v13 }
  0xba   : > { %2089 = vmatprep.subr.bf16.mxu1 %v3219_v15 }
  0xbb   : > { %2014 = vmatpush1.bf16.msra.mxu0 %v3220_v20 }
  0xbc   : > { %2015 = vmatprep.subr.bf16.mxu0 %v3228_v23 }
  0xbd   : > { %2090 = vmatpush1.bf16.msra.mxu1 %v3217_v19 }
  0xbe   : > { %2091 = vmatprep.subr.bf16.mxu1 %v3225_v21 }
  0xbf   : > { %2016 = vmatpush1.bf16.msra.mxu0 %v3226_v25 }
  0xc0   : > { %2017 = vmatprep.subr.bf16.mxu0 %v3234_v6 }
  0xc1   : > { %2092 = vmatpush1.bf16.msra.mxu1 %v3223_v24 }
  0xc2   : > { %2093 = vmatprep.subr.bf16.mxu1 %v3231_v51 }
  0xc3   : > { %2018 = vmatpush1.bf16.msra.mxu0 %v3232_v27 }
  0xc4   : > { %2019 = vmatprep.subr.bf16.mxu0 %v3240_v29 }
  0xc5   : > { %2094 = vmatpush1.bf16.msra.mxu1 %v3229_v26 }
  0xc6   : > { %2095 = vmatprep.subr.bf16.mxu1 %v3237_v28 }
  0xc7   : > { %2020 = vmatpush1.bf16.msra.mxu0 %v3238_v31 }
  0xc8   : > { %2021 = vmatprep.subr.bf16.mxu0 %v3246_v17 }
  0xc9   : > { %2096 = vmatpush1.bf16.msra.mxu1 %v3235_v30 }
  0xca   : > { %2097 = vmatprep.subr.bf16.mxu1 %v3243_v32 }
  0xcb   : > { %2022 = vmatpush1.bf16.msra.mxu0 %v3244_v34 }
  0xcc   : > { %2023 = vmatprep.subr.bf16.mxu0 %v3252_v36 }
  0xcd   : > { %2098 = vmatpush1.bf16.msra.mxu1 %v3241_v33 }
  0xce   : > { %2099 = vmatprep.subr.bf16.mxu1 %v3249_v35 }
  0xcf   : > { %2024 = vmatpush1.bf16.msra.mxu0 %v3250_v38 }
  0xd0   : > { %2025 = vmatprep.subr.bf16.mxu0 %v3258_v41 }
  0xd1   : > { %2100 = vmatpush1.bf16.msra.mxu1 %v3247_v37 }
  0xd2   : > { %2101 = vmatprep.subr.bf16.mxu1 %v3255_v40 }
  0xd3   : > { %2026 = vmatpush1.bf16.msra.mxu0 %v3256_v43  ;;  %v2179_v43 = vlaneseq }
  0xd4   : > { %2027 = vmatprep.subr.bf16.mxu0 %v3264_v45 }
  0xd5   : > { %2102 = vmatpush1.bf16.msra.mxu1 %v3253_v42  ;;  %vm2274_vm5 = vcmp.lt.s32.totalorder %v2179_v43, 512 }
  0xd6   : > { %2103 = vmatprep.subr.bf16.mxu1 %v3261_v44  ;;  %v4102_v44 = vshrl.u32 %v2179_v43, 7 }
  0xd7   : > { %2028 = vmatpush1.bf16.msra.mxu0 %v3262_v47 }
  0xd8   : > { %2120 = vmatprep.subr.bf16.mxu0 %v3273_v49  ;;  %v2181_v45 = vsub.s32 0, %v4102_v44  ;;  %v2185_v47 = vsub.s32 1, %v4102_v44 }
  0xd9   : > { %2104 = vmatpush1.bf16.msra.mxu1 %v3259_v46  ;;  %v2177_v46 = vld [vmem:[%s4154_s2] sm:$0xf] }
  0xda   : > { %2105 = vmatprep.subr.bf16.mxu1 %v3267_v48  ;;  %2030 = vmatmul.mubr.bf16.vlgmr.msra.gmra.mrb[16].mxu0 %v1629_v50 }
  0xdb   : > { %2121 = vmatpush1.bf16.msra.mxu0 %v3271_v53  ;;  %2152 = vmatprep.mubr.bf16.mxu0 %v3320_v2 }
  0xdc   : > { %2122 = vmatprep.subr.bf16.mxu0 %v3279_v22 }
  0xdd   : > { %2106 = vmatpush1.bf16.msra.mxu1 %v3265_v52 }
  0xde   : > { %2107 = vmatprep.subr.bf16.mxu1 %v3270_v9  ;;  %v2186_v9 = vrot.slane %v2177_v46, %v2185_v47 }
  0xdf   : > { %2123 = vmatpush1.bf16.msra.mxu0 %v3277_v54 }
  0xe1   : > { %2108 = vmatpush1.bf16.msra.mxu1 %v3268_v39 }
  0xe2   : > { %2109 = vmatprep.subr.bf16.mxu1 %v3276_v55  ;;  %2903 = vmatmul.mubr.msk.bf16.vlgmr.msra.gmra.mrb[20].mxu0 %vm741_vm0, %v1631_v57 }
  0xe5   : > { %2110 = vmatpush1.bf16.msra.mxu1 %v3274_v56 }
  0xe8   : > { %2112 = vmatmul.mubr.bf16.vlgmr.msra.gmra.mrb[20].mxu1 %v1629_v50  ;;  %v2182_v50 = vrot.slane %v2177_v46, %v2181_v45 }
  0xeb   : > { %v820_v58 = vpop.f32.mrb[0].mxu1 }
  0xec   : > { %v822_v59 = vpop.f32.mrb[1].mxu1 }
  0xed   : > { %v824_v60 = vpop.f32.mrb[2].mxu1 }
  0xee   : > { %v825_v61 = vpop.f32.mrb[3].mxu1 }
 0x11d   : > { %v779_v62 = vpop.f32.mrb[0].mxu0 }
 0x11e   : > { %v821_v63 = vadd.f32 %v820_v58, %v779_v62  ;;  %v781_v2 = vpop.f32.mrb[1].mxu0 }
 0x11f   : > { %v823_v0 = vadd.f32 %v822_v59, %v781_v2  ;;  %v783_v1 = vpop.f32.mrb[2].mxu0 }
 0x120   : > { %v784_v3 = vpop.f32.mrb[3].mxu0 }
 0x125   : > { %v902_v4 = vpop.f32.mrb[4].mxu0 }
 0x126   : > { %v904_v5 = vpop.f32.mrb[5].mxu0 }
 0x127   : > { %v906_v7 = vpop.f32.mrb[6].mxu0 }
 0x128   : > { %v907_v8 = vpop.f32.mrb[7].mxu0 }
 0x12b   : > { %v861_v10 = vpop.f32.mrb[4].mxu1 }
 0x12c   : > { %v903_v18 = vadd.f32 %v902_v4, %v861_v10  ;;  %v863_v11 = vpop.f32.mrb[5].mxu1  ;;  %v2193_v4 = vsub.s32 3, %v4102_v44 }
 0x12d   : > { %v905_v57 = vadd.f32 %v904_v5, %v863_v11  ;;  %v865_v12 = vpop.f32.mrb[6].mxu1 }
 0x12e   : > { %v866_v13 = vpop.f32.mrb[7].mxu1 }
 0x133   : > { %v1455_v14 = vpop.f32.mrb[8].mxu1 }
 0x134   : > { %v1457_v15 = vpop.f32.mrb[9].mxu1 }
 0x135   : > { %v1459_v16 = vpop.f32.mrb[10].mxu1 }
 0x136   : > { %v1460_v19 = vpop.f32.mrb[11].mxu1 }
 0x165   : > { %v1414_v20 = vpop.f32.mrb[8].mxu0 }
 0x166   : > { %v1456_v21 = vadd.f32 %v1455_v14, %v1414_v20  ;;  %v1416_v23 = vpop.f32.mrb[9].mxu0 }
 0x167   : > { %v1458_v24 = vadd.f32 %v1457_v15, %v1416_v23  ;;  %v1418_v25 = vpop.f32.mrb[10].mxu0  ;;  %v2194_v23 = vrot.slane %v2177_v46, %v2193_v4 }
 0x168   : > { %v1548_v51 = vadd.f32 %v1456_v21, %v821_v63  ;;  %v1419_v6 = vpop.f32.mrb[11].mxu0  ;;  %v2189_v63 = vsub.s32 2, %v4102_v44 }
 0x169   : > { %v1549_v26 = vadd.f32 %v1458_v24, %v823_v0 }
 0x16a   : > { %v2190_v15 = vrot.slane %v2177_v46, %v2189_v63 }
 0x16d   : > { %v1537_v27 = vpop.f32.mrb[12].mxu0 }
 0x16e   : > { %v1539_v28 = vpop.f32.mrb[13].mxu0 }
 0x16f   : > { %v1541_v29 = vpop.f32.mrb[14].mxu0 }
 0x170   : > { %v1542_v30 = vpop.f32.mrb[15].mxu0 }
 0x173   : > { %v1496_v31 = vpop.f32.mrb[12].mxu1 }
 0x174   : > { %v1538_v32 = vadd.f32 %v1537_v27, %v1496_v31  ;;  %v1498_v17 = vpop.f32.mrb[13].mxu1 }
 0x175   : > { %v1540_v33 = vadd.f32 %v1539_v28, %v1498_v17  ;;  %v1500_v34 = vpop.f32.mrb[14].mxu1 }
 0x176   : > { %v4096_v35 = vadd.f32 %v1538_v32, %v903_v18  ;;  %v1501_v36 = vpop.f32.mrb[15].mxu1 }
 0x177   : > { %v4098_v37 = vadd.f32 %v1540_v33, %v905_v57 }
 0x17b   : > { %v2072_v38 = vpop.f32.mrb[16].mxu1 }
 0x17c   : > { %v2074_v40 = vpop.f32.mrb[17].mxu1 }
 0x17d   : > { %v2076_v41 = vpop.f32.mrb[18].mxu1 }
 0x17e   : > { %v2077_v42 = vpop.f32.mrb[19].mxu1 }
 0x1ad   : > { %v2031_v48 = vpop.f32.mrb[16].mxu0 }
 0x1ae   : > { %v2073_v49 = vadd.f32 %v2072_v38, %v2031_v48  ;;  %v2033_v52 = vpop.f32.mrb[17].mxu0 }
 0x1af   : > { %v2075_v53 = vadd.f32 %v2074_v40, %v2033_v52  ;;  %v2035_v22 = vpop.f32.mrb[18].mxu0 }
 0x1b0   : > { %v2165_v39 = vadd.f32 %v2073_v49, %v1548_v51  ;;  %v2036_v54 = vpop.f32.mrb[19].mxu0 }
 0x1b1   : > { %v2166_v55 = vadd.f32 %v2075_v53, %v1549_v26 }
 0x1b2   : > { %v2199_v56 = vadd.f32 %v2182_v50, %v2165_v39 }
 0x1b3   : > { %v2200_v58 = vadd.f32 %v2186_v9, %v2166_v55  ;;  %v3321_v55 = vmov 1966171168  }
 0x1b4   : > { %vm2203_vm1 = vcmp.gt.f32.partialorder %v2199_v56, 0.0  ;;  %v2207_v59 = vmul.f32 0.01, %v2199_v56 }
 0x1b5   : > { %vm2204_vm2 = vcmp.gt.f32.partialorder %v2200_v58, 0.0  ;;  %v2208_v60 = vmul.f32 0.01, %v2200_v58  ;;  %v2154_v61 = vpop.f32.mrb[20].mxu0 }
 0x1b6   : > { %v2211_v62 = vsel %vm2203_vm1, %v2199_v56, %v2207_v59  ;;  %v2156_v2 = vpop.f32.mrb[21].mxu0  ;;  %v2250_v56 = vunpack.c.l.s4 %v3321_v55 }
 0x1b7   : > { %2215 = vst [vmem:[%s4117_s26] sm:$0xff] %v2211_v62  ;;  %v2219_v0 = vrot.slane %v2211_v62, 4  ;;  %v2277_v1 = vmul.f32 %v2211_v62, %v2211_v62  ;;  %v2212_v3 = vsel %vm2204_vm2, %v2200_v58, %v2208_v60  ;;  %v2158_v5 = vpop.f32.mrb[22].mxu0 }
 0x1b8   : > { %2216 = vst [vmem:[%s4117_s26 + $0x8] sm:$0xff] %v2212_v3  ;;  %v2225_v7 = vrot.slane %v2212_v3, 4  ;;  %v2278_v8 = vmul.f32 %v2212_v3, %v2212_v3  ;;  %v2159_v10 = vpop.f32.mrb[23].mxu0 }
 0x1b9   : > { %v2220_v18 = vadd.f32 %v2219_v0, %v2211_v62  ;;  %v2281_v11 = vrot.slane %v2277_v1, 4 }
 0x1ba   : > { %v2226_v12 = vadd.f32 %v2225_v7, %v2212_v3  ;;  %v2287_v13 = vrot.slane %v2278_v8, 4  ;;  %v2251_v3 = vunpack.c.0.s8 %v2250_v56 }
 0x1bb   : > { %v2113_v57 = vpop.f32.mrb[20].mxu1  ;;  %v2221_v19 = vrot.slane %v2220_v18, 2  ;;  %v2282_v20 = vadd.f32 %v2281_v11, %v2277_v1 }
 0x1bc   : > { %v2155_v14 = vadd.f32 %v2154_v61, %v2113_v57  ;;  %v2115_v16 = vpop.f32.mrb[21].mxu1  ;;  %v2227_v25 = vrot.slane %v2226_v12, 2  ;;  %v2288_v51 = vadd.f32 %v2287_v13, %v2278_v8 }
 0x1bd   : > { %v2157_v21 = vadd.f32 %v2156_v2, %v2115_v16  ;;  %v2117_v24 = vpop.f32.mrb[22].mxu1  ;;  %v2222_v27 = vadd.f32 %v2221_v19, %v2220_v18  ;;  %v2283_v28 = vrot.slane %v2282_v20, 2 }
 0x1be   : > { %v2167_v6 = vadd.f32 %v2155_v14, %v4096_v35  ;;  %v2118_v26 = vpop.f32.mrb[23].mxu1  ;;  %v2228_v30 = vadd.f32 %v2227_v25, %v2226_v12  ;;  %v2289_v31 = vrot.slane %v2288_v51, 2  ;;  %v2254_v12 = vsub.s32 %v2251_v3, %v4102_v44 }
 0x1bf   : > { %v2168_v29 = vadd.f32 %v2157_v21, %v4098_v37  ;;  %v2223_v17 = vrot.slane %v2222_v27, 1  ;;  %v2284_v33 = vadd.f32 %v2283_v28, %v2282_v20 }
 0x1c0   : > { %v2201_v32 = vadd.f32 %v2190_v15, %v2167_v6  ;;  %v2229_v36 = vrot.slane %v2228_v30, 1  ;;  %v2290_v38 = vadd.f32 %v2289_v31, %v2288_v51 }
 0x1c1   : > { %v2202_v34 = vadd.f32 %v2194_v23, %v2168_v29  ;;  %v2224_v41 = vadd.f32 %v2223_v17, %v2222_v27  ;;  %v2285_v42 = vrot.slane %v2284_v33, 1 }
 0x1c2   : > { %vm2205_vm3 = vcmp.gt.f32.partialorder %v2201_v32, 0.0  ;;  %v2209_v40 = vmul.f32 0.01, %v2201_v32  ;;  %v2230_v45 = vadd.f32 %v2229_v36, %v2228_v30  ;;  %v2291_v46 = vrot.slane %v2290_v38, 1 }
 0x1c3   : > { %vm2206_vm4 = vcmp.gt.f32.partialorder %v2202_v34, 0.0  ;;  %v2210_v35 = vmul.f32 0.01, %v2202_v34  ;;  %v2286_v37 = vadd.f32 %v2285_v42, %v2284_v33 }
 0x1c4   : > { %v2213_v47 = vsel %vm2205_vm3, %v2201_v32, %v2209_v40  ;;  %v2247_v52 = vcombine.low %v2224_v41, %v2230_v45  ;;  %v2292_v53 = vadd.f32 %v2291_v46, %v2290_v38 }
 0x1c5   : > { %2217 = vst [vmem:[%s4117_s26 + $0x10] sm:$0xff] %v2213_v47  ;;  %v2231_v48 = vrot.slane %v2213_v47, 4  ;;  %v2279_v49 = vmul.f32 %v2213_v47, %v2213_v47  ;;  %v2214_v50 = vsel %vm2206_vm4, %v2202_v34, %v2210_v35 }
 0x1c6   : > { %2218 = vst [vmem:[%s4117_s26 + $0x18] sm:$0xff] %v2214_v50  ;;  %v2237_v9 = vrot.slane %v2214_v50, 4  ;;  %v2280_v22 = vmul.f32 %v2214_v50, %v2214_v50  ;;  %v2309_v58 = vcombine.low %v2286_v37, %v2292_v53  ;;  %v2255_v20 = vrot.slane %v2247_v52, %v2254_v12 }
 0x1c7   : > { %v2232_v39 = vadd.f32 %v2231_v48, %v2213_v47  ;;  %v2293_v54 = vrot.slane %v2279_v49, 4 }
 0x1c8   : > { %v2238_v59 = vadd.f32 %v2237_v9, %v2214_v50  ;;  %v2299_v60 = vrot.slane %v2280_v22, 4  ;;  %v2317_v24 = vrot.slane %v2309_v58, %v2254_v12 }
 0x1c9   : > { %v2233_v61 = vrot.slane %v2232_v39, 2  ;;  %v2294_v62 = vadd.f32 %v2293_v54, %v2279_v49 }
 0x1ca   : > { %v2239_v63 = vrot.slane %v2238_v59, 2  ;;  %v2300_v2 = vadd.f32 %v2299_v60, %v2280_v22 }
 0x1cb   : > { %v2234_v0 = vadd.f32 %v2233_v61, %v2232_v39  ;;  %v2295_v1 = vrot.slane %v2294_v62, 2 }
 0x1cc   : > { %v2240_v4 = vadd.f32 %v2239_v63, %v2238_v59  ;;  %v2301_v5 = vrot.slane %v2300_v2, 2 }
 0x1cd   : > { %v2235_v7 = vrot.slane %v2234_v0, 1  ;;  %v2296_v8 = vadd.f32 %v2295_v1, %v2294_v62 }
 0x1ce   : > { %v2241_v10 = vrot.slane %v2240_v4, 1  ;;  %v2302_v18 = vadd.f32 %v2301_v5, %v2300_v2 }
 0x1cf   : > { %v2236_v11 = vadd.f32 %v2235_v7, %v2234_v0  ;;  %v2297_v57 = vrot.slane %v2296_v8, 1 }
 0x1d0   : > { %v2242_v13 = vadd.f32 %v2241_v10, %v2240_v4  ;;  %v2303_v14 = vrot.slane %v2302_v18, 1 }
 0x1d1   : > { %v2298_v15 = vadd.f32 %v2297_v57, %v2296_v8 }
 0x1d2   : > { %v2248_v16 = vcombine.low %v2236_v11, %v2242_v13  ;;  %v2304_v19 = vadd.f32 %v2303_v14, %v2302_v18 }
 0x1d4   : > { %v2262_v21 = vrot.slane %v2248_v16, %v2254_v12  ;;  %v2310_v23 = vcombine.low %v2298_v15, %v2304_v19 }
 0x1d6   : > { %v2263_v25 = vcombine.low %v2255_v20, %v2262_v21  ;;  %v2324_v51 = vrot.slane %v2310_v23, %v2254_v12 }
 0x1d8   : > { %v2270_v6 = vrot.slane %v2263_v25, %v2254_v12  ;;  %v2325_v44 = vcombine.low %v2317_v24, %v2324_v51 }
 0x1da   : > { %2276 = vst.msk [vmem:[%s279_s29] sm:$0xf] %vm2274_vm5, %v2270_v6  ;;  %v2332_v26 = vrot.slane %v2325_v44, %v2254_v12 }
 0x1dc   : > { %2334 = vst.msk [vmem:[%s287_s7] sm:$0xf] %vm2274_vm5, %v2332_v26 }
 0x1dd PF: > { %s16_s22 = sadd.s32 1, %s3318_s22   ;;  %s4158_s18 = smov %s3310_s20 }
 0x1de   : > { %p13_p7 = scmp.ge.s32.totalorder %s16_s22, 6   ;;  %s4159_s19 = smov %s3314_s21 }
 0x1df   : > { %s4160_s20 = smov %s4163_s23  ;;  %s4161_s21 = smov %s4167_s24 }
 0x1e0   :  { %15 = sbr.rel (!%p13_p7) target bundleno = 3 (0x3), region = 89 }

// kernel: duck_conv2d_block.23
= control target key start
LH: loop header
LB: loop body
LE: loop exit
PB: predicated region body
PF: predicated region fallthrough
CT: control target
= control target key end

     0   :  { %s2252_s18 = smov 0   ;;  %s2254_s19 = smov 0   ;;  %s2758_s0 = inlined_call_operand.vmem [shape: bf16[2,22,352], index: 0, kind: input, shape index: {}]   ;;  %s2759_s1 = inlined_call_operand.vmem [shape: bf16[3,352,256], index: 1, kind: input, shape index: {}]   ;;  %s2760_s2 = inlined_call_operand.vmem [shape: f32[1,256], index: 2, kind: input, shape index: {}]   ;;  %s2761_s3 = inlined_call_operand.vmem [shape: f32[2,16,256], index: 3, kind: output, shape index: {0}]   ;;  %s2762_s4 = inlined_call_operand.vmem [shape: f32[2,2,1,256], index: 4, kind: output, shape index: {1}]   ;;  %s2763_s5 = inlined_call_operand.vmem [shape: f32[2,2,1,256], index: 5, kind: output, shape index: {2}]  }
   0x1   :  { %s2256_s20 = smov 0   ;;  %s2258_s21 = smov 0  }
   0x2   :  { %s2260_s22 = smov 0  }
   0x3 LB: > { %s25_s23 = sadd.s32 1, %s2210_s20  ;;  %s28_s24 = sadd.s32 1, %s2214_s21  ;;  %s2218_s22 = sphi %s2260_s22, %s16_s22   ;;  %s2214_s21 = sphi %s2258_s21, %s2767_s21   ;;  %s2210_s20 = sphi %s2256_s20, %s2766_s20   ;;  %s2206_s19 = sphi %s2254_s19, %s2765_s19   ;;  %s2202_s18 = sphi %s2252_s18, %s2764_s18  }
   0x4   : > { %p26_p0 = scmp.ge.s32.totalorder %s25_s23, 2  ;;  %p1690_p1 = scmp.ge.s32.totalorder %s2218_s22, 1 }
   0x5   : > { %p210_p2 = scmp.lt.s32.totalorder %s2218_s22, 5 }
   0x6   : > { %s2769_s23 = smov (%p26_p0, %s25_s23), 0  ;;  %s2771_s24 = smov (!%p26_p0, %s28_s24), %s2214_s21 }
   0x7   : > { %p211_p3 = pnand %p1690_p1, %p210_p2  ;;  %p30_p4 = scmp.ge.s32.totalorder %s2771_s24, 2 }
   0x8   : > { %v1976_v0 = vld [vmem:[%s2759_s1 + $0x4] ss:$8 sps:$4 sm:$0xff] (!%p211_p3)   ;;  %p258_p5 = scmp.lt.s32.totalorder (!%p211_p3), %s2206_s19, 1  ;;  %v2220_v2 = vmov (!%p211_p3), 0   ;;  %v1980_v3 = vld [vmem:[%s2759_s1] ss:$8 sps:$4 sm:$0xff] (!%p211_p3)  }
   0x9   : > { %s2773_s24 = smov (%p30_p4, %s2771_s24), 0  ;;  %214 = sbr.rel (%p211_p3) target bundleno = 390 (0x186), region = 32 }
   0xa   : > { %v1978_v1 = vld [vmem:[%s2759_s1 + $0x104] ss:$8 sps:$4 sm:$0xff] (!%p211_p3)   ;;  %650 = vmatprep.mubr.bf16.mxu1 (!%p211_p3), %v2220_v2  ;;  %577 = vmatprep.subr.bf16.mxu0 (!%p211_p3), %v1976_v0  ;;  %v1981_v4 = vld [vmem:[%s2759_s1 + $0x100] ss:$8 sps:$4 sm:$0xff] (!%p211_p3)   ;;  %v1982_v5 = vld [vmem:[%s2759_s1 + $0x14] ss:$8 sps:$4 sm:$0xff] (!%p211_p3)  }
   0xb   : > { %618 = vmatprep.subr.bf16.mxu1 (!%p211_p3), %v1978_v1  ;;  %s1699_s10 = sshll.u32 (!%p211_p3), %s2202_s18, 3  ;;  %578 = vmatpush1.bf16.msra.mxu0 (!%p211_p3), %v1980_v3  ;;  %v1984_v6 = vld [vmem:[%s2759_s1 + $0x114] ss:$8 sps:$4 sm:$0xff] (!%p211_p3)   ;;  %v1986_v7 = vld [vmem:[%s2759_s1 + $0x10] ss:$8 sps:$4 sm:$0xff] (!%p211_p3)   ;;  %vm573_vm0 = vcmask (!%p211_p3), 785408  }
   0xc   : > { %619 = vmatpush1.bf16.msra.mxu1 (!%p211_p3), %v1981_v4  ;;  %579 = vmatprep.subr.bf16.mxu0 (!%p211_p3), %v1982_v5  ;;  %v1987_v8 = vld [vmem:[%s2759_s1 + $0x110] ss:$8 sps:$4 sm:$0xff] (!%p211_p3)   ;;  %v1988_v9 = vld [vmem:[%s2759_s1 + $0x24] ss:$8 sps:$4 sm:$0xff] (!%p211_p3)   ;;  %s290_s27 = sshra.s32 (!%p211_p3), %s1699_s10, 3  ;;  %p265_p6 = scmp.lt.s32.totalorder (!%p211_p3), %s2202_s18, 1 }
   0xd   : > { %620 = vmatprep.subr.bf16.mxu1 (!%p211_p3), %v1984_v6  ;;  %v1990_v10 = vld [vmem:[%s2759_s1 + $0x124] ss:$8 sps:$4 sm:$0xff] (!%p211_p3)   ;;  %v1992_v11 = vld [vmem:[%s2759_s1 + $0x20] ss:$8 sps:$4 sm:$0xff] (!%p211_p3)   ;;  %v1994_v13 = vld [vmem:[%s2759_s1 + $0x34] ss:$8 sps:$4 sm:$0xff] (!%p211_p3)  }
   0xe   : > { %v1993_v12 = vld [vmem:[%s2759_s1 + $0x120] ss:$8 sps:$4 sm:$0xff] (!%p211_p3)   ;;  %v1996_v14 = vld [vmem:[%s2759_s1 + $0x134] ss:$8 sps:$4 sm:$0xff] (!%p211_p3)   ;;  %s1932_s13 = smul.u32 (!%p211_p3), 12, %s290_s27 }
   0xf   : > { %580 = vmatpush1.bf16.msra.mxu0 (!%p211_p3), %v1986_v7  ;;  %v1998_v15 = vld [vmem:[%s2759_s1 + $0x30] ss:$8 sps:$4 sm:$0xff] (!%p211_p3)   ;;  %v2000_v17 = vld [vmem:[%s2759_s1 + $0x44] ss:$8 sps:$4 sm:$0xff] (!%p211_p3)   ;;  %v2004_v19 = vld [vmem:[%s2759_s1 + $0x40] ss:$8 sps:$4 sm:$0xff] (!%p211_p3)  }
  0x10   : > { %s2775_s19 = smov (!%p258_p5, %s2206_s19), 1  ;;  %621 = vmatpush1.bf16.msra.mxu1 %v1987_v8  ;;  %581 = vmatprep.subr.bf16.mxu0 %v1988_v9  ;;  %v1999_v16 = vld [vmem:[%s2759_s1 + $0x130] ss:$8 sps:$4 sm:$0xff]   ;;  %v2002_v18 = vld [vmem:[%s2759_s1 + $0x144] ss:$8 sps:$4 sm:$0xff]   ;;  %s2777_s18 = smov (!%p265_p6, %s2202_s18), 1 }
  0x11   : > { %s1933_s26 = smul.u32 36, %s2775_s19  ;;  %622 = vmatprep.subr.bf16.mxu1 %v1990_v10  ;;  %v2005_v20 = vld [vmem:[%s2759_s1 + $0x140] ss:$8 sps:$4 sm:$0xff]   ;;  %v2006_v21 = vld [vmem:[%s2759_s1 + $0x54] ss:$8 sps:$4 sm:$0xff]   ;;  %s1692_s6 = sshll.u32 %s2777_s18, 1 }
  0x12   : > { %v2008_v22 = vld [vmem:[%s2759_s1 + $0x154] ss:$8 sps:$4 sm:$0xff]   ;;  %v2010_v26 = vld [vmem:[%s2759_s1 + $0x50] ss:$8 sps:$4 sm:$0xff]   ;;  %v2012_v28 = vld [vmem:[%s2759_s1 + $0x64] ss:$8 sps:$4 sm:$0xff]  }
  0x13   : > { %s262_s25 = scalar_lea.vmem %s2758_s0, %s1933_s26  ;;  %582 = vmatpush1.bf16.msra.mxu0 %v1992_v11  ;;  %v2011_v27 = vld [vmem:[%s2759_s1 + $0x150] ss:$8 sps:$4 sm:$0xff]   ;;  %v2018_v29 = vld [vmem:[%s2759_s1 + $0x164] ss:$8 sps:$4 sm:$0xff]   ;;  %v2016_v31 = vld [vmem:[%s2759_s1 + $0x160] ss:$8 sps:$4 sm:$0xff]  }
  0x14   : > { %623 = vmatpush1.bf16.msra.mxu1 %v1993_v12  ;;  %583 = vmatprep.subr.bf16.mxu0 %v1994_v13  ;;  %s2346_s8 = scalar_lea.vmem %s262_s25, %s1932_s13  ;;  %v2019_v32 = vld [vmem:[%s2759_s1 + $0x60] ss:$8 sps:$4 sm:$0xff]   ;;  %v2020_v33 = vld [vmem:[%s2759_s1 + $0x74] ss:$8 sps:$4 sm:$0xff]   ;;  %v2022_v35 = vld [vmem:[%s2759_s1 + $0x170] ss:$8 sps:$4 sm:$0xff]  }
  0x15   : > { %624 = vmatprep.subr.bf16.mxu1 %v1996_v14  ;;  %v296_v23 = vld [vmem:[%s2346_s8 + $0x8] sm:$0xf]  ;;  %v298_v24 = vld [vmem:[%s2346_s8 + $0x14] sm:$0x7]  ;;  %v2025_v36 = vld [vmem:[%s2759_s1 + $0x70] ss:$8 sps:$4 sm:$0xff]  }
  0x16   : > { %v2362_v25 = vcombine.low %v296_v23, %v298_v24  ;;  %v1703_v30 = vcombine.low %v296_v23, %v296_v23  ;;  %v2024_v34 = vld [vmem:[%s2759_s1 + $0x174] ss:$8 sps:$4 sm:$0xff]   ;;  %v2026_v37 = vld [vmem:[%s2759_s1 + $0x84] ss:$8 sps:$4 sm:$0xff]   ;;  %v2028_v39 = vld [vmem:[%s2759_s1 + $0x180] ss:$8 sps:$4 sm:$0xff]  }
  0x17   : > { %584 = vmatpush1.bf16.msra.mxu0 %v1998_v15  ;;  %v2030_v38 = vld [vmem:[%s2759_s1 + $0x184] ss:$8 sps:$4 sm:$0xff]   ;;  %v2031_v40 = vld [vmem:[%s2759_s1 + $0x80] ss:$8 sps:$4 sm:$0xff]   ;;  %v2032_v41 = vld [vmem:[%s2759_s1 + $0x94] ss:$8 sps:$4 sm:$0xff]  }
  0x18   : > { %625 = vmatpush1.bf16.msra.mxu1 %v1999_v16  ;;  %585 = vmatprep.subr.bf16.mxu0 %v2000_v17  ;;  %v2036_v42 = vld [vmem:[%s2759_s1 + $0x194] ss:$8 sps:$4 sm:$0xff]   ;;  %v2034_v43 = vld [vmem:[%s2759_s1 + $0x190] ss:$8 sps:$4 sm:$0xff]   ;;  %v2038_v45 = vld [vmem:[%s2759_s1 + $0xa4] ss:$8 sps:$4 sm:$0xff]  }
  0x19   : > { %626 = vmatprep.subr.bf16.mxu1 %v2002_v18  ;;  %v2037_v44 = vld [vmem:[%s2759_s1 + $0x90] ss:$8 sps:$4 sm:$0xff]   ;;  %v2042_v46 = vld [vmem:[%s2759_s1 + $0x1a4] ss:$8 sps:$4 sm:$0xff]   ;;  %v2040_v47 = vld [vmem:[%s2759_s1 + $0x1a0] ss:$8 sps:$4 sm:$0xff]  }
  0x1a   : > { %v2043_v48 = vld [vmem:[%s2759_s1 + $0xa0] ss:$8 sps:$4 sm:$0xff]   ;;  %v2044_v49 = vld [vmem:[%s2759_s1 + $0xb4] ss:$8 sps:$4 sm:$0xff]   ;;  %v2046_v51 = vld [vmem:[%s2759_s1 + $0x1b0] ss:$8 sps:$4 sm:$0xff]  }
  0x1b   : > { %586 = vmatpush1.bf16.msra.mxu0 %v2004_v19  ;;  %v2048_v50 = vld [vmem:[%s2759_s1 + $0x1b4] ss:$8 sps:$4 sm:$0xff]   ;;  %v2049_v52 = vld [vmem:[%s2759_s1 + $0xb0] ss:$8 sps:$4 sm:$0xff]   ;;  %v2444_v53 = vld [vmem:[%s2346_s8] sm:$0xff]  ;;  %s1693_s27 = sshll.u32 %s2775_s19, 2 }
  0x1c   : > { %627 = vmatpush1.bf16.msra.mxu1 %v2005_v20  ;;  %587 = vmatprep.subr.bf16.mxu0 %v2006_v21  ;;  %v2447_v54 = vld [vmem:[%s2346_s8 + $0xc] sm:$0x77]  ;;  %v1702_v56 = vcombine.high %v2444_v53, %v2444_v53  ;;  %v2052_v60 = vld [vmem:[%s2759_s1 + $0x1c0] ss:$8 sps:$4 sm:$0xff]   ;;  %v2056_v63 = vld [vmem:[%s2759_s1 + $0xd4] ss:$8 sps:$4 sm:$0xff]   ;;  %v1701_v17 = vcombine.low %v2444_v53, %v2444_v53  ;;  %s2728_s26 = sadd.s32 %s1693_s27, %s1692_s6 }
  0x1d   : > { %628 = vmatprep.subr.bf16.mxu1 %v2008_v22  ;;  %v2050_v55 = vld [vmem:[%s2759_s1 + $0xc4] ss:$8 sps:$4 sm:$0xff]   ;;  %v1794_v57 = vcombine.high %v2444_v53, %v2447_v54  ;;  %v2055_v61 = vld [vmem:[%s2759_s1 + $0xc0] ss:$8 sps:$4 sm:$0xff]   ;;  %v2060_v1 = vld [vmem:[%s2759_s1 + $0x1d4] ss:$8 sps:$4 sm:$0xff]   ;;  %s279_s15 = scalar_lea.vmem %s2762_s4, %s2728_s26  ;;  %s287_s17 = scalar_lea.vmem %s2763_s5, %s2728_s26 }
  0x1e   : > { %v2054_v58 = vld [vmem:[%s2759_s1 + $0x1c4] ss:$8 sps:$4 sm:$0xff]   ;;  %609 = vmatprep.mubr.bf16.mxu0 %v1702_v56  ;;  %v2058_v4 = vld [vmem:[%s2759_s1 + $0x1d0] ss:$8 sps:$4 sm:$0xff]   ;;  %v2064_v9 = vld [vmem:[%s2759_s1 + $0x1e0] ss:$8 sps:$4 sm:$0xff]  }
  0x1f   : > { %588 = vmatpush1.bf16.msra.mxu0 %v2010_v26  ;;  %v723_v59 = vshrl.u32 %v1794_v57, 16  ;;  %v726_v62 = vshll.u32 %v1794_v57, 16  ;;  %v2061_v5 = vld [vmem:[%s2759_s1 + $0xd0] ss:$8 sps:$4 sm:$0xff]   ;;  %v2062_v7 = vld [vmem:[%s2759_s1 + $0xe4] ss:$8 sps:$4 sm:$0xff]  }
  0x20   : > { %629 = vmatpush1.bf16.msra.mxu1 %v2011_v27  ;;  %589 = vmatprep.subr.bf16.mxu0 %v2012_v28  ;;  %v2066_v8 = vld [vmem:[%s2759_s1 + $0x1e4] ss:$8 sps:$4 sm:$0xff]   ;;  %v2067_v10 = vld [vmem:[%s2759_s1 + $0xe0] ss:$8 sps:$4 sm:$0xff]   ;;  %v2068_v11 = vld [vmem:[%s2759_s1 + $0xf4] ss:$8 sps:$4 sm:$0xff]  }
  0x21   : > { %963 = vmatprep.subr.bf16.mxu1 %v2018_v29  ;;  %v725_v0 = vrot.slane %v723_v59, 1  ;;  %v728_v3 = vrot.slane %v726_v62, 2  ;;  %v2072_v12 = vld [vmem:[%s2759_s1 + $0x1f4] ss:$8 sps:$4 sm:$0xff]   ;;  %v2070_v13 = vld [vmem:[%s2759_s1 + $0x1f0] ss:$8 sps:$4 sm:$0xff]  }
  0x22   : > { %v2073_v14 = vld [vmem:[%s2759_s1 + $0xf0] ss:$8 sps:$4 sm:$0xff]   ;;  %v2080_v15 = vld [vmem:[%s2759_s1 + $0x204] ss:$8 sps:$4 sm:$0xff]   ;;  %v2078_v18 = vld [vmem:[%s2759_s1 + $0x200] ss:$8 sps:$4 sm:$0xff]  }
  0x23   : > { %1748 = vmatmul.mubr.msk.bf16.vlgmr.msra.gmra.mrb[0].mxu1 %vm573_vm0, %v1703_v30  ;;  %590 = vmatpush1.bf16.msra.mxu0 %v2019_v32  ;;  %v729_v6 = vor.u32 %v728_v3, %v725_v0  ;;  %v2086_v16 = vld [vmem:[%s2759_s1 + $0x2c4] ss:$8 sps:$4 sm:$0xff]   ;;  %v2083_v19 = vld [vmem:[%s2759_s1 + $0x214] ss:$8 sps:$4 sm:$0xff]   ;;  %v2084_v20 = vld [vmem:[%s2759_s1 + $0x2c0] ss:$8 sps:$4 sm:$0xff]   ;;  %v2547_v32 = vcombine.low %v2444_v53, %v2447_v54 }
  0x24   : > { %964 = vmatpush1.bf16.msra.mxu1 %v2016_v31  ;;  %591 = vmatprep.subr.bf16.mxu0 %v2020_v33  ;;  %v2092_v21 = vld [vmem:[%s2759_s1 + $0x2d4] ss:$8 sps:$4 sm:$0xff]   ;;  %v1097_v22 = vrot.slane %v1794_v57, 3  ;;  %v2081_v23 = vld [vmem:[%s2759_s1 + $0x210] ss:$8 sps:$4 sm:$0xff]   ;;  %v731_v3 = vshrl.u32 %v2362_v25, 16 }
  0x25   : > { %965 = vmatprep.subr.bf16.mxu1 %v2024_v34  ;;  %995 = vmatprep.mubr.bf16.mxu1 %v729_v6  ;;  %v2089_v24 = vld [vmem:[%s2759_s1 + $0x224] ss:$8 sps:$4 sm:$0xff]   ;;  %v2090_v26 = vld [vmem:[%s2759_s1 + $0x2d0] ss:$8 sps:$4 sm:$0xff]   ;;  %v2087_v28 = vld [vmem:[%s2759_s1 + $0x220] ss:$8 sps:$4 sm:$0xff]  }
  0x26   : > { %v2098_v27 = vld [vmem:[%s2759_s1 + $0x2e4] ss:$8 sps:$4 sm:$0xff]   ;;  %v2095_v29 = vld [vmem:[%s2759_s1 + $0x234] ss:$8 sps:$4 sm:$0xff]   ;;  %v2096_v30 = vld [vmem:[%s2759_s1 + $0x2e0] ss:$8 sps:$4 sm:$0xff]  }
  0x27   : > { %592 = vmatpush1.bf16.msra.mxu0 %v2025_v36  ;;  %v2104_v31 = vld [vmem:[%s2759_s1 + $0x2f4] ss:$8 sps:$4 sm:$0xff]   ;;  %v2093_v33 = vld [vmem:[%s2759_s1 + $0x230] ss:$8 sps:$4 sm:$0xff]   ;;  %v2101_v34 = vld [vmem:[%s2759_s1 + $0x244] ss:$8 sps:$4 sm:$0xff]  }
  0x28   : > { %966 = vmatpush1.bf16.msra.mxu1 %v2022_v35  ;;  %593 = vmatprep.subr.bf16.mxu0 %v2026_v37  ;;  %v2102_v35 = vld [vmem:[%s2759_s1 + $0x2f0] ss:$8 sps:$4 sm:$0xff]   ;;  %v2110_v36 = vld [vmem:[%s2759_s1 + $0x304] ss:$8 sps:$4 sm:$0xff]   ;;  %v715_v37 = vshrl.u32 %v2547_v32, 16  ;;  %s1694_s11 = sshll.u32 %s2728_s26, 3 }
  0x29   : > { %967 = vmatprep.subr.bf16.mxu1 %v2030_v38  ;;  %v2099_v38 = vld [vmem:[%s2759_s1 + $0x240] ss:$8 sps:$4 sm:$0xff]   ;;  %v2128_v53 = vld [vmem:[%s2759_s1 + $0x334] ss:$8 sps:$4 sm:$0xff]   ;;  %v2117_v54 = vld [vmem:[%s2759_s1 + $0x270] ss:$8 sps:$4 sm:$0xff]   ;;  %s271_s10 = scalar_lea.vmem %s2761_s3, %s1694_s11 }
  0x2a   : > { %v2125_v56 = vld [vmem:[%s2759_s1 + $0x284] ss:$8 sps:$4 sm:$0xff]   ;;  %v2132_v59 = vld [vmem:[%s2759_s1 + $0x340] ss:$8 sps:$4 sm:$0xff]   ;;  %v2129_v62 = vld [vmem:[%s2759_s1 + $0x290] ss:$8 sps:$4 sm:$0xff]  }
  0x2b   : > { %594 = vmatpush1.bf16.msra.mxu0 %v2031_v40  ;;  %v718_v40 = vshll.u32 %v2547_v32, 16  ;;  %v2134_v57 = vld [vmem:[%s2759_s1 + $0x344] ss:$8 sps:$4 sm:$0xff]   ;;  %v2144_v6 = vld [vmem:[%s2759_s1 + $0x360] ss:$8 sps:$4 sm:$0xff]  }
  0x2c   : > { %968 = vmatpush1.bf16.msra.mxu1 %v2028_v39  ;;  %595 = vmatprep.subr.bf16.mxu0 %v2032_v41  ;;  %v2107_v39 = vld [vmem:[%s2759_s1 + $0x254] ss:$8 sps:$4 sm:$0xff]   ;;  %v2108_v41 = vld [vmem:[%s2759_s1 + $0x300] ss:$8 sps:$4 sm:$0xff]   ;;  %v2137_v0 = vld [vmem:[%s2759_s1 + $0x2a4] ss:$8 sps:$4 sm:$0xff]  }
  0x2d   : > { %969 = vmatprep.subr.bf16.mxu1 %v2036_v42  ;;  %v2116_v42 = vld [vmem:[%s2759_s1 + $0x314] ss:$8 sps:$4 sm:$0xff]  }
  0x2f   : > { %596 = vmatpush1.bf16.msra.mxu0 %v2037_v44  ;;  %v2105_v44 = vld [vmem:[%s2759_s1 + $0x250] ss:$8 sps:$4 sm:$0xff]  }
  0x30   : > { %970 = vmatpush1.bf16.msra.mxu1 %v2034_v43  ;;  %597 = vmatprep.subr.bf16.mxu0 %v2038_v45  ;;  %v717_v43 = vrot.slane %v715_v37, 1  ;;  %v720_v45 = vrot.slane %v718_v40, 2 }
  0x31   : > { %971 = vmatprep.subr.bf16.mxu1 %v2042_v46  ;;  %v2113_v46 = vld [vmem:[%s2759_s1 + $0x264] ss:$8 sps:$4 sm:$0xff]  }
  0x33   : > { %598 = vmatpush1.bf16.msra.mxu0 %v2043_v48  ;;  %v2122_v48 = vld [vmem:[%s2759_s1 + $0x324] ss:$8 sps:$4 sm:$0xff]  }
  0x34   : > { %972 = vmatpush1.bf16.msra.mxu1 %v2040_v47  ;;  %599 = vmatprep.subr.bf16.mxu0 %v2044_v49  ;;  %v2114_v47 = vld [vmem:[%s2759_s1 + $0x310] ss:$8 sps:$4 sm:$0xff]   ;;  %v721_v49 = vor.u32 %v720_v45, %v717_v43 }
  0x35   : > { %973 = vmatprep.subr.bf16.mxu1 %v2048_v50  ;;  %v2111_v50 = vld [vmem:[%s2759_s1 + $0x260] ss:$8 sps:$4 sm:$0xff]  }
  0x37   : > { %600 = vmatpush1.bf16.msra.mxu0 %v2049_v52  ;;  %v2119_v52 = vld [vmem:[%s2759_s1 + $0x274] ss:$8 sps:$4 sm:$0xff]  }
  0x38   : > { %974 = vmatpush1.bf16.msra.mxu1 %v2046_v51  ;;  %601 = vmatprep.subr.bf16.mxu0 %v2050_v55  ;;  %v2120_v51 = vld [vmem:[%s2759_s1 + $0x320] ss:$8 sps:$4 sm:$0xff]   ;;  %v2126_v55 = vld [vmem:[%s2759_s1 + $0x330] ss:$8 sps:$4 sm:$0xff]  }
  0x39   : > { %975 = vmatprep.subr.bf16.mxu1 %v2054_v58  ;;  %v2123_v58 = vld [vmem:[%s2759_s1 + $0x280] ss:$8 sps:$4 sm:$0xff]  }
  0x3b   : > { %602 = vmatpush1.bf16.msra.mxu0 %v2055_v61  ;;  %v2140_v61 = vld [vmem:[%s2759_s1 + $0x354] ss:$8 sps:$4 sm:$0xff]  }
  0x3c   : > { %976 = vmatpush1.bf16.msra.mxu1 %v2052_v60  ;;  %603 = vmatprep.subr.bf16.mxu0 %v2056_v63  ;;  %v2131_v60 = vld [vmem:[%s2759_s1 + $0x294] ss:$8 sps:$4 sm:$0xff]   ;;  %v2138_v63 = vld [vmem:[%s2759_s1 + $0x350] ss:$8 sps:$4 sm:$0xff]  }
  0x3d   : > { %977 = vmatprep.subr.bf16.mxu1 %v2060_v1  ;;  %v2146_v1 = vld [vmem:[%s2759_s1 + $0x364] ss:$8 sps:$4 sm:$0xff]  }
  0x3f   : > { %604 = vmatpush1.bf16.msra.mxu0 %v2061_v5  ;;  %v2135_v5 = vld [vmem:[%s2759_s1 + $0x2a0] ss:$8 sps:$4 sm:$0xff]  }
  0x40   : > { %978 = vmatpush1.bf16.msra.mxu1 %v2058_v4  ;;  %605 = vmatprep.subr.bf16.mxu0 %v2062_v7  ;;  %v734_v4 = vshll.u32 %v2362_v25, 16  ;;  %v2143_v7 = vld [vmem:[%s2759_s1 + $0x2b4] ss:$8 sps:$4 sm:$0xff]  }
  0x41   : > { %979 = vmatprep.subr.bf16.mxu1 %v2066_v8  ;;  %v2152_v8 = vld [vmem:[%s2759_s1 + $0x374] ss:$8 sps:$4 sm:$0xff]  }
  0x43   : > { %606 = vmatpush1.bf16.msra.mxu0 %v2067_v10  ;;  %v736_v10 = vrot.slane %v734_v4, 2 }
  0x44   : > { %980 = vmatpush1.bf16.msra.mxu1 %v2064_v9  ;;  %607 = vmatprep.subr.bf16.mxu0 %v2068_v11  ;;  %v733_v9 = vrot.slane %v731_v3, 1  ;;  %v2141_v11 = vld [vmem:[%s2759_s1 + $0x2b0] ss:$8 sps:$4 sm:$0xff]  }
  0x45   : > { %981 = vmatprep.subr.bf16.mxu1 %v2072_v12  ;;  %v2150_v12 = vld [vmem:[%s2759_s1 + $0x370] ss:$8 sps:$4 sm:$0xff]  }
  0x47   : > { %608 = vmatpush1.bf16.msra.mxu0 %v2073_v14  ;;  %v2158_v14 = vld [vmem:[%s2759_s1 + $0x384] ss:$8 sps:$4 sm:$0xff]  }
  0x48   : > { %982 = vmatpush1.bf16.msra.mxu1 %v2070_v13  ;;  %1324 = vmatprep.subr.bf16.mxu0 %v2086_v16  ;;  %v2149_v13 = vld [vmem:[%s2759_s1 + $0x3c4] ss:$8 sps:$4 sm:$0xff]   ;;  %v2147_v16 = vld [vmem:[%s2759_s1 + $0x3c0] ss:$8 sps:$4 sm:$0xff]  }
  0x49   : > { %983 = vmatprep.subr.bf16.mxu1 %v2080_v15  ;;  %v737_v15 = vor.u32 %v736_v10, %v733_v9 }
  0x4a   : > { %610 = vmatmul.mubr.bf16.vlgmr.msra.gmra.mrb[0].mxu0 %v1701_v17  ;;  %v2156_v17 = vld [vmem:[%s2759_s1 + $0x380] ss:$8 sps:$4 sm:$0xff]  }
  0x4b   : > { %1325 = vmatpush1.bf16.msra.mxu0 %v2084_v20  ;;  %1356 = vmatprep.mubr.bf16.mxu0 %v1097_v22  ;;  %v2153_v20 = vld [vmem:[%s2759_s1 + $0x3d0] ss:$8 sps:$4 sm:$0xff]   ;;  %v2161_v22 = vld [vmem:[%s2759_s1 + $0x3e4] ss:$8 sps:$4 sm:$0xff]  }
  0x4c   : > { %984 = vmatpush1.bf16.msra.mxu1 %v2078_v18  ;;  %1326 = vmatprep.subr.bf16.mxu0 %v2092_v21  ;;  %v2155_v18 = vld [vmem:[%s2759_s1 + $0x3d4] ss:$8 sps:$4 sm:$0xff]   ;;  %v2162_v21 = vld [vmem:[%s2759_s1 + $0x390] ss:$8 sps:$4 sm:$0xff]  }
  0x4d   : > { %985 = vmatprep.subr.bf16.mxu1 %v2083_v19  ;;  %v2164_v19 = vld [vmem:[%s2759_s1 + $0x394] ss:$8 sps:$4 sm:$0xff]  }
  0x4f   : > { %1327 = vmatpush1.bf16.msra.mxu0 %v2090_v26  ;;  %v2168_v26 = vld [vmem:[%s2759_s1 + $0x3a0] ss:$8 sps:$4 sm:$0xff]  }
  0x50   : > { %986 = vmatpush1.bf16.msra.mxu1 %v2081_v23  ;;  %1328 = vmatprep.subr.bf16.mxu0 %v2098_v27  ;;  %v2170_v23 = vld [vmem:[%s2759_s1 + $0x3a4] ss:$8 sps:$4 sm:$0xff]   ;;  %v2167_v27 = vld [vmem:[%s2759_s1 + $0x3f4] ss:$8 sps:$4 sm:$0xff]  }
  0x51   : > { %987 = vmatprep.subr.bf16.mxu1 %v2089_v24  ;;  %v2159_v24 = vld [vmem:[%s2759_s1 + $0x3e0] ss:$8 sps:$4 sm:$0xff]  }
  0x53   : > { %1329 = vmatpush1.bf16.msra.mxu0 %v2096_v30  ;;  %v2173_v30 = vld [vmem:[%s2759_s1 + $0x404] ss:$8 sps:$4 sm:$0xff]  }
  0x54   : > { %988 = vmatpush1.bf16.msra.mxu1 %v2087_v28  ;;  %1330 = vmatprep.subr.bf16.mxu0 %v2104_v31  ;;  %v2165_v28 = vld [vmem:[%s2759_s1 + $0x3f0] ss:$8 sps:$4 sm:$0xff]   ;;  %v1096_v31 = vrot.slane %v2547_v32, 3  ;;  %v1098_v32 = vrot.slane %v2362_v25, 3 }
  0x55   : > { %989 = vmatprep.subr.bf16.mxu1 %v2095_v29  ;;  %v2174_v29 = vld [vmem:[%s2759_s1 + $0x3b0] ss:$8 sps:$4 sm:$0xff]  }
  0x57   : > { %1331 = vmatpush1.bf16.msra.mxu0 %v2102_v35  ;;  %v2177_v35 = vld [vmem:[%s2759_s1 + $0x410] ss:$8 sps:$4 sm:$0xff]  }
  0x58   : > { %990 = vmatpush1.bf16.msra.mxu1 %v2093_v33  ;;  %1332 = vmatprep.subr.bf16.mxu0 %v2110_v36  ;;  %v2171_v33 = vld [vmem:[%s2759_s1 + $0x400] ss:$8 sps:$4 sm:$0xff]  }
  0x59   : > { %991 = vmatprep.subr.bf16.mxu1 %v2101_v34  ;;  %v2179_v34 = vld [vmem:[%s2759_s1 + $0x414] ss:$8 sps:$4 sm:$0xff]  }
  0x5b   : > { %1333 = vmatpush1.bf16.msra.mxu0 %v2108_v41 }
  0x5c   : > { %992 = vmatpush1.bf16.msra.mxu1 %v2099_v38  ;;  %1334 = vmatprep.subr.bf16.mxu0 %v2116_v42 }
  0x5d   : > { %993 = vmatprep.subr.bf16.mxu1 %v2107_v39 }
  0x5f   : > { %1335 = vmatpush1.bf16.msra.mxu0 %v2114_v47 }
  0x60   : > { %994 = vmatpush1.bf16.msra.mxu1 %v2105_v44  ;;  %1336 = vmatprep.subr.bf16.mxu0 %v2122_v48 }
  0x61   : > { %1004 = vmatprep.subr.bf16.mxu1 %v2113_v46 }
  0x63   : > { %996 = vmatmul.mubr.bf16.vlgmr.msra.gmra.mrb[4].mxu1 %v721_v49  ;;  %1337 = vmatpush1.bf16.msra.mxu0 %v2120_v51 }
  0x64   : > { %1005 = vmatpush1.bf16.msra.mxu1 %v2111_v50  ;;  %1338 = vmatprep.subr.bf16.mxu0 %v2128_v53 }
  0x65   : > { %1006 = vmatprep.subr.bf16.mxu1 %v2119_v52  ;;  %1036 = vmatprep.mubr.bf16.mxu1 %v2220_v2 }
  0x67   : > { %1339 = vmatpush1.bf16.msra.mxu0 %v2126_v55 }
  0x68   : > { %1007 = vmatpush1.bf16.msra.mxu1 %v2117_v54  ;;  %1340 = vmatprep.subr.bf16.mxu0 %v2134_v57  ;;  %v1416_v57 = vlaneseq }
  0x69   : > { %1008 = vmatprep.subr.bf16.mxu1 %v2125_v56 }
  0x6a   : > { %vm1468_vm3 = vcmp.lt.s32.totalorder %v1416_v57, 256 }
  0x6b   : > { %1341 = vmatpush1.bf16.msra.mxu0 %v2132_v59 }
  0x6c   : > { %1009 = vmatpush1.bf16.msra.mxu1 %v2123_v58  ;;  %1342 = vmatprep.subr.bf16.mxu0 %v2140_v61 }
  0x6d   : > { %1010 = vmatprep.subr.bf16.mxu1 %v2131_v60  ;;  %v1417_v60 = vshrl.u32 %v1416_v57, 7 }
  0x6f   : > { %1343 = vmatpush1.bf16.msra.mxu0 %v2138_v63  ;;  %v1418_v63 = vsub.s32 0, %v1417_v60 }
  0x70   : > { %1011 = vmatpush1.bf16.msra.mxu1 %v2129_v62  ;;  %1344 = vmatprep.subr.bf16.mxu0 %v2146_v1  ;;  %v1422_v1 = vsub.s32 1, %v1417_v60 }
  0x71   : > { %1012 = vmatprep.subr.bf16.mxu1 %v2137_v0  ;;  %v1414_v0 = vld [vmem:[%s2760_s2] sm:$0x3] }
  0x73   : > { %1345 = vmatpush1.bf16.msra.mxu0 %v2144_v6 }
  0x74   : > { %1013 = vmatpush1.bf16.msra.mxu1 %v2135_v5  ;;  %1346 = vmatprep.subr.bf16.mxu0 %v2152_v8  ;;  %v1419_v5 = vrot.slane %v1414_v0, %v1418_v63  ;;  %v1423_v8 = vrot.slane %v1414_v0, %v1422_v1 }
  0x75   : > { %1014 = vmatprep.subr.bf16.mxu1 %v2143_v7 }
  0x77   : > { %1347 = vmatpush1.bf16.msra.mxu0 %v2150_v12 }
  0x78   : > { %1015 = vmatpush1.bf16.msra.mxu1 %v2141_v11  ;;  %1348 = vmatprep.subr.bf16.mxu0 %v2158_v14 }
  0x79   : > { %1365 = vmatprep.subr.bf16.mxu1 %v2149_v13 }
  0x7b   : > { %1840 = vmatmul.mubr.msk.bf16.vlgmr.msra.gmra.mrb[8].mxu1 %vm573_vm0, %v737_v15  ;;  %1349 = vmatpush1.bf16.msra.mxu0 %v2156_v17 }
  0x7c   : > { %1366 = vmatpush1.bf16.msra.mxu1 %v2147_v16  ;;  %1350 = vmatprep.subr.bf16.mxu0 %v2164_v19 }
  0x7d   : > { %1367 = vmatprep.subr.bf16.mxu1 %v2155_v18  ;;  %1397 = vmatprep.mubr.bf16.mxu1 %v2220_v2  ;;  %v2176_v2 = vld [vmem:[%s2759_s1 + $0x3b4] ss:$8 sps:$4 sm:$0xff]  }
  0x7f   : > { %1351 = vmatpush1.bf16.msra.mxu0 %v2162_v21 }
  0x80   : > { %1368 = vmatpush1.bf16.msra.mxu1 %v2153_v20  ;;  %1352 = vmatprep.subr.bf16.mxu0 %v2170_v23 }
  0x81   : > { %1369 = vmatprep.subr.bf16.mxu1 %v2161_v22 }
  0x83   : > { %1353 = vmatpush1.bf16.msra.mxu0 %v2168_v26  ;;  %v2221_v26 = vmov 1966171168  }
  0x84   : > { %1370 = vmatpush1.bf16.msra.mxu1 %v2159_v24  ;;  %1354 = vmatprep.subr.bf16.mxu0 %v2176_v2 }
  0x85   : > { %1371 = vmatprep.subr.bf16.mxu1 %v2167_v27  ;;  %v1452_v27 = vunpack.c.l.s4 %v2221_v26 }
  0x87   : > { %1355 = vmatpush1.bf16.msra.mxu0 %v2174_v29 }
  0x88   : > { %1372 = vmatpush1.bf16.msra.mxu1 %v2165_v28 }
  0x89   : > { %1373 = vmatprep.subr.bf16.mxu1 %v2173_v30 }
  0x8a   : > { %1357 = vmatmul.mubr.bf16.vlgmr.msra.gmra.mrb[4].mxu0 %v1096_v31 }
  0x8c   : > { %1374 = vmatpush1.bf16.msra.mxu1 %v2171_v33 }
  0x8d   : > { %1375 = vmatprep.subr.bf16.mxu1 %v2179_v34 }
  0x90   : > { %1376 = vmatpush1.bf16.msra.mxu1 %v2177_v35 }
  0x93   : > { %1929 = vmatmul.mubr.msk.bf16.vlgmr.msra.gmra.mrb[12].mxu1 %vm573_vm0, %v1098_v32  ;;  %v1453_v32 = vunpack.c.0.s8 %v1452_v27 }
  0xf6   : > { %v652_v36 = vpop.f32.mrb[0].mxu1 }
  0xf7   : > { %v654_v37 = vpop.f32.mrb[1].mxu1 }
  0xf8   : > { %v656_v38 = vpop.f32.mrb[2].mxu1 }
  0xf9   : > { %v657_v39 = vpop.f32.mrb[3].mxu1 }
 0x11d   : > { %v611_v40 = vpop.f32.mrb[0].mxu0 }
 0x11e   : > { %v653_v41 = vadd.f32 %v652_v36, %v611_v40  ;;  %v613_v42 = vpop.f32.mrb[1].mxu0 }
 0x11f   : > { %v655_v43 = vadd.f32 %v654_v37, %v613_v42  ;;  %v615_v44 = vpop.f32.mrb[2].mxu0 }
 0x120   : > { %v616_v45 = vpop.f32.mrb[3].mxu0  ;;  %v1456_v44 = vsub.s32 %v1453_v32, %v1417_v60 }
 0x136   : > { %v997_v46 = vpop.f32.mrb[4].mxu1 }
 0x137   : > { %v999_v47 = vpop.f32.mrb[5].mxu1 }
 0x138   : > { %v1001_v48 = vpop.f32.mrb[6].mxu1 }
 0x139   : > { %v1002_v49 = vpop.f32.mrb[7].mxu1 }
 0x14e   : > { %v1038_v25 = vpop.f32.mrb[8].mxu1 }
 0x14f   : > { %v1039_v50 = vadd.f32 %v1038_v25, %v997_v46  ;;  %v1040_v51 = vpop.f32.mrb[9].mxu1 }
 0x150   : > { %v1041_v52 = vadd.f32 %v1040_v51, %v999_v47  ;;  %v1042_v53 = vpop.f32.mrb[10].mxu1 }
 0x151   : > { %v1047_v54 = vadd.f32 %v1039_v50, %v653_v41  ;;  %v1043_v55 = vpop.f32.mrb[11].mxu1 }
 0x152   : > { %v1048_v56 = vadd.f32 %v1041_v52, %v655_v43 }
 0x15d   : > { %v1358_v58 = vpop.f32.mrb[4].mxu0 }
 0x15e   : > { %v1360_v59 = vpop.f32.mrb[5].mxu0 }
 0x15f   : > { %v1362_v61 = vpop.f32.mrb[6].mxu0 }
 0x160   : > { %v1363_v62 = vpop.f32.mrb[7].mxu0 }
 0x166   : > { %v1399_v3 = vpop.f32.mrb[12].mxu1 }
 0x167   : > { %v1400_v4 = vadd.f32 %v1399_v3, %v1358_v58  ;;  %v1401_v6 = vpop.f32.mrb[13].mxu1 }
 0x168   : > { %v1402_v7 = vadd.f32 %v1401_v6, %v1360_v59  ;;  %v1403_v9 = vpop.f32.mrb[14].mxu1 }
 0x169   : > { %v1408_v10 = vadd.f32 %v1400_v4, %v1047_v54  ;;  %v1404_v11 = vpop.f32.mrb[15].mxu1 }
 0x16a   : > { %v1409_v12 = vadd.f32 %v1402_v7, %v1048_v56 }
 0x16b   : > { %v1426_v13 = vadd.f32 %v1419_v5, %v1408_v10 }
 0x16c   : > { %v1427_v14 = vadd.f32 %v1423_v8, %v1409_v12 }
 0x16d   : > { %vm1428_vm1 = vcmp.gt.f32.partialorder %v1426_v13, 0.0  ;;  %v1430_v15 = vmul.f32 0.01, %v1426_v13 }
 0x16e   : > { %vm1429_vm2 = vcmp.gt.f32.partialorder %v1427_v14, 0.0  ;;  %v1431_v16 = vmul.f32 0.01, %v1427_v14 }
 0x16f   : > { %v1432_v17 = vsel %vm1428_vm1, %v1426_v13, %v1430_v15 }
 0x170   : > { %1434 = vst [vmem:[%s271_s10] sm:$0xff] %v1432_v17  ;;  %v1436_v18 = vrot.slane %v1432_v17, 4  ;;  %v1471_v19 = vmul.f32 %v1432_v17, %v1432_v17  ;;  %v1433_v20 = vsel %vm1429_vm2, %v1427_v14, %v1431_v16 }
 0x171   : > { %1435 = vst [vmem:[%s271_s10 + $0x8] sm:$0xff] %v1433_v20  ;;  %v1442_v21 = vrot.slane %v1433_v20, 4  ;;  %v1472_v22 = vmul.f32 %v1433_v20, %v1433_v20 }
 0x172   : > { %v1437_v23 = vadd.f32 %v1436_v18, %v1432_v17  ;;  %v1473_v24 = vrot.slane %v1471_v19, 4 }
 0x173   : > { %v1443_v2 = vadd.f32 %v1442_v21, %v1433_v20  ;;  %v1479_v28 = vrot.slane %v1472_v22, 4 }
 0x174   : > { %v1438_v29 = vrot.slane %v1437_v23, 2  ;;  %v1474_v30 = vadd.f32 %v1473_v24, %v1471_v19 }
 0x175   : > { %v1444_v31 = vrot.slane %v1443_v2, 2  ;;  %v1480_v33 = vadd.f32 %v1479_v28, %v1472_v22 }
 0x176   : > { %v1439_v34 = vadd.f32 %v1438_v29, %v1437_v23  ;;  %v1475_v35 = vrot.slane %v1474_v30, 2 }
 0x177   : > { %v1445_v36 = vadd.f32 %v1444_v31, %v1443_v2  ;;  %v1481_v37 = vrot.slane %v1480_v33, 2 }
 0x178   : > { %v1440_v38 = vrot.slane %v1439_v34, 1  ;;  %v1476_v39 = vadd.f32 %v1475_v35, %v1474_v30 }
 0x179   : > { %v1446_v40 = vrot.slane %v1445_v36, 1  ;;  %v1482_v41 = vadd.f32 %v1481_v37, %v1480_v33 }
 0x17a   : > { %v1441_v42 = vadd.f32 %v1440_v38, %v1439_v34  ;;  %v1477_v43 = vrot.slane %v1476_v39, 1 }
 0x17b   : > { %v1447_v45 = vadd.f32 %v1446_v40, %v1445_v36  ;;  %v1483_v46 = vrot.slane %v1482_v41, 1 }
 0x17c   : > { %v1478_v47 = vadd.f32 %v1477_v43, %v1476_v39 }
 0x17d   : > { %v1450_v48 = vcombine.low %v1441_v42, %v1447_v45  ;;  %v1484_v49 = vadd.f32 %v1483_v46, %v1482_v41 }
 0x17f   : > { %v1457_v25 = vrot.slane %v1450_v48, %v1456_v44  ;;  %v1487_v50 = vcombine.low %v1478_v47, %v1484_v49 }
 0x181   : > { %v1464_v51 = vrot.slane %v1457_v25, %v1456_v44  ;;  %v1494_v52 = vrot.slane %v1487_v50, %v1456_v44 }
 0x183   : > { %1470 = vst.msk [vmem:[%s279_s15] sm:$0x3] %vm1468_vm3, %v1464_v51  ;;  %v1501_v53 = vrot.slane %v1494_v52, %v1456_v44 }
 0x185   : > { %1503 = vst.msk [vmem:[%s287_s17] sm:$0x3] %vm1468_vm3, %v1501_v53 }
 0x186 PF: > { %s16_s22 = sadd.s32 1, %s2218_s22   ;;  %s2764_s18 = smov %s2210_s20 }
 0x187   : > { %p13_p7 = scmp.ge.s32.totalorder %s16_s22, 6   ;;  %s2765_s19 = smov %s2214_s21 }
 0x188   : > { %s2766_s20 = smov %s2769_s23  ;;  %s2767_s21 = smov %s2773_s24 }
 0x189   :  { %15 = sbr.rel (!%p13_p7) target bundleno = 3 (0x3), region = 89 }

// kernel: duck_conv2d_block.22
= control target key start
LH: loop header
LB: loop body
LE: loop exit
PB: predicated region body
PF: predicated region fallthrough
CT: control target
= control target key end

     0   :  { %s3658_s18 = smov 0   ;;  %s3660_s19 = smov 0   ;;  %s4485_s0 = inlined_call_operand.vmem [shape: bf16[2,22,352], index: 0, kind: input, shape index: {}]   ;;  %s4486_s1 = inlined_call_operand.vmem [shape: bf16[3,352,288], index: 1, kind: input, shape index: {}]   ;;  %s4487_s2 = inlined_call_operand.vmem [shape: f32[1,288], index: 2, kind: input, shape index: {}]   ;;  %s4488_s3 = inlined_call_operand.vmem [shape: f32[2,18,288], index: 3, kind: output, shape index: {0}]   ;;  %s4489_s4 = inlined_call_operand.vmem [shape: f32[2,1,1,288], index: 4, kind: output, shape index: {1}]   ;;  %s4490_s5 = inlined_call_operand.vmem [shape: f32[2,1,1,288], index: 5, kind: output, shape index: {2}]  }
   0x1   :  { %s3662_s20 = smov 0  }
   0x2 LB: > { %s28_s21 = sadd.s32 1, %s3620_s19  ;;  %p2735_p0 = scmp.ge.s32.totalorder %s3624_s20, 1  ;;  %s3624_s20 = sphi %s3662_s20, %s16_s20   ;;  %s3620_s19 = sphi %s3660_s19, %s4492_s19   ;;  %s3616_s18 = sphi %s3658_s18, %s4491_s18  }
   0x3   : > { %p30_p1 = scmp.ge.s32.totalorder %s28_s21, 2  ;;  %p210_p2 = scmp.lt.s32.totalorder %s3624_s20, 3 }
   0x5   : > { %s4494_s21 = smov (%p30_p1, %s28_s21), 0  ;;  %p211_p3 = pnand %p2735_p0, %p210_p2 }
   0x6   : > { %v3331_v0 = vld [vmem:[%s4486_s1 + $0x4] ss:$12 sps:$4 sm:$0xff] (!%p211_p3)   ;;  %v3626_v2 = vmov (!%p211_p3), 0   ;;  %v3335_v3 = vld [vmem:[%s4486_s1] ss:$12 sps:$4 sm:$0xff] (!%p211_p3)   ;;  %p259_p4 = scmp.lt.s32.totalorder (!%p211_p3), %s3616_s18, 1 }
   0x7   : > { %214 = sbr.rel (%p211_p3) target bundleno = 491 (0x1eb), region = 32  ;;  %v3333_v1 = vld [vmem:[%s4486_s1 + $0x184] ss:$12 sps:$4 sm:$0xff] (!%p211_p3)   ;;  %853 = vmatprep.mubr.bf16.mxu1 (!%p211_p3), %v3626_v2  ;;  %770 = vmatprep.subr.bf16.mxu0 (!%p211_p3), %v3331_v0  ;;  %v3336_v4 = vld [vmem:[%s4486_s1 + $0x180] ss:$12 sps:$4 sm:$0xff] (!%p211_p3)   ;;  %vm763_vm0 = vcmask (!%p211_p3), 785408  }
   0x8   : > { %821 = vmatprep.subr.bf16.mxu1 (!%p211_p3), %v3333_v1  ;;  %v3337_v5 = vld [vmem:[%s4486_s1 + $0x1c] ss:$12 sps:$4 sm:$0xff] (!%p211_p3)   ;;  %771 = vmatpush1.bf16.msra.mxu0 (!%p211_p3), %v3335_v3  ;;  %v3341_v7 = vld [vmem:[%s4486_s1 + $0x18] ss:$12 sps:$4 sm:$0xff] (!%p211_p3)   ;;  %v3343_v9 = vld [vmem:[%s4486_s1 + $0x34] ss:$12 sps:$4 sm:$0xff] (!%p211_p3)  }
   0x9   : > { %822 = vmatpush1.bf16.msra.mxu1 (!%p211_p3), %v3336_v4  ;;  %v3339_v6 = vld [vmem:[%s4486_s1 + $0x19c] ss:$12 sps:$4 sm:$0xff] (!%p211_p3)   ;;  %772 = vmatprep.subr.bf16.mxu0 (!%p211_p3), %v3337_v5  ;;  %v3342_v8 = vld [vmem:[%s4486_s1 + $0x198] ss:$12 sps:$4 sm:$0xff] (!%p211_p3)   ;;  %v3345_v10 = vld [vmem:[%s4486_s1 + $0x1b4] ss:$12 sps:$4 sm:$0xff] (!%p211_p3)  }
   0xa   : > { %823 = vmatprep.subr.bf16.mxu1 (!%p211_p3), %v3339_v6  ;;  %v3347_v11 = vld [vmem:[%s4486_s1 + $0x30] ss:$12 sps:$4 sm:$0xff] (!%p211_p3)   ;;  %v3349_v13 = vld [vmem:[%s4486_s1 + $0x4c] ss:$12 sps:$4 sm:$0xff] (!%p211_p3)   ;;  %v3353_v15 = vld [vmem:[%s4486_s1 + $0x48] ss:$12 sps:$4 sm:$0xff] (!%p211_p3)  }
   0xb   : > { %v3348_v12 = vld [vmem:[%s4486_s1 + $0x1b0] ss:$12 sps:$4 sm:$0xff] (!%p211_p3)   ;;  %v3351_v14 = vld [vmem:[%s4486_s1 + $0x1cc] ss:$12 sps:$4 sm:$0xff] (!%p211_p3)   ;;  %v3354_v16 = vld [vmem:[%s4486_s1 + $0x1c8] ss:$12 sps:$4 sm:$0xff] (!%p211_p3)  }
   0xc   : > { %773 = vmatpush1.bf16.msra.mxu0 (!%p211_p3), %v3341_v7  ;;  %v3355_v17 = vld [vmem:[%s4486_s1 + $0x64] ss:$12 sps:$4 sm:$0xff] (!%p211_p3)   ;;  %v3359_v19 = vld [vmem:[%s4486_s1 + $0x60] ss:$12 sps:$4 sm:$0xff] (!%p211_p3)   ;;  %v3361_v21 = vld [vmem:[%s4486_s1 + $0x7c] ss:$12 sps:$4 sm:$0xff] (!%p211_p3)  }
   0xd   : > { %824 = vmatpush1.bf16.msra.mxu1 (!%p211_p3), %v3342_v8  ;;  %774 = vmatprep.subr.bf16.mxu0 (!%p211_p3), %v3343_v9  ;;  %v3357_v18 = vld [vmem:[%s4486_s1 + $0x1e4] ss:$12 sps:$4 sm:$0xff] (!%p211_p3)   ;;  %v3360_v20 = vld [vmem:[%s4486_s1 + $0x1e0] ss:$12 sps:$4 sm:$0xff] (!%p211_p3)   ;;  %v3363_v22 = vld [vmem:[%s4486_s1 + $0x1fc] ss:$12 sps:$4 sm:$0xff] (!%p211_p3)  }
   0xe   : > { %s4496_s18 = smov (!%p259_p4, %s3616_s18), 1  ;;  %825 = vmatprep.subr.bf16.mxu1 %v3345_v10  ;;  %v3365_v23 = vld [vmem:[%s4486_s1 + $0x78] ss:$12 sps:$4 sm:$0xff]   ;;  %v3367_v25 = vld [vmem:[%s4486_s1 + $0x94] ss:$12 sps:$4 sm:$0xff]   ;;  %vm1068_vm1 = vcmask 1046528  }
   0xf   : > { %s3302_s10 = smul.u32 36, %s4496_s18  ;;  %v3366_v24 = vld [vmem:[%s4486_s1 + $0x1f8] ss:$12 sps:$4 sm:$0xff]   ;;  %v3370_v26 = vld [vmem:[%s4486_s1 + $0xc8] ss:$12 sps:$4 sm:$0xff]   ;;  %vm1754_vm2 = vcmask 1045504  }
  0x10   : > { %775 = vmatpush1.bf16.msra.mxu0 %v3347_v11  ;;  %v3371_v28 = vld [vmem:[%s4486_s1 + $0x90] ss:$12 sps:$4 sm:$0xff]   ;;  %v3372_v29 = vld [vmem:[%s4486_s1 + $0x8] ss:$12 sps:$4 sm:$0xff]   ;;  %v3373_v30 = vld [vmem:[%s4486_s1 + $0xac] ss:$12 sps:$4 sm:$0xff]  }
  0x11   : > { %826 = vmatpush1.bf16.msra.mxu1 %v3348_v12  ;;  %776 = vmatprep.subr.bf16.mxu0 %v3349_v13  ;;  %s3750_s25 = scalar_lea.vmem %s4485_s0, %s3302_s10  ;;  %v3375_v31 = vld [vmem:[%s4486_s1 + $0xe0] ss:$12 sps:$4 sm:$0xff]   ;;  %v3376_v32 = vld [vmem:[%s4486_s1 + $0xa8] ss:$12 sps:$4 sm:$0xff]   ;;  %v3378_v34 = vld [vmem:[%s4486_s1 + $0xc4] ss:$12 sps:$4 sm:$0xff]  }
  0x12   : > { %827 = vmatprep.subr.bf16.mxu1 %v3351_v14  ;;  %v3768_v27 = vld [vmem:[%s3750_s25 + $0x8] ss:$12 sps:$4 sm:$0xff]   ;;  %v3377_v33 = vld [vmem:[%s4486_s1 + $0x20] ss:$12 sps:$4 sm:$0xff]   ;;  %v3380_v35 = vld [vmem:[%s4486_s1 + $0xf8] ss:$12 sps:$4 sm:$0xff]  }
  0x13   : > { %v3381_v36 = vld [vmem:[%s4486_s1 + $0xc0] ss:$12 sps:$4 sm:$0xff]   ;;  %v3382_v37 = vld [vmem:[%s4486_s1 + $0x38] ss:$12 sps:$4 sm:$0xff]   ;;  %v3383_v38 = vld [vmem:[%s4486_s1 + $0xdc] ss:$12 sps:$4 sm:$0xff]  }
  0x14   : > { %777 = vmatpush1.bf16.msra.mxu0 %v3353_v15  ;;  %v3385_v39 = vld [vmem:[%s4486_s1 + $0x110] ss:$12 sps:$4 sm:$0xff]   ;;  %v3386_v40 = vld [vmem:[%s4486_s1 + $0xd8] ss:$12 sps:$4 sm:$0xff]   ;;  %v3388_v42 = vld [vmem:[%s4486_s1 + $0xf4] ss:$12 sps:$4 sm:$0xff]  }
  0x15   : > { %828 = vmatpush1.bf16.msra.mxu1 %v3354_v16  ;;  %778 = vmatprep.subr.bf16.mxu0 %v3355_v17  ;;  %v3387_v41 = vld [vmem:[%s4486_s1 + $0x50] ss:$12 sps:$4 sm:$0xff]   ;;  %v3390_v43 = vld [vmem:[%s4486_s1 + $0x128] ss:$12 sps:$4 sm:$0xff]   ;;  %v3393_v47 = vld [vmem:[%s4486_s1 + $0x10c] ss:$12 sps:$4 sm:$0xff]  }
  0x16   : > { %829 = vmatprep.subr.bf16.mxu1 %v3357_v18  ;;  %v3822_v44 = vld [vmem:[%s3750_s25 + $0x20] ss:$0 sps:$4 sm:$0x77]   ;;  %v3391_v45 = vld [vmem:[%s4486_s1 + $0xf0] ss:$12 sps:$4 sm:$0xff]   ;;  %v1761_v15 = vrot.slane %v3768_v27, 2 }
  0x17   : > { %v3392_v46 = vld [vmem:[%s4486_s1 + $0x68] ss:$12 sps:$4 sm:$0xff]   ;;  %v3395_v48 = vld [vmem:[%s4486_s1 + $0x140] ss:$12 sps:$4 sm:$0xff]   ;;  %v3399_v51 = vld [vmem:[%s4486_s1 + $0x124] ss:$12 sps:$4 sm:$0xff]  }
  0x18   : > { %779 = vmatpush1.bf16.msra.mxu0 %v3359_v19  ;;  %v3396_v49 = vld [vmem:[%s4486_s1 + $0x108] ss:$12 sps:$4 sm:$0xff]   ;;  %v3397_v50 = vld [vmem:[%s4486_s1 + $0x80] ss:$12 sps:$4 sm:$0xff]   ;;  %v3401_v52 = vld [vmem:[%s4486_s1 + $0x158] ss:$12 sps:$4 sm:$0xff]  }
  0x19   : > { %830 = vmatpush1.bf16.msra.mxu1 %v3360_v20  ;;  %780 = vmatprep.subr.bf16.mxu0 %v3361_v21  ;;  %v3851_v53 = vld [vmem:[%s3750_s25 + $0x4] ss:$12 sps:$4 sm:$0xff]   ;;  %v3402_v54 = vld [vmem:[%s4486_s1 + $0x120] ss:$12 sps:$4 sm:$0xff]   ;;  %v3404_v56 = vld [vmem:[%s4486_s1 + $0x13c] ss:$12 sps:$4 sm:$0xff]  }
  0x1a   : > { %831 = vmatprep.subr.bf16.mxu1 %v3363_v22  ;;  %v3403_v55 = vld [vmem:[%s4486_s1 + $0x98] ss:$12 sps:$4 sm:$0xff]   ;;  %802 = vmatprep.mubr.bf16.mxu0 %v3851_v53  ;;  %v3406_v57 = vld [vmem:[%s4486_s1 + $0x170] ss:$12 sps:$4 sm:$0xff]   ;;  %v3412_v60 = vld [vmem:[%s4486_s1 + $0x154] ss:$12 sps:$4 sm:$0xff]  }
  0x1b   : > { %v3407_v58 = vld [vmem:[%s4486_s1 + $0x138] ss:$12 sps:$4 sm:$0xff]   ;;  %v3408_v59 = vld [vmem:[%s4486_s1 + $0xb0] ss:$12 sps:$4 sm:$0xff]   ;;  %v3414_v61 = vld [vmem:[%s4486_s1 + $0x188] ss:$12 sps:$4 sm:$0xff]  }
  0x1c   : > { %781 = vmatpush1.bf16.msra.mxu0 %v3365_v23  ;;  %v3880_v62 = vld [vmem:[%s3750_s25] ss:$12 sps:$4 sm:$0xff]   ;;  %v3415_v63 = vld [vmem:[%s4486_s1 + $0x150] ss:$12 sps:$4 sm:$0xff]   ;;  %v3419_v5 = vld [vmem:[%s4486_s1 + $0x168] ss:$12 sps:$4 sm:$0xff]  }
  0x1d   : > { %832 = vmatpush1.bf16.msra.mxu1 %v3366_v24  ;;  %782 = vmatprep.subr.bf16.mxu0 %v3367_v25  ;;  %v296_v0 = vld [vmem:[%s3750_s25 + $0x18] sm:$0x77]  ;;  %v3418_v3 = vld [vmem:[%s4486_s1 + $0x1a0] ss:$12 sps:$4 sm:$0xff]   ;;  %v3428_v13 = vld [vmem:[%s4486_s1 + $0x1e8] ss:$12 sps:$4 sm:$0xff]  }
  0x1e   : > { %3132 = vmatprep.subr.bf16.mxu1 %v3370_v26  ;;  %v3416_v1 = vld [vmem:[%s4486_s1 + $0x16c] ss:$12 sps:$4 sm:$0xff]   ;;  %v3892_v4 = vcombine.high %v296_v0, %v296_v0  ;;  %v3908_v9 = vcombine.low %v296_v0, %v296_v0  ;;  %v3423_v10 = vld [vmem:[%s4486_s1 + $0x1d0] ss:$12 sps:$4 sm:$0xff]   ;;  %v3429_v14 = vld [vmem:[%s4486_s1 + $0x308] ss:$12 sps:$4 sm:$0xff]  }
  0x1f   : > { %v3420_v6 = vld [vmem:[%s4486_s1 + $0x1b8] ss:$12 sps:$4 sm:$0xff]   ;;  %v3424_v11 = vld [vmem:[%s4486_s1 + $0x2f0] ss:$12 sps:$4 sm:$0xff]   ;;  %v1072_v16 = vrot.slane %v3851_v53, 1  ;;  %v3939_v19 = vrot.slane %v3822_v44, 2 }
  0x20   : > { %2810 = vmatmul.mubr.msk.bf16.vlgmr.msra.gmra.mrb[0].mxu1 %vm763_vm0, %v3768_v27  ;;  %783 = vmatpush1.bf16.msra.mxu0 %v3371_v28  ;;  %v3421_v7 = vld [vmem:[%s4486_s1 + $0x2d8] ss:$12 sps:$4 sm:$0xff]   ;;  %v3426_v12 = vld [vmem:[%s4486_s1 + $0x230] ss:$12 sps:$4 sm:$0xff]   ;;  %v3933_v17 = vrot.slane %v3892_v4, 1  ;;  %v1755_v23 = vrot.slane %v3880_v62, 2 }
  0x21   : > { %3133 = vmatpush3.bf16.msra.mxu1 %v3372_v29  ;;  %784 = vmatprep.subr.bf16.mxu0 %v3373_v30  ;;  %v3422_v8 = vld [vmem:[%s4486_s1 + $0x218] ss:$12 sps:$4 sm:$0xff]   ;;  %v3430_v18 = vld [vmem:[%s4486_s1 + $0x248] ss:$12 sps:$4 sm:$0xff]   ;;  %v3431_v20 = vld [vmem:[%s4486_s1 + $0x200] ss:$12 sps:$4 sm:$0xff]   ;;  %v3949_v22 = vsel %vm1754_vm2, %v1761_v15, %v3939_v19 }
  0x22   : > { %3134 = vmatprep.subr.bf16.mxu1 %v3375_v31  ;;  %863 = vmatprep.mubr.bf16.mxu1 %v3626_v2  ;;  %v3432_v21 = vld [vmem:[%s4486_s1 + $0x320] ss:$12 sps:$4 sm:$0xff]   ;;  %v1074_v25 = vsel %vm1068_vm1, %v1072_v16, %v3933_v17  ;;  %v3962_v28 = vrot.slane %v3908_v9, 2  ;;  %v3437_v29 = vld [vmem:[%s4486_s1 + $0x338] ss:$12 sps:$4 sm:$0xff]   ;;  %vm977_vm3 = vcmask 254976  }
  0x23   : > { %v3433_v24 = vld [vmem:[%s4486_s1 + $0x260] ss:$12 sps:$4 sm:$0xff]   ;;  %v3434_v31 = vld [vmem:[%s4486_s1 + $0x210] ss:$12 sps:$4 sm:$0xff]   ;;  %v3473_v0 = vld [vmem:[%s4486_s1 + $0x3f8] ss:$12 sps:$4 sm:$0xff]  }
  0x24   : > { %785 = vmatpush1.bf16.msra.mxu0 %v3376_v32  ;;  %v3436_v26 = vld [vmem:[%s4486_s1 + $0x214] ss:$12 sps:$4 sm:$0xff]   ;;  %v3969_v30 = vsel %vm1754_vm2, %v1755_v23, %v3962_v28  ;;  %v3438_v32 = vld [vmem:[%s4486_s1 + $0x278] ss:$12 sps:$4 sm:$0xff]   ;;  %vm970_vm4 = vcmask 261120   ;;  %s3303_s28 = smul.u32 72, %s4496_s18 }
  0x25   : > { %3135 = vmatpush3.bf16.msra.mxu1 %v3377_v33  ;;  %786 = vmatprep.subr.bf16.mxu0 %v3378_v34  ;;  %v3441_v33 = vld [vmem:[%s4486_s1 + $0x22c] ss:$12 sps:$4 sm:$0xff]   ;;  %v3442_v34 = vld [vmem:[%s4486_s1 + $0x350] ss:$12 sps:$4 sm:$0xff]   ;;  %v3492_v16 = vld [vmem:[%s4486_s1 + $0x334] ss:$12 sps:$4 sm:$0xff]  }
  0x26   : > { %3136 = vmatprep.subr.bf16.mxu1 %v3380_v35  ;;  %v3439_v35 = vld [vmem:[%s4486_s1 + $0x228] ss:$12 sps:$4 sm:$0xff]   ;;  %v3498_v23 = vld [vmem:[%s4486_s1 + $0x34c] ss:$12 sps:$4 sm:$0xff]   ;;  %s4432_s6 = scalar_lea.vmem %s4488_s3, %s3303_s28  ;;  %vm2423_vm10 = vcmask 1041408   ;;  %s3304_s7 = smul.u32 3, %s4496_s18 }
  0x28   : > { %787 = vmatpush1.bf16.msra.mxu0 %v3381_v36  ;;  %2811 = vmatmul.mubr.msk.bf16.gmra.mrb[4].mxu1 %vm763_vm0, %v3822_v44  ;;  %v3443_v36 = vld [vmem:[%s4486_s1 + $0x290] ss:$12 sps:$4 sm:$0xff]   ;;  %s282_s10 = scalar_lea.vmem %s4489_s4, %s3304_s7  ;;  %s290_s13 = scalar_lea.vmem %s4490_s5, %s3304_s7 }
  0x29   : > { %3137 = vmatpush3.bf16.msra.mxu1 %v3382_v37  ;;  %788 = vmatprep.subr.bf16.mxu0 %v3383_v38  ;;  %v3446_v37 = vld [vmem:[%s4486_s1 + $0x244] ss:$12 sps:$4 sm:$0xff]   ;;  %v3447_v38 = vld [vmem:[%s4486_s1 + $0x368] ss:$12 sps:$4 sm:$0xff]  }
  0x2a   : > { %3138 = vmatprep.subr.bf16.mxu1 %v3385_v39  ;;  %904 = vmatprep.mubr.bf16.mxu1 %v3851_v53  ;;  %v3444_v39 = vld [vmem:[%s4486_s1 + $0x240] ss:$12 sps:$4 sm:$0xff]  }
  0x2c   : > { %789 = vmatpush1.bf16.msra.mxu0 %v3386_v40  ;;  %v3448_v40 = vld [vmem:[%s4486_s1 + $0x2a8] ss:$12 sps:$4 sm:$0xff]  }
  0x2d   : > { %3139 = vmatpush3.bf16.msra.mxu1 %v3387_v41  ;;  %790 = vmatprep.subr.bf16.mxu0 %v3388_v42  ;;  %v3451_v41 = vld [vmem:[%s4486_s1 + $0x25c] ss:$12 sps:$4 sm:$0xff]   ;;  %v3452_v42 = vld [vmem:[%s4486_s1 + $0x380] ss:$12 sps:$4 sm:$0xff]  }
  0x2e   : > { %3140 = vmatprep.subr.bf16.mxu1 %v3390_v43  ;;  %v1069_v43 = vrot.slane %v3880_v62, 1 }
  0x30   : > { %791 = vmatpush1.bf16.msra.mxu0 %v3391_v45  ;;  %v3449_v45 = vld [vmem:[%s4486_s1 + $0x258] ss:$12 sps:$4 sm:$0xff]  }
  0x31   : > { %3141 = vmatpush3.bf16.msra.mxu1 %v3392_v46  ;;  %792 = vmatprep.subr.bf16.mxu0 %v3393_v47  ;;  %v3453_v46 = vld [vmem:[%s4486_s1 + $0x2c0] ss:$12 sps:$4 sm:$0xff]   ;;  %v4017_v47 = vrot.slane %v3908_v9, 1 }
  0x32   : > { %3142 = vmatprep.subr.bf16.mxu1 %v3395_v48  ;;  %v3456_v48 = vld [vmem:[%s4486_s1 + $0x274] ss:$12 sps:$4 sm:$0xff]  }
  0x34   : > { %793 = vmatpush1.bf16.msra.mxu0 %v3396_v49  ;;  %v3457_v49 = vld [vmem:[%s4486_s1 + $0x398] ss:$12 sps:$4 sm:$0xff]  }
  0x35   : > { %3143 = vmatpush3.bf16.msra.mxu1 %v3397_v50  ;;  %794 = vmatprep.subr.bf16.mxu0 %v3399_v51  ;;  %v3454_v50 = vld [vmem:[%s4486_s1 + $0x270] ss:$12 sps:$4 sm:$0xff]   ;;  %v4030_v51 = vsel %vm1068_vm1, %v1069_v43, %v4017_v47  ;;  %v3525_v43 = vld [vmem:[%s4486_s1 + $0x4cc] ss:$12 sps:$4 sm:$0xff]  }
  0x36   : > { %3144 = vmatprep.subr.bf16.mxu1 %v3401_v52  ;;  %v3460_v52 = vld [vmem:[%s4486_s1 + $0x28c] ss:$12 sps:$4 sm:$0xff]  }
  0x38   : > { %795 = vmatpush1.bf16.msra.mxu0 %v3402_v54  ;;  %v3461_v54 = vld [vmem:[%s4486_s1 + $0x3b0] ss:$12 sps:$4 sm:$0xff]  }
  0x39   : > { %3145 = vmatpush3.bf16.msra.mxu1 %v3403_v55  ;;  %796 = vmatprep.subr.bf16.mxu0 %v3404_v56  ;;  %v3458_v55 = vld [vmem:[%s4486_s1 + $0x288] ss:$12 sps:$4 sm:$0xff]   ;;  %v3464_v56 = vld [vmem:[%s4486_s1 + $0x2a4] ss:$12 sps:$4 sm:$0xff]  }
  0x3a   : > { %3146 = vmatprep.subr.bf16.mxu1 %v3406_v57  ;;  %v3465_v57 = vld [vmem:[%s4486_s1 + $0x3c8] ss:$12 sps:$4 sm:$0xff]  }
  0x3c   : > { %797 = vmatpush1.bf16.msra.mxu0 %v3407_v58  ;;  %v1075_v58 = vrot.slane %v3768_v27, 1 }
  0x3d   : > { %3147 = vmatpush3.bf16.msra.mxu1 %v3408_v59  ;;  %798 = vmatprep.subr.bf16.mxu0 %v3412_v60  ;;  %v4051_v59 = vrot.slane %v3822_v44, 1  ;;  %v3462_v60 = vld [vmem:[%s4486_s1 + $0x2a0] ss:$12 sps:$4 sm:$0xff]  }
  0x3e   : > { %3240 = vmatprep.subr.bf16.mxu1 %v3414_v61 }
  0x40   : > { %905 = vmatmul.mubr.bf16.vlgmr.msra.gmra.mrb[8].mxu1 %v3880_v62  ;;  %799 = vmatpush1.bf16.msra.mxu0 %v3415_v63  ;;  %v3472_v63 = vld [vmem:[%s4486_s1 + $0x2d4] ss:$12 sps:$4 sm:$0xff]  }
  0x41   : > { %3241 = vmatpush3.bf16.msra.mxu1 %v3414_v61  ;;  %800 = vmatprep.subr.bf16.mxu0 %v3416_v1  ;;  %v3468_v61 = vld [vmem:[%s4486_s1 + $0x2bc] ss:$12 sps:$4 sm:$0xff]  }
  0x42   : > { %3242 = vmatprep.subr.bf16.mxu1 %v3418_v3  ;;  %912 = vmatprep.mubr.bf16.mxu1 %v3892_v4  ;;  %v3470_v1 = vld [vmem:[%s4486_s1 + $0x2d0] ss:$12 sps:$4 sm:$0xff]  }
  0x44   : > { %801 = vmatpush1.bf16.msra.mxu0 %v3419_v5  ;;  %v3477_v5 = vld [vmem:[%s4486_s1 + $0x410] ss:$12 sps:$4 sm:$0xff]  }
  0x45   : > { %3243 = vmatpush3.bf16.msra.mxu1 %v3418_v3  ;;  %3168 = vmatprep.subr.bf16.mxu0 %v3421_v7  ;;  %v3476_v3 = vld [vmem:[%s4486_s1 + $0x2ec] ss:$12 sps:$4 sm:$0xff]   ;;  %v3480_v7 = vld [vmem:[%s4486_s1 + $0x304] ss:$12 sps:$4 sm:$0xff]  }
  0x46   : > { %3244 = vmatprep.subr.bf16.mxu1 %v3420_v6 }
  0x47   : > { %803 = vmatmul.mubr.bf16.vlgmr.msra.gmra.mrb[0].mxu0 %v3880_v62  ;;  %v3469_v62 = vld [vmem:[%s4486_s1 + $0x3e0] ss:$12 sps:$4 sm:$0xff]  }
  0x48   : > { %913 = vmatmul.mubr.bf16.gmra.mrb[12].mxu1 %v3908_v9  ;;  %3169 = vmatpush3.bf16.msra.mxu0 %v3422_v8  ;;  %v3483_v8 = vld [vmem:[%s4486_s1 + $0x424] ss:$12 sps:$4 sm:$0xff]  }
  0x49   : > { %3245 = vmatpush3.bf16.msra.mxu1 %v3420_v6  ;;  %3170 = vmatprep.subr.bf16.mxu0 %v3424_v11  ;;  %v3474_v6 = vld [vmem:[%s4486_s1 + $0x2e8] ss:$12 sps:$4 sm:$0xff]   ;;  %v3478_v11 = vld [vmem:[%s4486_s1 + $0x300] ss:$12 sps:$4 sm:$0xff]  }
  0x4a   : > { %3246 = vmatprep.subr.bf16.mxu1 %v3423_v10  ;;  %812 = vmatprep.mubr.bf16.mxu0 %v3892_v4 }
  0x4b   : > { %3252 = vmatprep.mubr.msk.bf16.mxu1 %vm763_vm0, %v3768_v27  ;;  %v4065_v27 = vsel %vm1068_vm1, %v1075_v58, %v4051_v59  ;;  %v3541_v58 = vld [vmem:[%s4486_s1 + $0x510] ss:$12 sps:$4 sm:$0xff]  }
  0x4c   : > { %3171 = vmatpush3.bf16.msra.mxu0 %v3426_v12  ;;  %v3481_v12 = vld [vmem:[%s4486_s1 + $0x420] ss:$12 sps:$4 sm:$0xff]  }
  0x4d   : > { %3247 = vmatpush3.bf16.msra.mxu1 %v3423_v10  ;;  %3172 = vmatprep.subr.bf16.mxu0 %v3429_v14  ;;  %v4098_v10 = vrot.slane %v3892_v4, 2  ;;  %v3484_v4 = vld [vmem:[%s4486_s1 + $0x318] ss:$12 sps:$4 sm:$0xff]  }
  0x4e   : > { %3248 = vmatprep.subr.bf16.mxu1 %v3428_v13  ;;  %v3487_v14 = vld [vmem:[%s4486_s1 + $0x438] ss:$12 sps:$4 sm:$0xff]  }
  0x4f   : > { %813 = vmatmul.mubr.bf16.gmra.mrb[4].mxu0 %v3908_v9  ;;  %v1758_v9 = vrot.slane %v3851_v53, 2  ;;  %v3489_v53 = vld [vmem:[%s4486_s1 + $0x43c] ss:$12 sps:$4 sm:$0xff]  }
  0x50   : > { %3173 = vmatpush3.bf16.msra.mxu0 %v3430_v18  ;;  %1574 = vmatprep.mubr.bf16.mxu0 %v1074_v25  ;;  %v3495_v18 = vld [vmem:[%s4486_s1 + $0x454] ss:$12 sps:$4 sm:$0xff]  }
  0x51   : > { %3249 = vmatpush3.bf16.msra.mxu1 %v3428_v13  ;;  %3174 = vmatprep.subr.bf16.mxu0 %v3432_v21  ;;  %v3486_v13 = vld [vmem:[%s4486_s1 + $0x31c] ss:$12 sps:$4 sm:$0xff]   ;;  %v4122_v15 = vsel %vm1754_vm2, %v1758_v9, %v4098_v10  ;;  %v3562_v9 = vld [vmem:[%s4486_s1 + $0x574] ss:$12 sps:$4 sm:$0xff]  }
  0x52   : > { %3250 = vmatprep.subr.bf16.mxu1 %v3431_v20  ;;  %v3493_v21 = vld [vmem:[%s4486_s1 + $0x450] ss:$12 sps:$4 sm:$0xff]  }
  0x54   : > { %3175 = vmatpush3.bf16.msra.mxu0 %v3433_v24  ;;  %v3501_v24 = vld [vmem:[%s4486_s1 + $0x46c] ss:$12 sps:$4 sm:$0xff]  }
  0x55   : > { %3251 = vmatpush3.bf16.msra.mxu1 %v3431_v20  ;;  %3176 = vmatprep.subr.bf16.mxu0 %v3437_v29  ;;  %v3490_v20 = vld [vmem:[%s4486_s1 + $0x330] ss:$12 sps:$4 sm:$0xff]  }
  0x56   : > { %1440 = vmatprep.subr.bf16.mxu1 %v3436_v26  ;;  %v3499_v26 = vld [vmem:[%s4486_s1 + $0x468] ss:$12 sps:$4 sm:$0xff]   ;;  %v3504_v29 = vld [vmem:[%s4486_s1 + $0x364] ss:$12 sps:$4 sm:$0xff]  }
  0x58   : > { %3253 = vmatmul.mubr.msk.bf16.vlgmr.msra.gmra.mrb[16].mxu1 %vm763_vm0, %v3822_v44  ;;  %3177 = vmatpush3.bf16.msra.mxu0 %v3438_v32  ;;  %v3466_v44 = vld [vmem:[%s4486_s1 + $0x2b8] ss:$12 sps:$4 sm:$0xff]   ;;  %v3502_v32 = vld [vmem:[%s4486_s1 + $0x360] ss:$12 sps:$4 sm:$0xff]  }
  0x59   : > { %1441 = vmatpush1.bf16.msra.mxu1 %v3434_v31  ;;  %3178 = vmatprep.subr.bf16.mxu0 %v3442_v34  ;;  %v3507_v31 = vld [vmem:[%s4486_s1 + $0x484] ss:$12 sps:$4 sm:$0xff]   ;;  %v3510_v34 = vld [vmem:[%s4486_s1 + $0x37c] ss:$12 sps:$4 sm:$0xff]  }
  0x5a   : > { %1442 = vmatprep.subr.bf16.mxu1 %v3441_v33  ;;  %1472 = vmatprep.mubr.bf16.mxu1 %v1074_v25  ;;  %v3496_v25 = vld [vmem:[%s4486_s1 + $0x348] ss:$12 sps:$4 sm:$0xff]   ;;  %v3505_v33 = vld [vmem:[%s4486_s1 + $0x480] ss:$12 sps:$4 sm:$0xff]  }
  0x5c   : > { %3179 = vmatpush3.bf16.msra.mxu0 %v3443_v36  ;;  %v3508_v36 = vld [vmem:[%s4486_s1 + $0x378] ss:$12 sps:$4 sm:$0xff]  }
  0x5d   : > { %1443 = vmatpush1.bf16.msra.mxu1 %v3439_v35  ;;  %3180 = vmatprep.subr.bf16.mxu0 %v3447_v38  ;;  %v3513_v35 = vld [vmem:[%s4486_s1 + $0x49c] ss:$12 sps:$4 sm:$0xff]   ;;  %v3516_v38 = vld [vmem:[%s4486_s1 + $0x394] ss:$12 sps:$4 sm:$0xff]  }
  0x5e   : > { %1444 = vmatprep.subr.bf16.mxu1 %v3446_v37  ;;  %v3511_v37 = vld [vmem:[%s4486_s1 + $0x498] ss:$12 sps:$4 sm:$0xff]  }
  0x60   : > { %3181 = vmatpush3.bf16.msra.mxu0 %v3448_v40  ;;  %v3514_v40 = vld [vmem:[%s4486_s1 + $0x390] ss:$12 sps:$4 sm:$0xff]  }
  0x61   : > { %1445 = vmatpush1.bf16.msra.mxu1 %v3444_v39  ;;  %3182 = vmatprep.subr.bf16.mxu0 %v3452_v42  ;;  %v3519_v39 = vld [vmem:[%s4486_s1 + $0x4b4] ss:$12 sps:$4 sm:$0xff]   ;;  %v3522_v42 = vld [vmem:[%s4486_s1 + $0x3ac] ss:$12 sps:$4 sm:$0xff]  }
  0x62   : > { %1446 = vmatprep.subr.bf16.mxu1 %v3451_v41  ;;  %v3517_v41 = vld [vmem:[%s4486_s1 + $0x4b0] ss:$12 sps:$4 sm:$0xff]  }
  0x64   : > { %3183 = vmatpush3.bf16.msra.mxu0 %v3453_v46  ;;  %v3523_v46 = vld [vmem:[%s4486_s1 + $0x4c8] ss:$12 sps:$4 sm:$0xff]  }
  0x65   : > { %1447 = vmatpush1.bf16.msra.mxu1 %v3449_v45  ;;  %3256 = vmatprep.subr.bf16.mxu0 %v3457_v49  ;;  %v3520_v45 = vld [vmem:[%s4486_s1 + $0x3a8] ss:$12 sps:$4 sm:$0xff]  }
  0x66   : > { %1448 = vmatprep.subr.bf16.mxu1 %v3456_v48  ;;  %v3528_v48 = vld [vmem:[%s4486_s1 + $0x3c4] ss:$12 sps:$4 sm:$0xff]  }
  0x67   : > { %1575 = vmatmul.mubr.bf16.vlgmr.msra.gmra.mrb[8].mxu0 %v4030_v51 }
  0x68   : > { %3257 = vmatpush3.bf16.msra.mxu0 %v3457_v49  ;;  %1582 = vmatprep.mubr.bf16.mxu0 %v3933_v17  ;;  %v3531_v49 = vld [vmem:[%s4486_s1 + $0x4e4] ss:$12 sps:$4 sm:$0xff]  }
  0x69   : > { %1449 = vmatpush1.bf16.msra.mxu1 %v3454_v50  ;;  %3258 = vmatprep.subr.bf16.mxu0 %v3461_v54  ;;  %v3526_v50 = vld [vmem:[%s4486_s1 + $0x3c0] ss:$12 sps:$4 sm:$0xff]  }
  0x6a   : > { %1450 = vmatprep.subr.bf16.mxu1 %v3460_v52  ;;  %v3534_v52 = vld [vmem:[%s4486_s1 + $0x3dc] ss:$12 sps:$4 sm:$0xff]  }
  0x6c   : > { %3259 = vmatpush3.bf16.msra.mxu0 %v3461_v54  ;;  %v3537_v54 = vld [vmem:[%s4486_s1 + $0x4fc] ss:$12 sps:$4 sm:$0xff]  }
  0x6d   : > { %1451 = vmatpush1.bf16.msra.mxu1 %v3458_v55  ;;  %3260 = vmatprep.subr.bf16.mxu0 %v3465_v57  ;;  %v3535_v55 = vld [vmem:[%s4486_s1 + $0x4f8] ss:$12 sps:$4 sm:$0xff]  }
  0x6e   : > { %1452 = vmatprep.subr.bf16.mxu1 %v3464_v56  ;;  %v3540_v56 = vld [vmem:[%s4486_s1 + $0x3f4] ss:$12 sps:$4 sm:$0xff]  }
  0x6f   : > { %1583 = vmatmul.mubr.bf16.gmra.mrb[12].mxu0 %v4017_v47 }
  0x70   : > { %3261 = vmatpush3.bf16.msra.mxu0 %v3465_v57  ;;  %3268 = vmatprep.mubr.msk.bf16.mxu0 %vm763_vm0, %v4065_v27  ;;  %v3543_v57 = vld [vmem:[%s4486_s1 + $0x514] ss:$12 sps:$4 sm:$0xff]  }
  0x71   : > { %1453 = vmatpush1.bf16.msra.mxu1 %v3462_v60  ;;  %3262 = vmatprep.subr.bf16.mxu0 %v3469_v62  ;;  %v3546_v60 = vld [vmem:[%s4486_s1 + $0x40c] ss:$12 sps:$4 sm:$0xff]  }
  0x72   : > { %1454 = vmatprep.subr.bf16.mxu1 %v3468_v61  ;;  %v3549_v61 = vld [vmem:[%s4486_s1 + $0x52c] ss:$12 sps:$4 sm:$0xff]  }
  0x74   : > { %3263 = vmatpush3.bf16.msra.mxu0 %v3469_v62  ;;  %v3544_v62 = vld [vmem:[%s4486_s1 + $0x408] ss:$12 sps:$4 sm:$0xff]  }
  0x75   : > { %1455 = vmatpush1.bf16.msra.mxu1 %v3466_v44  ;;  %3264 = vmatprep.subr.bf16.mxu0 %v3473_v0  ;;  %v3547_v44 = vld [vmem:[%s4486_s1 + $0x528] ss:$12 sps:$4 sm:$0xff]  }
  0x76   : > { %1456 = vmatprep.subr.bf16.mxu1 %v3472_v63  ;;  %v3552_v63 = vld [vmem:[%s4486_s1 + $0x544] ss:$12 sps:$4 sm:$0xff]  }
  0x78   : > { %3265 = vmatpush3.bf16.msra.mxu0 %v3473_v0  ;;  %v3553_v0 = vld [vmem:[%s4486_s1 + $0x4e8] ss:$12 sps:$4 sm:$0xff]  }
  0x79   : > { %1457 = vmatpush1.bf16.msra.mxu1 %v3470_v1  ;;  %3266 = vmatprep.subr.bf16.mxu0 %v3477_v5  ;;  %v3550_v1 = vld [vmem:[%s4486_s1 + $0x540] ss:$12 sps:$4 sm:$0xff]  }
  0x7a   : > { %1458 = vmatprep.subr.bf16.mxu1 %v3476_v3  ;;  %v3554_v3 = vld [vmem:[%s4486_s1 + $0x428] ss:$12 sps:$4 sm:$0xff]  }
  0x7c   : > { %3267 = vmatpush3.bf16.msra.mxu0 %v3477_v5  ;;  %v3557_v5 = vld [vmem:[%s4486_s1 + $0x55c] ss:$12 sps:$4 sm:$0xff]  }
  0x7d   : > { %1459 = vmatpush1.bf16.msra.mxu1 %v3474_v6  ;;  %2126 = vmatprep.subr.bf16.mxu0 %v3483_v8  ;;  %v3558_v6 = vld [vmem:[%s4486_s1 + $0x500] ss:$12 sps:$4 sm:$0xff]  }
  0x7e   : > { %1460 = vmatprep.subr.bf16.mxu1 %v3480_v7  ;;  %v3555_v7 = vld [vmem:[%s4486_s1 + $0x558] ss:$12 sps:$4 sm:$0xff]   ;;  %v3559_v8 = vld [vmem:[%s4486_s1 + $0x440] ss:$12 sps:$4 sm:$0xff]  }
  0x7f   : > { %3269 = vmatmul.mubr.msk.bf16.vlgmr.msra.gmra.mrb[16].mxu0 %vm763_vm0, %v4051_v59 }
  0x80   : > { %2127 = vmatpush1.bf16.msra.mxu0 %v3481_v12  ;;  %2158 = vmatprep.mubr.bf16.mxu0 %v4122_v15  ;;  %v3564_v12 = vld [vmem:[%s4486_s1 + $0x458] ss:$12 sps:$4 sm:$0xff]  }
  0x81   : > { %1461 = vmatpush1.bf16.msra.mxu1 %v3478_v11  ;;  %2128 = vmatprep.subr.bf16.mxu0 %v3489_v53  ;;  %v3560_v11 = vld [vmem:[%s4486_s1 + $0x570] ss:$12 sps:$4 sm:$0xff]  }
  0x82   : > { %1462 = vmatprep.subr.bf16.mxu1 %v3486_v13  ;;  %v3567_v13 = vld [vmem:[%s4486_s1 + $0x58c] ss:$12 sps:$4 sm:$0xff]   ;;  %v3568_v53 = vld [vmem:[%s4486_s1 + $0x530] ss:$12 sps:$4 sm:$0xff]  }
  0x84   : > { %2129 = vmatpush1.bf16.msra.mxu0 %v3487_v14  ;;  %v3569_v14 = vld [vmem:[%s4486_s1 + $0x470] ss:$12 sps:$4 sm:$0xff]  }
  0x85   : > { %1463 = vmatpush1.bf16.msra.mxu1 %v3484_v4  ;;  %2130 = vmatprep.subr.bf16.mxu0 %v3495_v18  ;;  %v3565_v4 = vld [vmem:[%s4486_s1 + $0x588] ss:$12 sps:$4 sm:$0xff]   ;;  %v3570_v18 = vld [vmem:[%s4486_s1 + $0x5a0] ss:$12 sps:$4 sm:$0xff]  }
  0x86   : > { %1464 = vmatprep.subr.bf16.mxu1 %v3492_v16  ;;  %v3572_v16 = vld [vmem:[%s4486_s1 + $0x5a4] ss:$12 sps:$4 sm:$0xff]  }
  0x88   : > { %2131 = vmatpush1.bf16.msra.mxu0 %v3493_v21  ;;  %v3577_v21 = vld [vmem:[%s4486_s1 + $0x5bc] ss:$12 sps:$4 sm:$0xff]  }
  0x89   : > { %1465 = vmatpush1.bf16.msra.mxu1 %v3490_v20  ;;  %2132 = vmatprep.subr.bf16.mxu0 %v3501_v24  ;;  %v3574_v20 = vld [vmem:[%s4486_s1 + $0x488] ss:$12 sps:$4 sm:$0xff]   ;;  %v3579_v24 = vld [vmem:[%s4486_s1 + $0x4a0] ss:$12 sps:$4 sm:$0xff]  }
  0x8a   : > { %1466 = vmatprep.subr.bf16.mxu1 %v3498_v23  ;;  %v3575_v23 = vld [vmem:[%s4486_s1 + $0x5b8] ss:$12 sps:$4 sm:$0xff]  }
  0x8c   : > { %2133 = vmatpush1.bf16.msra.mxu0 %v3499_v26  ;;  %v3583_v26 = vld [vmem:[%s4486_s1 + $0x578] ss:$12 sps:$4 sm:$0xff]  }
  0x8d   : > { %1467 = vmatpush1.bf16.msra.mxu1 %v3496_v25  ;;  %2134 = vmatprep.subr.bf16.mxu0 %v3507_v31  ;;  %v3582_v25 = vld [vmem:[%s4486_s1 + $0x5d4] ss:$12 sps:$4 sm:$0xff]   ;;  %v3584_v31 = vld [vmem:[%s4486_s1 + $0x4b8] ss:$12 sps:$4 sm:$0xff]  }
  0x8e   : > { %1468 = vmatprep.subr.bf16.mxu1 %v3504_v29  ;;  %v3580_v29 = vld [vmem:[%s4486_s1 + $0x5d0] ss:$12 sps:$4 sm:$0xff]  }
  0x90   : > { %2135 = vmatpush1.bf16.msra.mxu0 %v3505_v33  ;;  %v3588_v33 = vld [vmem:[%s4486_s1 + $0x590] ss:$12 sps:$4 sm:$0xff]  }
  0x91   : > { %1469 = vmatpush1.bf16.msra.mxu1 %v3502_v32  ;;  %2136 = vmatprep.subr.bf16.mxu0 %v3513_v35  ;;  %v3587_v32 = vld [vmem:[%s4486_s1 + $0x5ec] ss:$12 sps:$4 sm:$0xff]   ;;  %v3589_v35 = vld [vmem:[%s4486_s1 + $0x4d0] ss:$12 sps:$4 sm:$0xff]  }
  0x92   : > { %1470 = vmatprep.subr.bf16.mxu1 %v3510_v34  ;;  %v3585_v34 = vld [vmem:[%s4486_s1 + $0x5e8] ss:$12 sps:$4 sm:$0xff]  }
  0x94   : > { %2137 = vmatpush1.bf16.msra.mxu0 %v3511_v37  ;;  %v3593_v37 = vld [vmem:[%s4486_s1 + $0x5a8] ss:$12 sps:$4 sm:$0xff]  }
  0x95   : > { %1471 = vmatpush1.bf16.msra.mxu1 %v3508_v36  ;;  %2138 = vmatprep.subr.bf16.mxu0 %v3519_v39  ;;  %v3592_v36 = vld [vmem:[%s4486_s1 + $0x604] ss:$12 sps:$4 sm:$0xff]   ;;  %v3596_v39 = vld [vmem:[%s4486_s1 + $0x61c] ss:$12 sps:$4 sm:$0xff]  }
  0x96   : > { %1491 = vmatprep.subr.bf16.mxu1 %v3516_v38  ;;  %v3590_v38 = vld [vmem:[%s4486_s1 + $0x600] ss:$12 sps:$4 sm:$0xff]  }
  0x98   : > { %1473 = vmatmul.mubr.bf16.vlgmr.msra.gmra.mrb[20].mxu1 %v4030_v51  ;;  %2139 = vmatpush1.bf16.msra.mxu0 %v3517_v41  ;;  %v3529_v51 = vld [vmem:[%s4486_s1 + $0x4e0] ss:$12 sps:$4 sm:$0xff]   ;;  %v3594_v41 = vld [vmem:[%s4486_s1 + $0x618] ss:$12 sps:$4 sm:$0xff]  }
  0x99   : > { %1492 = vmatpush1.bf16.msra.mxu1 %v3514_v40  ;;  %2140 = vmatprep.subr.bf16.mxu0 %v3525_v43  ;;  %v3597_v40 = vld [vmem:[%s4486_s1 + $0x5c0] ss:$12 sps:$4 sm:$0xff]  }
  0x9a   : > { %1493 = vmatprep.subr.bf16.mxu1 %v3522_v42  ;;  %1482 = vmatprep.mubr.bf16.mxu1 %v3933_v17  ;;  %v3532_v17 = vld [vmem:[%s4486_s1 + $0x3d8] ss:$12 sps:$4 sm:$0xff]   ;;  %v3601_v43 = vld [vmem:[%s4486_s1 + $0x620] ss:$12 sps:$4 sm:$0xff]  }
  0x9b   : > { %v3598_v42 = vld [vmem:[%s4486_s1 + $0x5d8] ss:$12 sps:$4 sm:$0xff]  }
  0x9c   : > { %2141 = vmatpush1.bf16.msra.mxu0 %v3523_v46 }
  0x9d   : > { %1494 = vmatpush1.bf16.msra.mxu1 %v3520_v45  ;;  %2142 = vmatprep.subr.bf16.mxu0 %v3531_v49 }
  0x9e   : > { %1495 = vmatprep.subr.bf16.mxu1 %v3528_v48 }
  0xa0   : > { %1483 = vmatmul.mubr.bf16.gmra.mrb[24].mxu1 %v4017_v47  ;;  %2143 = vmatpush1.bf16.msra.mxu0 %v3529_v51  ;;  %v3538_v47 = vld [vmem:[%s4486_s1 + $0x3f0] ss:$12 sps:$4 sm:$0xff]  }
  0xa1   : > { %1496 = vmatpush1.bf16.msra.mxu1 %v3526_v50  ;;  %2144 = vmatprep.subr.bf16.mxu0 %v3537_v54 }
  0xa2   : > { %1497 = vmatprep.subr.bf16.mxu1 %v3534_v52  ;;  %1523 = vmatprep.mubr.bf16.mxu1 %v3626_v2 }
  0xa4   : > { %2145 = vmatpush1.bf16.msra.mxu0 %v3535_v55 }
  0xa5   : > { %1498 = vmatpush1.bf16.msra.mxu1 %v3532_v17  ;;  %2146 = vmatprep.subr.bf16.mxu0 %v3543_v57 }
  0xa6   : > { %1499 = vmatprep.subr.bf16.mxu1 %v3540_v56 }
  0xa8   : > { %2147 = vmatpush1.bf16.msra.mxu0 %v3541_v58 }
  0xa9   : > { %1500 = vmatpush1.bf16.msra.mxu1 %v3538_v47  ;;  %2148 = vmatprep.subr.bf16.mxu0 %v3549_v61 }
  0xaa   : > { %1501 = vmatprep.subr.bf16.mxu1 %v3546_v60 }
  0xac   : > { %2149 = vmatpush1.bf16.msra.mxu0 %v3547_v44 }
  0xad   : > { %1502 = vmatpush1.bf16.msra.mxu1 %v3544_v62  ;;  %2150 = vmatprep.subr.bf16.mxu0 %v3552_v63 }
  0xae   : > { %3204 = vmatprep.subr.bf16.mxu1 %v3553_v0 }
  0xb0   : > { %2968 = vmatmul.mubr.msk.bf16.vlgmr.msra.gmra.mrb[20].mxu1 %vm763_vm0, %v4065_v27  ;;  %2151 = vmatpush1.bf16.msra.mxu0 %v3550_v1  ;;  %v3563_v27 = vld [vmem:[%s4486_s1 + $0x518] ss:$12 sps:$4 sm:$0xff]  }
  0xb1   : > { %3205 = vmatpush3.bf16.msra.mxu1 %v3554_v3  ;;  %2152 = vmatprep.subr.bf16.mxu0 %v3557_v5 }
  0xb2   : > { %3206 = vmatprep.subr.bf16.mxu1 %v3558_v6  ;;  %1533 = vmatprep.mubr.bf16.mxu1 %v3626_v2 }
  0xb4   : > { %2153 = vmatpush1.bf16.msra.mxu0 %v3555_v7 }
  0xb5   : > { %3207 = vmatpush3.bf16.msra.mxu1 %v3559_v8  ;;  %2154 = vmatprep.subr.bf16.mxu0 %v3562_v9 }
  0xb6   : > { %3208 = vmatprep.subr.bf16.mxu1 %v3563_v27 }
  0xb8   : > { %2969 = vmatmul.mubr.msk.bf16.gmra.mrb[28].mxu1 %vm763_vm0, %v4051_v59  ;;  %2155 = vmatpush1.bf16.msra.mxu0 %v3560_v11  ;;  %v3573_v59 = vld [vmem:[%s4486_s1 + $0x548] ss:$12 sps:$4 sm:$0xff]  }
  0xb9   : > { %3209 = vmatpush3.bf16.msra.mxu1 %v3564_v12  ;;  %2156 = vmatprep.subr.bf16.mxu0 %v3567_v13 }
  0xba   : > { %3210 = vmatprep.subr.bf16.mxu1 %v3568_v53  ;;  %2260 = vmatprep.mubr.bf16.mxu1 %v4122_v15  ;;  %v3578_v15 = vld [vmem:[%s4486_s1 + $0x560] ss:$12 sps:$4 sm:$0xff]  }
  0xbc   : > { %2157 = vmatpush1.bf16.msra.mxu0 %v3565_v4 }
  0xbd   : > { %3211 = vmatpush3.bf16.msra.mxu1 %v3569_v14  ;;  %2177 = vmatprep.subr.bf16.mxu0 %v3572_v16 }
  0xbe   : > { %3212 = vmatprep.subr.bf16.mxu1 %v3573_v59 }
  0xbf   : > { %2159 = vmatmul.mubr.bf16.vlgmr.msra.gmra.mrb[20].mxu0 %v3969_v30 }
  0xc0   : > { %2178 = vmatpush1.bf16.msra.mxu0 %v3570_v18  ;;  %2168 = vmatprep.mubr.bf16.mxu0 %v4098_v10 }
  0xc1   : > { %3213 = vmatpush3.bf16.msra.mxu1 %v3574_v20  ;;  %2179 = vmatprep.subr.bf16.mxu0 %v3577_v21 }
  0xc2   : > { %3214 = vmatprep.subr.bf16.mxu1 %v3578_v15 }
  0xc4   : > { %2180 = vmatpush1.bf16.msra.mxu0 %v3575_v23 }
  0xc5   : > { %3215 = vmatpush3.bf16.msra.mxu1 %v3579_v24  ;;  %2181 = vmatprep.subr.bf16.mxu0 %v3582_v25 }
  0xc6   : > { %3216 = vmatprep.subr.bf16.mxu1 %v3583_v26 }
  0xc7   : > { %2169 = vmatmul.mubr.bf16.gmra.mrb[24].mxu0 %v3962_v28 }
  0xc8   : > { %2182 = vmatpush1.bf16.msra.mxu0 %v3580_v29  ;;  %2209 = vmatprep.mubr.bf16.mxu0 %v3626_v2 }
  0xc9   : > { %3217 = vmatpush3.bf16.msra.mxu1 %v3584_v31  ;;  %2183 = vmatprep.subr.bf16.mxu0 %v3587_v32 }
  0xca   : > { %3218 = vmatprep.subr.bf16.mxu1 %v3588_v33 }
  0xcc   : > { %2184 = vmatpush1.bf16.msra.mxu0 %v3585_v34 }
  0xcd   : > { %3219 = vmatpush3.bf16.msra.mxu1 %v3589_v35  ;;  %2185 = vmatprep.subr.bf16.mxu0 %v3592_v36 }
  0xce   : > { %3272 = vmatprep.subr.bf16.mxu1 %v3593_v37 }
  0xd0   : > { %2261 = vmatmul.mubr.bf16.vlgmr.msra.gmra.mrb[32].mxu1 %v3969_v30  ;;  %2186 = vmatpush1.bf16.msra.mxu0 %v3590_v38  ;;  %v3599_v30 = vld [vmem:[%s4486_s1 + $0x5f0] ss:$12 sps:$4 sm:$0xff]  }
  0xd1   : > { %3273 = vmatpush3.bf16.msra.mxu1 %v3593_v37  ;;  %2187 = vmatprep.subr.bf16.mxu0 %v3596_v39 }
  0xd2   : > { %3274 = vmatprep.subr.bf16.mxu1 %v3597_v40  ;;  %2268 = vmatprep.mubr.bf16.mxu1 %v4098_v10  ;;  %v3600_v10 = vld [vmem:[%s4486_s1 + $0x608] ss:$12 sps:$4 sm:$0xff]  }
  0xd4   : > { %2188 = vmatpush1.bf16.msra.mxu0 %v3594_v41 }
  0xd5   : > { %3275 = vmatpush3.bf16.msra.mxu1 %v3597_v40 }
  0xd6   : > { %3276 = vmatprep.subr.bf16.mxu1 %v3598_v42 }
  0xd7   : > { %3126 = vmatmul.mubr.msk.bf16.vlgmr.msra.gmra.mrb[20].mxu0 %vm763_vm0, %v3949_v22 }
  0xd8   : > { %2269 = vmatmul.mubr.bf16.gmra.mrb[36].mxu1 %v3962_v28  ;;  %2219 = vmatprep.mubr.bf16.mxu0 %v3626_v2 }
  0xd9   : > { %3277 = vmatpush3.bf16.msra.mxu1 %v3598_v42  ;;  %3284 = vmatprep.mubr.msk.bf16.mxu1 %vm763_vm0, %v3949_v22 }
  0xda   : > { %3278 = vmatprep.subr.bf16.mxu1 %v3599_v30 }
  0xdd   : > { %3279 = vmatpush3.bf16.msra.mxu1 %v3599_v30 }
  0xde   : > { %3280 = vmatprep.subr.bf16.mxu1 %v3600_v10 }
  0xdf   : > { %3127 = vmatmul.mubr.msk.bf16.gmra.mrb[28].mxu0 %vm763_vm0, %v3939_v19 }
  0xe1   : > { %3281 = vmatpush3.bf16.msra.mxu1 %v3600_v10 }
  0xe2   : > { %3282 = vmatprep.subr.bf16.mxu1 %v3601_v43 }
  0xe5   : > { %3283 = vmatpush3.bf16.msra.mxu1 %v3601_v43 }
  0xe8   : > { %3285 = vmatmul.mubr.msk.bf16.vlgmr.msra.gmra.mrb[40].mxu1 %vm763_vm0, %v3939_v19 }
  0xf3   : > { %v855_v2 = vpop.f32.mrb[0].mxu1 }
  0xf4   : > { %v857_v28 = vpop.f32.mrb[1].mxu1 }
  0xf5   : > { %v859_v45 = vpop.f32.mrb[2].mxu1 }
  0xf6   : > { %v861_v46 = vpop.f32.mrb[3].mxu1 }
  0xfb   : > { %v865_v22 = vpop.f32.mrb[4].mxu1 }
  0xfc   : > { %v867_v48 = vpop.f32.mrb[5].mxu1 }
  0xfd   : > { %v869_v49 = vpop.f32.mrb[6].mxu1 }
  0xfe   : > { %v870_v50 = vpop.f32.mrb[7].mxu1 }
 0x113   : > { %v3148_v51 = vpop.f32.mrb[8].mxu1 }
 0x114   : > { %v3149_v52 = vpop.f32.mrb[9].mxu1 }
 0x115   : > { %v3150_v54 = vadd.f32 %v3149_v52, %v3148_v51  ;;  %v3151_v17 = vpop.f32.mrb[10].mxu1 }
 0x116   : > { %v3152_v55 = vpop.f32.mrb[11].mxu1 }
 0x117   : > { %v3153_v56 = vadd.f32 %v3152_v55, %v3151_v17 }
 0x11a   : > { %v804_v57 = vpop.f32.mrb[0].mxu0 }
 0x11b   : > { %v3154_v47 = vpop.f32.mrb[12].mxu1  ;;  %v4397_v58 = vadd.f32 %v855_v2, %v804_v57  ;;  %v806_v60 = vpop.f32.mrb[1].mxu0 }
 0x11c   : > { %v3155_v19 = vpop.f32.mrb[13].mxu1  ;;  %v858_v61 = vadd.f32 %v857_v28, %v806_v60  ;;  %v808_v62 = vpop.f32.mrb[2].mxu0 }
 0x11d   : > { %v3156_v44 = vadd.f32 %v3155_v19, %v3154_v47  ;;  %v3157_v63 = vpop.f32.mrb[14].mxu1  ;;  %v860_v0 = vadd.f32 %v859_v45, %v808_v62  ;;  %v810_v1 = vpop.f32.mrb[3].mxu0 }
 0x11e   : > { %v3158_v3 = vpop.f32.mrb[15].mxu1  ;;  %v862_v5 = vadd.f32 %v861_v46, %v810_v1 }
 0x122   : > { %v814_v6 = vpop.f32.mrb[4].mxu0 }
 0x123   : > { %v866_v7 = vadd.f32 %v865_v22, %v814_v6  ;;  %v816_v8 = vpop.f32.mrb[5].mxu0 }
 0x124   : > { %v868_v9 = vadd.f32 %v867_v48, %v816_v8  ;;  %v818_v27 = vpop.f32.mrb[6].mxu0 }
 0x125   : > { %975 = vst [vmem:[#allocation2 + $0x30] sm:$0x3] %v866_v7  ;;  %v819_v11 = vpop.f32.mrb[7].mxu0 }
 0x126   : > { %976 = vst [vmem:[#allocation2 + $0x38] sm:$0x3] %v868_v9 }
 0x12b   : > { %v3254_v12 = vpop.f32.mrb[16].mxu1 }
 0x12c   : > { %v963_v13 = vadd.f32 %v3254_v12, %v3156_v44  ;;  %v954_v53 = vpop.f32.mrb[17].mxu1  ;;  %v1644_v47 = vld [vmem:[#allocation2 + $0x30] sm:$0x3] }
 0x12d   : > { %v955_v4 = vadd.f32 %v3150_v54, %v954_v53  ;;  %v3255_v14 = vpop.f32.mrb[18].mxu1  ;;  %v1645_v44 = vld [vmem:[#allocation2 + $0x38] sm:$0x3]  ;;  %v4417_v53 = vld [vmem:[%s4487_s2] sm:$0x7] }
 0x12e   : > { %978 = vst.msk [vmem:[#allocation2 + $0x40] sm:$0x3] %vm977_vm3, %v963_v13  ;;  %v957_v16 = vpop.f32.mrb[19].mxu1 }
 0x12f   : > { %971 = vst.msk [vmem:[#allocation2 + $0x10] sm:$0xff] %vm970_vm4, %v955_v4  ;;  %v958_v59 = vadd.f32 %v3153_v56, %v957_v16 }
 0x131   : > { %974 = vst.msk [vmem:[#allocation2 + $0x28] sm:$0xff] %vm970_vm4, %v958_v59 }
 0x135   : > { %v1646_v36 = vld [vmem:[#allocation2 + $0x40] sm:$0x3] }
 0x136   : > { %v1640_v40 = vld [vmem:[#allocation2 + $0x10] sm:$0xff] }
 0x138   : > { %v1643_v10 = vld [vmem:[#allocation2 + $0x28] sm:$0xff] }
 0x13a   : > { %v3184_v18 = vpop.f32.mrb[8].mxu0 }
 0x13b   : > { %v3185_v20 = vpop.f32.mrb[9].mxu0 }
 0x13c   : > { %v3186_v21 = vadd.f32 %v3185_v20, %v3184_v18  ;;  %v3187_v15 = vpop.f32.mrb[10].mxu0 }
 0x13d   : > { %v3188_v23 = vpop.f32.mrb[11].mxu0 }
 0x13e   : > { %v3189_v24 = vadd.f32 %v3188_v23, %v3187_v15 }
 0x142   : > { %v3190_v25 = vpop.f32.mrb[12].mxu0 }
 0x143   : > { %v3191_v26 = vpop.f32.mrb[13].mxu0 }
 0x144   : > { %v3192_v29 = vadd.f32 %v3191_v26, %v3190_v25  ;;  %v3193_v31 = vpop.f32.mrb[14].mxu0 }
 0x145   : > { %v3194_v32 = vpop.f32.mrb[15].mxu0 }
 0x152   : > { %v3270_v33 = vpop.f32.mrb[16].mxu0 }
 0x153   : > { %v1633_v34 = vadd.f32 %v3270_v33, %v3192_v29  ;;  %v1624_v35 = vpop.f32.mrb[17].mxu0 }
 0x154   : > { %v1625_v37 = vadd.f32 %v3186_v21, %v1624_v35  ;;  %v3271_v38 = vpop.f32.mrb[18].mxu0 }
 0x155   : > { %v1655_v39 = vadd.f32 %v1646_v36, %v1633_v34  ;;  %v1627_v41 = vpop.f32.mrb[19].mxu0 }
 0x156   : > { %v1649_v42 = vadd.f32 %v1640_v40, %v1625_v37  ;;  %v1628_v30 = vadd.f32 %v3189_v24, %v1627_v41 }
 0x157   : > { %1664 = vst.msk [vmem:[#allocation2 + $0x40] sm:$0x3] %vm977_vm3, %v1655_v39 }
 0x158   : > { %1658 = vst.msk [vmem:[#allocation2 + $0x10] sm:$0xff] %vm970_vm4, %v1649_v42  ;;  %v1652_v43 = vadd.f32 %v1643_v10, %v1628_v30 }
 0x15a   : > { %1661 = vst.msk [vmem:[#allocation2 + $0x28] sm:$0xff] %vm970_vm4, %v1652_v43 }
 0x173   : > { %v1484_v2 = vpop.f32.mrb[24].mxu1 }
 0x174   : > { %v1486_v28 = vpop.f32.mrb[25].mxu1 }
 0x175   : > { %v1488_v45 = vpop.f32.mrb[26].mxu1 }
 0x176   : > { %v1489_v46 = vpop.f32.mrb[27].mxu1 }
 0x183   : > { %v1525_v22 = vpop.f32.mrb[20].mxu1 }
 0x184   : > { %v1647_v48 = vadd.f32 %v1525_v22, %v4397_v58  ;;  %v1527_v49 = vpop.f32.mrb[21].mxu1 }
 0x185   : > { %v1648_v50 = vadd.f32 %v1527_v49, %v858_v61  ;;  %v1529_v51 = vpop.f32.mrb[22].mxu1 }
 0x186   : > { %v1650_v52 = vadd.f32 %v1529_v51, %v860_v0  ;;  %v1531_v54 = vpop.f32.mrb[23].mxu1  ;;  %v2362_v0 = vlaneseq }
 0x187   : > { %v1651_v17 = vadd.f32 %v1531_v54, %v862_v5 }
 0x188   : > { %v4407_v5 = vshrl.u32 %v2362_v0, 7  ;;  %vm2481_vm15 = vcmp.lt.s32.totalorder %v2362_v0, 288 }
 0x18a   : > { %v2364_v12 = vsub.s32 0, %v4407_v5  ;;  %v2368_v4 = vsub.s32 1, %v4407_v5 }
 0x18b   : > { %v1535_v55 = vpop.f32.mrb[28].mxu1 }
 0x18c   : > { %v1536_v56 = vadd.f32 %v1535_v55, %v1484_v2  ;;  %v1537_v57 = vpop.f32.mrb[29].mxu1  ;;  %v4421_v14 = vrot.slane %v4417_v53, %v2364_v12  ;;  %v4424_v59 = vrot.slane %v4417_v53, %v2368_v4  ;;  %v2372_v12 = vsub.s32 2, %v4407_v5 }
 0x18d   : > { %v1538_v60 = vadd.f32 %v1537_v57, %v1486_v28  ;;  %v1539_v19 = vpop.f32.mrb[30].mxu1 }
 0x18e   : > { %v1653_v62 = vadd.f32 %v1644_v47, %v1536_v56  ;;  %v1540_v63 = vpop.f32.mrb[31].mxu1 }
 0x18f   : > { %v1654_v1 = vadd.f32 %v1645_v44, %v1538_v60 }
 0x190   : > { %1662 = vst [vmem:[#allocation2 + $0x30] sm:$0x3] %v1653_v62 }
 0x191   : > { %1663 = vst [vmem:[#allocation2 + $0x38] sm:$0x3] %v1654_v1  ;;  %v2332_v1 = vld [vmem:[#allocation2 + $0x40] sm:$0x3] }
 0x197   : > { %v2330_v49 = vld [vmem:[#allocation2 + $0x30] sm:$0x3] }
 0x198   : > { %v2331_v56 = vld [vmem:[#allocation2 + $0x38] sm:$0x3] }
 0x19a   : > { %v2170_v3 = vpop.f32.mrb[24].mxu0 }
 0x19b   : > { %v2172_v58 = vpop.f32.mrb[25].mxu0 }
 0x19c   : > { %v2174_v6 = vpop.f32.mrb[26].mxu0 }
 0x19d   : > { %v2175_v61 = vpop.f32.mrb[27].mxu0 }
 0x19e   : > { %v2326_v61 = vld [vmem:[#allocation2 + $0x10] sm:$0xff] }
 0x1a3   : > { %v3220_v7 = vpop.f32.mrb[32].mxu1 }
 0x1a4   : > { %v3221_v8 = vpop.f32.mrb[33].mxu1 }
 0x1a5   : > { %v4409_v9 = vadd.f32 %v3221_v8, %v3220_v7  ;;  %v3223_v27 = vpop.f32.mrb[34].mxu1 }
 0x1a6   : > { %v3224_v11 = vpop.f32.mrb[35].mxu1 }
 0x1a7   : > { %v4412_v13 = vadd.f32 %v3224_v11, %v3223_v27 }
 0x1aa   : > { %v2211_v16 = vpop.f32.mrb[20].mxu0 }
 0x1ab   : > { %v3226_v18 = vpop.f32.mrb[36].mxu1  ;;  %v2333_v20 = vadd.f32 %v2211_v16, %v1647_v48  ;;  %v2213_v21 = vpop.f32.mrb[21].mxu0 }
 0x1ac   : > { %v3227_v15 = vpop.f32.mrb[37].mxu1  ;;  %v2334_v23 = vadd.f32 %v2213_v21, %v1648_v50  ;;  %v2215_v24 = vpop.f32.mrb[22].mxu0 }
 0x1ad   : > { %v3228_v25 = vadd.f32 %v3227_v15, %v3226_v18  ;;  %v3229_v26 = vpop.f32.mrb[38].mxu1  ;;  %v2377_v29 = vadd.f32 %v4421_v14, %v2333_v20  ;;  %v2336_v31 = vadd.f32 %v2215_v24, %v1650_v52  ;;  %v2217_v32 = vpop.f32.mrb[23].mxu0  ;;  %v2329_v18 = vld [vmem:[#allocation2 + $0x28] sm:$0xff]  ;;  %v2373_v15 = vrot.slane %v4417_v53, %v2372_v12 }
 0x1ae   : > { %v3230_v33 = vpop.f32.mrb[39].mxu1  ;;  %v2378_v34 = vadd.f32 %v4424_v59, %v2334_v23  ;;  %v2337_v35 = vadd.f32 %v2217_v32, %v1651_v17 }
 0x1af   : > { %vm2386_vm5 = vcmp.gt.f32.partialorder %v2377_v29, 0.0  ;;  %v2395_v36 = vmul.f32 0.01, %v2377_v29  ;;  %v2380_v37 = vadd.f32 %v4421_v14, %v2336_v31 }
 0x1b0   : > { %vm2387_vm6 = vcmp.gt.f32.partialorder %v2378_v34, 0.0  ;;  %v2396_v38 = vmul.f32 0.01, %v2378_v34  ;;  %v2381_v39 = vadd.f32 %v4424_v59, %v2337_v35 }
 0x1b1   : > { %v2404_v40 = vsel %vm2386_vm5, %v2377_v29, %v2395_v36  ;;  %vm2389_vm7 = vcmp.gt.f32.partialorder %v2380_v37, 0.0  ;;  %v2398_v41 = vmul.f32 0.01, %v2380_v37 }
 0x1b2   : > { %2413 = vst [vmem:[%s4432_s6] sm:$0xff] %v2404_v40  ;;  %v2405_v42 = vsel %vm2387_vm6, %v2378_v34, %v2396_v38  ;;  %vm2390_vm8 = vcmp.gt.f32.partialorder %v2381_v39, 0.0  ;;  %v2399_v30 = vmul.f32 0.01, %v2381_v39  ;;  %v2221_v10 = vpop.f32.mrb[28].mxu0  ;;  %v2484_v43 = vmul.f32 %v2404_v40, %v2404_v40 }
 0x1b3   : > { %2414 = vst [vmem:[%s4432_s6 + $0x8] sm:$0xff] %v2405_v42  ;;  %v2407_v2 = vsel %vm2389_vm7, %v2380_v37, %v2398_v41  ;;  %v2222_v28 = vadd.f32 %v2221_v10, %v2170_v3  ;;  %v2223_v45 = vpop.f32.mrb[29].mxu0  ;;  %v2485_v52 = vmul.f32 %v2405_v42, %v2405_v42 }
 0x1b4   : > { %2416 = vst [vmem:[%s4432_s6 + $0x18] sm:$0xff] %v2407_v2  ;;  %v2422_v46 = vadd.f32 %v2407_v2, %v2404_v40  ;;  %v2487_v22 = vmul.f32 %v2407_v2, %v2407_v2  ;;  %v2408_v48 = vsel %vm2390_vm8, %v2381_v39, %v2399_v30  ;;  %v2224_v50 = vadd.f32 %v2223_v45, %v2172_v58  ;;  %v2225_v51 = vpop.f32.mrb[30].mxu0 }
 0x1b5   : > { %2417 = vst [vmem:[%s4432_s6 + $0x20] sm:$0xff] %v2408_v48  ;;  %v2432_v54 = vadd.f32 %v2408_v48, %v2405_v42  ;;  %v2488_v17 = vmul.f32 %v2408_v48, %v2408_v48  ;;  %v2339_v55 = vadd.f32 %v2330_v49, %v2222_v28  ;;  %v2226_v57 = vpop.f32.mrb[31].mxu0 }
 0x1b6   : > { %v2493_v47 = vadd.f32 %v2487_v22, %v2484_v43  ;;  %v2340_v60 = vadd.f32 %v2331_v56, %v2224_v50 }
 0x1b7   : > { %v2502_v19 = vadd.f32 %v2488_v17, %v2485_v52  ;;  %2348 = vst [vmem:[#allocation2 + $0x30] sm:$0x3] %v2339_v55 }
 0x1b8   : > { %2349 = vst [vmem:[#allocation2 + $0x38] sm:$0x3] %v2340_v60 }
 0x1bb   : > { %v3286_v62 = vpop.f32.mrb[40].mxu1 }
 0x1bc   : > { %v2319_v44 = vadd.f32 %v3286_v62, %v3228_v25  ;;  %v2310_v63 = vpop.f32.mrb[41].mxu1 }
 0x1bd   : > { %v2311_v3 = vadd.f32 %v4409_v9, %v2310_v63  ;;  %v3287_v58 = vpop.f32.mrb[42].mxu1 }
 0x1be   : > { %v2341_v6 = vadd.f32 %v2332_v1, %v2319_v44  ;;  %v2313_v7 = vpop.f32.mrb[43].mxu1  ;;  %v2357_v8 = vld [vmem:[#allocation2 + $0x30] sm:$0x3] }
 0x1bf   : > { %v2335_v27 = vadd.f32 %v2326_v61, %v2311_v3  ;;  %v2314_v11 = vadd.f32 %v4412_v13, %v2313_v7  ;;  %v2383_v4 = vadd.f32 %v4421_v14, %v2357_v8  ;;  %v2358_v16 = vld [vmem:[#allocation2 + $0x38] sm:$0x3] }
 0x1c0   : > { %2350 = vst.msk [vmem:[#allocation2 + $0x40] sm:$0x3] %vm977_vm3, %v2341_v6  ;;  %v2384_v20 = vadd.f32 %v4424_v59, %v2358_v16 }
 0x1c1   : > { %2344 = vst.msk [vmem:[#allocation2 + $0x10] sm:$0xff] %vm970_vm4, %v2335_v27  ;;  %v2338_v9 = vadd.f32 %v2329_v18, %v2314_v11  ;;  %vm2392_vm9 = vcmp.gt.f32.partialorder %v2383_v4, 0.0  ;;  %v2401_v21 = vmul.f32 0.01, %v2383_v4 }
 0x1c2   : > { %vm2393_vm11 = vcmp.gt.f32.partialorder %v2384_v20, 0.0  ;;  %v2402_v13 = vmul.f32 0.01, %v2384_v20 }
 0x1c3   : > { %2347 = vst.msk [vmem:[#allocation2 + $0x28] sm:$0xff] %vm970_vm4, %v2338_v9  ;;  %v2410_v14 = vsel %vm2392_vm9, %v2383_v4, %v2401_v21 }
 0x1c4   : > { %2419 = vst [vmem:[%s4432_s6 + $0x30] sm:$0x3] %v2410_v14  ;;  %v2424_v23 = vsel %vm2423_vm10, %v2410_v14, 0.0  ;;  %v2490_v24 = vmul.f32 %v2410_v14, %v2410_v14  ;;  %v2411_v25 = vsel %vm2393_vm11, %v2384_v20, %v2402_v13  ;;  %v3627_v14 = vmov 1966171168  }
 0x1c5   : > { %v2425_v59 = vadd.f32 %v2424_v23, %v2422_v46  ;;  %2420 = vst [vmem:[%s4432_s6 + $0x38] sm:$0x3] %v2411_v25  ;;  %v2433_v26 = vsel %vm2423_vm10, %v2411_v25, 0.0  ;;  %v2491_v29 = vmul.f32 %v2411_v25, %v2411_v25  ;;  %v2457_v23 = vunpack.c.l.s4 %v3627_v14 }
 0x1c6   : > { %v2494_v31 = vsel %vm2423_vm10, %v2490_v24, 0.0  ;;  %v2434_v32 = vadd.f32 %v2433_v26, %v2432_v54 }
 0x1c7   : > { %v2359_v33 = vld [vmem:[#allocation2 + $0x40] sm:$0x3]  ;;  %v2426_v34 = vrot.slane %v2425_v59, 4  ;;  %v2495_v35 = vadd.f32 %v2494_v31, %v2493_v47  ;;  %v2503_v36 = vsel %vm2423_vm10, %v2491_v29, 0.0  ;;  %v2458_v29 = vunpack.c.0.s8 %v2457_v23 }
 0x1c8   : > { %v2385_v53 = vadd.f32 %v2373_v15, %v2359_v33  ;;  %v2353_v37 = vld [vmem:[#allocation2 + $0x10] sm:$0xff]  ;;  %v2435_v38 = vrot.slane %v2434_v32, 4  ;;  %v2504_v39 = vadd.f32 %v2503_v36, %v2502_v19 }
 0x1c9   : > { %v2379_v40 = vadd.f32 %v2373_v15, %v2353_v37  ;;  %v2427_v41 = vadd.f32 %v2426_v34, %v2425_v59  ;;  %v2496_v42 = vrot.slane %v2495_v35, 4 }
 0x1ca   : > { %vm2394_vm12 = vcmp.gt.f32.partialorder %v2385_v53, 0.0  ;;  %v2403_v30 = vmul.f32 0.01, %v2385_v53  ;;  %v2356_v10 = vld [vmem:[#allocation2 + $0x28] sm:$0xff]  ;;  %v2436_v43 = vadd.f32 %v2435_v38, %v2434_v32  ;;  %v2505_v2 = vrot.slane %v2504_v39, 4 }
 0x1cb   : > { %vm2388_vm13 = vcmp.gt.f32.partialorder %v2379_v40, 0.0  ;;  %v2397_v28 = vmul.f32 0.01, %v2379_v40  ;;  %v2428_v45 = vrot.slane %v2427_v41, 2  ;;  %v2497_v46 = vadd.f32 %v2496_v42, %v2495_v35 }
 0x1cc   : > { %v2412_v22 = vsel %vm2394_vm12, %v2385_v53, %v2403_v30  ;;  %v2382_v48 = vadd.f32 %v2373_v15, %v2356_v10  ;;  %v2437_v49 = vrot.slane %v2436_v43, 2  ;;  %v2506_v50 = vadd.f32 %v2505_v2, %v2504_v39 }
 0x1cd   : > { %2421 = vst.msk [vmem:[%s4432_s6 + $0x40] sm:$0x3] %vm977_vm3, %v2412_v22  ;;  %v2429_v51 = vadd.f32 %v2428_v45, %v2427_v41  ;;  %v2498_v52 = vrot.slane %v2497_v46, 2  ;;  %v2406_v54 = vsel %vm2388_vm13, %v2379_v40, %v2397_v28  ;;  %v2492_v62 = vmul.f32 %v2412_v22, %v2412_v22 }
 0x1ce   : > { %v2438_v17 = vadd.f32 %v2437_v49, %v2436_v43  ;;  %v2507_v55 = vrot.slane %v2506_v50, 2  ;;  %2415 = vst.msk [vmem:[%s4432_s6 + $0x10] sm:$0xff] %vm970_vm4, %v2406_v54  ;;  %vm2391_vm14 = vcmp.gt.f32.partialorder %v2382_v48, 0.0  ;;  %v2400_v47 = vmul.f32 0.01, %v2382_v48 }
 0x1cf   : > { %v2430_v56 = vrot.slane %v2429_v51, 1  ;;  %v2499_v57 = vadd.f32 %v2498_v52, %v2497_v46  ;;  %v2486_v44 = vmul.f32 %v2406_v54, %v2406_v54  ;;  %v2441_v3 = vsel %vm970_vm4, %v2406_v54, 0.0 }
 0x1d0   : > { %v2439_v60 = vrot.slane %v2438_v17, 1  ;;  %v2508_v19 = vadd.f32 %v2507_v55, %v2506_v50  ;;  %v2409_v58 = vsel %vm2391_vm14, %v2382_v48, %v2400_v47  ;;  %v2444_v11 = vsel %vm977_vm3, %v2412_v22, 0.0 }
 0x1d1   : > { %v2431_v63 = vadd.f32 %v2430_v56, %v2429_v51  ;;  %v2500_v1 = vrot.slane %v2499_v57, 1  ;;  %2418 = vst.msk [vmem:[%s4432_s6 + $0x28] sm:$0xff] %vm970_vm4, %v2409_v58  ;;  %v2442_v7 = vsel %vm970_vm4, %v2409_v58, 0.0  ;;  %v2489_v8 = vmul.f32 %v2409_v58, %v2409_v58 }
 0x1d2   : > { %v2440_v6 = vadd.f32 %v2439_v60, %v2438_v17  ;;  %v2509_v61 = vrot.slane %v2508_v19, 1  ;;  %v2443_v12 = vadd.f32 %v2442_v7, %v2441_v3  ;;  %v2511_v18 = vsel %vm970_vm4, %v2486_v44, 0.0 }
 0x1d3   : > { %v2501_v27 = vadd.f32 %v2500_v1, %v2499_v57  ;;  %v2512_v20 = vsel %vm970_vm4, %v2489_v8, 0.0  ;;  %v2514_v15 = vsel %vm977_vm3, %v2492_v62, 0.0  ;;  %v2461_v35 = vsub.s32 %v2458_v29, %v4407_v5 }
 0x1d4   : > { %v2455_v4 = vcombine.low %v2431_v63, %v2440_v6  ;;  %v2510_v16 = vadd.f32 %v2509_v61, %v2508_v19  ;;  %v2445_v9 = vadd.f32 %v2444_v11, %v2443_v12  ;;  %v2513_v21 = vadd.f32 %v2512_v20, %v2511_v18 }
 0x1d6   : > { %v2525_v13 = vcombine.low %v2501_v27, %v2510_v16  ;;  %v2446_v24 = vrot.slane %v2445_v9, 4  ;;  %v2515_v25 = vadd.f32 %v2514_v15, %v2513_v21  ;;  %v2462_v39 = vrot.slane %v2455_v4, %v2461_v35 }
 0x1d8   : > { %v2447_v59 = vadd.f32 %v2446_v24, %v2445_v9  ;;  %v2516_v26 = vrot.slane %v2515_v25, 4  ;;  %v2532_v42 = vrot.slane %v2525_v13, %v2461_v35 }
 0x1da   : > { %v2448_v31 = vrot.slane %v2447_v59, 2  ;;  %v2517_v32 = vadd.f32 %v2516_v26, %v2515_v25 }
 0x1dc   : > { %v2449_v33 = vadd.f32 %v2448_v31, %v2447_v59  ;;  %v2518_v34 = vrot.slane %v2517_v32, 2 }
 0x1de   : > { %v2450_v36 = vrot.slane %v2449_v33, 1  ;;  %v2519_v53 = vadd.f32 %v2518_v34, %v2517_v32 }
 0x1e0   : > { %v2451_v37 = vadd.f32 %v2450_v36, %v2449_v33  ;;  %v2520_v38 = vrot.slane %v2519_v53, 1 }
 0x1e2   : > { %v2469_v40 = vrot.slane %v2451_v37, %v2461_v35  ;;  %v2521_v41 = vadd.f32 %v2520_v38, %v2519_v53 }
 0x1e4   : > { %v2470_v30 = vcombine.low %v2462_v39, %v2469_v40  ;;  %v2539_v10 = vrot.slane %v2521_v41, %v2461_v35 }
 0x1e6   : > { %v2477_v43 = vrot.slane %v2470_v30, %v2461_v35  ;;  %v2540_v2 = vcombine.low %v2532_v42, %v2539_v10 }
 0x1e8   : > { %2483 = vst.msk [vmem:[%s282_s10] sm:$0x7] %vm2481_vm15, %v2477_v43  ;;  %v2547_v5 = vrot.slane %v2540_v2, %v2461_v35 }
 0x1ea   : > { %2549 = vst.msk [vmem:[%s290_s13] sm:$0x7] %vm2481_vm15, %v2547_v5 }
 0x1eb PF: > { %s16_s20 = sadd.s32 1, %s3624_s20   ;;  %s4491_s18 = smov %s3620_s19 }
 0x1ec   : > { %p13_p5 = scmp.ge.s32.totalorder %s16_s20, 4   ;;  %s4492_s19 = smov %s4494_s21 }
 0x1ee   :  { %15 = sbr.rel (!%p13_p5) target bundleno = 2 (0x2), region = 88 }

// kernel: duck_conv2d_block.40
= control target key start
LH: loop header
LB: loop body
LE: loop exit
PB: predicated region body
PF: predicated region fallthrough
CT: control target
= control target key end

     0   :  { %s1074_s13 = smov 0   ;;  %s1231_s0 = inlined_call_operand.vmem [shape: f32[32,256], index: 0, kind: input, shape index: {}]   ;;  %s1232_s1 = inlined_call_operand.vmem [shape: f32[32,256], index: 1, kind: input, shape index: {}]   ;;  %s1233_s2 = inlined_call_operand.vmem [shape: f32[32,256], index: 2, kind: input, shape index: {}]   ;;  %s1234_s3 = inlined_call_operand.vmem [shape: f32[32,256], index: 3, kind: input, shape index: {}]   ;;  %s1235_s4 = inlined_call_operand.vmem [shape: f32[32,256], index: 4, kind: input, shape index: {}]   ;;  %s1236_s5 = inlined_call_operand.vmem [shape: f32[32,256], index: 5, kind: input, shape index: {}]   ;;  %s1237_s6 = inlined_call_operand.vmem [shape: f32[6,256], index: 6, kind: input, shape index: {}]   ;;  %s1238_s7 = inlined_call_operand.vmem [shape: f32[6,256], index: 7, kind: input, shape index: {}]   ;;  %s1239_s8 = inlined_call_operand.vmem [shape: f32[32,256], index: 8, kind: output, shape index: {0}]   ;;  %s1240_s9 = inlined_call_operand.vmem [shape: f32[2,1,256], index: 9, kind: output, shape index: {1}]   ;;  %s1241_s10 = inlined_call_operand.vmem [shape: f32[2,1,256], index: 10, kind: output, shape index: {2}]  }
   0x1 LB: > { %s1080_s14 = sadd.s32 4294967295, %s1016_s13   ;;  %p968_p0 = scmp.ge.s32.totalorder %s1016_s13, 1  ;;  %s1016_s13 = sphi %s1074_s13, %s21_s13  }
   0x2   : > { %p379_p1 = scmp.lt.s32.totalorder %s1016_s13, 3 }
   0x4   : > { %p380_p2 = pnand %p968_p0, %p379_p1 }
   0x5   : > { %s969_s15 = sshll.u32 (!%p380_p2), %s1080_s14, 1  ;;  %v522_v0 = vlaneseq (!%p380_p2)  ;;  %v514_v2 = vld [vmem:[%s1237_s6] sm:$0x3f] (!%p380_p2)  ;;  %v1117_v10 = vld [vmem:[%s1237_s6 + $0x8] sm:$0x3f] (!%p380_p2)  ;;  %p506_p4 = scmp.lt.s32.totalorder (!%p380_p2), %s1080_s14, 1 }
   0x6   : > { %383 = sbr.rel (%p380_p2) target bundleno = 68 (0x44), region = 52  ;;  %p458_p3 = scmp.lt.s32.totalorder (!%p380_p2), %s969_s15, 3  ;;  %v1094_v3 = vld [vmem:[%s1238_s7] sm:$0x3f] (!%p380_p2)  ;;  %v1133_v14 = vld [vmem:[%s1238_s7 + $0x8] sm:$0x3f] (!%p380_p2) }
   0x7   : > { %v1086_v1 = vshrl.u32 (!%p380_p2), %v522_v0, 7  ;;  %vm744_vm0 = vcmp.lt.s32.totalorder (!%p380_p2), %v522_v0, 256 }
   0x9   : > { %v524_v4 = vsub.s32 (!%p380_p2), 0, %v1086_v1  ;;  %v552_v5 = vsub.s32 (!%p380_p2), 1, %v1086_v1  ;;  %v584_v6 = vsub.s32 (!%p380_p2), 2, %v1086_v1  ;;  %v1128_v13 = vsub.s32 (!%p380_p2), 3, %v1086_v1 }
   0xa   : > { %v1143_v19 = vsub.s32 (!%p380_p2), 4, %v1086_v1  ;;  %v1165_v35 = vsub.s32 (!%p380_p2), 5, %v1086_v1 }
   0xb   : > { %v525_v7 = vrot.slane (!%p380_p2), %v514_v2, %v524_v4  ;;  %v537_v8 = vrot.slane (!%p380_p2), %v1094_v3, %v524_v4  ;;  %v553_v9 = vrot.slane (!%p380_p2), %v514_v2, %v552_v5  ;;  %v585_v17 = vrot.slane (!%p380_p2), %v514_v2, %v584_v6 }
   0xc   : > { %v569_v22 = vrot.slane (!%p380_p2), %v1094_v3, %v552_v5  ;;  %v529_v23 = vrot.slane (!%p380_p2), %v1117_v10, %v524_v4  ;;  %v541_v24 = vrot.slane (!%p380_p2), %v1133_v14, %v524_v4  ;;  %v617_v26 = vrot.slane (!%p380_p2), %v514_v2, %v1128_v13 }
   0xd   : > { %s1243_s15 = smov (!%p458_p3, %s969_s15), 3  ;;  %v557_v27 = vrot.slane %v1117_v10, %v552_v5  ;;  %v589_v32 = vrot.slane %v1117_v10, %v584_v6  ;;  %v1162_v34 = vrot.slane %v514_v2, %v1143_v19  ;;  %v601_v40 = vrot.slane %v1094_v3, %v584_v6  ;;  %s1245_s14 = smov (!%p506_p4, %s1080_s14), 1 }
   0xe   : > { %s1099_s20 = sshll.u32 %s1243_s15, 4  ;;  %v573_v43 = vrot.slane %v1133_v14, %v552_v5  ;;  %v621_v45 = vrot.slane %v1117_v10, %v1128_v13  ;;  %v633_v54 = vrot.slane %v1094_v3, %v1128_v13  ;;  %v681_v56 = vrot.slane %v514_v2, %v1165_v35 }
   0xf   : > { %s1105_s23 = scalar_lea.vmem %s1231_s0, %s1099_s20  ;;  %s1111_s26 = scalar_lea.vmem %s1232_s1, %s1099_s20  ;;  %v605_v61 = vrot.slane %v1133_v14, %v584_v6  ;;  %v653_v63 = vrot.slane %v1117_v10, %v1143_v19  ;;  %v665_v6 = vrot.slane %v1094_v3, %v1143_v19 }
  0x10   : > { %s1123_s11 = scalar_lea.vmem %s1233_s2, %s1099_s20  ;;  %v518_v11 = vld [vmem:[%s1105_s23] sm:$0xff]  ;;  %s1139_s18 = scalar_lea.vmem %s1234_s3, %s1099_s20  ;;  %v519_v20 = vld [vmem:[%s1105_s23 + $0x8] sm:$0xff]  ;;  %v520_v33 = vld [vmem:[%s1105_s23 + $0x10] sm:$0xff] }
  0x11   : > { %v546_v12 = vld [vmem:[%s1111_s26] sm:$0xff]  ;;  %v530_v15 = vmul.f32 %v525_v7, %v518_v11  ;;  %v547_v25 = vld [vmem:[%s1111_s26 + $0x8] sm:$0xff]  ;;  %s1154_s22 = scalar_lea.vmem %s1235_s4, %s1099_s20  ;;  %v531_v31 = vmul.f32 %v529_v23, %v519_v20  ;;  %v548_v38 = vld [vmem:[%s1111_s26 + $0x10] sm:$0xff]  ;;  %v532_v46 = vmul.f32 %v525_v7, %v520_v33  ;;  %s1181_s27 = scalar_lea.vmem %s1236_s5, %s1099_s20  ;;  %v637_v20 = vrot.slane %v1133_v14, %v1128_v13 }
  0x12   : > { %v558_v16 = vmul.f32 %v553_v9, %v546_v12  ;;  %v578_v18 = vld [vmem:[%s1123_s11] sm:$0xff]  ;;  %v559_v36 = vmul.f32 %v557_v27, %v547_v25  ;;  %v579_v37 = vld [vmem:[%s1123_s11 + $0x8] sm:$0xff]  ;;  %v521_v47 = vld [vmem:[%s1105_s23 + $0x18] sm:$0xff]  ;;  %v560_v51 = vmul.f32 %v553_v9, %v548_v38  ;;  %s504_s28 = scalar_lea.vmem %s1239_s8, %s1099_s20  ;;  %s990_s20 = sshll.u32 %s1245_s14, 1 }
  0x13   : > { %v542_v21 = vadd.f32 %v537_v8, %v530_v15  ;;  %v590_v29 = vmul.f32 %v585_v17, %v578_v18  ;;  %v610_v30 = vld [vmem:[%s1139_s18] sm:$0xff]  ;;  %v543_v42 = vadd.f32 %v541_v24, %v531_v31  ;;  %v591_v50 = vmul.f32 %v589_v32, %v579_v37  ;;  %v580_v52 = vld [vmem:[%s1123_s11 + $0x10] sm:$0xff]  ;;  %v549_v53 = vld [vmem:[%s1111_s26 + $0x18] sm:$0xff]  ;;  %s513_s16 = scalar_lea.vmem %s1241_s10, %s990_s20 }
  0x14   : > { %v642_v41 = vld [vmem:[%s1154_s22] sm:$0xff]  ;;  %v622_v44 = vmul.f32 %v617_v26, %v610_v30  ;;  %v611_v57 = vld [vmem:[%s1139_s18 + $0x8] sm:$0xff]  ;;  %v544_v58 = vadd.f32 %v537_v8, %v532_v46  ;;  %v533_v62 = vmul.f32 %v529_v23, %v521_v47  ;;  %v592_v5 = vmul.f32 %v585_v17, %v580_v52  ;;  %v581_v9 = vld [vmem:[%s1123_s11 + $0x18] sm:$0xff]  ;;  %s509_s11 = scalar_lea.vmem %s1240_s9, %s990_s20 }
  0x15   : > { %v562_v28 = vadd.f32 %v558_v16, %v542_v21  ;;  %v563_v49 = vadd.f32 %v559_v36, %v543_v42  ;;  %v654_v55 = vmul.f32 %v1162_v34, %v642_v41  ;;  %v561_v7 = vmul.f32 %v557_v27, %v549_v53  ;;  %v674_v12 = vld [vmem:[%s1181_s27] sm:$0xff]  ;;  %v643_v16 = vld [vmem:[%s1154_s22 + $0x8] sm:$0xff]  ;;  %v612_v18 = vld [vmem:[%s1139_s18 + $0x10] sm:$0xff] }
  0x16   : > { %v564_v4 = vadd.f32 %v560_v51, %v544_v58  ;;  %v623_v2 = vmul.f32 %v621_v45, %v611_v57  ;;  %v545_v8 = vadd.f32 %v541_v24, %v533_v62  ;;  %v593_v27 = vmul.f32 %v589_v32, %v581_v9  ;;  %v613_v33 = vld [vmem:[%s1139_s18 + $0x18] sm:$0xff]  ;;  %v644_v38 = vld [vmem:[%s1154_s22 + $0x10] sm:$0xff] }
  0x17   : > { %v574_v39 = vadd.f32 %v569_v22, %v562_v28  ;;  %v575_v60 = vadd.f32 %v573_v43, %v563_v49  ;;  %v686_v28 = vmul.f32 %v681_v56, %v674_v12  ;;  %v624_v31 = vmul.f32 %v617_v26, %v612_v18  ;;  %v676_v51 = vld [vmem:[%s1181_s27 + $0x10] sm:$0xff]  ;;  %v677_v58 = vld [vmem:[%s1181_s27 + $0x18] sm:$0xff] }
  0x18   : > { %v576_v21 = vadd.f32 %v569_v22, %v564_v4  ;;  %v565_v25 = vadd.f32 %v561_v7, %v545_v8  ;;  %v685_v37 = vrot.slane %v1117_v10, %v1165_v35  ;;  %v697_v22 = vrot.slane %v1094_v3, %v1165_v35  ;;  %v645_v10 = vld [vmem:[%s1154_s22 + $0x18] sm:$0xff] }
  0x19   : > { %v594_v48 = vadd.f32 %v590_v29, %v574_v39  ;;  %v595_v15 = vadd.f32 %v591_v50, %v575_v60  ;;  %v655_v29 = vmul.f32 %v653_v63, %v643_v16  ;;  %v669_v32 = vrot.slane %v1133_v14, %v1143_v19  ;;  %v675_v39 = vld [vmem:[%s1181_s27 + $0x8] sm:$0xff] }
  0x1a   : > { %v596_v30 = vadd.f32 %v592_v5, %v576_v21  ;;  %v577_v13 = vadd.f32 %v573_v43, %v565_v25  ;;  %v625_v46 = vmul.f32 %v621_v45, %v613_v33  ;;  %v687_v50 = vmul.f32 %v685_v37, %v675_v39 }
  0x1b   : > { %v606_v59 = vadd.f32 %v601_v40, %v594_v48  ;;  %v607_v17 = vadd.f32 %v605_v61, %v595_v15  ;;  %v656_v48 = vmul.f32 %v1162_v34, %v644_v38  ;;  %v701_v19 = vrot.slane %v1133_v14, %v1165_v35 }
  0x1c   : > { %v608_v41 = vadd.f32 %v601_v40, %v596_v30  ;;  %v688_v57 = vmul.f32 %v681_v56, %v676_v51  ;;  %v689_v5 = vmul.f32 %v685_v37, %v677_v58 }
  0x1d   : > { %v626_v11 = vadd.f32 %v622_v44, %v606_v59  ;;  %v627_v36 = vadd.f32 %v623_v2, %v607_v17  ;;  %v597_v44 = vadd.f32 %v593_v27, %v577_v13 }
  0x1e   : > { %v628_v47 = vadd.f32 %v624_v31, %v608_v41 }
  0x1f   : > { %v638_v23 = vadd.f32 %v633_v54, %v626_v11  ;;  %v639_v42 = vadd.f32 %v637_v20, %v627_v36  ;;  %v609_v3 = vadd.f32 %v605_v61, %v597_v44 }
  0x20   : > { %v640_v40 = vadd.f32 %v633_v54, %v628_v47 }
  0x21   : > { %v658_v24 = vadd.f32 %v654_v55, %v638_v23  ;;  %v659_v43 = vadd.f32 %v655_v29, %v639_v42  ;;  %v629_v53 = vadd.f32 %v625_v46, %v609_v3  ;;  %v657_v55 = vmul.f32 %v653_v63, %v645_v10 }
  0x22   : > { %v660_v34 = vadd.f32 %v656_v48, %v640_v40 }
  0x23   : > { %v670_v26 = vadd.f32 %v665_v6, %v658_v24  ;;  %v671_v45 = vadd.f32 %v669_v32, %v659_v43  ;;  %v641_v60 = vadd.f32 %v637_v20, %v629_v53 }
  0x24   : > { %v672_v62 = vadd.f32 %v665_v6, %v660_v34 }
  0x25   : > { %v690_v49 = vadd.f32 %v686_v28, %v670_v26  ;;  %v691_v59 = vadd.f32 %v687_v50, %v671_v45  ;;  %v661_v4 = vadd.f32 %v657_v55, %v641_v60  ;;  %v1018_v28 = vmov 1966171168  }
  0x26   : > { %v692_v7 = vadd.f32 %v688_v57, %v672_v62  ;;  %v728_v29 = vunpack.c.l.s4 %v1018_v28 }
  0x27   : > { %v702_v52 = vadd.f32 %v697_v22, %v690_v49  ;;  %v703_v61 = vadd.f32 %v701_v19, %v691_v59  ;;  %v673_v9 = vadd.f32 %v669_v32, %v661_v4 }
  0x28   : > { %v704_v14 = vadd.f32 %v697_v22, %v692_v7  ;;  %v729_v13 = vunpack.c.0.s8 %v728_v29 }
  0x29   : > { %706 = vst [vmem:[%s504_s28] sm:$0xff] %v702_v52  ;;  %707 = vst [vmem:[%s504_s28 + $0x8] sm:$0xff] %v703_v61  ;;  %v747_v11 = vmul.f32 %v702_v52, %v702_v52  ;;  %v693_v35 = vadd.f32 %v689_v5, %v673_v9  ;;  %v748_v63 = vmul.f32 %v703_v61, %v703_v61 }
  0x2a   : > { %708 = vst [vmem:[%s504_s28 + $0x10] sm:$0xff] %v704_v14  ;;  %v710_v54 = vadd.f32 %v704_v14, %v702_v52  ;;  %v749_v12 = vmul.f32 %v704_v14, %v704_v14  ;;  %v732_v44 = vsub.s32 %v729_v13, %v1086_v1 }
  0x2b   : > { %v705_v15 = vadd.f32 %v701_v19, %v693_v35 }
  0x2c   : > { %v711_v56 = vrot.slane %v710_v54, 4  ;;  %v751_v2 = vadd.f32 %v749_v12, %v747_v11 }
  0x2d   : > { %709 = vst [vmem:[%s504_s28 + $0x18] sm:$0xff] %v705_v15  ;;  %v717_v16 = vadd.f32 %v705_v15, %v703_v61  ;;  %v750_v18 = vmul.f32 %v705_v15, %v705_v15 }
  0x2e   : > { %v712_v8 = vadd.f32 %v711_v56, %v710_v54  ;;  %v752_v6 = vrot.slane %v751_v2, 4 }
  0x2f   : > { %v718_v20 = vrot.slane %v717_v16, 4  ;;  %v758_v21 = vadd.f32 %v750_v18, %v748_v63 }
  0x30   : > { %v713_v23 = vrot.slane %v712_v8, 2  ;;  %v753_v17 = vadd.f32 %v752_v6, %v751_v2 }
  0x31   : > { %v719_v25 = vadd.f32 %v718_v20, %v717_v16  ;;  %v759_v27 = vrot.slane %v758_v21, 4 }
  0x32   : > { %v714_v30 = vadd.f32 %v713_v23, %v712_v8  ;;  %v754_v31 = vrot.slane %v753_v17, 2 }
  0x33   : > { %v720_v33 = vrot.slane %v719_v25, 2  ;;  %v760_v24 = vadd.f32 %v759_v27, %v758_v21 }
  0x34   : > { %v715_v36 = vrot.slane %v714_v30, 1  ;;  %v755_v37 = vadd.f32 %v754_v31, %v753_v17 }
  0x35   : > { %v721_v38 = vadd.f32 %v720_v33, %v719_v25  ;;  %v761_v22 = vrot.slane %v760_v24, 2 }
  0x36   : > { %v756_v32 = vrot.slane %v755_v37, 1  ;;  %v716_v39 = vadd.f32 %v715_v36, %v714_v30 }
  0x37   : > { %v722_v41 = vrot.slane %v721_v38, 1  ;;  %v762_v26 = vadd.f32 %v761_v22, %v760_v24 }
  0x38   : > { %v757_v46 = vadd.f32 %v756_v32, %v755_v37 }
  0x39   : > { %v723_v42 = vadd.f32 %v722_v41, %v721_v38  ;;  %v763_v47 = vrot.slane %v762_v26, 1 }
  0x3b   : > { %v726_v48 = vcombine.low %v716_v39, %v723_v42  ;;  %v764_v10 = vadd.f32 %v763_v47, %v762_v26 }
  0x3d   : > { %v733_v49 = vrot.slane %v726_v48, %v732_v44  ;;  %v767_v43 = vcombine.low %v757_v46, %v764_v10 }
  0x3f   : > { %v740_v50 = vrot.slane %v733_v49, %v732_v44  ;;  %v774_v51 = vrot.slane %v767_v43, %v732_v44 }
  0x41   : > { %746 = vst.msk [vmem:[%s509_s11] sm:$0x3] %vm744_vm0, %v740_v50  ;;  %v781_v1 = vrot.slane %v774_v51, %v732_v44 }
  0x43   : > { %783 = vst.msk [vmem:[%s513_s16] sm:$0x3] %vm744_vm0, %v781_v1 }
  0x44 PF: > { %s21_s13 = sadd.s32 1, %s1016_s13  }
  0x45   : > { %p18_p5 = scmp.ge.s32.totalorder %s21_s13, 4  }
  0x47   :  { %20 = sbr.rel (!%p18_p5) target bundleno = 1 (0x1), region = 121 }

// kernel: duck_conv2d_block.41
= control target key start
LH: loop header
LB: loop body
LE: loop exit
PB: predicated region body
PF: predicated region fallthrough
CT: control target
= control target key end

     0   :  { %s328_s12 = smov 0   ;;  %s351_s0 = inlined_call_operand.vmem [shape: f32[32,256], index: 0, kind: input, shape index: {}]   ;;  %s352_s1 = inlined_call_operand.vmem [shape: f32[1,256], index: 1, kind: input, shape index: {}]   ;;  %s353_s2 = inlined_call_operand.vmem [shape: f32[1,256], index: 2, kind: input, shape index: {}]   ;;  %s354_s3 = inlined_call_operand.vmem [shape: f32[32,256], index: 3, kind: output, shape index: {}]  }
   0x1 LB: > { %s277_s13 = sadd.s32 4294967295, %s306_s12   ;;  %p281_p0 = scmp.ge.s32.totalorder %s306_s12, 1  ;;  %s306_s12 = sphi %s328_s12, %s13_s12  }
   0x2   : > { %p139_p1 = scmp.lt.s32.totalorder %s306_s12, 3 }
   0x4   : > { %p140_p2 = pnand %p281_p0, %p139_p1 }
   0x5   : > { %s282_s14 = sshll.u32 (!%p140_p2), %s277_s13, 1  ;;  %v185_v0 = vlaneseq (!%p140_p2)  ;;  %v183_v2 = vld [vmem:[%s352_s1] sm:$0x3] (!%p140_p2) }
   0x6   : > { %143 = sbr.rel (%p140_p2) target bundleno = 23 (0x17), region = 32  ;;  %p166_p3 = scmp.lt.s32.totalorder (!%p140_p2), %s282_s14, 3  ;;  %v199_v3 = vld [vmem:[%s353_s2] sm:$0x3] (!%p140_p2) }
   0x7   : > { %v186_v1 = vshrl.u32 (!%p140_p2), %v185_v0, 7 }
   0x9   : > { %v187_v4 = vsub.s32 (!%p140_p2), 0, %v186_v1  ;;  %v191_v5 = vsub.s32 (!%p140_p2), 1, %v186_v1 }
   0xb   : > { %v188_v6 = vrot.slane (!%p140_p2), %v183_v2, %v187_v4  ;;  %v204_v7 = vrot.slane (!%p140_p2), %v199_v3, %v187_v4  ;;  %v192_v8 = vrot.slane (!%p140_p2), %v183_v2, %v191_v5  ;;  %v208_v9 = vrot.slane (!%p140_p2), %v199_v3, %v191_v5 }
   0xd   : > { %s356_s14 = smov (!%p166_p3, %s282_s14), 3 }
   0xe   : > { %s290_s19 = sshll.u32 %s356_s14, 4 }
   0xf   : > { %s170_s22 = scalar_lea.vmem %s351_s0, %s290_s19  ;;  %s177_s25 = scalar_lea.vmem %s354_s3, %s290_s19 }
  0x10   : > { %v179_v10 = vld [vmem:[%s170_s22] sm:$0xff]  ;;  %v180_v11 = vld [vmem:[%s170_s22 + $0x8] sm:$0xff]  ;;  %v181_v12 = vld [vmem:[%s170_s22 + $0x10] sm:$0xff] }
  0x11   : > { %v195_v13 = vmul.f32 %v188_v6, %v179_v10  ;;  %v196_v14 = vmul.f32 %v192_v8, %v180_v11  ;;  %v197_v15 = vmul.f32 %v188_v6, %v181_v12  ;;  %v182_v16 = vld [vmem:[%s170_s22 + $0x18] sm:$0xff] }
  0x12   : > { %v198_v17 = vmul.f32 %v192_v8, %v182_v16 }
  0x13   : > { %v211_v18 = vadd.f32 %v204_v7, %v195_v13  ;;  %v212_v19 = vadd.f32 %v208_v9, %v196_v14  ;;  %v213_v20 = vadd.f32 %v204_v7, %v197_v15 }
  0x14   : > { %v214_v21 = vadd.f32 %v208_v9, %v198_v17 }
  0x15   : > { %215 = vst [vmem:[%s177_s25] sm:$0xff] %v211_v18  ;;  %216 = vst [vmem:[%s177_s25 + $0x8] sm:$0xff] %v212_v19 }
  0x16   : > { %217 = vst [vmem:[%s177_s25 + $0x10] sm:$0xff] %v213_v20  ;;  %218 = vst [vmem:[%s177_s25 + $0x18] sm:$0xff] %v214_v21 }
  0x17 PF: > { %s13_s12 = sadd.s32 1, %s306_s12  }
  0x18   : > { %p10_p4 = scmp.ge.s32.totalorder %s13_s12, 4  }
  0x1a   :  { %12 = sbr.rel (!%p10_p4) target bundleno = 1 (0x1), region = 62 }

</bundles_post_ra>
